<compile_context>
chip_gen: v6e
topology: v6e:2x2x1
jax: 0.10.0
libtpu: 0.0.40
codegen_flags: <defaults>
</compile_context>

<pallas_src>
import functools
import numpy as np
import jax
import jax.numpy as jnp
from jax.experimental import pallas as pl
from jax.experimental.pallas import tpu as pltpu


def _round_up(x, m):
    return ((x + m - 1) // m) * m


# ----------------------------------------------------------------------------
# Fused Pallas kernel (one grid step == one batch tile of TB elements)
# ----------------------------------------------------------------------------
def _duel_net_kernel(x_ref,
                     m1_ref, s1_ref, m2_ref, s2_ref,
                     m3_ref, s3_ref, m4_ref, s4_ref,
                     w1_ref, b1_ref, w2_ref, b2_ref,
                     q_ref, *, n_act):
    """x_ref : (H, TB, W*Cin)      bf16 input tile (height, batch, w*c layout)
       m*_ref: (3, W*Cin, Wo*Cout) bf16 block-Toeplitz conv weights (BN folded)
       s*_ref: (1, Wo*Cout)        f32 folded BN shift
       w1_ref: (Ho, Wo*Cout, NH2)  bf16 combined state|adv head-1 weights
       b1_ref: (1, NH2)            f32
       w2_ref: (NH2, Apad)         bf16 (col 0 = V, cols 1..A = advantages)
       b2_ref: (1, Apad)           f32
       q_ref : (TB, Apad)          f32 (cols 1..A hold Q; rest is ignored pad)
    """

    def conv3x3_bn_relu(a, m_ref, s_ref):
        # a: (h, TB, K) bf16 -> (h-2, TB, N) bf16.  3 lane-dense MXU matmuls
        # (one per kernel row) with M = (h-2)*TB.
        h, tb, k = a.shape
        ho = h - 2
        n = m_ref.shape[-1]
        acc = jnp.dot(a[0:ho].reshape(ho * tb, k), m_ref[0],
                      preferred_element_type=jnp.float32)
        for ki in (1, 2):
            acc = acc + jnp.dot(a[ki:ki + ho].reshape(ho * tb, k), m_ref[ki],
                                preferred_element_type=jnp.float32)
        acc = jnp.maximum(acc + s_ref[...], 0.0)
        return acc.astype(jnp.bfloat16).reshape(ho, tb, n)

    a = x_ref[...]                                 # (16, TB,  64)
    a = conv3x3_bn_relu(a, m1_ref, s1_ref)         # (14, TB, 224)
    a = conv3x3_bn_relu(a, m2_ref, s2_ref)         # (12, TB, 384)
    a = conv3x3_bn_relu(a, m3_ref, s3_ref)         # (10, TB, 320)
    a = conv3x3_bn_relu(a, m4_ref, s4_ref)         # ( 8, TB, 512)

    # Head layer 1: 4096-long contraction split by conv output row (leading
    # dim -> free extraction); w1 rows are pre-permuted from torch's (C,H,W)
    # flatten order so the (h, w*C + c) layout is consumed directly.
    hid = jnp.dot(a[0], w1_ref[0], preferred_element_type=jnp.float32)
    for r in range(1, a.shape[0]):
        hid = hid + jnp.dot(a[r], w1_ref[r],
                            preferred_element_type=jnp.float32)
    hid = jnp.maximum(hid + b1_ref[...], 0.0).astype(jnp.bfloat16)   # (TB,NH2)

    # Head layer 2 + dueling combine.  Column 0 = V, columns 1..A = advantage.
    o = jnp.dot(hid, w2_ref[...], preferred_element_type=jnp.float32) + b2_ref[...]
    mean_av = jnp.mean(o[:, 1:1 + n_act], axis=1, keepdims=True)
    q_ref[...] = o[:, 0:1] + (o - mean_av)     # lane-dense (TB, 128) store


def _const_spec(shape):
    zeros = (0,) * len(shape)
    return pl.BlockSpec(shape, lambda b, _z=zeros: _z)


def duel_network_forward(x_nchw, params, *, n_act, tb=128):
    """x_nchw: (B, stack_size, x_size, y_size) like the torch module."""
    (m1, m2, m3, m4), (s1, s2, s3, s4), w1, b1, w2, b2 = params
    B, cin, H, W = x_nchw.shape
    apad = w2.shape[-1]

    # Batch tile: multiple of 16 (bf16 sublane packing) so in-kernel reshapes
    # (rows, TB, lanes) <-> (rows*TB, lanes) stay tile-aligned.  Pick tb such
    # that ceil(B/tb) >= 2 on v7x large batches to feed both TensorCores.
    tb = min(int(tb), _round_up(B, 16))
    tb = max(16, _round_up(tb, 16))
    b_pad = _round_up(B, tb)

    # NCHW -> (H, B, W*Cin): batch on the sublane axis, (w, c) on lanes.
    x = jnp.transpose(x_nchw, (2, 0, 3, 1)).reshape(H, B, W * cin)
    x = x.astype(jnp.bfloat16)
    if b_pad != B:
        x = jnp.pad(x, ((0, 0), (0, b_pad - B), (0, 0)))

    args = (x, m1, s1, m2, s2, m3, s3, m4, s4, w1, b1, w2, b2)
    in_specs = [pl.BlockSpec((H, tb, W * cin), lambda b: (0, b, 0))]
    in_specs += [_const_spec(a.shape) for a in args[1:]]

    # Advisory cost estimate (MXU flops incl. Toeplitz zero padding).
    flops = 0
    h_ = H
    for m in (m1, m2, m3, m4):
        ho_ = h_ - 2
        flops += 3 * 2 * ho_ * m.shape[1] * m.shape[2]
        h_ = ho_
    flops += w1.shape[0] * 2 * w1.shape[1] * w1.shape[2]
    flops += 2 * w2.shape[0] * w2.shape[1]
    flops *= b_pad
    nbytes = lambda a: a.size * a.dtype.itemsize
    bytes_accessed = int(sum(nbytes(a) for a in args) + b_pad * apad * 4)

    q = pl.pallas_call(
        functools.partial(_duel_net_kernel, n_act=n_act),
        out_shape=jax.ShapeDtypeStruct((b_pad, apad), jnp.float32),
        grid=(b_pad // tb,),
        in_specs=in_specs,
        out_specs=pl.BlockSpec((tb, apad), lambda b: (b, 0)),
        compiler_params=pltpu.CompilerParams(
            dimension_semantics=("parallel",),
            vmem_limit_bytes=48 * 1024 * 1024),
        cost_estimate=pl.CostEstimate(flops=int(flops), transcendentals=0,
                                      bytes_accessed=bytes_accessed),
    )(*args)
    return q[:B, 1:1 + n_act]


# ----------------------------------------------------------------------------
# Parameter construction (torch layout) and kernel-layout preparation
# ----------------------------------------------------------------------------
def init_torch_params(key, stack_size, channels, action_space, img_size):
    """Deterministic synthetic parameters in the torch module's own layouts."""
    ks = iter(jax.random.split(key, 32))

    def conv_bn(cin, cout):
        w = 0.1 * jax.random.normal(next(ks), (cout, cin, 3, 3), jnp.float32)
        gamma = 1.0 + 0.1 * jax.random.normal(next(ks), (cout,), jnp.float32)
        beta = 0.1 * jax.random.normal(next(ks), (cout,), jnp.float32)
        mean = 0.1 * jax.random.normal(next(ks), (cout,), jnp.float32)
        var = 0.5 + jnp.abs(jax.random.normal(next(ks), (cout,), jnp.float32))
        return (w, gamma, beta, mean, var)

    c1, c2, c3, c4 = channels
    convs = (conv_bn(stack_size, c1), conv_bn(c1, c2),
             conv_bn(c2, c3), conv_bn(c3, c4))

    def lin(fan_in, fan_out, s):
        w = s * jax.random.normal(next(ks), (fan_out, fan_in), jnp.float32)
        b = 0.01 * jax.random.normal(next(ks), (fan_out,), jnp.float32)
        return w, b

    w1s, b1s = lin(img_size, 100, 0.02)
    w2s, b2s = lin(100, 1, 0.1)
    w1a, b1a = lin(img_size, 100, 0.02)
    w2a, b2a = lin(100, action_space, 0.1)
    return convs, (w1s, b1s, w2s, b2s, w1a, b1a, w2a, b2a)


def prepare_kernel_params(torch_params, x_size, y_size, eps=1e-5):
    """Fold BN, build block-Toeplitz conv matrices, permute/pad head weights."""
    convs, (w1s, b1s, w2s, b2s, w1a, b1a, w2a, b2a) = torch_params

    conv_mats, conv_shifts = [], []
    h, w = x_size, y_size
    for (wt, gamma, beta, mean, var) in convs:
        cout, cin = wt.shape[0], wt.shape[1]
        scale = gamma / jnp.sqrt(var + eps)
        shift = beta - mean * scale
        # OIHW -> HWIO, fold BN scale into output channels.
        w_hwio = np.asarray(jnp.transpose(wt, (2, 3, 1, 0)) * scale, np.float32)
        ho, wo = h - 2, w - 2
        m = np.zeros((3, w * cin, wo * cout), np.float32)
        for ki in range(3):
            for j in range(wo):
                for kj in range(3):
                    wi = j + kj
                    m[ki, wi * cin:(wi + 1) * cin,
                      j * cout:(j + 1) * cout] = w_hwio[ki, kj]
        conv_mats.append(jnp.asarray(m, jnp.bfloat16))
        conv_shifts.append(
            jnp.tile(shift, wo).reshape(1, wo * cout).astype(jnp.float32))
        h, w = ho, wo

    c4 = convs[-1][0].shape[0]          # last conv output channels
    nh = w1s.shape[0]                   # hidden width per head (100)
    nh2 = 2 * nh
    A = w2a.shape[0]
    nh2p = _round_up(nh2, 128)          # 200 -> 256 (lane-dense hidden)
    apad = _round_up(1 + A, 128)        # 7   -> 128 (lane-dense output)

    # Head layer 1: concat state/advantage columns, pad to nh2p, permute rows
    # from torch's (C, H, W) flatten order to (H, W*C), split by conv row h.
    w1_cat = jnp.concatenate([w1s.T, w1a.T], axis=1)             # (img, 200)
    w1_cat = jnp.pad(w1_cat, ((0, 0), (0, nh2p - nh2)))
    w1_k = (w1_cat.reshape(c4, h, w, nh2p).transpose(1, 2, 0, 3)
            .reshape(h, w * c4, nh2p).astype(jnp.bfloat16))
    b1_k = jnp.concatenate(
        [b1s, b1a, jnp.zeros((nh2p - nh2,), jnp.float32)]).reshape(1, nh2p)

    # Head layer 2: single block matrix; col 0 = V, cols 1..A = advantages,
    # padded rows/cols zero so the hidden/output padding has no effect.
    w2_np = np.zeros((nh2p, apad), np.float32)
    w2_np[:nh, 0:1] = np.asarray(w2s.T)
    w2_np[nh:nh2, 1:1 + A] = np.asarray(w2a.T)
    w2_k = jnp.asarray(w2_np, jnp.bfloat16)
    b2_np = np.zeros((1, apad), np.float32)
    b2_np[0, 0:1] = np.asarray(b2s)
    b2_np[0, 1:1 + A] = np.asarray(b2a)
    b2_k = jnp.asarray(b2_np)

    return (tuple(conv_mats), tuple(conv_shifts), w1_k, b1_k, w2_k, b2_k)


# ----------------------------------------------------------------------------
# Pure-JAX f32 reference (direct transliteration of the torch forward)
# ----------------------------------------------------------------------------
def reference_forward(x_nchw, torch_params, eps=1e-5):
    convs, (w1s, b1s, w2s, b2s, w1a, b1a, w2a, b2a) = torch_params
    hx = x_nchw.astype(jnp.float32)
    for (wt, gamma, beta, mean, var) in convs:
        hx = jax.lax.conv_general_dilated(
            hx, wt, window_strides=(1, 1), padding="VALID",
            dimension_numbers=("NCHW", "OIHW", "NCHW"))
        hx = (hx - mean[None, :, None, None]) / jnp.sqrt(
            var + eps)[None, :, None, None]
        hx = hx * gamma[None, :, None, None] + beta[None, :, None, None]
        hx = jnp.maximum(hx, 0.0)
    xf = hx.reshape(hx.shape[0], -1)                 # torch (C,H,W) flatten
    hs = jnp.maximum(xf @ w1s.T + b1s, 0.0)
    sv = hs @ w2s.T + b2s
    ha = jnp.maximum(xf @ w1a.T + b1a, 0.0)
    av = ha @ w2a.T + b2a
    return sv + (av - av.mean(axis=1, keepdims=True))


# ----------------------------------------------------------------------------
if __name__ == "__main__":
    # DuelNetworkConfigurable(x_size=16, y_size=16, action_space=6, stack_size=4)
    B, stack_size, x_size, y_size = 2, 4, 16, 16
    channels = (16, 32, 32, 64)
    action_space = 6
    img_size = channels[-1] * (x_size - 8) * (y_size - 8)   # 64 * 8 * 8 = 4096

    key = jax.random.PRNGKey(0)
    k_in, k_par = jax.random.split(key)
    x = jax.random.normal(k_in, (B, stack_size, x_size, y_size), jnp.float32)

    torch_params = init_torch_params(k_par, stack_size, channels,
                                     action_space, img_size)
    kernel_params = prepare_kernel_params(torch_params, x_size, y_size)

    fwd = jax.jit(duel_network_forward, static_argnames=("n_act", "tb"))
    q = jax.block_until_ready(fwd(x, kernel_params, n_act=action_space))

    q_ref = reference_forward(x, torch_params)
    assert q.shape == (B, action_space)
    # bf16 MXU inputs (f32 accumulation) -> bf16-level tolerance vs f32 ref.
    assert jnp.allclose(q, q_ref, rtol=5e-2, atol=5e-2), (
        q, q_ref, jnp.max(jnp.abs(q - q_ref)))

    print("KERNEL_OK")
</pallas_src>

<mosaic_0001>
module attributes {stable_mosaic.version = 11 : i64} {
  func.func @_duel_net_kernel(%arg0: i32, %arg1: memref<16x16x64xbf16, #tpu.memory_space<vmem>>, %arg2: memref<3x64x224xbf16, #tpu.memory_space<vmem>>, %arg3: memref<1x224xf32, #tpu.memory_space<vmem>>, %arg4: memref<3x224x384xbf16, #tpu.memory_space<vmem>>, %arg5: memref<1x384xf32, #tpu.memory_space<vmem>>, %arg6: memref<3x384x320xbf16, #tpu.memory_space<vmem>>, %arg7: memref<1x320xf32, #tpu.memory_space<vmem>>, %arg8: memref<3x320x512xbf16, #tpu.memory_space<vmem>>, %arg9: memref<1x512xf32, #tpu.memory_space<vmem>>, %arg10: memref<8x512x256xbf16, #tpu.memory_space<vmem>>, %arg11: memref<1x256xf32, #tpu.memory_space<vmem>>, %arg12: memref<256x128xbf16, #tpu.memory_space<vmem>>, %arg13: memref<1x128xf32, #tpu.memory_space<vmem>>, %arg14: memref<16x128xf32, #tpu.memory_space<vmem>>) attributes {dimension_semantics = [#tpu.dimension_semantics<parallel>], iteration_bounds = array<i64: 1>, scalar_prefetch = 0 : i64, scratch_operands = 0 : i64, tpu.core_type = #tpu.core_type<tc>, window_params = [{transform_indices = @transform_0, window_bounds = array<i64: 16, 16, 64>}, {pipeline_mode = #tpu.pipeline_mode<synchronous>, transform_indices = @transform_1, window_bounds = array<i64: 3, 64, 224>}, {pipeline_mode = #tpu.pipeline_mode<synchronous>, transform_indices = @transform_2, window_bounds = array<i64: 1, 224>}, {pipeline_mode = #tpu.pipeline_mode<synchronous>, transform_indices = @transform_3, window_bounds = array<i64: 3, 224, 384>}, {pipeline_mode = #tpu.pipeline_mode<synchronous>, transform_indices = @transform_4, window_bounds = array<i64: 1, 384>}, {pipeline_mode = #tpu.pipeline_mode<synchronous>, transform_indices = @transform_5, window_bounds = array<i64: 3, 384, 320>}, {pipeline_mode = #tpu.pipeline_mode<synchronous>, transform_indices = @transform_6, window_bounds = array<i64: 1, 320>}, {pipeline_mode = #tpu.pipeline_mode<synchronous>, transform_indices = @transform_7, window_bounds = array<i64: 3, 320, 512>}, {pipeline_mode = #tpu.pipeline_mode<synchronous>, transform_indices = @transform_8, window_bounds = array<i64: 1, 512>}, {pipeline_mode = #tpu.pipeline_mode<synchronous>, transform_indices = @transform_9, window_bounds = array<i64: 8, 512, 256>}, {pipeline_mode = #tpu.pipeline_mode<synchronous>, transform_indices = @transform_10, window_bounds = array<i64: 1, 256>}, {pipeline_mode = #tpu.pipeline_mode<synchronous>, transform_indices = @transform_11, window_bounds = array<i64: 256, 128>}, {pipeline_mode = #tpu.pipeline_mode<synchronous>, transform_indices = @transform_12, window_bounds = array<i64: 1, 128>}, {transform_indices = @transform_13, window_bounds = array<i64: 16, 128>}]} {
    %c0 = arith.constant 0 : index
    %c0_0 = arith.constant 0 : index
    %c0_1 = arith.constant 0 : index
    %0 = vector.load %arg1[%c0, %c0_0, %c0_1] : memref<16x16x64xbf16, #tpu.memory_space<vmem>>, vector<16x16x64xbf16>
    %1 = vector.extract_strided_slice %0 {offsets = [0, 0, 0], sizes = [14, 16, 64], strides = [1, 1, 1]} : vector<16x16x64xbf16> to vector<14x16x64xbf16>
    %2 = vector.shape_cast %1 : vector<14x16x64xbf16> to vector<224x64xbf16>
    %c0_2 = arith.constant 0 : index
    %c0_3 = arith.constant 0 : index
    %c0_4 = arith.constant 0 : index
    %3 = vector.load %arg2[%c0_2, %c0_3, %c0_4] : memref<3x64x224xbf16, #tpu.memory_space<vmem>>, vector<1x64x224xbf16>
    %4 = vector.shape_cast %3 : vector<1x64x224xbf16> to vector<64x224xbf16>
    %cst = arith.constant dense<0.000000e+00> : vector<224x224xf32>
    %5 = tpu.matmul %2, %4, %cst {dimension_numbers = #tpu.dot_dimension_numbers<[1], [0], [0], [1], [0, 0, 1, 1], [], []>} : vector<224x64xbf16>, vector<64x224xbf16>, vector<224x224xf32> -> vector<224x224xf32>
    %6 = vector.extract_strided_slice %0 {offsets = [1, 0, 0], sizes = [14, 16, 64], strides = [1, 1, 1]} : vector<16x16x64xbf16> to vector<14x16x64xbf16>
    %7 = vector.shape_cast %6 : vector<14x16x64xbf16> to vector<224x64xbf16>
    %c1 = arith.constant 1 : index
    %c0_5 = arith.constant 0 : index
    %c0_6 = arith.constant 0 : index
    %8 = vector.load %arg2[%c1, %c0_5, %c0_6] : memref<3x64x224xbf16, #tpu.memory_space<vmem>>, vector<1x64x224xbf16>
    %9 = vector.shape_cast %8 : vector<1x64x224xbf16> to vector<64x224xbf16>
    %cst_7 = arith.constant dense<0.000000e+00> : vector<224x224xf32>
    %10 = tpu.matmul %7, %9, %cst_7 {dimension_numbers = #tpu.dot_dimension_numbers<[1], [0], [0], [1], [0, 0, 1, 1], [], []>} : vector<224x64xbf16>, vector<64x224xbf16>, vector<224x224xf32> -> vector<224x224xf32>
    %11 = arith.addf %5, %10 : vector<224x224xf32>
    %12 = vector.extract_strided_slice %0 {offsets = [2, 0, 0], sizes = [14, 16, 64], strides = [1, 1, 1]} : vector<16x16x64xbf16> to vector<14x16x64xbf16>
    %13 = vector.shape_cast %12 : vector<14x16x64xbf16> to vector<224x64xbf16>
    %c2 = arith.constant 2 : index
    %c0_8 = arith.constant 0 : index
    %c0_9 = arith.constant 0 : index
    %14 = vector.load %arg2[%c2, %c0_8, %c0_9] : memref<3x64x224xbf16, #tpu.memory_space<vmem>>, vector<1x64x224xbf16>
    %15 = vector.shape_cast %14 : vector<1x64x224xbf16> to vector<64x224xbf16>
    %cst_10 = arith.constant dense<0.000000e+00> : vector<224x224xf32>
    %16 = tpu.matmul %13, %15, %cst_10 {dimension_numbers = #tpu.dot_dimension_numbers<[1], [0], [0], [1], [0, 0, 1, 1], [], []>} : vector<224x64xbf16>, vector<64x224xbf16>, vector<224x224xf32> -> vector<224x224xf32>
    %17 = arith.addf %11, %16 : vector<224x224xf32>
    %c0_11 = arith.constant 0 : index
    %c0_12 = arith.constant 0 : index
    %18 = vector.load %arg3[%c0_11, %c0_12] : memref<1x224xf32, #tpu.memory_space<vmem>>, vector<1x224xf32>
    %19 = vector.broadcast %18 : vector<1x224xf32> to vector<224x224xf32>
    %20 = arith.addf %17, %19 : vector<224x224xf32>
    %cst_13 = arith.constant 0.000000e+00 : f32
    %21 = vector.broadcast %cst_13 : f32 to vector<224x224xf32>
    %22 = arith.maximumf %20, %21 : vector<224x224xf32>
    %23 = arith.truncf %22 : vector<224x224xf32> to vector<224x224xbf16>
    %24 = vector.shape_cast %23 : vector<224x224xbf16> to vector<14x16x224xbf16>
    %25 = vector.extract_strided_slice %24 {offsets = [0, 0, 0], sizes = [12, 16, 224], strides = [1, 1, 1]} : vector<14x16x224xbf16> to vector<12x16x224xbf16>
    %26 = vector.shape_cast %25 : vector<12x16x224xbf16> to vector<192x224xbf16>
    %c0_14 = arith.constant 0 : index
    %c0_15 = arith.constant 0 : index
    %c0_16 = arith.constant 0 : index
    %27 = vector.load %arg4[%c0_14, %c0_15, %c0_16] : memref<3x224x384xbf16, #tpu.memory_space<vmem>>, vector<1x224x384xbf16>
    %28 = vector.shape_cast %27 : vector<1x224x384xbf16> to vector<224x384xbf16>
    %cst_17 = arith.constant dense<0.000000e+00> : vector<192x384xf32>
    %29 = tpu.matmul %26, %28, %cst_17 {dimension_numbers = #tpu.dot_dimension_numbers<[1], [0], [0], [1], [0, 0, 1, 1], [], []>} : vector<192x224xbf16>, vector<224x384xbf16>, vector<192x384xf32> -> vector<192x384xf32>
    %30 = vector.extract_strided_slice %24 {offsets = [1, 0, 0], sizes = [12, 16, 224], strides = [1, 1, 1]} : vector<14x16x224xbf16> to vector<12x16x224xbf16>
    %31 = vector.shape_cast %30 : vector<12x16x224xbf16> to vector<192x224xbf16>
    %c1_18 = arith.constant 1 : index
    %c0_19 = arith.constant 0 : index
    %c0_20 = arith.constant 0 : index
    %32 = vector.load %arg4[%c1_18, %c0_19, %c0_20] : memref<3x224x384xbf16, #tpu.memory_space<vmem>>, vector<1x224x384xbf16>
    %33 = vector.shape_cast %32 : vector<1x224x384xbf16> to vector<224x384xbf16>
    %cst_21 = arith.constant dense<0.000000e+00> : vector<192x384xf32>
    %34 = tpu.matmul %31, %33, %cst_21 {dimension_numbers = #tpu.dot_dimension_numbers<[1], [0], [0], [1], [0, 0, 1, 1], [], []>} : vector<192x224xbf16>, vector<224x384xbf16>, vector<192x384xf32> -> vector<192x384xf32>
    %35 = arith.addf %29, %34 : vector<192x384xf32>
    %36 = vector.extract_strided_slice %24 {offsets = [2, 0, 0], sizes = [12, 16, 224], strides = [1, 1, 1]} : vector<14x16x224xbf16> to vector<12x16x224xbf16>
    %37 = vector.shape_cast %36 : vector<12x16x224xbf16> to vector<192x224xbf16>
    %c2_22 = arith.constant 2 : index
    %c0_23 = arith.constant 0 : index
    %c0_24 = arith.constant 0 : index
    %38 = vector.load %arg4[%c2_22, %c0_23, %c0_24] : memref<3x224x384xbf16, #tpu.memory_space<vmem>>, vector<1x224x384xbf16>
    %39 = vector.shape_cast %38 : vector<1x224x384xbf16> to vector<224x384xbf16>
    %cst_25 = arith.constant dense<0.000000e+00> : vector<192x384xf32>
    %40 = tpu.matmul %37, %39, %cst_25 {dimension_numbers = #tpu.dot_dimension_numbers<[1], [0], [0], [1], [0, 0, 1, 1], [], []>} : vector<192x224xbf16>, vector<224x384xbf16>, vector<192x384xf32> -> vector<192x384xf32>
    %41 = arith.addf %35, %40 : vector<192x384xf32>
    %c0_26 = arith.constant 0 : index
    %c0_27 = arith.constant 0 : index
    %42 = vector.load %arg5[%c0_26, %c0_27] : memref<1x384xf32, #tpu.memory_space<vmem>>, vector<1x384xf32>
    %43 = vector.broadcast %42 : vector<1x384xf32> to vector<192x384xf32>
    %44 = arith.addf %41, %43 : vector<192x384xf32>
    %cst_28 = arith.constant 0.000000e+00 : f32
    %45 = vector.broadcast %cst_28 : f32 to vector<192x384xf32>
    %46 = arith.maximumf %44, %45 : vector<192x384xf32>
    %47 = arith.truncf %46 : vector<192x384xf32> to vector<192x384xbf16>
    %48 = vector.shape_cast %47 : vector<192x384xbf16> to vector<12x16x384xbf16>
    %49 = vector.extract_strided_slice %48 {offsets = [0, 0, 0], sizes = [10, 16, 384], strides = [1, 1, 1]} : vector<12x16x384xbf16> to vector<10x16x384xbf16>
    %50 = vector.shape_cast %49 : vector<10x16x384xbf16> to vector<160x384xbf16>
    %c0_29 = arith.constant 0 : index
    %c0_30 = arith.constant 0 : index
    %c0_31 = arith.constant 0 : index
    %51 = vector.load %arg6[%c0_29, %c0_30, %c0_31] : memref<3x384x320xbf16, #tpu.memory_space<vmem>>, vector<1x384x320xbf16>
    %52 = vector.shape_cast %51 : vector<1x384x320xbf16> to vector<384x320xbf16>
    %cst_32 = arith.constant dense<0.000000e+00> : vector<160x320xf32>
    %53 = tpu.matmul %50, %52, %cst_32 {dimension_numbers = #tpu.dot_dimension_numbers<[1], [0], [0], [1], [0, 0, 1, 1], [], []>} : vector<160x384xbf16>, vector<384x320xbf16>, vector<160x320xf32> -> vector<160x320xf32>
    %54 = vector.extract_strided_slice %48 {offsets = [1, 0, 0], sizes = [10, 16, 384], strides = [1, 1, 1]} : vector<12x16x384xbf16> to vector<10x16x384xbf16>
    %55 = vector.shape_cast %54 : vector<10x16x384xbf16> to vector<160x384xbf16>
    %c1_33 = arith.constant 1 : index
    %c0_34 = arith.constant 0 : index
    %c0_35 = arith.constant 0 : index
    %56 = vector.load %arg6[%c1_33, %c0_34, %c0_35] : memref<3x384x320xbf16, #tpu.memory_space<vmem>>, vector<1x384x320xbf16>
    %57 = vector.shape_cast %56 : vector<1x384x320xbf16> to vector<384x320xbf16>
    %cst_36 = arith.constant dense<0.000000e+00> : vector<160x320xf32>
    %58 = tpu.matmul %55, %57, %cst_36 {dimension_numbers = #tpu.dot_dimension_numbers<[1], [0], [0], [1], [0, 0, 1, 1], [], []>} : vector<160x384xbf16>, vector<384x320xbf16>, vector<160x320xf32> -> vector<160x320xf32>
    %59 = arith.addf %53, %58 : vector<160x320xf32>
    %60 = vector.extract_strided_slice %48 {offsets = [2, 0, 0], sizes = [10, 16, 384], strides = [1, 1, 1]} : vector<12x16x384xbf16> to vector<10x16x384xbf16>
    %61 = vector.shape_cast %60 : vector<10x16x384xbf16> to vector<160x384xbf16>
    %c2_37 = arith.constant 2 : index
    %c0_38 = arith.constant 0 : index
    %c0_39 = arith.constant 0 : index
    %62 = vector.load %arg6[%c2_37, %c0_38, %c0_39] : memref<3x384x320xbf16, #tpu.memory_space<vmem>>, vector<1x384x320xbf16>
    %63 = vector.shape_cast %62 : vector<1x384x320xbf16> to vector<384x320xbf16>
    %cst_40 = arith.constant dense<0.000000e+00> : vector<160x320xf32>
    %64 = tpu.matmul %61, %63, %cst_40 {dimension_numbers = #tpu.dot_dimension_numbers<[1], [0], [0], [1], [0, 0, 1, 1], [], []>} : vector<160x384xbf16>, vector<384x320xbf16>, vector<160x320xf32> -> vector<160x320xf32>
    %65 = arith.addf %59, %64 : vector<160x320xf32>
    %c0_41 = arith.constant 0 : index
    %c0_42 = arith.constant 0 : index
    %66 = vector.load %arg7[%c0_41, %c0_42] : memref<1x320xf32, #tpu.memory_space<vmem>>, vector<1x320xf32>
    %67 = vector.broadcast %66 : vector<1x320xf32> to vector<160x320xf32>
    %68 = arith.addf %65, %67 : vector<160x320xf32>
    %cst_43 = arith.constant 0.000000e+00 : f32
    %69 = vector.broadcast %cst_43 : f32 to vector<160x320xf32>
    %70 = arith.maximumf %68, %69 : vector<160x320xf32>
    %71 = arith.truncf %70 : vector<160x320xf32> to vector<160x320xbf16>
    %72 = vector.shape_cast %71 : vector<160x320xbf16> to vector<10x16x320xbf16>
    %73 = vector.extract_strided_slice %72 {offsets = [0, 0, 0], sizes = [8, 16, 320], strides = [1, 1, 1]} : vector<10x16x320xbf16> to vector<8x16x320xbf16>
    %74 = vector.shape_cast %73 : vector<8x16x320xbf16> to vector<128x320xbf16>
    %c0_44 = arith.constant 0 : index
    %c0_45 = arith.constant 0 : index
    %c0_46 = arith.constant 0 : index
    %75 = vector.load %arg8[%c0_44, %c0_45, %c0_46] : memref<3x320x512xbf16, #tpu.memory_space<vmem>>, vector<1x320x512xbf16>
    %76 = vector.shape_cast %75 : vector<1x320x512xbf16> to vector<320x512xbf16>
    %cst_47 = arith.constant dense<0.000000e+00> : vector<128x512xf32>
    %77 = tpu.matmul %74, %76, %cst_47 {dimension_numbers = #tpu.dot_dimension_numbers<[1], [0], [0], [1], [0, 0, 1, 1], [], []>} : vector<128x320xbf16>, vector<320x512xbf16>, vector<128x512xf32> -> vector<128x512xf32>
    %78 = vector.extract_strided_slice %72 {offsets = [1, 0, 0], sizes = [8, 16, 320], strides = [1, 1, 1]} : vector<10x16x320xbf16> to vector<8x16x320xbf16>
    %79 = vector.shape_cast %78 : vector<8x16x320xbf16> to vector<128x320xbf16>
    %c1_48 = arith.constant 1 : index
    %c0_49 = arith.constant 0 : index
    %c0_50 = arith.constant 0 : index
    %80 = vector.load %arg8[%c1_48, %c0_49, %c0_50] : memref<3x320x512xbf16, #tpu.memory_space<vmem>>, vector<1x320x512xbf16>
    %81 = vector.shape_cast %80 : vector<1x320x512xbf16> to vector<320x512xbf16>
    %cst_51 = arith.constant dense<0.000000e+00> : vector<128x512xf32>
    %82 = tpu.matmul %79, %81, %cst_51 {dimension_numbers = #tpu.dot_dimension_numbers<[1], [0], [0], [1], [0, 0, 1, 1], [], []>} : vector<128x320xbf16>, vector<320x512xbf16>, vector<128x512xf32> -> vector<128x512xf32>
    %83 = arith.addf %77, %82 : vector<128x512xf32>
    %84 = vector.extract_strided_slice %72 {offsets = [2, 0, 0], sizes = [8, 16, 320], strides = [1, 1, 1]} : vector<10x16x320xbf16> to vector<8x16x320xbf16>
    %85 = vector.shape_cast %84 : vector<8x16x320xbf16> to vector<128x320xbf16>
    %c2_52 = arith.constant 2 : index
    %c0_53 = arith.constant 0 : index
    %c0_54 = arith.constant 0 : index
    %86 = vector.load %arg8[%c2_52, %c0_53, %c0_54] : memref<3x320x512xbf16, #tpu.memory_space<vmem>>, vector<1x320x512xbf16>
    %87 = vector.shape_cast %86 : vector<1x320x512xbf16> to vector<320x512xbf16>
    %cst_55 = arith.constant dense<0.000000e+00> : vector<128x512xf32>
    %88 = tpu.matmul %85, %87, %cst_55 {dimension_numbers = #tpu.dot_dimension_numbers<[1], [0], [0], [1], [0, 0, 1, 1], [], []>} : vector<128x320xbf16>, vector<320x512xbf16>, vector<128x512xf32> -> vector<128x512xf32>
    %89 = arith.addf %83, %88 : vector<128x512xf32>
    %c0_56 = arith.constant 0 : index
    %c0_57 = arith.constant 0 : index
    %90 = vector.load %arg9[%c0_56, %c0_57] : memref<1x512xf32, #tpu.memory_space<vmem>>, vector<1x512xf32>
    %91 = vector.broadcast %90 : vector<1x512xf32> to vector<128x512xf32>
    %92 = arith.addf %89, %91 : vector<128x512xf32>
    %cst_58 = arith.constant 0.000000e+00 : f32
    %93 = vector.broadcast %cst_58 : f32 to vector<128x512xf32>
    %94 = arith.maximumf %92, %93 : vector<128x512xf32>
    %95 = arith.truncf %94 : vector<128x512xf32> to vector<128x512xbf16>
    %96 = vector.shape_cast %95 : vector<128x512xbf16> to vector<8x16x512xbf16>
    %97 = vector.extract_strided_slice %96 {offsets = [0, 0, 0], sizes = [1, 16, 512], strides = [1, 1, 1]} : vector<8x16x512xbf16> to vector<1x16x512xbf16>
    %98 = vector.shape_cast %97 : vector<1x16x512xbf16> to vector<16x512xbf16>
    %c0_59 = arith.constant 0 : index
    %c0_60 = arith.constant 0 : index
    %c0_61 = arith.constant 0 : index
    %99 = vector.load %arg10[%c0_59, %c0_60, %c0_61] : memref<8x512x256xbf16, #tpu.memory_space<vmem>>, vector<1x512x256xbf16>
    %100 = vector.shape_cast %99 : vector<1x512x256xbf16> to vector<512x256xbf16>
    %cst_62 = arith.constant dense<0.000000e+00> : vector<16x256xf32>
    %101 = tpu.matmul %98, %100, %cst_62 {dimension_numbers = #tpu.dot_dimension_numbers<[1], [0], [0], [1], [0, 0, 1, 1], [], []>} : vector<16x512xbf16>, vector<512x256xbf16>, vector<16x256xf32> -> vector<16x256xf32>
    %102 = vector.extract_strided_slice %96 {offsets = [1, 0, 0], sizes = [1, 16, 512], strides = [1, 1, 1]} : vector<8x16x512xbf16> to vector<1x16x512xbf16>
    %103 = vector.shape_cast %102 : vector<1x16x512xbf16> to vector<16x512xbf16>
    %c1_63 = arith.constant 1 : index
    %c0_64 = arith.constant 0 : index
    %c0_65 = arith.constant 0 : index
    %104 = vector.load %arg10[%c1_63, %c0_64, %c0_65] : memref<8x512x256xbf16, #tpu.memory_space<vmem>>, vector<1x512x256xbf16>
    %105 = vector.shape_cast %104 : vector<1x512x256xbf16> to vector<512x256xbf16>
    %cst_66 = arith.constant dense<0.000000e+00> : vector<16x256xf32>
    %106 = tpu.matmul %103, %105, %cst_66 {dimension_numbers = #tpu.dot_dimension_numbers<[1], [0], [0], [1], [0, 0, 1, 1], [], []>} : vector<16x512xbf16>, vector<512x256xbf16>, vector<16x256xf32> -> vector<16x256xf32>
    %107 = arith.addf %101, %106 : vector<16x256xf32>
    %108 = vector.extract_strided_slice %96 {offsets = [2, 0, 0], sizes = [1, 16, 512], strides = [1, 1, 1]} : vector<8x16x512xbf16> to vector<1x16x512xbf16>
    %109 = vector.shape_cast %108 : vector<1x16x512xbf16> to vector<16x512xbf16>
    %c2_67 = arith.constant 2 : index
    %c0_68 = arith.constant 0 : index
    %c0_69 = arith.constant 0 : index
    %110 = vector.load %arg10[%c2_67, %c0_68, %c0_69] : memref<8x512x256xbf16, #tpu.memory_space<vmem>>, vector<1x512x256xbf16>
    %111 = vector.shape_cast %110 : vector<1x512x256xbf16> to vector<512x256xbf16>
    %cst_70 = arith.constant dense<0.000000e+00> : vector<16x256xf32>
    %112 = tpu.matmul %109, %111, %cst_70 {dimension_numbers = #tpu.dot_dimension_numbers<[1], [0], [0], [1], [0, 0, 1, 1], [], []>} : vector<16x512xbf16>, vector<512x256xbf16>, vector<16x256xf32> -> vector<16x256xf32>
    %113 = arith.addf %107, %112 : vector<16x256xf32>
    %114 = vector.extract_strided_slice %96 {offsets = [3, 0, 0], sizes = [1, 16, 512], strides = [1, 1, 1]} : vector<8x16x512xbf16> to vector<1x16x512xbf16>
    %115 = vector.shape_cast %114 : vector<1x16x512xbf16> to vector<16x512xbf16>
    %c3 = arith.constant 3 : index
    %c0_71 = arith.constant 0 : index
    %c0_72 = arith.constant 0 : index
    %116 = vector.load %arg10[%c3, %c0_71, %c0_72] : memref<8x512x256xbf16, #tpu.memory_space<vmem>>, vector<1x512x256xbf16>
    %117 = vector.shape_cast %116 : vector<1x512x256xbf16> to vector<512x256xbf16>
    %cst_73 = arith.constant dense<0.000000e+00> : vector<16x256xf32>
    %118 = tpu.matmul %115, %117, %cst_73 {dimension_numbers = #tpu.dot_dimension_numbers<[1], [0], [0], [1], [0, 0, 1, 1], [], []>} : vector<16x512xbf16>, vector<512x256xbf16>, vector<16x256xf32> -> vector<16x256xf32>
    %119 = arith.addf %113, %118 : vector<16x256xf32>
    %120 = vector.extract_strided_slice %96 {offsets = [4, 0, 0], sizes = [1, 16, 512], strides = [1, 1, 1]} : vector<8x16x512xbf16> to vector<1x16x512xbf16>
    %121 = vector.shape_cast %120 : vector<1x16x512xbf16> to vector<16x512xbf16>
    %c4 = arith.constant 4 : index
    %c0_74 = arith.constant 0 : index
    %c0_75 = arith.constant 0 : index
    %122 = vector.load %arg10[%c4, %c0_74, %c0_75] : memref<8x512x256xbf16, #tpu.memory_space<vmem>>, vector<1x512x256xbf16>
    %123 = vector.shape_cast %122 : vector<1x512x256xbf16> to vector<512x256xbf16>
    %cst_76 = arith.constant dense<0.000000e+00> : vector<16x256xf32>
    %124 = tpu.matmul %121, %123, %cst_76 {dimension_numbers = #tpu.dot_dimension_numbers<[1], [0], [0], [1], [0, 0, 1, 1], [], []>} : vector<16x512xbf16>, vector<512x256xbf16>, vector<16x256xf32> -> vector<16x256xf32>
    %125 = arith.addf %119, %124 : vector<16x256xf32>
    %126 = vector.extract_strided_slice %96 {offsets = [5, 0, 0], sizes = [1, 16, 512], strides = [1, 1, 1]} : vector<8x16x512xbf16> to vector<1x16x512xbf16>
    %127 = vector.shape_cast %126 : vector<1x16x512xbf16> to vector<16x512xbf16>
    %c5 = arith.constant 5 : index
    %c0_77 = arith.constant 0 : index
    %c0_78 = arith.constant 0 : index
    %128 = vector.load %arg10[%c5, %c0_77, %c0_78] : memref<8x512x256xbf16, #tpu.memory_space<vmem>>, vector<1x512x256xbf16>
    %129 = vector.shape_cast %128 : vector<1x512x256xbf16> to vector<512x256xbf16>
    %cst_79 = arith.constant dense<0.000000e+00> : vector<16x256xf32>
    %130 = tpu.matmul %127, %129, %cst_79 {dimension_numbers = #tpu.dot_dimension_numbers<[1], [0], [0], [1], [0, 0, 1, 1], [], []>} : vector<16x512xbf16>, vector<512x256xbf16>, vector<16x256xf32> -> vector<16x256xf32>
    %131 = arith.addf %125, %130 : vector<16x256xf32>
    %132 = vector.extract_strided_slice %96 {offsets = [6, 0, 0], sizes = [1, 16, 512], strides = [1, 1, 1]} : vector<8x16x512xbf16> to vector<1x16x512xbf16>
    %133 = vector.shape_cast %132 : vector<1x16x512xbf16> to vector<16x512xbf16>
    %c6 = arith.constant 6 : index
    %c0_80 = arith.constant 0 : index
    %c0_81 = arith.constant 0 : index
    %134 = vector.load %arg10[%c6, %c0_80, %c0_81] : memref<8x512x256xbf16, #tpu.memory_space<vmem>>, vector<1x512x256xbf16>
    %135 = vector.shape_cast %134 : vector<1x512x256xbf16> to vector<512x256xbf16>
    %cst_82 = arith.constant dense<0.000000e+00> : vector<16x256xf32>
    %136 = tpu.matmul %133, %135, %cst_82 {dimension_numbers = #tpu.dot_dimension_numbers<[1], [0], [0], [1], [0, 0, 1, 1], [], []>} : vector<16x512xbf16>, vector<512x256xbf16>, vector<16x256xf32> -> vector<16x256xf32>
    %137 = arith.addf %131, %136 : vector<16x256xf32>
    %138 = vector.extract_strided_slice %96 {offsets = [7, 0, 0], sizes = [1, 16, 512], strides = [1, 1, 1]} : vector<8x16x512xbf16> to vector<1x16x512xbf16>
    %139 = vector.shape_cast %138 : vector<1x16x512xbf16> to vector<16x512xbf16>
    %c7 = arith.constant 7 : index
    %c0_83 = arith.constant 0 : index
    %c0_84 = arith.constant 0 : index
    %140 = vector.load %arg10[%c7, %c0_83, %c0_84] : memref<8x512x256xbf16, #tpu.memory_space<vmem>>, vector<1x512x256xbf16>
    %141 = vector.shape_cast %140 : vector<1x512x256xbf16> to vector<512x256xbf16>
    %cst_85 = arith.constant dense<0.000000e+00> : vector<16x256xf32>
    %142 = tpu.matmul %139, %141, %cst_85 {dimension_numbers = #tpu.dot_dimension_numbers<[1], [0], [0], [1], [0, 0, 1, 1], [], []>} : vector<16x512xbf16>, vector<512x256xbf16>, vector<16x256xf32> -> vector<16x256xf32>
    %143 = arith.addf %137, %142 : vector<16x256xf32>
    %c0_86 = arith.constant 0 : index
    %c0_87 = arith.constant 0 : index
    %144 = vector.load %arg11[%c0_86, %c0_87] : memref<1x256xf32, #tpu.memory_space<vmem>>, vector<1x256xf32>
    %145 = vector.broadcast %144 : vector<1x256xf32> to vector<16x256xf32>
    %146 = arith.addf %143, %145 : vector<16x256xf32>
    %cst_88 = arith.constant 0.000000e+00 : f32
    %147 = vector.broadcast %cst_88 : f32 to vector<16x256xf32>
    %148 = arith.maximumf %146, %147 : vector<16x256xf32>
    %149 = arith.truncf %148 : vector<16x256xf32> to vector<16x256xbf16>
    %c0_89 = arith.constant 0 : index
    %c0_90 = arith.constant 0 : index
    %150 = vector.load %arg12[%c0_89, %c0_90] : memref<256x128xbf16, #tpu.memory_space<vmem>>, vector<256x128xbf16>
    %cst_91 = arith.constant dense<0.000000e+00> : vector<16x128xf32>
    %151 = tpu.matmul %149, %150, %cst_91 {dimension_numbers = #tpu.dot_dimension_numbers<[1], [0], [0], [1], [0, 0, 1, 1], [], []>} : vector<16x256xbf16>, vector<256x128xbf16>, vector<16x128xf32> -> vector<16x128xf32>
    %c0_92 = arith.constant 0 : index
    %c0_93 = arith.constant 0 : index
    %152 = vector.load %arg13[%c0_92, %c0_93] : memref<1x128xf32, #tpu.memory_space<vmem>>, vector<1x128xf32>
    %153 = vector.broadcast %152 : vector<1x128xf32> to vector<16x128xf32>
    %154 = arith.addf %151, %153 : vector<16x128xf32>
    %155 = vector.extract_strided_slice %154 {offsets = [0, 1], sizes = [16, 6], strides = [1, 1]} : vector<16x128xf32> to vector<16x6xf32>
    %cst_94 = arith.constant dense<0.000000e+00> : vector<16xf32>
    %156 = vector.multi_reduction <add>, %155, %cst_94 [1] : vector<16x6xf32> to vector<16xf32>
    %157 = vector.shape_cast %156 : vector<16xf32> to vector<16x1xf32>
    %cst_95 = arith.constant 6.000000e+00 : f32
    %158 = vector.broadcast %cst_95 : f32 to vector<16x1xf32>
    %159 = arith.divf %157, %158 : vector<16x1xf32>
    %160 = vector.extract_strided_slice %154 {offsets = [0, 0], sizes = [16, 1], strides = [1, 1]} : vector<16x128xf32> to vector<16x1xf32>
    %161 = vector.broadcast %159 : vector<16x1xf32> to vector<16x128xf32>
    %162 = arith.subf %154, %161 : vector<16x128xf32>
    %163 = vector.broadcast %160 : vector<16x1xf32> to vector<16x128xf32>
    %164 = arith.addf %163, %162 : vector<16x128xf32>
    %c0_96 = arith.constant 0 : index
    %c0_97 = arith.constant 0 : index
    %165 = vector.load %arg14[%c0_96, %c0_97] : memref<16x128xf32, #tpu.memory_space<vmem>>, vector<16x128xf32>
    tpu.vector_store %arg14[%c0_96, %c0_97], %164 {strides = array<i32>} : memref<16x128xf32, #tpu.memory_space<vmem>>, vector<16x128xf32>,
    return
  }
  func.func @transform_0(%arg0: i32) -> (i32, i32, i32) {
    %c0_i32 = arith.constant 0 : i32
    %c0_i32_0 = arith.constant 0 : i32
    %c0_i32_1 = arith.constant 0 : i32
    return %c0_i32, %arg0, %c0_i32_0 : i32, i32, i32
  }
  func.func @transform_1(%arg0: i32) -> (i32, i32, i32) {
    %c0_i32 = arith.constant 0 : i32
    %c0_i32_0 = arith.constant 0 : i32
    %c0_i32_1 = arith.constant 0 : i32
    %c0_i32_2 = arith.constant 0 : i32
    return %c0_i32, %c0_i32_0, %c0_i32_1 : i32, i32, i32
  }
  func.func @transform_2(%arg0: i32) -> (i32, i32) {
    %c0_i32 = arith.constant 0 : i32
    %c0_i32_0 = arith.constant 0 : i32
    %c0_i32_1 = arith.constant 0 : i32
    return %c0_i32, %c0_i32_0 : i32, i32
  }
  func.func @transform_3(%arg0: i32) -> (i32, i32, i32) {
    %c0_i32 = arith.constant 0 : i32
    %c0_i32_0 = arith.constant 0 : i32
    %c0_i32_1 = arith.constant 0 : i32
    %c0_i32_2 = arith.constant 0 : i32
    return %c0_i32, %c0_i32_0, %c0_i32_1 : i32, i32, i32
  }
  func.func @transform_4(%arg0: i32) -> (i32, i32) {
    %c0_i32 = arith.constant 0 : i32
    %c0_i32_0 = arith.constant 0 : i32
    %c0_i32_1 = arith.constant 0 : i32
    return %c0_i32, %c0_i32_0 : i32, i32
  }
  func.func @transform_5(%arg0: i32) -> (i32, i32, i32) {
    %c0_i32 = arith.constant 0 : i32
    %c0_i32_0 = arith.constant 0 : i32
    %c0_i32_1 = arith.constant 0 : i32
    %c0_i32_2 = arith.constant 0 : i32
    return %c0_i32, %c0_i32_0, %c0_i32_1 : i32, i32, i32
  }
  func.func @transform_6(%arg0: i32) -> (i32, i32) {
    %c0_i32 = arith.constant 0 : i32
    %c0_i32_0 = arith.constant 0 : i32
    %c0_i32_1 = arith.constant 0 : i32
    return %c0_i32, %c0_i32_0 : i32, i32
  }
  func.func @transform_7(%arg0: i32) -> (i32, i32, i32) {
    %c0_i32 = arith.constant 0 : i32
    %c0_i32_0 = arith.constant 0 : i32
    %c0_i32_1 = arith.constant 0 : i32
    %c0_i32_2 = arith.constant 0 : i32
    return %c0_i32, %c0_i32_0, %c0_i32_1 : i32, i32, i32
  }
  func.func @transform_8(%arg0: i32) -> (i32, i32) {
    %c0_i32 = arith.constant 0 : i32
    %c0_i32_0 = arith.constant 0 : i32
    %c0_i32_1 = arith.constant 0 : i32
    return %c0_i32, %c0_i32_0 : i32, i32
  }
  func.func @transform_9(%arg0: i32) -> (i32, i32, i32) {
    %c0_i32 = arith.constant 0 : i32
    %c0_i32_0 = arith.constant 0 : i32
    %c0_i32_1 = arith.constant 0 : i32
    %c0_i32_2 = arith.constant 0 : i32
    return %c0_i32, %c0_i32_0, %c0_i32_1 : i32, i32, i32
  }
  func.func @transform_10(%arg0: i32) -> (i32, i32) {
    %c0_i32 = arith.constant 0 : i32
    %c0_i32_0 = arith.constant 0 : i32
    %c0_i32_1 = arith.constant 0 : i32
    return %c0_i32, %c0_i32_0 : i32, i32
  }
  func.func @transform_11(%arg0: i32) -> (i32, i32) {
    %c0_i32 = arith.constant 0 : i32
    %c0_i32_0 = arith.constant 0 : i32
    %c0_i32_1 = arith.constant 0 : i32
    return %c0_i32, %c0_i32_0 : i32, i32
  }
  func.func @transform_12(%arg0: i32) -> (i32, i32) {
    %c0_i32 = arith.constant 0 : i32
    %c0_i32_0 = arith.constant 0 : i32
    %c0_i32_1 = arith.constant 0 : i32
    return %c0_i32, %c0_i32_0 : i32, i32
  }
  func.func @transform_13(%arg0: i32) -> (i32, i32) {
    %c0_i32 = arith.constant 0 : i32
    %c0_i32_0 = arith.constant 0 : i32
    return %arg0, %c0_i32 : i32, i32
  }
}

</mosaic_0001>

<bundles_post_ra>
// kernel: duel_network_forward.1
= control target key start
LH: loop header
LB: loop body
LE: loop exit
PB: predicated region body
PF: predicated region fallthrough
CT: control target
= control target key end

     0   :  { %18 = vsyncpa [#allocation3], 0  ;;  %s23242_s0 = inlined_call_operand.vmem [shape: bf16[16,16,64], index: 0, kind: input, shape index: {}]   ;;  %s23243_s1 = inlined_call_operand.hbm [shape: bf16[3,64,224], index: 1, kind: input, shape index: {}]   ;;  %s23244_s2 = inlined_call_operand.hbm [shape: f32[1,224], index: 2, kind: input, shape index: {}]   ;;  %s23245_s3 = inlined_call_operand.vmem [shape: bf16[3,224,384], index: 3, kind: input, shape index: {}]   ;;  %s23246_s4 = inlined_call_operand.hbm [shape: f32[1,384], index: 4, kind: input, shape index: {}]   ;;  %s23247_s5 = inlined_call_operand.vmem [shape: bf16[3,384,320], index: 5, kind: input, shape index: {}]   ;;  %s23248_s6 = inlined_call_operand.hbm [shape: f32[1,320], index: 6, kind: input, shape index: {}]   ;;  %s23249_s7 = inlined_call_operand.vmem [shape: bf16[3,320,512], index: 7, kind: input, shape index: {}]   ;;  %s23250_s8 = inlined_call_operand.hbm [shape: f32[1,512], index: 8, kind: input, shape index: {}]   ;;  %s23251_s9 = inlined_call_operand.hbm [shape: bf16[8,512,256], index: 9, kind: input, shape index: {}]   ;;  %s23252_s10 = inlined_call_operand.hbm [shape: f32[1,256], index: 10, kind: input, shape index: {}]   ;;  %s23253_s11 = inlined_call_operand.hbm [shape: bf16[256,128], index: 11, kind: input, shape index: {}]   ;;  %s23254_s12 = inlined_call_operand.hbm [shape: f32[1,128], index: 12, kind: input, shape index: {}]   ;;  %s23255_s13 = inlined_call_operand.vmem [shape: f32[16,128], index: 13, kind: output, shape index: {}]  }
   0x1   :  { %19 = vsyncpa [#allocation5], 0 }
   0x2   :  { %20 = vsyncpa [#allocation8], 0 }
   0x3   :  { %21 = vsyncpa [#allocation11], 0 }
   0x4   :  { %22 = vsyncpa [#allocation14], 0  ;;  %s17487_s25 = smov [#allocation4]   ;;  %s17488_s27 = smov [#allocation7]  }
   0x5   :  { %s43_s26 = sshll.u32 %s17487_s25, 4  ;;  %s67_s28 = sshll.u32 %s17488_s27, 4  ;;  %s44_s26 = int_to_ptr.vmem [resolvable:$true] %s43_s26  ;;  %s68_s28 = int_to_ptr.vmem [resolvable:$true] %s67_s28 }
   0x6   :  { %s17305_s29 = scalar_lea.vmem %s44_s26, 32  ;;  %p17310_p1 = scmp.lt.s32.totalorder %s44_s26, %s44_s26 }
   0x7   :  { %p17306_p0 = scmp.ne.s32.totalorder %s44_s26, %s17305_s29  ;;  %p17311_p2 = scmp.lt.s32.totalorder %s17305_s29, %s17305_s29 }
   0x9   :  { %p17312_p3 = por %p17311_p2, %p17310_p1 }
   0xb   :  { %p17313_p4 = pnand %p17312_p3, %p17306_p0 }
   0xd   :  { %17316 = shalt.err (!%p17313_p4)
}
   0xe   :  { %46 = dma.hbm_to_vmem [thread:$0]  %s23244_s2, 32, %s44_s26, [#allocation5]  }
   0xf   :  { %s17325_s15 = scalar_lea.vmem %s68_s28, 48  ;;  %s17329_s16 = scalar_lea.vmem %s68_s28, 64 }
  0x10   :  { %p17326_p5 = scmp.ne.s32.totalorder %s68_s28, %s17325_s15  ;;  %p17330_p6 = scmp.lt.s32.totalorder %s68_s28, %s68_s28 }
  0x11   :  { %p17331_p7 = scmp.lt.s32.totalorder %s17329_s16, %s17325_s15 }
  0x13   :  { %p17332_p8 = por %p17331_p7, %p17330_p6 }
  0x15   :  { %p17333_p9 = pnand %p17332_p8, %p17326_p5 }
  0x17   :  { %17336 = shalt.err (!%p17333_p9)
}
  0x18   :  { %70 = dma.hbm_to_vmem [thread:$0]  %s23248_s6, 48, %s68_s28, [#allocation8]  }
  0x19   :  { %s17489_s19 = smov [#allocation10]   ;;  %s17490_s21 = smov [#allocation13]  }
  0x1a   :  { %s88_s20 = sshll.u32 %s17489_s19, 4  ;;  %s110_s22 = sshll.u32 %s17490_s21, 4  ;;  %s89_s20 = int_to_ptr.vmem [resolvable:$true] %s88_s20  ;;  %s111_s22 = int_to_ptr.vmem [resolvable:$true] %s110_s22 }
  0x1b   :  { %s17345_s23 = scalar_lea.vmem %s89_s20, 65536  ;;  %p17350_p11 = scmp.lt.s32.totalorder %s89_s20, %s89_s20 }
  0x1c   :  { %p17346_p10 = scmp.ne.s32.totalorder %s89_s20, %s17345_s23  ;;  %p17351_p12 = scmp.lt.s32.totalorder %s17345_s23, %s17345_s23 }
  0x1e   :  { %p17352_p13 = por %p17351_p12, %p17350_p11 }
  0x20   :  { %p17353_p0 = pnand %p17352_p13, %p17346_p10 }
  0x22   :  { %17356 = shalt.err (!%p17353_p0)
}
  0x23   :  { %s17491_s2 = smov 128   ;;  %s17492_s24 = smov 8  }
  0x24   :  { %94 = dma.hbm_to_vmem [thread:$0]  %s23251_s9, 65536, %s89_s20, [#allocation11], %s17491_s2, %s17491_s2, %s17492_s24  }
  0x25   :  { %s17365_s6 = scalar_lea.vmem %s111_s22, 2048  ;;  %p17370_p2 = scmp.lt.s32.totalorder %s111_s22, %s111_s22 }
  0x26   :  { %p17366_p1 = scmp.ne.s32.totalorder %s111_s22, %s17365_s6  ;;  %p17371_p3 = scmp.lt.s32.totalorder %s17365_s6, %s17365_s6 }
  0x28   :  { %p17372_p4 = por %p17371_p3, %p17370_p2 }
  0x2a   :  { %p17373_p5 = pnand %p17372_p4, %p17366_p1 }
  0x2c   :  { %17376 = shalt.err (!%p17373_p5)
}
  0x2d   :  { %s17493_s27 = smov 64   ;;  %s17494_s28 = smov 4  }
  0x2e   :  { %116 = dma.hbm_to_vmem [thread:$0]  %s23253_s11, 2048, %s111_s22, [#allocation14], %s17493_s27, %s17493_s27, %s17494_s28  }
  0x2f   :  { %s17495_s14 = smov [#allocation2]   ;;  %s17496_s16 = smov [#allocation6]  }
  0x30   :  { %s30_s15 = sshll.u32 %s17495_s14, 4  ;;  %s55_s17 = sshll.u32 %s17496_s16, 4  ;;  %s31_s15 = int_to_ptr.vmem [resolvable:$true] %s30_s15  ;;  %s56_s17 = int_to_ptr.vmem [resolvable:$true] %s55_s17 }
  0x31   :  { %s17385_s9 = scalar_lea.vmem %s31_s15, 3072  ;;  %p17390_p7 = scmp.lt.s32.totalorder %s31_s15, %s31_s15 }
  0x32   :  { %p17386_p6 = scmp.ne.s32.totalorder %s31_s15, %s17385_s9  ;;  %p17391_p8 = scmp.lt.s32.totalorder %s17385_s9, %s17385_s9 }
  0x34   :  { %p17392_p9 = por %p17391_p8, %p17390_p7 }
  0x36   :  { %p17393_p10 = pnand %p17392_p9, %p17386_p6 }
  0x38   :  { %17396 = shalt.err (!%p17393_p10)
}
  0x39   :  { %36 = dma.hbm_to_vmem [thread:$0]  %s23243_s1, 3072, %s31_s15, [#allocation3], %s17491_s2, %s17491_s2, %s17492_s24  }
  0x3a   :  { %s17405_s20 = scalar_lea.vmem %s56_s17, 48  ;;  %s17409_s11 = scalar_lea.vmem %s56_s17, 64 }
  0x3b   :  { %p17406_p11 = scmp.ne.s32.totalorder %s56_s17, %s17405_s20  ;;  %p17410_p12 = scmp.lt.s32.totalorder %s56_s17, %s56_s17 }
  0x3c   :  { %p17411_p13 = scmp.lt.s32.totalorder %s17409_s11, %s17405_s20 }
  0x3e   :  { %p17412_p0 = por %p17411_p13, %p17410_p12 }
  0x40   :  { %p17413_p1 = pnand %p17412_p0, %p17406_p11 }
  0x42   :  { %17416 = shalt.err (!%p17413_p1)
}
  0x43   :  { %58 = dma.hbm_to_vmem [thread:$0]  %s23246_s4, 48, %s56_s17, [#allocation5]  }
  0x44   :  { %s17497_s23 = smov [#allocation9]   ;;  %s17498_s26 = smov [#allocation12]  }
  0x45   :  { %s79_s25 = sshll.u32 %s17497_s23, 4  ;;  %s101_s6 = sshll.u32 %s17498_s26, 4  ;;  %s80_s25 = int_to_ptr.vmem [resolvable:$true] %s79_s25  ;;  %s102_s6 = int_to_ptr.vmem [resolvable:$true] %s101_s6 }
  0x46   :  { %s17425_s27 = scalar_lea.vmem %s80_s25, 64  ;;  %p17430_p3 = scmp.lt.s32.totalorder %s80_s25, %s80_s25 }
  0x47   :  { %p17426_p2 = scmp.ne.s32.totalorder %s80_s25, %s17425_s27  ;;  %p17431_p4 = scmp.lt.s32.totalorder %s17425_s27, %s17425_s27 }
  0x49   :  { %p17432_p5 = por %p17431_p4, %p17430_p3 }
  0x4b   :  { %p17433_p6 = pnand %p17432_p5, %p17426_p2 }
  0x4d   :  { %17436 = shalt.err (!%p17433_p6)
}
  0x4e   :  { %82 = dma.hbm_to_vmem [thread:$0]  %s23250_s8, 64, %s80_s25, [#allocation8]  }
  0x4f   :  { %s17445_s24 = scalar_lea.vmem %s102_s6, 32  ;;  %p17450_p8 = scmp.lt.s32.totalorder %s102_s6, %s102_s6 }
  0x50   :  { %p17446_p7 = scmp.ne.s32.totalorder %s102_s6, %s17445_s24  ;;  %p17451_p9 = scmp.lt.s32.totalorder %s17445_s24, %s17445_s24 }
  0x52   :  { %p17452_p10 = por %p17451_p9, %p17450_p8 }
  0x54   :  { %p17453_p11 = pnand %p17452_p10, %p17446_p7 }
  0x56   :  { %17456 = shalt.err (!%p17453_p11)
}
  0x57   :  { %104 = dma.hbm_to_vmem [thread:$0]  %s23252_s10, 32, %s102_s6, [#allocation11]  }
  0x58   :  { %s17499_s29 = smov [#allocation15]  }
  0x59   :  { %s123_s30 = sshll.u32 %s17499_s29, 4  ;;  %s124_s30 = int_to_ptr.vmem [resolvable:$true] %s123_s30 }
  0x5a   :  { %s17465_s14 = scalar_lea.vmem %s124_s30, 16  ;;  %s17469_s15 = scalar_lea.vmem %s124_s30, 32 }
  0x5b   :  { %p17466_p12 = scmp.ne.s32.totalorder %s124_s30, %s17465_s14  ;;  %p17470_p13 = scmp.lt.s32.totalorder %s124_s30, %s124_s30 }
  0x5c   :  { %p17471_p0 = scmp.lt.s32.totalorder %s17469_s15, %s17465_s14 }
  0x5e   :  { %p17472_p1 = por %p17471_p0, %p17470_p13 }
  0x60   :  { %p17473_p2 = pnand %p17472_p1, %p17466_p12 }
  0x62   :  { %17476 = shalt.err (!%p17473_p2)
}
  0x63   :  { %126 = dma.hbm_to_vmem [thread:$0]  %s23254_s12, 16, %s124_s30, [#allocation14]  }
  0x64   :  { %17477 = dma.done.wait [#allocation3], 3072  }
  0x65   :  { %17478 = vsyncadd [#allocation3], 4294964224 }
  0x66   :  { %17479 = dma.done.wait [#allocation5], 80  }
  0x67   :  { %17480 = vsyncadd [#allocation5], 4294967216 }
  0x68   :  { %17481 = dma.done.wait [#allocation8], 112  }
  0x69   :  { %17482 = vsyncadd [#allocation8], 4294967184 }
  0x6a   :  { %17483 = dma.done.wait [#allocation11], 65568  }
  0x6b   :  { %17484 = vsyncadd [#allocation11], 4294901728 }
  0x6c   :  { %17485 = dma.done.wait [#allocation14], 2064  }
  0x6d   :  { %17486 = vsyncadd [#allocation14], 4294965232  ;;  %v23256_v0 = vmov 0   ;;  %v15644_v1 = vld [vmem:[#allocation2 + $0x74] ss:$8 sps:$4 sm:$0xff]   ;;  %v15668_v18 = vld [vmem:[%s23242_s0 + $0x8] sm:$0xff]  }
  0x6e   :  { %389 = vmatprep.mubr.bf16.mxu0 %v23256_v0  ;;  %610 = vmatprep.mubr.bf16.mxu1 %v23256_v0  ;;  %v15646_v2 = vld [vmem:[#allocation2 + $0x34] ss:$8 sps:$4 sm:$0xff]   ;;  %v15648_v3 = vld [vmem:[#allocation2 + $0x70] ss:$8 sps:$4 sm:$0xff]   ;;  %v15650_v5 = vld [vmem:[#allocation2 + $0x64] ss:$8 sps:$4 sm:$0xff]  }
  0x6f   :  { %15642 = vset.pattern.permute.xlu0 %v23256_v0  ;;  %15643 = vset.pattern.permute.xlu1 %v23256_v0  ;;  %v15649_v4 = vld [vmem:[#allocation2 + $0x30] ss:$8 sps:$4 sm:$0xff]   ;;  %v15652_v6 = vld [vmem:[#allocation2 + $0x24] ss:$8 sps:$4 sm:$0xff]   ;;  %v15654_v7 = vld [vmem:[#allocation2 + $0x60] ss:$8 sps:$4 sm:$0xff]  }
  0x70   :  { %365 = vmatprep.subr.bf16.mxu0 %v15644_v1  ;;  %586 = vmatprep.subr.bf16.mxu1 %v15646_v2  ;;  %v15655_v8 = vld [vmem:[#allocation2 + $0x20] ss:$8 sps:$4 sm:$0xff]   ;;  %v15656_v9 = vld [vmem:[#allocation2 + $0x54] ss:$8 sps:$4 sm:$0xff]   ;;  %v15660_v11 = vld [vmem:[#allocation2 + $0x50] ss:$8 sps:$4 sm:$0xff]  }
  0x71   :  { %366 = vmatpush1.bf16.msra.mxu0 %v15648_v3  ;;  %587 = vmatpush1.bf16.msra.mxu1 %v15649_v4  ;;  %v15658_v10 = vld [vmem:[#allocation2 + $0x14] ss:$8 sps:$4 sm:$0xff]   ;;  %v15661_v12 = vld [vmem:[#allocation2 + $0x10] ss:$8 sps:$4 sm:$0xff]   ;;  %v15662_v13 = vld [vmem:[#allocation2 + $0x44] ss:$8 sps:$4 sm:$0xff]  }
  0x72   :  { %367 = vmatprep.subr.bf16.mxu0 %v15650_v5  ;;  %588 = vmatprep.subr.bf16.mxu1 %v15652_v6  ;;  %v15664_v14 = vld [vmem:[#allocation2 + $0x4] ss:$8 sps:$4 sm:$0xff]   ;;  %v15666_v15 = vld [vmem:[#allocation2 + $0x40] ss:$8 sps:$4 sm:$0xff]   ;;  %v15672_v17 = vld [vmem:[#allocation2 + $0xb4] ss:$8 sps:$4 sm:$0xff]  }
  0x73   :  { %v15667_v16 = vld [vmem:[#allocation2] ss:$8 sps:$4 sm:$0xff]   ;;  %vm314_vm0 = vcmask 523264   ;;  %v15670_v20 = vld [vmem:[#allocation2 + $0xb0] ss:$8 sps:$4 sm:$0xff]   ;;  %vm1526_vm1 = vcmask 785408  }
  0x74   :  { %v15669_v19 = vld [vmem:[%s23242_s0] sm:$0xff]   ;;  %v17616_v23 = vld [vmem:[%s23242_s0 + $0x10] sm:$0xff]   ;;  %v17626_v28 = vld [vmem:[%s23242_s0 + $0x18] sm:$0xff]   ;;  %vm13405_vm2 = vcmask 48128  }
  0x75   :  { %368 = vmatpush1.bf16.msra.mxu0 %v15654_v7  ;;  %589 = vmatpush1.bf16.msra.mxu1 %v15655_v8  ;;  %v15678_v21 = vld [vmem:[#allocation2 + $0xa4] ss:$8 sps:$4 sm:$0xff]   ;;  %v15676_v22 = vld [vmem:[#allocation2 + $0xa0] ss:$8 sps:$4 sm:$0xff]   ;;  %v15685_v24 = vld [vmem:[#allocation2 + $0x94] ss:$8 sps:$4 sm:$0xff]  }
  0x76   :  { %369 = vmatprep.subr.bf16.mxu0 %v15656_v9  ;;  %590 = vmatprep.subr.bf16.mxu1 %v15658_v10  ;;  %v15683_v25 = vld [vmem:[#allocation2 + $0x90] ss:$8 sps:$4 sm:$0xff]   ;;  %v15691_v26 = vld [vmem:[#allocation2 + $0x84] ss:$8 sps:$4 sm:$0xff]   ;;  %v15689_v27 = vld [vmem:[#allocation2 + $0x80] ss:$8 sps:$4 sm:$0xff]  }
  0x77   :  { %v17637_v29 = vld [vmem:[%s23242_s0 + $0x20] sm:$0xff]   ;;  %v17648_v30 = vld [vmem:[%s23242_s0 + $0x28] sm:$0xff]   ;;  %v17659_v31 = vld [vmem:[%s23242_s0 + $0x30] sm:$0xff]  }
  0x78   :  { %v17670_v32 = vld [vmem:[%s23242_s0 + $0x38] sm:$0xff]   ;;  %v17681_v33 = vld [vmem:[%s23242_s0 + $0x40] sm:$0xff]   ;;  %v17692_v34 = vld [vmem:[%s23242_s0 + $0x48] sm:$0xff]  }
  0x79   :  { %370 = vmatpush1.bf16.msra.mxu0 %v15660_v11  ;;  %591 = vmatpush1.bf16.msra.mxu1 %v15661_v12  ;;  %v17703_v35 = vld [vmem:[%s23242_s0 + $0x50] sm:$0xff]   ;;  %v17714_v36 = vld [vmem:[%s23242_s0 + $0x58] sm:$0xff]   ;;  %v17725_v37 = vld [vmem:[%s23242_s0 + $0x60] sm:$0xff]  }
  0x7a   :  { %371 = vmatprep.subr.bf16.mxu0 %v15662_v13  ;;  %592 = vmatprep.subr.bf16.mxu1 %v15664_v14  ;;  %v15696_v38 = vld [vmem:[%s23245_s3 + $0x1f8] ss:$12 sps:$4 sm:$0xff]   ;;  %v15698_v39 = vld [vmem:[%s23245_s3 + $0x1fc] ss:$12 sps:$4 sm:$0xff]   ;;  %v15699_v41 = vld [vmem:[%s23245_s3 + $0x1e0] ss:$12 sps:$4 sm:$0xff]  }
  0x7b   :  { %v17742_v40 = vld [vmem:[%s23242_s0 + $0x68] sm:$0xff]   ;;  %v15701_v42 = vld [vmem:[%s23245_s3 + $0x1e4] ss:$12 sps:$4 sm:$0xff]   ;;  %v15707_v47 = vld [vmem:[%s23245_s3 + $0x1b4] ss:$12 sps:$4 sm:$0xff]  }
  0x7c   :  { %v17759_v43 = vld [vmem:[%s23242_s0 + $0x70] sm:$0xff]   ;;  %v15704_v45 = vld [vmem:[%s23245_s3 + $0x1cc] ss:$12 sps:$4 sm:$0xff]   ;;  %v15710_v49 = vld [vmem:[%s23245_s3 + $0x19c] ss:$12 sps:$4 sm:$0xff]  }
  0x7d   :  { %372 = vmatpush1.bf16.msra.mxu0 %v15666_v15  ;;  %593 = vmatpush1.bf16.msra.mxu1 %v15667_v16  ;;  %v15702_v44 = vld [vmem:[%s23245_s3 + $0x1c8] ss:$12 sps:$4 sm:$0xff]   ;;  %v15705_v46 = vld [vmem:[%s23245_s3 + $0x1b0] ss:$12 sps:$4 sm:$0xff]   ;;  %v15708_v48 = vld [vmem:[%s23245_s3 + $0x198] ss:$12 sps:$4 sm:$0xff]  }
  0x7e   :  { %816 = vmatprep.subr.bf16.mxu0 %v15672_v17  ;;  %1563 = vmatprep.subr.bf16.mxu1 %v15698_v39  ;;  %v15711_v50 = vld [vmem:[%s23245_s3 + $0x180] ss:$12 sps:$4 sm:$0xff]   ;;  %v15713_v51 = vld [vmem:[%s23245_s3 + $0x184] ss:$12 sps:$4 sm:$0xff]   ;;  %v15717_v53 = vld [vmem:[%s23245_s3 + $0xa8] ss:$12 sps:$4 sm:$0xff]  }
  0x7f   :  { %v15719_v52 = vld [vmem:[%s23245_s3 + $0xac] ss:$12 sps:$4 sm:$0xff]   ;;  %v15714_v54 = vld [vmem:[%s23245_s3 + $0x168] ss:$12 sps:$4 sm:$0xff]   ;;  %v15720_v57 = vld [vmem:[%s23245_s3 + $0x90] ss:$12 sps:$4 sm:$0xff]  }
  0x80   :  { %13460 = vmatmul.mubr.msk.bf16.vlgmr.msra.gmra.mxu0 %vm314_vm0, %v15668_v18  ;;  %13483 = vmatmul.mubr.msk.bf16.vlgmr.msra.gmra.mxu1 %vm314_vm0, %v15669_v19  ;;  %v15716_v55 = vld [vmem:[%s23245_s3 + $0x16c] ss:$12 sps:$4 sm:$0xff]   ;;  %v15722_v56 = vld [vmem:[%s23245_s3 + $0x94] ss:$12 sps:$4 sm:$0xff]   ;;  %v15728_v58 = vld [vmem:[%s23245_s3 + $0x7c] ss:$12 sps:$4 sm:$0xff]  }
  0x81   :  { %817 = vmatpush1.bf16.msra.mxu0 %v15670_v20  ;;  %399 = vmatprep.mubr.bf16.mxu0 %v23256_v0  ;;  %v15726_v59 = vld [vmem:[%s23245_s3 + $0x78] ss:$12 sps:$4 sm:$0xff]   ;;  %v15723_v60 = vld [vmem:[%s23245_s3 + $0x150] ss:$12 sps:$4 sm:$0xff]   ;;  %v15725_v61 = vld [vmem:[%s23245_s3 + $0x154] ss:$12 sps:$4 sm:$0xff]  }
  0x82   :  { %620 = vmatprep.mubr.bf16.mxu1 %v23256_v0  ;;  %818 = vmatprep.subr.bf16.mxu0 %v15678_v21  ;;  %v15731_v62 = vld [vmem:[%s23245_s3 + $0x64] ss:$12 sps:$4 sm:$0xff]   ;;  %v15729_v63 = vld [vmem:[%s23245_s3 + $0x60] ss:$12 sps:$4 sm:$0xff]   ;;  %v15735_v2 = vld [vmem:[%s23245_s3 + $0x48] ss:$12 sps:$4 sm:$0xff]  }
  0x83   :  { %1564 = vmatpush1.bf16.msra.mxu1 %v15696_v38  ;;  %v15737_v1 = vld [vmem:[%s23245_s3 + $0x4c] ss:$12 sps:$4 sm:$0xff]   ;;  %v15732_v3 = vld [vmem:[%s23245_s3 + $0x288] ss:$12 sps:$4 sm:$0xff]   ;;  %v15738_v6 = vld [vmem:[%s23245_s3 + $0x30] ss:$12 sps:$4 sm:$0xff]  }
  0x84   :  { %1565 = vmatprep.subr.bf16.mxu1 %v15701_v42  ;;  %v15734_v4 = vld [vmem:[%s23245_s3 + $0x28c] ss:$12 sps:$4 sm:$0xff]   ;;  %v15740_v5 = vld [vmem:[%s23245_s3 + $0x34] ss:$12 sps:$4 sm:$0xff]   ;;  %v15746_v7 = vld [vmem:[%s23245_s3 + $0x1c] ss:$12 sps:$4 sm:$0xff]  }
  0x85   :  { %819 = vmatpush1.bf16.msra.mxu0 %v15676_v22  ;;  %v15744_v8 = vld [vmem:[%s23245_s3 + $0x18] ss:$12 sps:$4 sm:$0xff]   ;;  %v15741_v9 = vld [vmem:[%s23245_s3 + $0x270] ss:$12 sps:$4 sm:$0xff]   ;;  %v15743_v10 = vld [vmem:[%s23245_s3 + $0x274] ss:$12 sps:$4 sm:$0xff]  }
  0x86   :  { %820 = vmatprep.subr.bf16.mxu0 %v15685_v24  ;;  %v15749_v11 = vld [vmem:[%s23245_s3 + $0x4] ss:$12 sps:$4 sm:$0xff]   ;;  %v15747_v12 = vld [vmem:[%s23245_s3] ss:$12 sps:$4 sm:$0xff]   ;;  %v15755_v13 = vld [vmem:[%s23245_s3 + $0x13c] ss:$12 sps:$4 sm:$0xff]  }
  0x87   :  { %1566 = vmatpush1.bf16.msra.mxu1 %v15699_v41  ;;  %v15753_v14 = vld [vmem:[%s23245_s3 + $0x138] ss:$12 sps:$4 sm:$0xff]   ;;  %v15752_v16 = vld [vmem:[%s23245_s3 + $0x25c] ss:$12 sps:$4 sm:$0xff]   ;;  %v15767_v21 = vld [vmem:[%s23245_s3 + $0xf4] ss:$12 sps:$4 sm:$0xff]  }
  0x88   :  { %13461 = vmatmul.mubr.msk.bf16.gmra.mxu0 %vm314_vm0, %v17616_v23  ;;  %13484 = vmatmul.mubr.msk.bf16.gmra.mxu1 %vm314_vm0, %v15668_v18  ;;  %v15750_v15 = vld [vmem:[%s23245_s3 + $0x258] ss:$12 sps:$4 sm:$0xff]   ;;  %v15756_v18 = vld [vmem:[%s23245_s3 + $0x120] ss:$12 sps:$4 sm:$0xff]   ;;  %v15762_v20 = vld [vmem:[%s23245_s3 + $0x108] ss:$12 sps:$4 sm:$0xff]  }
  0x89   :  { %409 = vmatprep.mubr.bf16.mxu0 %v23256_v0  ;;  %630 = vmatprep.mubr.bf16.mxu1 %v23256_v0  ;;  %v15758_v17 = vld [vmem:[%s23245_s3 + $0x124] ss:$12 sps:$4 sm:$0xff]   ;;  %v15764_v19 = vld [vmem:[%s23245_s3 + $0x10c] ss:$12 sps:$4 sm:$0xff]  }
  0x8a   :  { %821 = vmatpush1.bf16.msra.mxu0 %v15683_v25  ;;  %1567 = vmatprep.subr.bf16.mxu1 %v15704_v45  ;;  %v15765_v22 = vld [vmem:[%s23245_s3 + $0xf0] ss:$12 sps:$4 sm:$0xff]  }
  0x8b   :  { %822 = vmatprep.subr.bf16.mxu0 %v15691_v26  ;;  %1568 = vmatpush1.bf16.msra.mxu1 %v15702_v44  ;;  %v15761_v24 = vld [vmem:[%s23245_s3 + $0x244] ss:$12 sps:$4 sm:$0xff]   ;;  %v15773_v25 = vld [vmem:[%s23245_s3 + $0xdc] ss:$12 sps:$4 sm:$0xff]  }
  0x8c   :  { %1569 = vmatprep.subr.bf16.mxu1 %v15707_v47  ;;  %v15771_v26 = vld [vmem:[%s23245_s3 + $0xd8] ss:$12 sps:$4 sm:$0xff]  }
  0x8e   :  { %823 = vmatpush1.bf16.msra.mxu0 %v15689_v27  ;;  %v15776_v27 = vld [vmem:[%s23245_s3 + $0xc4] ss:$12 sps:$4 sm:$0xff]  }
  0x8f   :  { %1570 = vmatpush1.bf16.msra.mxu1 %v15705_v46  ;;  %2072 = vmatprep.subr.bf16.mxu0 %v15719_v52 }
  0x90   :  { %13462 = vmatmul.mubr.msk.bf16.gmra.mxu0 %vm314_vm0, %v17626_v28  ;;  %13485 = vmatmul.mubr.msk.bf16.gmra.mxu1 %vm314_vm0, %v17616_v23 }
  0x91   :  { %419 = vmatprep.mubr.bf16.mxu0 %v23256_v0  ;;  %640 = vmatprep.mubr.bf16.mxu1 %v23256_v0 }
  0x92   :  { %1571 = vmatprep.subr.bf16.mxu1 %v15710_v49  ;;  %v15695_v49 = vld [vmem:[%s23242_s0 + $0x78] sm:$0xff]  }
  0x93   :  { %1572 = vmatpush1.bf16.msra.mxu1 %v15708_v48 }
  0x94   :  { %1573 = vmatprep.subr.bf16.mxu1 %v15713_v51 }
  0x97   :  { %1574 = vmatpush1.bf16.msra.mxu1 %v15711_v50 }
  0x98   :  { %13463 = vmatmul.mubr.msk.bf16.gmra.mxu0 %vm314_vm0, %v17637_v29  ;;  %13486 = vmatmul.mubr.msk.bf16.gmra.mxu1 %vm314_vm0, %v17626_v28 }
  0x99   :  { %429 = vmatprep.mubr.bf16.mxu0 %v23256_v0  ;;  %650 = vmatprep.mubr.bf16.mxu1 %v23256_v0 }
  0x9a   :  { %1575 = vmatprep.subr.bf16.mxu1 %v15716_v55 }
  0x9b   :  { %1576 = vmatpush1.bf16.msra.mxu1 %v15714_v54 }
  0x9c   :  { %1577 = vmatprep.subr.bf16.mxu1 %v15725_v61 }
  0x9f   :  { %1578 = vmatpush1.bf16.msra.mxu1 %v15723_v60 }
  0xa0   :  { %13464 = vmatmul.mubr.msk.bf16.gmra.mxu0 %vm314_vm0, %v17648_v30  ;;  %13487 = vmatmul.mubr.msk.bf16.gmra.mxu1 %vm314_vm0, %v17637_v29 }
  0xa1   :  { %439 = vmatprep.mubr.bf16.mxu0 %v23256_v0  ;;  %660 = vmatprep.mubr.bf16.mxu1 %v23256_v0 }
  0xa2   :  { %1583 = vmatprep.subr.bf16.mxu1 %v15734_v4 }
  0xa3   :  { %1584 = vmatpush2.bf16.msra.mxu1 %v15732_v3 }
  0xa4   :  { %1585 = vmatprep.subr.bf16.mxu1 %v15743_v10 }
  0xa7   :  { %1586 = vmatpush2.bf16.msra.mxu1 %v15741_v9 }
  0xa8   :  { %13465 = vmatmul.mubr.msk.bf16.gmra.mxu0 %vm314_vm0, %v17659_v31  ;;  %13488 = vmatmul.mubr.msk.bf16.gmra.mxu1 %vm314_vm0, %v17648_v30 }
  0xa9   :  { %449 = vmatprep.mubr.bf16.mxu0 %v23256_v0  ;;  %670 = vmatprep.mubr.bf16.mxu1 %v23256_v0 }
  0xaa   :  { %1587 = vmatprep.subr.bf16.mxu1 %v15752_v16 }
  0xab   :  { %1588 = vmatpush2.bf16.msra.mxu1 %v15750_v15 }
  0xac   :  { %1589 = vmatprep.subr.bf16.mxu1 %v15761_v24 }
  0xb0   :  { %13466 = vmatmul.mubr.msk.bf16.gmra.mxu0 %vm314_vm0, %v17670_v32  ;;  %13489 = vmatmul.mubr.msk.bf16.gmra.mxu1 %vm314_vm0, %v17659_v31 }
  0xb1   :  { %459 = vmatprep.mubr.bf16.mxu0 %v23256_v0  ;;  %680 = vmatprep.mubr.bf16.mxu1 %v23256_v0 }
  0xb8   :  { %13467 = vmatmul.mubr.msk.bf16.gmra.mxu0 %vm314_vm0, %v17681_v33  ;;  %13490 = vmatmul.mubr.msk.bf16.gmra.mxu1 %vm314_vm0, %v17670_v32 }
  0xb9   :  { %469 = vmatprep.mubr.bf16.mxu0 %v23256_v0  ;;  %690 = vmatprep.mubr.bf16.mxu1 %v23256_v0 }
  0xc0   :  { %13468 = vmatmul.mubr.msk.bf16.gmra.mxu0 %vm314_vm0, %v17692_v34  ;;  %13491 = vmatmul.mubr.msk.bf16.gmra.mxu1 %vm314_vm0, %v17681_v33 }
  0xc1   :  { %479 = vmatprep.mubr.bf16.mxu0 %v23256_v0  ;;  %700 = vmatprep.mubr.bf16.mxu1 %v23256_v0 }
  0xc8   :  { %13469 = vmatmul.mubr.msk.bf16.gmra.mxu0 %vm314_vm0, %v17703_v35  ;;  %13492 = vmatmul.mubr.msk.bf16.gmra.mxu1 %vm314_vm0, %v17692_v34 }
  0xc9   :  { %489 = vmatprep.mubr.bf16.mxu0 %v23256_v0  ;;  %710 = vmatprep.mubr.bf16.mxu1 %v23256_v0 }
  0xd0   :  { %13470 = vmatmul.mubr.msk.bf16.gmra.mxu0 %vm314_vm0, %v17714_v36  ;;  %13493 = vmatmul.mubr.msk.bf16.gmra.mxu1 %vm314_vm0, %v17703_v35 }
  0xd1   :  { %499 = vmatprep.mubr.bf16.mxu0 %v23256_v0  ;;  %720 = vmatprep.mubr.bf16.mxu1 %v23256_v0 }
  0xd8   :  { %13471 = vmatmul.mubr.msk.bf16.gmra.mxu0 %vm314_vm0, %v17725_v37  ;;  %13494 = vmatmul.mubr.msk.bf16.gmra.mxu1 %vm314_vm0, %v17714_v36 }
  0xd9   :  { %509 = vmatprep.mubr.bf16.mxu0 %v23256_v0  ;;  %730 = vmatprep.mubr.bf16.mxu1 %v23256_v0 }
  0xe0   :  { %13472 = vmatmul.mubr.msk.bf16.gmra.mxu0 %vm314_vm0, %v17742_v40  ;;  %13495 = vmatmul.mubr.msk.bf16.gmra.mxu1 %vm314_vm0, %v17725_v37 }
  0xe1   :  { %519 = vmatprep.mubr.bf16.mxu0 %v23256_v0  ;;  %740 = vmatprep.mubr.bf16.mxu1 %v23256_v0 }
  0xe8   :  { %13473 = vmatmul.mubr.msk.bf16.gmra.mxu0 %vm314_vm0, %v17759_v43  ;;  %13496 = vmatmul.mubr.msk.bf16.gmra.mxu1 %vm314_vm0, %v17742_v40 }
  0xe9   :  { %840 = vmatprep.mubr.bf16.mxu0 %v23256_v0 }
  0xf0   :  { %13506 = vmatmul.mubr.msk.bf16.vlgmr.msra.gmra.mxu0 %vm314_vm0, %v17616_v23  ;;  %v15759_v23 = vld [vmem:[%s23245_s3 + $0x240] ss:$12 sps:$4 sm:$0xff]  }
  0xf1   :  { %850 = vmatprep.mubr.bf16.mxu0 %v23256_v0  ;;  %2073 = vmatpush1.bf16.msra.mxu0 %v15717_v53 }
  0xf2   :  { %2074 = vmatprep.subr.bf16.mxu0 %v15722_v56  ;;  %1590 = vmatpush2.bf16.msra.mxu1 %v15759_v23 }
  0xf5   :  { %2075 = vmatpush1.bf16.msra.mxu0 %v15720_v57 }
  0xf6   :  { %2076 = vmatprep.subr.bf16.mxu0 %v15728_v58 }
  0xf8   :  { %13507 = vmatmul.mubr.msk.bf16.gmra.mxu0 %vm314_vm0, %v17626_v28  ;;  %v15774_v28 = vld [vmem:[%s23245_s3 + $0xc0] ss:$12 sps:$4 sm:$0xff]  }
  0xf9   :  { %860 = vmatprep.mubr.bf16.mxu0 %v23256_v0  ;;  %2077 = vmatpush1.bf16.msra.mxu0 %v15726_v59 }
  0xfa   :  { %2078 = vmatprep.subr.bf16.mxu0 %v15731_v62 }
  0xfd   :  { %2079 = vmatpush1.bf16.msra.mxu0 %v15729_v63 }
  0xfe   :  { %2080 = vmatprep.subr.bf16.mxu0 %v15737_v1  ;;  %v15787_v1 = vld [vmem:[%s23245_s3 + $0x34c] ss:$12 sps:$4 sm:$0xff]  }
 0x100   :  { %13508 = vmatmul.mubr.msk.bf16.gmra.mxu0 %vm314_vm0, %v17637_v29  ;;  %v15768_v29 = vld [vmem:[%s23245_s3 + $0x228] ss:$12 sps:$4 sm:$0xff]  }
 0x101   :  { %870 = vmatprep.mubr.bf16.mxu0 %v23256_v0  ;;  %2081 = vmatpush1.bf16.msra.mxu0 %v15735_v2 }
 0x102   :  { %2082 = vmatprep.subr.bf16.mxu0 %v15740_v5 }
 0x105   :  { %2083 = vmatpush1.bf16.msra.mxu0 %v15738_v6 }
 0x106   :  { %2084 = vmatprep.subr.bf16.mxu0 %v15746_v7 }
 0x108   :  { %13509 = vmatmul.mubr.msk.bf16.gmra.mxu0 %vm314_vm0, %v17648_v30  ;;  %v15770_v30 = vld [vmem:[%s23245_s3 + $0x22c] ss:$12 sps:$4 sm:$0xff]  }
 0x109   :  { %880 = vmatprep.mubr.bf16.mxu0 %v23256_v0  ;;  %2085 = vmatpush1.bf16.msra.mxu0 %v15744_v8 }
 0x10a   :  { %2086 = vmatprep.subr.bf16.mxu0 %v15749_v11  ;;  %1591 = vmatprep.subr.bf16.mxu1 %v15770_v30 }
 0x10b   :  { %1592 = vmatpush2.bf16.msra.mxu1 %v15768_v29 }
 0x10d   :  { %2087 = vmatpush1.bf16.msra.mxu0 %v15747_v12 }
 0x10e   :  { %2092 = vmatprep.subr.bf16.mxu0 %v15755_v13 }
 0x110   :  { %13510 = vmatmul.mubr.msk.bf16.gmra.mxu0 %vm314_vm0, %v17659_v31 }
 0x111   :  { %890 = vmatprep.mubr.bf16.mxu0 %v23256_v0  ;;  %2093 = vmatpush2.bf16.msra.mxu0 %v15753_v14 }
 0x112   :  { %2094 = vmatprep.subr.bf16.mxu0 %v15758_v17 }
 0x115   :  { %2095 = vmatpush2.bf16.msra.mxu0 %v15756_v18 }
 0x116   :  { %2096 = vmatprep.subr.bf16.mxu0 %v15764_v19 }
 0x118   :  { %13511 = vmatmul.mubr.msk.bf16.gmra.mxu0 %vm314_vm0, %v17670_v32 }
 0x119   :  { %900 = vmatprep.mubr.bf16.mxu0 %v23256_v0  ;;  %2097 = vmatpush2.bf16.msra.mxu0 %v15762_v20 }
 0x11a   :  { %2098 = vmatprep.subr.bf16.mxu0 %v15767_v21 }
 0x11d   :  { %2099 = vmatpush2.bf16.msra.mxu0 %v15765_v22 }
 0x11e   :  { %2100 = vmatprep.subr.bf16.mxu0 %v15773_v25 }
 0x120   :  { %13512 = vmatmul.mubr.msk.bf16.gmra.mxu0 %vm314_vm0, %v17681_v33 }
 0x121   :  { %910 = vmatprep.mubr.bf16.mxu0 %v23256_v0  ;;  %2101 = vmatpush2.bf16.msra.mxu0 %v15771_v26 }
 0x122   :  { %2102 = vmatprep.subr.bf16.mxu0 %v15776_v27 }
 0x125   :  { %2103 = vmatpush2.bf16.msra.mxu0 %v15774_v28 }
 0x126   :  { %2638 = vmatprep.subr.bf16.mxu0 %v15787_v1 }
 0x128   :  { %13513 = vmatmul.mubr.msk.bf16.gmra.mxu0 %vm314_vm0, %v17692_v34  ;;  %v15779_v34 = vld [vmem:[%s23245_s3 + $0x214] ss:$12 sps:$4 sm:$0xff]  }
 0x129   :  { %920 = vmatprep.mubr.bf16.mxu0 %v23256_v0  ;;  %1593 = vmatprep.subr.bf16.mxu1 %v15779_v34 }
 0x130   :  { %13514 = vmatmul.mubr.msk.bf16.gmra.mxu0 %vm314_vm0, %v17703_v35  ;;  %v15777_v35 = vld [vmem:[%s23245_s3 + $0x210] ss:$12 sps:$4 sm:$0xff]  }
 0x131   :  { %930 = vmatprep.mubr.bf16.mxu0 %v23256_v0  ;;  %1594 = vmatpush2.bf16.msra.mxu1 %v15777_v35 }
 0x132   :  { %1716 = vmatprep.subr.bf16.mxu1 %v23256_v0 }
 0x138   :  { %13515 = vmatmul.mubr.msk.bf16.gmra.mxu0 %vm314_vm0, %v17714_v36 }
 0x139   :  { %940 = vmatprep.mubr.bf16.mxu0 %v23256_v0 }
 0x140   :  { %v17946_v31 = vpop.f32.mrf.mxu0  ;;  %v17948_v32 = vpop.f32.mrf.mxu1  ;;  %13516 = vmatmul.mubr.msk.bf16.gmra.mxu0 %vm314_vm0, %v17725_v37 }
 0x141   :  { %950 = vmatprep.mubr.bf16.mxu0 %v23256_v0 }
 0x142   :  { %v17953_v33 = vpop.f32.mrf.mxu0  ;;  %v17961_v36 = vpop.f32.mrf.mxu1 }
 0x144   :  { %v17963_v38 = vpop.f32.mrf.mxu0  ;;  %v17968_v39 = vpop.f32.mrf.mxu1 }
 0x146   :  { %v17965_v37 = vpop.f32.mrf.mxu0  ;;  %v17977_v44 = vpop.f32.mrf.mxu1 }
 0x148   :  { %v17970_v41 = vpop.f32.mrf.mxu0  ;;  %13517 = vmatmul.mubr.msk.bf16.gmra.mxu0 %vm314_vm0, %v17742_v40  ;;  %v17983_v47 = vpop.f32.mrf.mxu1 }
 0x149   :  { %960 = vmatprep.mubr.bf16.mxu0 %v23256_v0 }
 0x14a   :  { %v17975_v42 = vpop.f32.mrf.mxu0  ;;  %v17995_v50 = vpop.f32.mrf.mxu1 }
 0x14c   :  { %v17979_v45 = vpop.f32.mrf.mxu0  ;;  %v18001_v53 = vpop.f32.mrf.mxu1 }
 0x14e   :  { %v17981_v46 = vpop.f32.mrf.mxu0  ;;  %v18008_v55 = vpop.f32.mrf.mxu1 }
 0x150   :  { %v17985_v48 = vpop.f32.mrf.mxu0  ;;  %13518 = vmatmul.mubr.msk.bf16.gmra.mxu0 %vm314_vm0, %v17759_v43  ;;  %v18014_v58 = vpop.f32.mrf.mxu1 }
 0x151   :  { %970 = vmatprep.mubr.bf16.mxu0 %v23256_v0 }
 0x152   :  { %v17990_v40 = vpop.f32.mrf.mxu0  ;;  %v18020_v61 = vpop.f32.mrf.mxu1 }
 0x154   :  { %v17997_v51 = vpop.f32.mrf.mxu0  ;;  %v18029_v2 = vpop.f32.mrf.mxu1 }
 0x156   :  { %v17999_v52 = vpop.f32.mrf.mxu0  ;;  %v18035_v5 = vpop.f32.mrf.mxu1 }
 0x158   :  { %v18003_v54 = vpop.f32.mrf.mxu0  ;;  %13519 = vmatmul.mubr.msk.bf16.gmra.mxu0 %vm314_vm0, %v15695_v49  ;;  %v18041_v8 = vpop.f32.mrf.mxu1 }
 0x15a   :  { %v18006_v43 = vpop.f32.mrf.mxu0  ;;  %v18047_v11 = vpop.f32.mrf.mxu1 }
 0x15c   :  { %v18010_v56 = vpop.f32.mrf.mxu0  ;;  %v18053_v14 = vpop.f32.mrf.mxu1 }
 0x15e   :  { %v18012_v57 = vpop.f32.mrf.mxu0  ;;  %v18059_v17 = vpop.f32.mrf.mxu1 }
 0x160   :  { %v18016_v59 = vpop.f32.mrf.mxu0  ;;  %v18065_v20 = vpop.f32.mrf.mxu1 }
 0x162   :  { %v18018_v60 = vpop.f32.mrf.mxu0  ;;  %v18071_v23 = vpop.f32.mrf.mxu1 }
 0x164   :  { %v18022_v62 = vpop.f32.mrf.mxu0  ;;  %v18077_v26 = vpop.f32.mrf.mxu1 }
 0x166   :  { %v18024_v63 = vpop.f32.mrf.mxu0  ;;  %v18083_v29 = vpop.f32.mrf.mxu1 }
 0x168   :  { %v18031_v3 = vpop.f32.mrf.mxu0  ;;  %v18089_v35 = vpop.f32.mrf.mxu1 }
 0x16a   :  { %v18033_v4 = vpop.f32.mrf.mxu0  ;;  %v18095_v0 = vpop.f32.mrf.mxu1 }
 0x16c   :  { %v18037_v6 = vpop.f32.mrf.mxu0 }
 0x16e   :  { %v18039_v7 = vpop.f32.mrf.mxu0 }
 0x170   :  { %v18043_v9 = vpop.f32.mrf.mxu0 }
 0x172   :  { %v18045_v10 = vpop.f32.mrf.mxu0 }
 0x174   :  { %v18049_v12 = vpop.f32.mrf.mxu0 }
 0x175   :  { %23311 = vst [vmem:[#allocation21_spill] sm:$0xff] %v18049_v12 }
 0x176   :  { %v18051_v13 = vpop.f32.mrf.mxu0 }
 0x177   :  { %23312 = vst [vmem:[#allocation22_spill] sm:$0xff] %v18051_v13 }
 0x178   :  { %v18055_v15 = vpop.f32.mrf.mxu0 }
 0x179   :  { %23313 = vst [vmem:[#allocation23_spill] sm:$0xff] %v18055_v15 }
 0x17a   :  { %v18057_v16 = vpop.f32.mrf.mxu0 }
 0x17b   :  { %23314 = vst [vmem:[#allocation24_spill] sm:$0xff] %v18057_v16 }
 0x17c   :  { %v18061_v18 = vpop.f32.mrf.mxu0 }
 0x17d   :  { %23315 = vst [vmem:[#allocation25_spill] sm:$0xff] %v18061_v18  ;;  %v1039_v18 = vlaneseq }
 0x17e   :  { %v18063_v19 = vpop.f32.mrf.mxu0 }
 0x17f   :  { %23316 = vst [vmem:[#allocation26_spill] sm:$0xff] %v18063_v19 }
 0x180   :  { %v18067_v21 = vpop.f32.mrf.mxu0 }
 0x181   :  { %23317 = vst [vmem:[#allocation27_spill] sm:$0xff] %v18067_v21 }
 0x182   :  { %v18069_v22 = vpop.f32.mrf.mxu0 }
 0x183   :  { %23318 = vst [vmem:[#allocation28_spill] sm:$0xff] %v18069_v22 }
 0x184   :  { %v18073_v24 = vpop.f32.mrf.mxu0 }
 0x185   :  { %23319 = vst [vmem:[#allocation29_spill] sm:$0xff] %v18073_v24 }
 0x186   :  { %v18075_v25 = vpop.f32.mrf.mxu0 }
 0x187   :  { %23320 = vst [vmem:[#allocation30_spill] sm:$0xff] %v18075_v25 }
 0x188   :  { %v18079_v27 = vpop.f32.mrf.mxu0 }
 0x189   :  { %23321 = vst [vmem:[#allocation31_spill] sm:$0xff] %v18079_v27  ;;  %v18101_v27 = vpop.f32.mrf.mxu1 }
 0x18a   :  { %v18081_v28 = vpop.f32.mrf.mxu0 }
 0x18b   :  { %23322 = vst [vmem:[#allocation32_spill] sm:$0xff] %v18081_v28 }
 0x18c   :  { %v18085_v30 = vpop.f32.mrf.mxu0 }
 0x18d   :  { %23323 = vst [vmem:[#allocation33_spill] sm:$0xff] %v18085_v30  ;;  %v18107_v30 = vpop.f32.mrf.mxu1 }
 0x18e   :  { %v18087_v34 = vpop.f32.mrf.mxu0 }
 0x18f   :  { %23324 = vst [vmem:[#allocation34_spill] sm:$0xff] %v18087_v34 }
 0x190   :  { %v18091_v49 = vpop.f32.mrf.mxu0 }
 0x191   :  { %23325 = vst [vmem:[#allocation35_spill] sm:$0xff] %v18091_v49  ;;  %v18113_v49 = vpop.f32.mrf.mxu1 }
 0x192   :  { %v18093_v1 = vpop.f32.mrf.mxu0 }
 0x193   :  { %23326 = vst [vmem:[#allocation36_spill] sm:$0xff] %v18093_v1 }
 0x194   :  { %v18097_v25 = vpop.f32.mrf.mxu0 }
 0x195   :  { %23327 = vst [vmem:[#allocation37_spill] sm:$0xff] %v18097_v25  ;;  %v18119_v25 = vpop.f32.mrf.mxu1 }
 0x196   :  { %v18099_v24 = vpop.f32.mrf.mxu0  ;;  %23335 = vst [vmem:[#allocation45_spill] sm:$0xff] %v18119_v25 }
 0x197   :  { %23328 = vst [vmem:[#allocation38_spill] sm:$0xff] %v18099_v24 }
 0x198   :  { %v18103_v28 = vpop.f32.mrf.mxu0 }
 0x199   :  { %23329 = vst [vmem:[#allocation39_spill] sm:$0xff] %v18103_v28 }
 0x19a   :  { %v18105_v22 = vpop.f32.mrf.mxu0 }
 0x19b   :  { %23330 = vst [vmem:[#allocation40_spill] sm:$0xff] %v18105_v22  ;;  %v18125_v22 = vpop.f32.mrf.mxu1 }
 0x19c   :  { %v18109_v34 = vpop.f32.mrf.mxu0  ;;  %23338 = vst [vmem:[#allocation48_spill] sm:$0xff] %v18125_v22 }
 0x19d   :  { %23331 = vst [vmem:[#allocation41_spill] sm:$0xff] %v18109_v34  ;;  %v18129_v34 = vshrl.u32 %v1039_v18, 7  ;;  %v18133_v15 = vpop.f32.mrf.mxu1 }
 0x19e   :  { %v18111_v21 = vpop.f32.mrf.mxu0  ;;  %23342 = vst [vmem:[#allocation52_spill] sm:$0xff] %v18133_v15 }
 0x19f   :  { %23332 = vst [vmem:[#allocation42_spill] sm:$0xff] %v18111_v21  ;;  %23340 = vst [vmem:[#allocation50_spill] sm:$0xff] %v18129_v34  ;;  %v18138_v13 = vsub.s32 0, %v18129_v34  ;;  %v18145_v22 = vsub.s32 1, %v18129_v34  ;;  %v18147_v18 = vpop.f32.mrf.mxu1 }
 0x1a0   :  { %v18115_v1 = vpop.f32.mrf.mxu0  ;;  %23347 = vst [vmem:[#allocation57_spill] sm:$0xff] %v18147_v18  ;;  %v619_v18 = vadd.f32 %v17977_v44, %v17965_v37 }
 0x1a1   :  { %23333 = vst [vmem:[#allocation43_spill] sm:$0xff] %v18115_v1  ;;  %23344 = vst [vmem:[#allocation54_spill] sm:$0xff] %v18138_v13 }
 0x1a2   :  { %v18117_v19 = vpop.f32.mrf.mxu0  ;;  %23346 = vst [vmem:[#allocation56_spill] sm:$0xff] %v18145_v22 }
 0x1a3   :  { %23334 = vst [vmem:[#allocation44_spill] sm:$0xff] %v18117_v19  ;;  %v1037_v19 = vld [vmem:[#allocation4] sm:$0x3] }
 0x1a4   :  { %v18121_v24 = vpop.f32.mrf.mxu0 }
 0x1a5   :  { %23336 = vst [vmem:[#allocation46_spill] sm:$0xff] %v18121_v24 }
 0x1a6   :  { %v18123_v28 = vpop.f32.mrf.mxu0 }
 0x1a7   :  { %23337 = vst [vmem:[#allocation47_spill] sm:$0xff] %v18123_v28  ;;  %v613_v28 = vadd.f32 %v17948_v32, %v17946_v31  ;;  %v18157_v31 = vrot.slane %v1037_v19, %v18145_v22  ;;  %v18159_v32 = vpop.f32.mrf.mxu1 }
 0x1a8   :  { %v18127_v16 = vpop.f32.mrf.mxu0 }
 0x1a9   :  { %23339 = vst [vmem:[#allocation49_spill] sm:$0xff] %v18127_v16 }
 0x1aa   :  { %v18131_v21 = vpop.f32.mrf.mxu0 }
 0x1ab   :  { %23341 = vst [vmem:[#allocation51_spill] sm:$0xff] %v18131_v21  ;;  %v615_v21 = vadd.f32 %v17961_v36, %v17953_v33 }
 0x1ac   :  { %v18135_v1 = vpop.f32.mrf.mxu0 }
 0x1ad   :  { %23343 = vst [vmem:[#allocation53_spill] sm:$0xff] %v18135_v1  ;;  %v18152_v1 = vrot.slane %v1037_v19, %v18138_v13  ;;  %v18170_v19 = vpop.f32.mrf.mxu1 }
 0x1ae   :  { %v18140_v24 = vpop.f32.mrf.mxu0 }
 0x1af   :  { %23345 = vst [vmem:[#allocation55_spill] sm:$0xff] %v18140_v24  ;;  %v617_v24 = vadd.f32 %v17968_v39, %v17963_v38 }
 0x1b0   :  { %v842_v16 = vpop.f32.mrf.mxu0 }
 0x1b1   :  { %v981_v15 = vadd.f32 %v842_v16, %v613_v28  ;;  %v623_v28 = vadd.f32 %v17983_v47, %v17970_v41 }
 0x1b2   :  { %v844_v12 = vpop.f32.mrf.mxu0 }
 0x1b3   :  { %v982_v25 = vadd.f32 %v844_v12, %v615_v21  ;;  %v1049_v33 = vadd.f32 %v18152_v1, %v981_v15  ;;  %v625_v12 = vadd.f32 %v17995_v50, %v17975_v42  ;;  %v15785_v42 = vld [vmem:[%s23245_s3 + $0x348] ss:$12 sps:$4 sm:$0xff]   ;;  %v18180_v50 = vpop.f32.mrf.mxu1 }
 0x1b4   :  { %v846_v34 = vpop.f32.mrf.mxu0 }
 0x1b5   :  { %v983_v36 = vadd.f32 %v846_v34, %v617_v24  ;;  %v1050_v13 = vadd.f32 %v18157_v31, %v982_v25  ;;  %v1105_v22 = vmax.f32 %v1049_v33, 0.0  ;;  %v627_v24 = vadd.f32 %v18001_v53, %v17979_v45 }
 0x1b6   :  { %v848_v16 = vpop.f32.mrf.mxu0  ;;  %v629_v45 = vadd.f32 %v18008_v55, %v17981_v46  ;;  %v15789_v46 = vld [vmem:[%s23245_s3 + $0x330] ss:$12 sps:$4 sm:$0xff]   ;;  %v635_v55 = vadd.f32 %v18020_v61, %v17990_v40 }
 0x1b7   :  { %v1051_v38 = vadd.f32 %v18152_v1, %v983_v36  ;;  %v984_v39 = vadd.f32 %v848_v16, %v619_v18  ;;  %v1106_v47 = vmax.f32 %v1050_v13, 0.0  ;;  %v15791_v36 = vld [vmem:[%s23245_s3 + $0x334] ss:$12 sps:$4 sm:$0xff]  }
 0x1b8   :  { %v852_v21 = vpop.f32.mrf.mxu0 }
 0x1b9   :  { %v1107_v37 = vmax.f32 %v1051_v38, 0.0  ;;  %v1052_v44 = vadd.f32 %v18157_v31, %v984_v39  ;;  %v985_v15 = vadd.f32 %v852_v21, %v623_v28  ;;  %v633_v28 = vadd.f32 %v18014_v58, %v17985_v48  ;;  %v18201_v21 = vpop.f32.mrf.mxu1 }
 0x1ba   :  { %v854_v41 = vpop.f32.mrf.mxu0 }
 0x1bb   :  { %v18175_v25 = vpack.c.bf16 %v1107_v37, %v1105_v22  ;;  %v1108_v34 = vmax.f32 %v1052_v44, 0.0  ;;  %v986_v18 = vadd.f32 %v854_v41, %v625_v12  ;;  %v1053_v13 = vadd.f32 %v18152_v1, %v985_v15 }
 0x1bc   :  { %v856_v33 = vpop.f32.mrf.mxu0  ;;  %v637_v41 = vadd.f32 %v18029_v2, %v17997_v51  ;;  %v15798_v51 = vld [vmem:[%s23245_s3 + $0x304] ss:$12 sps:$4 sm:$0xff]   ;;  %v639_v2 = vadd.f32 %v18035_v5, %v17999_v52  ;;  %v15781_v52 = vld [vmem:[%s23245_s3 + $0x1e8] ss:$12 sps:$4 sm:$0xff]   ;;  %v645_v5 = vadd.f32 %v18047_v11, %v18006_v43  ;;  %v647_v43 = vadd.f32 %v18053_v14, %v18010_v56 }
 0x1bd   :  { %v18187_v53 = vpack.c.bf16 %v1108_v34, %v1106_v47  ;;  %v987_v22 = vadd.f32 %v856_v33, %v627_v24  ;;  %v1054_v38 = vadd.f32 %v18157_v31, %v986_v18  ;;  %v1109_v48 = vmax.f32 %v1053_v13, 0.0  ;;  %v15794_v24 = vld [vmem:[%s23245_s3 + $0x31c] ss:$12 sps:$4 sm:$0xff]   ;;  %v15780_v33 = vld [vmem:[%s23245_s3 + $0x200] ss:$12 sps:$4 sm:$0xff]  }
 0x1be   :  { %v858_v16 = vpop.f32.mrf.mxu0  ;;  %v649_v56 = vadd.f32 %v18059_v17, %v18012_v57 }
 0x1bf   :  { %v1055_v39 = vadd.f32 %v18152_v1, %v987_v22  ;;  %v988_v12 = vadd.f32 %v858_v16, %v629_v45  ;;  %13684 = vmatprep.mubr.msk.bf16.mxu0 %vm1526_vm1, %v18187_v53  ;;  %v1110_v40 = vmax.f32 %v1054_v38, 0.0  ;;  %v18218_v45 = vpop.f32.mrf.mxu1 }
 0x1c0   :  { %v862_v37 = vpop.f32.mrf.mxu0  ;;  %2105 = vmatmul.mubr.bf16.vlgmr.msra.gmra.mxu0 %v18175_v25 }
 0x1c1   :  { %v1111_v58 = vmax.f32 %v1055_v39, 0.0  ;;  %v1056_v44 = vadd.f32 %v18157_v31, %v988_v12  ;;  %v989_v15 = vadd.f32 %v862_v37, %v633_v28  ;;  %2639 = vmatpush1.bf16.msra.mxu0 %v15785_v42  ;;  %v15792_v42 = vld [vmem:[%s23245_s3 + $0x318] ss:$12 sps:$4 sm:$0xff]   ;;  %v643_v28 = vadd.f32 %v18041_v8, %v18003_v54  ;;  %v15796_v54 = vld [vmem:[%s23245_s3 + $0x300] ss:$12 sps:$4 sm:$0xff]   ;;  %v18244_v8 = vpop.f32.mrf.mxu1 }
 0x1c2   :  { %v864_v47 = vpop.f32.mrf.mxu0  ;;  %2640 = vmatprep.subr.bf16.mxu0 %v15791_v36 }
 0x1c3   :  { %v18210_v61 = vpack.c.bf16 %v1111_v58, %v1109_v48  ;;  %v1112_v34 = vmax.f32 %v1056_v44, 0.0  ;;  %v990_v18 = vadd.f32 %v864_v47, %v635_v55  ;;  %v1057_v22 = vadd.f32 %v18152_v1, %v989_v15  ;;  %v15801_v15 = vld [vmem:[%s23245_s3 + $0x2ec] ss:$12 sps:$4 sm:$0xff]   ;;  %v18265_v14 = vpop.f32.mrf.mxu1 }
 0x1c4   :  { %v866_v13 = vpop.f32.mrf.mxu0 }
 0x1c5   :  { %v18225_v36 = vpack.c.bf16 %v1112_v34, %v1110_v40  ;;  %v991_v16 = vadd.f32 %v866_v13, %v637_v41  ;;  %2641 = vmatpush1.bf16.msra.mxu0 %v15789_v46  ;;  %v1058_v39 = vadd.f32 %v18157_v31, %v990_v18  ;;  %v1113_v37 = vmax.f32 %v1057_v22, 0.0  ;;  %v15782_v18 = vld [vmem:[%s23245_s3 + $0x1d0] ss:$12 sps:$4 sm:$0xff]   ;;  %v15805_v13 = vld [vmem:[%s23245_s3 + $0x2d4] ss:$12 sps:$4 sm:$0xff]  }
 0x1c6   :  { %v868_v38 = vpop.f32.mrf.mxu0  ;;  %2642 = vmatprep.subr.bf16.mxu0 %v15794_v24  ;;  %v23348_v24 = vmov 0  }
 0x1c7   :  { %v1059_v12 = vadd.f32 %v18152_v1, %v991_v16  ;;  %v992_v55 = vadd.f32 %v868_v38, %v639_v2  ;;  %13618 = vmatprep.mubr.msk.bf16.mxu1 %vm1526_vm1, %v18225_v36  ;;  %13685 = vmatprep.mubr.msk.bf16.mxu0 %vm1526_vm1, %v18225_v36  ;;  %v1114_v41 = vmax.f32 %v1058_v39, 0.0  ;;  %v653_v16 = vadd.f32 %v18065_v20, %v18016_v59  ;;  %v15783_v39 = vld [vmem:[%s23245_s3 + $0x1b8] ss:$12 sps:$4 sm:$0xff]   ;;  %v15803_v59 = vld [vmem:[%s23245_s3 + $0x2d0] ss:$12 sps:$4 sm:$0xff]  }
 0x1c8   :  { %v872_v46 = vpop.f32.mrf.mxu0  ;;  %1596 = vmatmul.mubr.bf16.vlgmr.msra.gmra.mxu1 %v18210_v61  ;;  %2115 = vmatmul.mubr.bf16.gmra.mxu0 %v18210_v61  ;;  %v655_v20 = vadd.f32 %v18071_v23, %v18018_v60  ;;  %v657_v60 = vadd.f32 %v18077_v26, %v18022_v62  ;;  %v659_v62 = vadd.f32 %v18083_v29, %v18024_v63 }
 0x1c9   :  { %v1115_v48 = vmax.f32 %v1059_v12, 0.0  ;;  %v1060_v58 = vadd.f32 %v18157_v31, %v992_v55  ;;  %v993_v44 = vadd.f32 %v872_v46, %v643_v28  ;;  %1717 = vmatpush1.bf16.msra.mxu1 %v15780_v33  ;;  %2643 = vmatpush1.bf16.msra.mxu0 %v15792_v42  ;;  %v15799_v33 = vld [vmem:[%s23245_s3 + $0x2e8] ss:$12 sps:$4 sm:$0xff]   ;;  %v18290_v12 = vpop.f32.mrf.mxu1 }
 0x1ca   :  { %v874_v11 = vpop.f32.mrf.mxu0  ;;  %1718 = vmatprep.subr.bf16.mxu1 %v23348_v24  ;;  %2644 = vmatprep.subr.bf16.mxu0 %v15798_v51 }
 0x1cb   :  { %v18255_v47 = vpack.c.bf16 %v1115_v48, %v1113_v37  ;;  %v1116_v40 = vmax.f32 %v1060_v58, 0.0  ;;  %v994_v34 = vadd.f32 %v874_v11, %v645_v5  ;;  %v1061_v2 = vadd.f32 %v18152_v1, %v993_v44  ;;  %v15809_v37 = vld [vmem:[%s23245_s3 + $0x2bc] ss:$12 sps:$4 sm:$0xff]   ;;  %v15807_v11 = vld [vmem:[%s23245_s3 + $0x2b8] ss:$12 sps:$4 sm:$0xff]   ;;  %v18311_v26 = vpop.f32.mrf.mxu1 }
 0x1cc   :  { %v876_v42 = vpop.f32.mrf.mxu0 }
 0x1cd   :  { %v18270_v51 = vpack.c.bf16 %v1116_v40, %v1114_v41  ;;  %v995_v22 = vadd.f32 %v876_v42, %v647_v43  ;;  %1719 = vmatpush1.bf16.msra.mxu1 %v15781_v52  ;;  %2645 = vmatpush1.bf16.msra.mxu0 %v15796_v54  ;;  %v1062_v57 = vadd.f32 %v18157_v31, %v994_v34  ;;  %v1117_v52 = vmax.f32 %v1061_v2, 0.0  ;;  %v15784_v43 = vld [vmem:[%s23245_s3 + $0x1a0] ss:$12 sps:$4 sm:$0xff]   ;;  %v15812_v40 = vld [vmem:[%s23245_s3 + $0x2a4] ss:$12 sps:$4 sm:$0xff]  }
 0x1ce   :  { %v878_v28 = vpop.f32.mrf.mxu0  ;;  %1720 = vmatprep.subr.bf16.mxu1 %v23348_v24  ;;  %2646 = vmatprep.subr.bf16.mxu0 %v15801_v15  ;;  %v15788_v2 = vld [vmem:[%s23245_s3 + $0x188] ss:$12 sps:$4 sm:$0xff]  }
 0x1cf   :  { %v1063_v17 = vadd.f32 %v18152_v1, %v995_v22  ;;  %v996_v38 = vadd.f32 %v878_v28, %v649_v56  ;;  %13619 = vmatprep.mubr.msk.bf16.mxu1 %vm1526_vm1, %v18270_v51  ;;  %13686 = vmatprep.mubr.msk.bf16.mxu0 %vm1526_vm1, %v18270_v51  ;;  %v1118_v48 = vmax.f32 %v1062_v57, 0.0  ;;  %v663_v56 = vadd.f32 %v18089_v35, %v18031_v3  ;;  %v15810_v3 = vld [vmem:[%s23245_s3 + $0x2a0] ss:$12 sps:$4 sm:$0xff]   ;;  %v18336_v22 = vpop.f32.mrf.mxu1 }
 0x1d0   :  { %v882_v55 = vpop.f32.mrf.mxu0  ;;  %1606 = vmatmul.mubr.bf16.gmra.mxu1 %v18255_v47  ;;  %2125 = vmatmul.mubr.bf16.gmra.mxu0 %v18255_v47  ;;  %v665_v35 = vadd.f32 %v18095_v0, %v18033_v4  ;;  %v667_v0 = vadd.f32 %v18101_v27, %v18037_v6  ;;  %v669_v6 = vadd.f32 %v18107_v30, %v18039_v7 }
 0x1d1   :  { %v1119_v54 = vmax.f32 %v1063_v17, 0.0  ;;  %v1064_v5 = vadd.f32 %v18157_v31, %v996_v38  ;;  %v997_v46 = vadd.f32 %v882_v55, %v653_v16  ;;  %1721 = vmatpush1.bf16.msra.mxu1 %v15782_v18  ;;  %2647 = vmatpush1.bf16.msra.mxu0 %v15799_v33  ;;  %v18357_v27 = vpop.f32.mrf.mxu1 }
 0x1d2   :  { %v884_v23 = vpop.f32.mrf.mxu0  ;;  %1722 = vmatprep.subr.bf16.mxu1 %v23348_v24  ;;  %2648 = vmatprep.subr.bf16.mxu0 %v15805_v13 }
 0x1d3   :  { %v18301_v58 = vpack.c.bf16 %v1119_v54, %v1117_v52  ;;  %v1120_v44 = vmax.f32 %v1064_v5, 0.0  ;;  %v998_v15 = vadd.f32 %v884_v23, %v655_v20  ;;  %v1065_v18 = vadd.f32 %v18152_v1, %v997_v46  ;;  %v15795_v54 = vld [vmem:[%s23245_s3 + $0x170] ss:$12 sps:$4 sm:$0xff]   ;;  %v15814_v5 = vld [vmem:[%s23245_s3 + $0x3d8] ss:$12 sps:$4 sm:$0xff]  }
 0x1d4   :  { %v886_v41 = vpop.f32.mrf.mxu0 }
 0x1d5   :  { %v18316_v34 = vpack.c.bf16 %v1120_v44, %v1118_v48  ;;  %v999_v33 = vadd.f32 %v886_v41, %v657_v60  ;;  %1723 = vmatpush1.bf16.msra.mxu1 %v15783_v39  ;;  %2649 = vmatpush1.bf16.msra.mxu0 %v15803_v59  ;;  %v1066_v63 = vadd.f32 %v18157_v31, %v998_v15  ;;  %v1121_v28 = vmax.f32 %v1065_v18, 0.0  ;;  %v15816_v39 = vld [vmem:[%s23245_s3 + $0x3dc] ss:$12 sps:$4 sm:$0xff]  }
 0x1d6   :  { %v888_v42 = vpop.f32.mrf.mxu0  ;;  %1724 = vmatprep.subr.bf16.mxu1 %v23348_v24  ;;  %2650 = vmatprep.subr.bf16.mxu0 %v15809_v37  ;;  %v15819_v37 = vld [vmem:[%s23245_s3 + $0x3c4] ss:$12 sps:$4 sm:$0xff]   ;;  %v673_v44 = vadd.f32 %v18113_v49, %v18043_v9 }
 0x1d7   :  { %v1067_v29 = vadd.f32 %v18152_v1, %v999_v33  ;;  %v1000_v13 = vadd.f32 %v888_v42, %v659_v62  ;;  %13620 = vmatprep.mubr.msk.bf16.mxu1 %vm1526_vm1, %v18316_v34  ;;  %13687 = vmatprep.mubr.msk.bf16.mxu0 %vm1526_vm1, %v18316_v34  ;;  %v1122_v59 = vmax.f32 %v1066_v63, 0.0  ;;  %v23349_v9 = vld [vmem:[#allocation45_spill] sm:$0xff]  ;;  %v18379_v62 = vpop.f32.mrf.mxu1 }
 0x1d8   :  { %v892_v16 = vpop.f32.mrf.mxu0  ;;  %1616 = vmatmul.mubr.bf16.gmra.mxu1 %v18301_v58  ;;  %2135 = vmatmul.mubr.bf16.gmra.mxu0 %v18301_v58  ;;  %v675_v49 = vadd.f32 %v23349_v9, %v18045_v10  ;;  %v15823_v10 = vld [vmem:[%s23245_s3 + $0x3ac] ss:$12 sps:$4 sm:$0xff]  }
 0x1d9   :  { %v1123_v57 = vmax.f32 %v1067_v29, 0.0  ;;  %v1068_v17 = vadd.f32 %v18157_v31, %v1000_v13  ;;  %v1001_v38 = vadd.f32 %v892_v16, %v663_v56  ;;  %1725 = vmatpush1.bf16.msra.mxu1 %v15784_v43  ;;  %2651 = vmatpush1.bf16.msra.mxu0 %v15807_v11  ;;  %v15802_v11 = vld [vmem:[%s23245_s3 + $0x158] ss:$12 sps:$4 sm:$0xff]   ;;  %v23351_v29 = vld [vmem:[#allocation48_spill] sm:$0xff] }
 0x1da   :  { %v894_v4 = vpop.f32.mrf.mxu0  ;;  %1726 = vmatprep.subr.bf16.mxu1 %v23348_v24  ;;  %2652 = vmatprep.subr.bf16.mxu0 %v15812_v40  ;;  %v15817_v40 = vld [vmem:[%s23245_s3 + $0x3c0] ss:$12 sps:$4 sm:$0xff]   ;;  %v23350_v63 = vld [vmem:[#allocation21_spill] sm:$0xff] }
 0x1db   :  { %v18347_v20 = vpack.c.bf16 %v1123_v57, %v1121_v28  ;;  %v1124_v55 = vmax.f32 %v1068_v17, 0.0  ;;  %v1002_v52 = vadd.f32 %v894_v4, %v665_v35  ;;  %v1069_v23 = vadd.f32 %v18152_v1, %v1001_v38  ;;  %v15806_v57 = vld [vmem:[%s23245_s3 + $0x290] ss:$12 sps:$4 sm:$0xff]   ;;  %v15821_v17 = vld [vmem:[%s23245_s3 + $0x3a8] ss:$12 sps:$4 sm:$0xff]   ;;  %v18403_v4 = vpop.f32.mrf.mxu1 }
 0x1dc   :  { %v896_v46 = vpop.f32.mrf.mxu0  ;;  %v677_v13 = vadd.f32 %v23351_v29, %v23350_v63  ;;  %v23352_v38 = vld [vmem:[#allocation22_spill] sm:$0xff] }
 0x1dd   :  { %v18362_v60 = vpack.c.bf16 %v1124_v55, %v1122_v59  ;;  %v1003_v48 = vadd.f32 %v896_v46, %v667_v0  ;;  %1727 = vmatpush1.bf16.msra.mxu1 %v15788_v2  ;;  %2653 = vmatpush1.bf16.msra.mxu0 %v15810_v3  ;;  %v1070_v7 = vadd.f32 %v18157_v31, %v1002_v52  ;;  %v1125_v18 = vmax.f32 %v1069_v23, 0.0  ;;  %v15826_v55 = vld [vmem:[%s23245_s3 + $0x394] ss:$12 sps:$4 sm:$0xff]   ;;  %v18428_v9 = vpop.f32.mrf.mxu1 }
 0x1de   :  { %v898_v15 = vpop.f32.mrf.mxu0  ;;  %1728 = vmatprep.subr.bf16.mxu1 %v23348_v24  ;;  %2658 = vmatprep.subr.bf16.mxu0 %v15816_v39  ;;  %v23353_v39 = vld [vmem:[#allocation52_spill] sm:$0xff]  ;;  %v23355_v46 = vld [vmem:[#allocation57_spill] sm:$0xff] }
 0x1df   :  { %v1071_v30 = vadd.f32 %v18152_v1, %v1003_v48  ;;  %v1004_v43 = vadd.f32 %v898_v15, %v669_v6  ;;  %13621 = vmatprep.mubr.msk.bf16.mxu1 %vm1526_vm1, %v18362_v60  ;;  %13688 = vmatprep.mubr.msk.bf16.mxu0 %vm1526_vm1, %v18362_v60  ;;  %v1126_v3 = vmax.f32 %v1070_v7, 0.0  ;;  %v679_v0 = vadd.f32 %v23353_v39, %v23352_v38  ;;  %v23354_v6 = vld [vmem:[#allocation23_spill] sm:$0xff] }
 0x1e0   :  { %v902_v41 = vpop.f32.mrf.mxu0  ;;  %1626 = vmatmul.mubr.bf16.gmra.mxu1 %v18347_v20  ;;  %2145 = vmatmul.mubr.bf16.gmra.mxu0 %v18347_v20  ;;  %v15813_v7 = vld [vmem:[%s23245_s3 + $0x278] ss:$12 sps:$4 sm:$0xff]  }
 0x1e1   :  { %v1127_v33 = vmax.f32 %v1071_v30, 0.0  ;;  %v1072_v56 = vadd.f32 %v18157_v31, %v1004_v43  ;;  %v1005_v42 = vadd.f32 %v902_v41, %v673_v44  ;;  %1729 = vmatpush1.bf16.msra.mxu1 %v15795_v54  ;;  %2659 = vmatpush2.bf16.msra.mxu0 %v15814_v5  ;;  %v15824_v30 = vld [vmem:[%s23245_s3 + $0x390] ss:$12 sps:$4 sm:$0xff]  }
 0x1e2   :  { %v904_v2 = vpop.f32.mrf.mxu0  ;;  %1730 = vmatprep.subr.bf16.mxu1 %v23348_v24  ;;  %2660 = vmatprep.subr.bf16.mxu0 %v15819_v37  ;;  %v683_v37 = vadd.f32 %v23355_v46, %v23354_v6  ;;  %v23356_v43 = vld [vmem:[#allocation24_spill] sm:$0xff] }
 0x1e3   :  { %v18393_v35 = vpack.c.bf16 %v1127_v33, %v1125_v18  ;;  %v1128_v16 = vmax.f32 %v1072_v56, 0.0  ;;  %v1006_v28 = vadd.f32 %v904_v2, %v675_v49  ;;  %v1073_v54 = vadd.f32 %v18152_v1, %v1005_v42  ;;  %v15830_v56 = vld [vmem:[%s23245_s3 + $0x37c] ss:$12 sps:$4 sm:$0xff]   ;;  %v23357_v42 = vld [vmem:[#allocation25_spill] sm:$0xff] }
 0x1e4   :  { %v906_v59 = vpop.f32.mrf.mxu0  ;;  %v15834_v38 = vld [vmem:[%s23245_s3 + $0x364] ss:$12 sps:$4 sm:$0xff]  }
 0x1e5   :  { %v18408_v52 = vpack.c.bf16 %v1128_v16, %v1126_v3  ;;  %v1007_v5 = vadd.f32 %v906_v59, %v677_v13  ;;  %1731 = vmatpush1.bf16.msra.mxu1 %v15802_v11  ;;  %2661 = vmatpush2.bf16.msra.mxu0 %v15817_v40  ;;  %v1074_v48 = vadd.f32 %v18157_v31, %v1006_v28  ;;  %v1129_v41 = vmax.f32 %v1073_v54, 0.0  ;;  %v15820_v3 = vld [vmem:[%s23245_s3 + $0x260] ss:$12 sps:$4 sm:$0xff]   ;;  %v15828_v16 = vld [vmem:[%s23245_s3 + $0x378] ss:$12 sps:$4 sm:$0xff]  }
 0x1e6   :  { %v908_v23 = vpop.f32.mrf.mxu0  ;;  %1736 = vmatprep.subr.bf16.mxu1 %v23348_v24  ;;  %2662 = vmatprep.subr.bf16.mxu0 %v15823_v10  ;;  %v685_v11 = vadd.f32 %v18159_v32, %v23356_v43  ;;  %v687_v32 = vadd.f32 %v18170_v19, %v23357_v42  ;;  %v23358_v28 = vld [vmem:[#allocation26_spill] sm:$0xff] }
 0x1e7   :  { %v1075_v44 = vadd.f32 %v18152_v1, %v1007_v5  ;;  %v1008_v15 = vadd.f32 %v908_v23, %v679_v0  ;;  %13622 = vmatprep.mubr.msk.bf16.mxu1 %vm1526_vm1, %v18408_v52  ;;  %13689 = vmatprep.mubr.msk.bf16.mxu0 %vm1526_vm1, %v18408_v52  ;;  %v1130_v63 = vmax.f32 %v1074_v48, 0.0  ;;  %v689_v19 = vadd.f32 %v18180_v50, %v23358_v28  ;;  %v15831_v42 = vld [vmem:[%s23245_s3 + $0x230] ss:$12 sps:$4 sm:$0xff]  }
 0x1e8   :  { %v912_v49 = vpop.f32.mrf.mxu0  ;;  %1636 = vmatmul.mubr.bf16.gmra.mxu1 %v18393_v35  ;;  %2155 = vmatmul.mubr.bf16.gmra.mxu0 %v18393_v35 }
 0x1e9   :  { %v1131_v40 = vmax.f32 %v1075_v44, 0.0  ;;  %v1076_v18 = vadd.f32 %v18157_v31, %v1008_v15  ;;  %v1009_v33 = vadd.f32 %v912_v49, %v683_v37  ;;  %1737 = vmatpush2.bf16.msra.mxu1 %v15806_v57  ;;  %2663 = vmatpush2.bf16.msra.mxu0 %v15821_v17  ;;  %v18449_v57 = vpop.f32.mrf.mxu1  ;;  %v15827_v37 = vld [vmem:[%s23245_s3 + $0x248] ss:$12 sps:$4 sm:$0xff]  }
 0x1ea   :  { %v914_v10 = vpop.f32.mrf.mxu0  ;;  %1738 = vmatprep.subr.bf16.mxu1 %v23348_v24  ;;  %2664 = vmatprep.subr.bf16.mxu0 %v15826_v55  ;;  %v23359_v55 = vld [vmem:[#allocation27_spill] sm:$0xff]  ;;  %v23361_v49 = vld [vmem:[#allocation29_spill] sm:$0xff] }
 0x1eb   :  { %v18439_v29 = vpack.c.bf16 %v1131_v40, %v1129_v41  ;;  %v1132_v13 = vmax.f32 %v1076_v18, 0.0  ;;  %v1010_v2 = vadd.f32 %v914_v10, %v685_v11  ;;  %v1077_v0 = vadd.f32 %v18152_v1, %v1009_v33  ;;  %v18471_v48 = vpop.f32.mrf.mxu1  ;;  %v15832_v11 = vld [vmem:[%s23245_s3 + $0x360] ss:$12 sps:$4 sm:$0xff]  }
 0x1ec   :  { %v916_v17 = vpop.f32.mrf.mxu0  ;;  %v693_v54 = vadd.f32 %v18201_v21, %v23359_v55  ;;  %v23360_v21 = vld [vmem:[#allocation28_spill] sm:$0xff] }
 0x1ed   :  { %v18454_v39 = vpack.c.bf16 %v1132_v13, %v1130_v63  ;;  %v1011_v59 = vadd.f32 %v916_v17, %v687_v32  ;;  %1739 = vmatpush2.bf16.msra.mxu1 %v15813_v7  ;;  %2665 = vmatpush2.bf16.msra.mxu0 %v15824_v30  ;;  %v1078_v50 = vadd.f32 %v18157_v31, %v1010_v2  ;;  %v1133_v15 = vmax.f32 %v1077_v0, 0.0  ;;  %v23362_v32 = vld [vmem:[#allocation30_spill] sm:$0xff]  ;;  %v18489_v63 = vpop.f32.mrf.mxu1  ;;  %v23364_v0 = vld [vmem:[#allocation32_spill] sm:$0xff] }
 0x1ee   :  { %v918_v5 = vpop.f32.mrf.mxu0  ;;  %1740 = vmatprep.subr.bf16.mxu1 %v23348_v24  ;;  %2666 = vmatprep.subr.bf16.mxu0 %v15830_v56  ;;  %v695_v23 = vadd.f32 %v18218_v45, %v23360_v21  ;;  %v697_v45 = vadd.f32 %v18244_v8, %v23361_v49  ;;  %v699_v10 = vadd.f32 %v18265_v14, %v23362_v32 }
 0x1ef   :  { %v1079_v6 = vadd.f32 %v18152_v1, %v1011_v59  ;;  %v1012_v46 = vadd.f32 %v918_v5, %v689_v19  ;;  %13623 = vmatprep.mubr.msk.bf16.mxu1 %vm1526_vm1, %v18454_v39  ;;  %13690 = vmatprep.mubr.msk.bf16.mxu0 %vm1526_vm1, %v18454_v39  ;;  %v1134_v40 = vmax.f32 %v1078_v50, 0.0  ;;  %v705_v59 = vadd.f32 %v18311_v26, %v23364_v0  ;;  %v18505_v55 = vpop.f32.mrf.mxu1 }
 0x1f0   :  { %v922_v44 = vpop.f32.mrf.mxu0  ;;  %1646 = vmatmul.mubr.bf16.gmra.mxu1 %v18439_v29  ;;  %2165 = vmatmul.mubr.bf16.gmra.mxu0 %v18439_v29 }
 0x1f1   :  { %v1135_v7 = vmax.f32 %v1079_v6, 0.0  ;;  %v1080_v30 = vadd.f32 %v18157_v31, %v1012_v46  ;;  %v1013_v43 = vadd.f32 %v922_v44, %v693_v54  ;;  %1741 = vmatpush2.bf16.msra.mxu1 %v15820_v3  ;;  %2667 = vmatpush2.bf16.msra.mxu0 %v15828_v16  ;;  %v23363_v16 = vld [vmem:[#allocation31_spill] sm:$0xff] }
 0x1f2   :  { %v924_v41 = vpop.f32.mrf.mxu0  ;;  %1742 = vmatprep.subr.bf16.mxu1 %v23348_v24  ;;  %2668 = vmatprep.subr.bf16.mxu0 %v15834_v38  ;;  %v703_v28 = vadd.f32 %v18290_v12, %v23363_v16  ;;  %v15835_v46 = vld [vmem:[%s23245_s3 + $0x218] ss:$12 sps:$4 sm:$0xff]  }
 0x1f3   :  { %v18482_v18 = vpack.c.bf16 %v1135_v7, %v1133_v15  ;;  %v1136_v33 = vmax.f32 %v1080_v30, 0.0  ;;  %v1014_v56 = vadd.f32 %v924_v41, %v695_v23  ;;  %v1081_v2 = vadd.f32 %v18152_v1, %v1013_v43  ;;  %v728_v30 = vpop.f32.mrf.mxu1 }
 0x1f4   :  { %v926_v13 = vpop.f32.mrf.mxu0 }
 0x1f5   :  { %v18491_v8 = vpack.c.bf16 %v1136_v33, %v1134_v40  ;;  %v1015_v3 = vadd.f32 %v926_v13, %v697_v45  ;;  %1743 = vmatpush2.bf16.msra.mxu1 %v15827_v37  ;;  %2669 = vmatpush2.bf16.msra.mxu0 %v15832_v11  ;;  %v1082_v17 = vadd.f32 %v18157_v31, %v1014_v56  ;;  %v1137_v54 = vmax.f32 %v1081_v2, 0.0  ;;  %v23365_v37 = vld [vmem:[#allocation33_spill] sm:$0xff]  ;;  %v23366_v11 = vld [vmem:[#allocation34_spill] sm:$0xff]  ;;  %v732_v2 = vpop.f32.mrf.mxu1 }
 0x1f6   :  { %v928_v19 = vpop.f32.mrf.mxu0  ;;  %1744 = vmatprep.subr.bf16.mxu1 %v23348_v24  ;;  %v707_v26 = vadd.f32 %v18336_v22, %v23365_v37  ;;  %v709_v49 = vadd.f32 %v18357_v27, %v23366_v11  ;;  %v23367_v22 = vld [vmem:[#allocation35_spill] sm:$0xff]  ;;  %v23368_v27 = vld [vmem:[#allocation36_spill] sm:$0xff] }
 0x1f7   :  { %v1083_v14 = vadd.f32 %v18152_v1, %v1015_v3  ;;  %v1016_v38 = vadd.f32 %v928_v19, %v699_v10  ;;  %13624 = vmatprep.mubr.msk.bf16.mxu1 %vm1526_vm1, %v18491_v8  ;;  %13691 = vmatprep.mubr.msk.bf16.mxu0 %vm1526_vm1, %v18491_v8  ;;  %v1138_v23 = vmax.f32 %v1082_v17, 0.0  ;;  %v713_v33 = vadd.f32 %v18379_v62, %v23367_v22  ;;  %v23369_v17 = vld [vmem:[#allocation37_spill] sm:$0xff] }
 0x1f8   :  { %v932_v12 = vpop.f32.mrf.mxu0  ;;  %1656 = vmatmul.mubr.bf16.gmra.mxu1 %v18482_v18  ;;  %2175 = vmatmul.mubr.bf16.gmra.mxu0 %v18482_v18  ;;  %v715_v13 = vadd.f32 %v18403_v4, %v23368_v27 }
 0x1f9   :  { %v1139_v5 = vmax.f32 %v1083_v14, 0.0  ;;  %v1084_v50 = vadd.f32 %v18157_v31, %v1016_v38  ;;  %v1017_v6 = vadd.f32 %v932_v12, %v703_v28  ;;  %1745 = vmatpush2.bf16.msra.mxu1 %v15831_v42  ;;  %v717_v14 = vadd.f32 %v18428_v9, %v23369_v17 }
 0x1fa   :  { %v934_v21 = vpop.f32.mrf.mxu0  ;;  %1746 = vmatprep.subr.bf16.mxu1 %v23348_v24 }
 0x1fb   :  { %v18516_v44 = vpack.c.bf16 %v1139_v5, %v1137_v54  ;;  %v1140_v15 = vmax.f32 %v1084_v50, 0.0  ;;  %v1018_v7 = vadd.f32 %v934_v21, %v705_v59  ;;  %v1085_v41 = vadd.f32 %v18152_v1, %v1017_v6  ;;  %v734_v54 = vpop.f32.mrf.mxu1  ;;  %v23370_v50 = vld [vmem:[#allocation38_spill] sm:$0xff]  ;;  %v23371_v21 = vld [vmem:[#allocation39_spill] sm:$0xff] }
 0x1fc   :  { %v936_v43 = vpop.f32.mrf.mxu0  ;;  %v719_v6 = vadd.f32 %v18449_v57, %v23370_v50  ;;  %v23372_v57 = vld [vmem:[#allocation40_spill] sm:$0xff] }
 0x1fd   :  { %v18520_v45 = vpack.c.bf16 %v1140_v15, %v1138_v23  ;;  %v1019_v40 = vadd.f32 %v936_v43, %v707_v26  ;;  %1747 = vmatpush2.bf16.msra.mxu1 %v15835_v46  ;;  %v1086_v42 = vadd.f32 %v18157_v31, %v1018_v7  ;;  %v1141_v62 = vmax.f32 %v1085_v41, 0.0 }
 0x1fe   :  { %v938_v56 = vpop.f32.mrf.mxu0  ;;  %2225 = vmatprep.subr.bf16.mxu1 %v23348_v24  ;;  %v723_v23 = vadd.f32 %v18471_v48, %v23371_v21  ;;  %v725_v11 = vadd.f32 %v18489_v63, %v23372_v57 }
 0x1ff   :  { %v1087_v32 = vadd.f32 %v18152_v1, %v1019_v40  ;;  %v1020_v10 = vadd.f32 %v938_v56, %v709_v49  ;;  %13625 = vmatprep.mubr.msk.bf16.mxu1 %vm1526_vm1, %v18520_v45  ;;  %13692 = vmatprep.mubr.msk.bf16.mxu0 %vm1526_vm1, %v18520_v45  ;;  %v1142_v0 = vmax.f32 %v1086_v42, 0.0  ;;  %v736_v49 = vpop.f32.mrf.mxu1  ;;  %v23373_v56 = vld [vmem:[#allocation41_spill] sm:$0xff] }
 0x200   :  { %v942_v3 = vpop.f32.mrf.mxu0  ;;  %1666 = vmatmul.mubr.bf16.gmra.mxu1 %v18516_v44  ;;  %2185 = vmatmul.mubr.bf16.gmra.mxu0 %v18516_v44  ;;  %v727_v42 = vadd.f32 %v18505_v55, %v23373_v56 }
 0x201   :  { %v1143_v16 = vmax.f32 %v1087_v32, 0.0  ;;  %v1088_v28 = vadd.f32 %v18157_v31, %v1020_v10  ;;  %v1021_v19 = vadd.f32 %v942_v3, %v713_v33  ;;  %v738_v3 = vpop.f32.mrf.mxu1 }
 0x202   :  { %v944_v38 = vpop.f32.mrf.mxu0 }
 0x203   :  { %v18539_v59 = vpack.c.bf16 %v1143_v16, %v1141_v62  ;;  %v1144_v12 = vmax.f32 %v1088_v28, 0.0  ;;  %v1022_v4 = vadd.f32 %v944_v38, %v715_v13  ;;  %v1089_v37 = vadd.f32 %v18152_v1, %v1021_v19  ;;  %v23374_v16 = vld [vmem:[#allocation42_spill] sm:$0xff]  ;;  %v23375_v38 = vld [vmem:[#allocation43_spill] sm:$0xff] }
 0x204   :  { %v946_v5 = vpop.f32.mrf.mxu0  ;;  %v729_v28 = vadd.f32 %v728_v30, %v23374_v16  ;;  %v23376_v30 = vld [vmem:[#allocation44_spill] sm:$0xff] }
 0x205   :  { %v18543_v46 = vpack.c.bf16 %v1144_v12, %v1142_v0  ;;  %v1023_v26 = vadd.f32 %v946_v5, %v717_v14  ;;  %v1090_v15 = vadd.f32 %v18157_v31, %v1022_v4  ;;  %v1145_v48 = vmax.f32 %v1089_v37, 0.0 }
 0x206   :  { %v948_v9 = vpop.f32.mrf.mxu0  ;;  %v733_v0 = vadd.f32 %v732_v2, %v23375_v38  ;;  %v735_v50 = vadd.f32 %v734_v54, %v23376_v30 }
 0x207   :  { %v1091_v7 = vadd.f32 %v18152_v1, %v1023_v26  ;;  %v1024_v43 = vadd.f32 %v948_v9, %v719_v6  ;;  %13626 = vmatprep.mubr.msk.bf16.mxu1 %vm1526_vm1, %v18543_v46  ;;  %13693 = vmatprep.mubr.msk.bf16.mxu0 %vm1526_vm1, %v18543_v46  ;;  %v1146_v10 = vmax.f32 %v1090_v15, 0.0  ;;  %v742_v6 = vpop.f32.mrf.mxu1  ;;  %v23377_v9 = vld [vmem:[#allocation46_spill] sm:$0xff] }
 0x208   :  { %v952_v41 = vpop.f32.mrf.mxu0  ;;  %1676 = vmatmul.mubr.bf16.gmra.mxu1 %v18539_v59  ;;  %2195 = vmatmul.mubr.bf16.gmra.mxu0 %v18539_v59  ;;  %v737_v15 = vadd.f32 %v736_v49, %v23377_v9 }
 0x209   :  { %v1147_v40 = vmax.f32 %v1091_v7, 0.0  ;;  %v1092_v22 = vadd.f32 %v18157_v31, %v1024_v43  ;;  %v1025_v33 = vadd.f32 %v952_v41, %v723_v23  ;;  %v18581_v54 = vpop.f32.mrf.mxu1 }
 0x20a   :  { %v954_v32 = vpop.f32.mrf.mxu0 }
 0x20b   :  { %v18561_v27 = vpack.c.bf16 %v1147_v40, %v1145_v48  ;;  %v1148_v13 = vmax.f32 %v1092_v22, 0.0  ;;  %v1026_v63 = vadd.f32 %v954_v32, %v725_v11  ;;  %v1093_v17 = vadd.f32 %v18152_v1, %v1025_v33  ;;  %v23378_v40 = vld [vmem:[#allocation47_spill] sm:$0xff]  ;;  %v23380_v32 = vld [vmem:[#allocation49_spill] sm:$0xff] }
 0x20c   :  { %v956_v62 = vpop.f32.mrf.mxu0  ;;  %v739_v22 = vadd.f32 %v738_v3, %v23378_v40  ;;  %v746_v3 = vpop.f32.mrf.mxu1  ;;  %v15841_v40 = vld [vmem:[%s23245_s3 + $0x38] ss:$12 sps:$4 sm:$0xff]  }
 0x20d   :  { %v18564_v19 = vpack.c.bf16 %v1148_v13, %v1146_v10  ;;  %v1027_v14 = vadd.f32 %v956_v62, %v727_v42  ;;  %v1094_v55 = vadd.f32 %v18157_v31, %v1026_v63  ;;  %v1149_v2 = vmax.f32 %v1093_v17, 0.0 }
 0x20e   :  { %v958_v12 = vpop.f32.mrf.mxu0  ;;  %v743_v10 = vadd.f32 %v742_v6, %v23380_v32  ;;  %v15867_v32 = vld [vmem:[%s23247_s5 + $0x2bc] ss:$12 sps:$4 sm:$0xff]  }
 0x20f   :  { %v1095_v4 = vadd.f32 %v18152_v1, %v1027_v14  ;;  %v1028_v5 = vadd.f32 %v958_v12, %v729_v28  ;;  %13627 = vmatprep.mubr.msk.bf16.mxu1 %vm1526_vm1, %v18564_v19  ;;  %13694 = vmatprep.mubr.msk.bf16.mxu0 %vm1526_vm1, %v18564_v19  ;;  %v1150_v43 = vmax.f32 %v1094_v55, 0.0  ;;  %v23381_v12 = vld [vmem:[#allocation53_spill] sm:$0xff] }
 0x210   :  { %v962_v37 = vpop.f32.mrf.mxu0  ;;  %1686 = vmatmul.mubr.bf16.gmra.mxu1 %v18561_v27  ;;  %2205 = vmatmul.mubr.bf16.gmra.mxu0 %v18561_v27  ;;  %v747_v55 = vadd.f32 %v746_v3, %v23381_v12  ;;  %v15874_v3 = vld [vmem:[%s23247_s5 + $0x28c] ss:$12 sps:$4 sm:$0xff]   ;;  %v15881_v12 = vld [vmem:[%s23247_s5 + $0x25c] ss:$12 sps:$4 sm:$0xff]  }
 0x211   :  { %v1151_v26 = vmax.f32 %v1095_v4, 0.0  ;;  %v1096_v21 = vadd.f32 %v18157_v31, %v1028_v5  ;;  %v1029_v23 = vadd.f32 %v962_v37, %v733_v0 }
 0x212   :  { %v964_v7 = vpop.f32.mrf.mxu0 }
 0x213   :  { %v18579_v57 = vpack.c.bf16 %v1151_v26, %v1149_v2  ;;  %v1152_v11 = vmax.f32 %v1096_v21, 0.0  ;;  %v1030_v41 = vadd.f32 %v964_v7, %v735_v50  ;;  %v1097_v56 = vadd.f32 %v18152_v1, %v1029_v23  ;;  %v15838_v7 = vld [vmem:[%s23245_s3 + $0x80] ss:$12 sps:$4 sm:$0xff]  }
 0x214   :  { %v966_v48 = vpop.f32.mrf.mxu0 }
 0x215   :  { %v18584_v33 = vpack.c.bf16 %v1152_v11, %v1150_v43  ;;  %v1031_v42 = vadd.f32 %v966_v48, %v737_v15  ;;  %v1098_v49 = vadd.f32 %v18157_v31, %v1030_v41  ;;  %v1153_v28 = vmax.f32 %v1097_v56, 0.0  ;;  %v15837_v15 = vld [vmem:[%s23245_s3 + $0x98] ss:$12 sps:$4 sm:$0xff]   ;;  %v15839_v43 = vld [vmem:[%s23245_s3 + $0x68] ss:$12 sps:$4 sm:$0xff]  }
 0x216   :  { %v968_v13 = vpop.f32.mrf.mxu0  ;;  %v15840_v11 = vld [vmem:[%s23245_s3 + $0x50] ss:$12 sps:$4 sm:$0xff]   ;;  %v15859_v41 = vld [vmem:[%s23247_s5 + $0x2ec] ss:$12 sps:$4 sm:$0xff]   ;;  %v15857_v48 = vld [vmem:[%s23247_s5 + $0x2e8] ss:$12 sps:$4 sm:$0xff]  }
 0x217   :  { %23379 = vst [vmem:[#allocation45_spill] sm:$0xff] %v18584_v33  ;;  %v1099_v63 = vadd.f32 %v18152_v1, %v1031_v42  ;;  %v1032_v62 = vadd.f32 %v968_v13, %v739_v22  ;;  %13628 = vmatprep.mubr.msk.bf16.mxu1 %vm1526_vm1, %v18584_v33  ;;  %13695 = vmatprep.mubr.msk.bf16.mxu0 %vm1526_vm1, %v18584_v33  ;;  %v1154_v4 = vmax.f32 %v1098_v49, 0.0  ;;  %v15863_v22 = vld [vmem:[%s23247_s5 + $0x2d4] ss:$12 sps:$4 sm:$0xff]   ;;  %v15861_v42 = vld [vmem:[%s23247_s5 + $0x2d0] ss:$12 sps:$4 sm:$0xff]  }
 0x218   :  { %v972_v16 = vpop.f32.mrf.mxu0  ;;  %1696 = vmatmul.mubr.bf16.gmra.mxu1 %v18579_v57  ;;  %2215 = vmatmul.mubr.bf16.gmra.mxu0 %v18579_v57  ;;  %v15842_v56 = vld [vmem:[%s23245_s3 + $0x20] ss:$12 sps:$4 sm:$0xff]   ;;  %v15843_v13 = vld [vmem:[%s23245_s3 + $0x8] ss:$12 sps:$4 sm:$0xff]   ;;  %v15870_v49 = vld [vmem:[%s23247_s5 + $0x2a4] ss:$12 sps:$4 sm:$0xff]  }
 0x219   :  { %v1155_v17 = vmax.f32 %v1099_v63, 0.0  ;;  %v1100_v14 = vadd.f32 %v18157_v31, %v1032_v62  ;;  %v1033_v38 = vadd.f32 %v972_v16, %v743_v10  ;;  %13806 = vmatprep.mubr.msk.bf16.mxu0 %vm1526_vm1, %v18270_v51  ;;  %3766 = vmatprep.subr.bf16.mxu0 %v15859_v41  ;;  %v15865_v10 = vld [vmem:[%s23247_s5 + $0x2b8] ss:$12 sps:$4 sm:$0xff]   ;;  %v15844_v63 = vld [vmem:[%s23245_s3 + $0x140] ss:$12 sps:$4 sm:$0xff]  }
 0x21a   :  { %v18599_v0 = vpop.f32.mrf.mxu0  ;;  %v15868_v62 = vld [vmem:[%s23247_s5 + $0x2a0] ss:$12 sps:$4 sm:$0xff]   ;;  %v15845_v16 = vld [vmem:[%s23245_s3 + $0x128] ss:$12 sps:$4 sm:$0xff]  }
 0x21b   :  { %v18602_v5 = vpack.c.bf16 %v1155_v17, %v1153_v28  ;;  %v1156_v30 = vmax.f32 %v1100_v14, 0.0  ;;  %v1101_v37 = vadd.f32 %v18152_v1, %v1033_v38  ;;  %v15872_v28 = vld [vmem:[%s23247_s5 + $0x288] ss:$12 sps:$4 sm:$0xff]   ;;  %v15846_v14 = vld [vmem:[%s23245_s3 + $0x110] ss:$12 sps:$4 sm:$0xff]  }
 0x21c   :  { %v976_v50 = vpop.f32.mrf.mxu0  ;;  %v15877_v17 = vld [vmem:[%s23247_s5 + $0x274] ss:$12 sps:$4 sm:$0xff]   ;;  %v15875_v38 = vld [vmem:[%s23247_s5 + $0x270] ss:$12 sps:$4 sm:$0xff]  }
 0x21d   :  { %23382 = vst [vmem:[#allocation21_spill] sm:$0xff] %v18602_v5  ;;  %v18604_v6 = vpack.c.bf16 %v1156_v30, %v1154_v4  ;;  %v1035_v2 = vadd.f32 %v976_v50, %v747_v55  ;;  %v1157_v21 = vmax.f32 %v1101_v37, 0.0  ;;  %v15847_v55 = vld [vmem:[%s23245_s3 + $0xf8] ss:$12 sps:$4 sm:$0xff]   ;;  %v15882_v50 = vld [vmem:[%s23247_s5 + $0x240] ss:$12 sps:$4 sm:$0xff]  }
 0x21e   :  { %v15879_v4 = vld [vmem:[%s23247_s5 + $0x258] ss:$12 sps:$4 sm:$0xff]   ;;  %v15848_v37 = vld [vmem:[%s23245_s3 + $0xe0] ss:$12 sps:$4 sm:$0xff]  }
 0x21f   :  { %23383 = vst [vmem:[#allocation48_spill] sm:$0xff] %v18604_v6  ;;  %v1103_v26 = vadd.f32 %v18152_v1, %v1035_v2  ;;  %13629 = vmatprep.mubr.msk.bf16.mxu1 %vm1526_vm1, %v18604_v6  ;;  %v15836_v1 = vld [vmem:[%s23245_s3 + $0xb0] ss:$12 sps:$4 sm:$0xff]   ;;  %v15888_v2 = vld [vmem:[%s23247_s5 + $0x3ac] ss:$12 sps:$4 sm:$0xff]   ;;  %v23385_v41 = vld [vmem:[#allocation55_spill] sm:$0xff] }
 0x220   :  { %1706 = vmatmul.mubr.bf16.gmra.mxu1 %v18602_v5  ;;  %2671 = vmatmul.mubr.bf16.vlgmr.msra.gmra.mxu0 %v18255_v47  ;;  %v15884_v30 = vld [vmem:[%s23247_s5 + $0x244] ss:$12 sps:$4 sm:$0xff]  }
 0x221   :  { %v1159_v23 = vmax.f32 %v1103_v26, 0.0  ;;  %13630 = vmatprep.mubr.msk.bf16.mxu1 %vm1526_vm1, %v18225_v36  ;;  %13807 = vmatprep.mubr.msk.bf16.mxu0 %vm1526_vm1, %v18316_v34  ;;  %v15886_v26 = vld [vmem:[%s23247_s5 + $0x3a8] ss:$12 sps:$4 sm:$0xff]  }
 0x222   :  { %3767 = vmatpush1.bf16.msra.mxu0 %v15857_v48 }
 0x223   :  { %v18616_v9 = vpack.c.bf16 %v1159_v23, %v1157_v21  ;;  %3768 = vmatprep.subr.bf16.mxu0 %v15863_v22  ;;  %v15849_v21 = vld [vmem:[%s23245_s3 + $0xc8] ss:$12 sps:$4 sm:$0xff]  }
 0x224   :  { %v15892_v23 = vld [vmem:[%s23247_s5 + $0x394] ss:$12 sps:$4 sm:$0xff]  }
 0x225   :  { %23384 = vst [vmem:[#allocation22_spill] sm:$0xff] %v18616_v9 }
 0x226   :  { %3769 = vmatpush1.bf16.msra.mxu0 %v15861_v42  ;;  %v15899_v42 = vld [vmem:[%s23247_s5 + $0x364] ss:$12 sps:$4 sm:$0xff]  }
 0x227   :  { %3770 = vmatprep.subr.bf16.mxu0 %v15867_v32  ;;  %v15897_v32 = vld [vmem:[%s23247_s5 + $0x360] ss:$12 sps:$4 sm:$0xff]  }
 0x228   :  { %1749 = vmatmul.mubr.bf16.vlgmr.msra.gmra.mxu1 %v18210_v61  ;;  %2681 = vmatmul.mubr.bf16.gmra.mxu0 %v18301_v58 }
 0x229   :  { %13631 = vmatprep.mubr.msk.bf16.mxu1 %vm1526_vm1, %v18270_v51  ;;  %2226 = vmatpush1.bf16.msra.mxu1 %v15836_v1  ;;  %v15890_v1 = vld [vmem:[%s23247_s5 + $0x390] ss:$12 sps:$4 sm:$0xff]  }
 0x22a   :  { %13808 = vmatprep.mubr.msk.bf16.mxu0 %vm1526_vm1, %v18362_v60  ;;  %2227 = vmatprep.subr.bf16.mxu1 %v23348_v24 }
 0x22b   :  { %3771 = vmatpush1.bf16.msra.mxu0 %v15865_v10 }
 0x22c   :  { %3772 = vmatprep.subr.bf16.mxu0 %v15870_v49  ;;  %v15900_v49 = vld [vmem:[%s23247_s5 + $0x348] ss:$12 sps:$4 sm:$0xff]  }
 0x22d   :  { %2228 = vmatpush1.bf16.msra.mxu1 %v15837_v15  ;;  %v748_v15 = vpop.f32.mrf.mxu1 }
 0x22e   :  { %2229 = vmatprep.subr.bf16.mxu1 %v23348_v24  ;;  %v749_v48 = vadd.f32 %v748_v15, %v23385_v41 }
 0x22f   :  { %3773 = vmatpush1.bf16.msra.mxu0 %v15868_v62  ;;  %v15905_v62 = vld [vmem:[%s23247_s5 + $0x334] ss:$12 sps:$4 sm:$0xff]  }
 0x230   :  { %1757 = vmatmul.mubr.bf16.gmra.mxu1 %v18255_v47  ;;  %2691 = vmatmul.mubr.bf16.gmra.mxu0 %v18347_v20 }
 0x231   :  { %13632 = vmatprep.mubr.msk.bf16.mxu1 %vm1526_vm1, %v18316_v34  ;;  %13809 = vmatprep.mubr.msk.bf16.mxu0 %vm1526_vm1, %v18408_v52 }
 0x232   :  { %2230 = vmatpush1.bf16.msra.mxu1 %v15838_v7  ;;  %3774 = vmatprep.subr.bf16.mxu0 %v15874_v3  ;;  %v15895_v7 = vld [vmem:[%s23247_s5 + $0x37c] ss:$12 sps:$4 sm:$0xff]  }
 0x233   :  { %2231 = vmatprep.subr.bf16.mxu1 %v23348_v24  ;;  %3775 = vmatpush1.bf16.msra.mxu0 %v15872_v28  ;;  %v15903_v3 = vld [vmem:[%s23247_s5 + $0x330] ss:$12 sps:$4 sm:$0xff]  }
 0x234   :  { %3776 = vmatprep.subr.bf16.mxu0 %v15877_v17  ;;  %v15908_v28 = vld [vmem:[%s23247_s5 + $0x31c] ss:$12 sps:$4 sm:$0xff]   ;;  %v15906_v17 = vld [vmem:[%s23247_s5 + $0x318] ss:$12 sps:$4 sm:$0xff]  }
 0x236   :  { %2232 = vmatpush1.bf16.msra.mxu1 %v15839_v43  ;;  %v978_v43 = vpop.f32.mrf.mxu0 }
 0x237   :  { %2233 = vmatprep.subr.bf16.mxu1 %v23348_v24  ;;  %3777 = vmatpush1.bf16.msra.mxu0 %v15875_v38  ;;  %v15909_v38 = vld [vmem:[%s23247_s5 + $0x300] ss:$12 sps:$4 sm:$0xff]  }
 0x238   :  { %1765 = vmatmul.mubr.bf16.gmra.mxu1 %v18301_v58  ;;  %2701 = vmatmul.mubr.bf16.gmra.mxu0 %v18393_v35 }
 0x239   :  { %13633 = vmatprep.mubr.msk.bf16.mxu1 %vm1526_vm1, %v18362_v60  ;;  %13810 = vmatprep.mubr.msk.bf16.mxu0 %vm1526_vm1, %v18454_v39 }
 0x23a   :  { %2234 = vmatpush1.bf16.msra.mxu1 %v15840_v11  ;;  %3778 = vmatprep.subr.bf16.mxu0 %v15881_v12  ;;  %v15893_v11 = vld [vmem:[%s23247_s5 + $0x378] ss:$12 sps:$4 sm:$0xff]  }
 0x23b   :  { %2235 = vmatprep.subr.bf16.mxu1 %v23348_v24  ;;  %3779 = vmatpush1.bf16.msra.mxu0 %v15879_v4 }
 0x23c   :  { %3780 = vmatprep.subr.bf16.mxu0 %v15884_v30  ;;  %v15850_v30 = vld [vmem:[%s23245_s3 + $0x350] ss:$12 sps:$4 sm:$0xff]  }
 0x23e   :  { %2236 = vmatpush1.bf16.msra.mxu1 %v15841_v40  ;;  %v23386_v40 = vld [vmem:[#allocation51_spill] sm:$0xff] }
 0x23f   :  { %2237 = vmatprep.subr.bf16.mxu1 %v23348_v24  ;;  %3781 = vmatpush1.bf16.msra.mxu0 %v15882_v50  ;;  %v745_v22 = vadd.f32 %v18581_v54, %v23386_v40  ;;  %v15902_v54 = vld [vmem:[%s23247_s5 + $0x34c] ss:$12 sps:$4 sm:$0xff]  }
 0x240   :  { %1773 = vmatmul.mubr.bf16.gmra.mxu1 %v18347_v20  ;;  %2711 = vmatmul.mubr.bf16.gmra.mxu0 %v18439_v29 }
 0x241   :  { %13634 = vmatprep.mubr.msk.bf16.mxu1 %vm1526_vm1, %v18408_v52  ;;  %13811 = vmatprep.mubr.msk.bf16.mxu0 %vm1526_vm1, %v18491_v8  ;;  %v1034_v10 = vadd.f32 %v18599_v0, %v745_v22  ;;  %v15853_v22 = vld [vmem:[%s23245_s3 + $0x308] ss:$12 sps:$4 sm:$0xff]  }
 0x242   :  { %2238 = vmatpush1.bf16.msra.mxu1 %v15842_v56  ;;  %3782 = vmatprep.subr.bf16.mxu0 %v15888_v2  ;;  %v1036_v56 = vadd.f32 %v978_v43, %v749_v48 }
 0x243   :  { %2239 = vmatprep.subr.bf16.mxu1 %v23348_v24  ;;  %3783 = vmatpush2.bf16.msra.mxu0 %v15886_v26 }
 0x244   :  { %3784 = vmatprep.subr.bf16.mxu0 %v15892_v23 }
 0x246   :  { %2240 = vmatpush1.bf16.msra.mxu1 %v15843_v13  ;;  %v1104_v13 = vadd.f32 %v18157_v31, %v1036_v56 }
 0x247   :  { %2245 = vmatprep.subr.bf16.mxu1 %v23348_v24  ;;  %3785 = vmatpush2.bf16.msra.mxu0 %v15890_v1 }
 0x248   :  { %1781 = vmatmul.mubr.bf16.gmra.mxu1 %v18393_v35  ;;  %2721 = vmatmul.mubr.bf16.gmra.mxu0 %v18482_v18  ;;  %v1160_v0 = vmax.f32 %v1104_v13, 0.0 }
 0x249   :  { %13635 = vmatprep.mubr.msk.bf16.mxu1 %vm1526_vm1, %v18454_v39  ;;  %13812 = vmatprep.mubr.msk.bf16.mxu0 %vm1526_vm1, %v18520_v45 }
 0x24a   :  { %2246 = vmatpush2.bf16.msra.mxu1 %v15844_v63  ;;  %3786 = vmatprep.subr.bf16.mxu0 %v15895_v7  ;;  %v1102_v63 = vadd.f32 %v18157_v31, %v1034_v10 }
 0x24b   :  { %2247 = vmatprep.subr.bf16.mxu1 %v23348_v24  ;;  %3787 = vmatpush2.bf16.msra.mxu0 %v15893_v11 }
 0x24c   :  { %3788 = vmatprep.subr.bf16.mxu0 %v15899_v42 }
 0x24e   :  { %2248 = vmatpush2.bf16.msra.mxu1 %v15845_v16  ;;  %v1158_v16 = vmax.f32 %v1102_v63, 0.0 }
 0x24f   :  { %2249 = vmatprep.subr.bf16.mxu1 %v23348_v24  ;;  %3789 = vmatpush2.bf16.msra.mxu0 %v15897_v32 }
 0x250   :  { %1789 = vmatmul.mubr.bf16.gmra.mxu1 %v18439_v29  ;;  %2731 = vmatmul.mubr.bf16.gmra.mxu0 %v18516_v44  ;;  %v18818_v31 = vpack.c.bf16 %v1160_v0, %v1158_v16  ;;  %v15855_v16 = vld [vmem:[%s23245_s3 + $0x2d8] ss:$12 sps:$4 sm:$0xff]  }
 0x251   :  { %13636 = vmatprep.mubr.msk.bf16.mxu1 %vm1526_vm1, %v18491_v8  ;;  %13813 = vmatprep.mubr.msk.bf16.mxu0 %vm1526_vm1, %v18543_v46 }
 0x252   :  { %2250 = vmatpush2.bf16.msra.mxu1 %v15846_v14  ;;  %3790 = vmatprep.subr.bf16.mxu0 %v15902_v54  ;;  %23387 = vst [vmem:[#allocation52_spill] sm:$0xff] %v18818_v31  ;;  %v15911_v14 = vld [vmem:[%s23247_s5 + $0x304] ss:$12 sps:$4 sm:$0xff]  }
 0x253   :  { %2251 = vmatprep.subr.bf16.mxu1 %v23348_v24  ;;  %3791 = vmatpush2.bf16.msra.mxu0 %v15900_v49 }
 0x254   :  { %3792 = vmatprep.subr.bf16.mxu0 %v15905_v62 }
 0x256   :  { %2252 = vmatpush2.bf16.msra.mxu1 %v15847_v55 }
 0x257   :  { %2253 = vmatprep.subr.bf16.mxu1 %v23348_v24  ;;  %3793 = vmatpush2.bf16.msra.mxu0 %v15903_v3 }
 0x258   :  { %1797 = vmatmul.mubr.bf16.gmra.mxu1 %v18482_v18  ;;  %2741 = vmatmul.mubr.bf16.gmra.mxu0 %v18539_v59 }
 0x259   :  { %13637 = vmatprep.mubr.msk.bf16.mxu1 %vm1526_vm1, %v18520_v45  ;;  %13814 = vmatprep.mubr.msk.bf16.mxu0 %vm1526_vm1, %v18564_v19 }
 0x25a   :  { %2254 = vmatpush2.bf16.msra.mxu1 %v15848_v37  ;;  %3794 = vmatprep.subr.bf16.mxu0 %v15908_v28 }
 0x25b   :  { %2255 = vmatprep.subr.bf16.mxu1 %v23348_v24  ;;  %3795 = vmatpush2.bf16.msra.mxu0 %v15906_v17 }
 0x25c   :  { %3796 = vmatprep.subr.bf16.mxu0 %v15911_v14 }
 0x25e   :  { %2256 = vmatpush2.bf16.msra.mxu1 %v15849_v21 }
 0x25f   :  { %2791 = vmatprep.subr.bf16.mxu1 %v23348_v24  ;;  %3797 = vmatpush2.bf16.msra.mxu0 %v15909_v38 }
 0x260   :  { %1805 = vmatmul.mubr.bf16.gmra.mxu1 %v18516_v44  ;;  %2751 = vmatmul.mubr.bf16.gmra.mxu0 %v18561_v27 }
 0x261   :  { %13638 = vmatprep.mubr.msk.bf16.mxu1 %vm1526_vm1, %v18543_v46  ;;  %13815 = vmatprep.mubr.msk.bf16.mxu0 %vm1526_vm1, %v18584_v33 }
 0x268   :  { %1813 = vmatmul.mubr.bf16.gmra.mxu1 %v18539_v59  ;;  %2761 = vmatmul.mubr.bf16.gmra.mxu0 %v18579_v57 }
 0x269   :  { %13639 = vmatprep.mubr.msk.bf16.mxu1 %vm1526_vm1, %v18564_v19  ;;  %13816 = vmatprep.mubr.msk.bf16.mxu0 %vm1526_vm1, %v18604_v6 }
 0x270   :  { %1821 = vmatmul.mubr.bf16.gmra.mxu1 %v18561_v27  ;;  %2771 = vmatmul.mubr.bf16.gmra.mxu0 %v18602_v5 }
 0x271   :  { %13640 = vmatprep.mubr.msk.bf16.mxu1 %vm1526_vm1, %v18584_v33  ;;  %13817 = vmatprep.mubr.msk.bf16.mxu0 %vm1526_vm1, %v18818_v31 }
 0x278   :  { %1829 = vmatmul.mubr.bf16.gmra.mxu1 %v18579_v57  ;;  %2781 = vmatmul.mubr.bf16.gmra.mxu0 %v18616_v9 }
 0x279   :  { %13641 = vmatprep.mubr.msk.bf16.mxu1 %vm1526_vm1, %v18604_v6 }
 0x280   :  { %1837 = vmatmul.mubr.bf16.gmra.mxu1 %v18602_v5  ;;  %v2106_v12 = vpop.f32.mrf.mxu0 }
 0x281   :  { %13696 = vmatprep.mubr.msk.bf16.mxu1 %vm1526_vm1, %v18187_v53  ;;  %v15851_v53 = vld [vmem:[%s23245_s3 + $0x338] ss:$12 sps:$4 sm:$0xff]  }
 0x282   :  { %v2108_v55 = vpop.f32.mrf.mxu0 }
 0x284   :  { %v2110_v4 = vpop.f32.mrf.mxu0 }
 0x286   :  { %v18848_v50 = vpop.f32.mrf.mxu0 }
 0x288   :  { %v1597_v37 = vpop.f32.mrf.mxu1  ;;  %v2116_v2 = vpop.f32.mrf.mxu0  ;;  %2258 = vmatmul.mubr.bf16.vlgmr.msra.gmra.mxu1 %v18175_v25  ;;  %v15852_v25 = vld [vmem:[%s23245_s3 + $0x320] ss:$12 sps:$4 sm:$0xff]  }
 0x289   :  { %v18851_v26 = vadd.f32 %v2106_v12, %v1597_v37  ;;  %13697 = vmatprep.mubr.msk.bf16.mxu1 %vm1526_vm1, %v18225_v36  ;;  %2792 = vmatpush1.bf16.msra.mxu1 %v15850_v30 }
 0x28a   :  { %v1599_v21 = vpop.f32.mrf.mxu1  ;;  %v2118_v23 = vpop.f32.mrf.mxu0  ;;  %2793 = vmatprep.subr.bf16.mxu1 %v23348_v24 }
 0x28b   :  { %v18859_v1 = vadd.f32 %v2108_v55, %v1599_v21 }
 0x28c   :  { %v1601_v15 = vpop.f32.mrf.mxu1  ;;  %v2120_v7 = vpop.f32.mrf.mxu0 }
 0x28d   :  { %v18861_v43 = vadd.f32 %v2110_v4, %v1601_v15  ;;  %2794 = vmatpush1.bf16.msra.mxu1 %v15851_v53  ;;  %v15856_v4 = vld [vmem:[%s23245_s3 + $0x2c0] ss:$12 sps:$4 sm:$0xff]  }
 0x28e   :  { %v18866_v36 = vpop.f32.mrf.mxu1  ;;  %v18868_v11 = vpop.f32.mrf.mxu0  ;;  %2795 = vmatprep.subr.bf16.mxu1 %v23348_v24 }
 0x290   :  { %v1607_v41 = vpop.f32.mrf.mxu1  ;;  %v2126_v48 = vpop.f32.mrf.mxu0  ;;  %2266 = vmatmul.mubr.bf16.gmra.mxu1 %v18210_v61  ;;  %v15854_v61 = vld [vmem:[%s23245_s3 + $0x2f0] ss:$12 sps:$4 sm:$0xff]  }
 0x291   :  { %v18872_v40 = vadd.f32 %v2116_v2, %v1607_v41  ;;  %13698 = vmatprep.mubr.msk.bf16.mxu1 %vm1526_vm1, %v18270_v51  ;;  %2796 = vmatpush1.bf16.msra.mxu1 %v15852_v25 }
 0x292   :  { %v1609_v56 = vpop.f32.mrf.mxu1  ;;  %v2128_v42 = vpop.f32.mrf.mxu0  ;;  %2797 = vmatprep.subr.bf16.mxu1 %v23348_v24 }
 0x293   :  { %v18880_v32 = vadd.f32 %v2118_v23, %v1609_v56  ;;  %v15860_v23 = vld [vmem:[%s23245_s3 + $0x2a8] ss:$12 sps:$4 sm:$0xff]   ;;  %v15864_v56 = vld [vmem:[%s23245_s3 + $0x3e0] ss:$12 sps:$4 sm:$0xff]  }
 0x294   :  { %v1611_v10 = vpop.f32.mrf.mxu1  ;;  %v2130_v13 = vpop.f32.mrf.mxu0 }
 0x295   :  { %v18882_v54 = vadd.f32 %v2120_v7, %v1611_v10  ;;  %2798 = vmatpush1.bf16.msra.mxu1 %v15853_v22 }
 0x296   :  { %v18887_v49 = vpop.f32.mrf.mxu1  ;;  %v18889_v63 = vpop.f32.mrf.mxu0  ;;  %2799 = vmatprep.subr.bf16.mxu1 %v23348_v24 }
 0x298   :  { %v1617_v0 = vpop.f32.mrf.mxu1  ;;  %v2136_v62 = vpop.f32.mrf.mxu0  ;;  %2274 = vmatmul.mubr.bf16.gmra.mxu1 %v18255_v47 }
 0x299   :  { %v18893_v3 = vadd.f32 %v2126_v48, %v1617_v0  ;;  %13699 = vmatprep.mubr.msk.bf16.mxu1 %vm1526_vm1, %v18316_v34  ;;  %2800 = vmatpush1.bf16.msra.mxu1 %v15854_v61 }
 0x29a   :  { %v1619_v28 = vpop.f32.mrf.mxu1  ;;  %v2138_v17 = vpop.f32.mrf.mxu0  ;;  %2801 = vmatprep.subr.bf16.mxu1 %v23348_v24 }
 0x29b   :  { %v18901_v14 = vadd.f32 %v2128_v42, %v1619_v28 }
 0x29c   :  { %v1621_v38 = vpop.f32.mrf.mxu1  ;;  %v2140_v12 = vpop.f32.mrf.mxu0 }
 0x29d   :  { %v18903_v55 = vadd.f32 %v2130_v13, %v1621_v38  ;;  %2802 = vmatpush1.bf16.msra.mxu1 %v15855_v16 }
 0x29e   :  { %v18908_v30 = vpop.f32.mrf.mxu1  ;;  %v18910_v37 = vpop.f32.mrf.mxu0  ;;  %2803 = vmatprep.subr.bf16.mxu1 %v23348_v24 }
 0x2a0   :  { %v1627_v2 = vpop.f32.mrf.mxu1  ;;  %v2146_v53 = vpop.f32.mrf.mxu0  ;;  %2282 = vmatmul.mubr.bf16.gmra.mxu1 %v18301_v58 }
 0x2a1   :  { %v18914_v21 = vadd.f32 %v2136_v62, %v1627_v2  ;;  %13700 = vmatprep.mubr.msk.bf16.mxu1 %vm1526_vm1, %v18362_v60  ;;  %2804 = vmatpush1.bf16.msra.mxu1 %v15856_v4  ;;  %v15871_v62 = vld [vmem:[%s23245_s3 + $0x3c8] ss:$12 sps:$4 sm:$0xff]   ;;  %v15878_v2 = vld [vmem:[%s23245_s3 + $0x3b0] ss:$12 sps:$4 sm:$0xff]  }
 0x2a2   :  { %v1629_v15 = vpop.f32.mrf.mxu1  ;;  %v2148_v7 = vpop.f32.mrf.mxu0  ;;  %2805 = vmatprep.subr.bf16.mxu1 %v23348_v24 }
 0x2a3   :  { %v18922_v25 = vadd.f32 %v2138_v17, %v1629_v15 }
 0x2a4   :  { %v1631_v41 = vpop.f32.mrf.mxu1  ;;  %v2150_v48 = vpop.f32.mrf.mxu0 }
 0x2a5   :  { %v18924_v22 = vadd.f32 %v2140_v12, %v1631_v41  ;;  %2806 = vmatpush1.bf16.msra.mxu1 %v15860_v23 }
 0x2a6   :  { %v18929_v42 = vpop.f32.mrf.mxu1  ;;  %v18931_v10 = vpop.f32.mrf.mxu0  ;;  %2811 = vmatprep.subr.bf16.mxu1 %v23348_v24 }
 0x2a8   :  { %v1637_v13 = vpop.f32.mrf.mxu1  ;;  %v2156_v61 = vpop.f32.mrf.mxu0  ;;  %2290 = vmatmul.mubr.bf16.gmra.mxu1 %v18347_v20 }
 0x2a9   :  { %v18935_v0 = vadd.f32 %v2146_v53, %v1637_v13  ;;  %13701 = vmatprep.mubr.msk.bf16.mxu1 %vm1526_vm1, %v18408_v52  ;;  %2812 = vmatpush2.bf16.msra.mxu1 %v15864_v56 }
 0x2aa   :  { %v1639_v16 = vpop.f32.mrf.mxu1  ;;  %v2158_v28 = vpop.f32.mrf.mxu0  ;;  %2813 = vmatprep.subr.bf16.mxu1 %v23348_v24 }
 0x2ab   :  { %v18943_v17 = vadd.f32 %v2148_v7, %v1639_v16 }
 0x2ac   :  { %v1641_v38 = vpop.f32.mrf.mxu1  ;;  %v2160_v12 = vpop.f32.mrf.mxu0 }
 0x2ad   :  { %v18945_v4 = vadd.f32 %v2150_v48, %v1641_v38  ;;  %2814 = vmatpush2.bf16.msra.mxu1 %v15871_v62  ;;  %v15885_v48 = vld [vmem:[%s23245_s3 + $0x398] ss:$12 sps:$4 sm:$0xff]  }
 0x2ae   :  { %v18950_v53 = vpop.f32.mrf.mxu1  ;;  %v18952_v23 = vpop.f32.mrf.mxu0  ;;  %2815 = vmatprep.subr.bf16.mxu1 %v23348_v24 }
 0x2af   :  { %23388 = vst [vmem:[#allocation23_spill] sm:$0xff] %v18952_v23 }
 0x2b0   :  { %v1647_v15 = vpop.f32.mrf.mxu1  ;;  %v2166_v41 = vpop.f32.mrf.mxu0  ;;  %2298 = vmatmul.mubr.bf16.gmra.mxu1 %v18393_v35 }
 0x2b1   :  { %v18956_v7 = vadd.f32 %v2156_v61, %v1647_v15  ;;  %13702 = vmatprep.mubr.msk.bf16.mxu1 %vm1526_vm1, %v18454_v39  ;;  %2816 = vmatpush2.bf16.msra.mxu1 %v15878_v2  ;;  %v15889_v61 = vld [vmem:[%s23245_s3 + $0x380] ss:$12 sps:$4 sm:$0xff]  }
 0x2b2   :  { %v1649_v56 = vpop.f32.mrf.mxu1  ;;  %v2168_v13 = vpop.f32.mrf.mxu0  ;;  %2817 = vmatprep.subr.bf16.mxu1 %v23348_v24 }
 0x2b3   :  { %v18964_v62 = vadd.f32 %v2158_v28, %v1649_v56 }
 0x2b4   :  { %v1651_v16 = vpop.f32.mrf.mxu1  ;;  %v2170_v38 = vpop.f32.mrf.mxu0 }
 0x2b5   :  { %v18966_v9 = vadd.f32 %v2160_v12, %v1651_v16  ;;  %2818 = vmatpush2.bf16.msra.mxu1 %v15885_v48  ;;  %v15896_v12 = vld [vmem:[%s23245_s3 + $0x368] ss:$12 sps:$4 sm:$0xff]   ;;  %v15912_v16 = vld [vmem:[%s23247_s5 + $0x3b0] ss:$12 sps:$4 sm:$0xff]  }
 0x2b6   :  { %v18971_v2 = vpop.f32.mrf.mxu1  ;;  %v18973_v15 = vpop.f32.mrf.mxu0  ;;  %2819 = vmatprep.subr.bf16.mxu1 %v23348_v24 }
 0x2b7   :  { %23389 = vst [vmem:[#allocation57_spill] sm:$0xff] %v18966_v9  ;;  %23390 = vst [vmem:[#allocation24_spill] sm:$0xff] %v18973_v15 }
 0x2b8   :  { %v1657_v31 = vpop.f32.mrf.mxu1  ;;  %v2176_v5 = vpop.f32.mrf.mxu0  ;;  %2306 = vmatmul.mubr.bf16.gmra.mxu1 %v18439_v29 }
 0x2b9   :  { %v18977_v28 = vadd.f32 %v2166_v41, %v1657_v31  ;;  %13703 = vmatprep.mubr.msk.bf16.mxu1 %vm1526_vm1, %v18491_v8  ;;  %2820 = vmatpush2.bf16.msra.mxu1 %v15889_v61 }
 0x2ba   :  { %v1659_v48 = vpop.f32.mrf.mxu1  ;;  %v2178_v56 = vpop.f32.mrf.mxu0  ;;  %2821 = vmatprep.subr.bf16.mxu1 %v23348_v24 }
 0x2bb   :  { %23391 = vst [vmem:[#allocation25_spill] sm:$0xff] %v18977_v28  ;;  %v18988_v6 = vadd.f32 %v2168_v13, %v1659_v48 }
 0x2bc   :  { %v1661_v31 = vpop.f32.mrf.mxu1  ;;  %v2180_v41 = vpop.f32.mrf.mxu0 }
 0x2bd   :  { %23392 = vst [vmem:[#allocation26_spill] sm:$0xff] %v18988_v6  ;;  %v18990_v15 = vadd.f32 %v2170_v38, %v1661_v31  ;;  %2822 = vmatpush2.bf16.msra.mxu1 %v15896_v12 }
 0x2be   :  { %v18992_v61 = vpop.f32.mrf.mxu1  ;;  %v18994_v28 = vpop.f32.mrf.mxu0  ;;  %15215 = vmatprep.subr.bf16.mxu1 %v15912_v16 }
 0x2bf   :  { %23393 = vst [vmem:[#allocation27_spill] sm:$0xff] %v18990_v15  ;;  %23394 = vst [vmem:[#allocation28_spill] sm:$0xff] %v18992_v61 }
 0x2c0   :  { %23395 = vst [vmem:[#allocation29_spill] sm:$0xff] %v18994_v28  ;;  %v1667_v9 = vpop.f32.mrf.mxu1  ;;  %v2186_v23 = vpop.f32.mrf.mxu0  ;;  %2314 = vmatmul.mubr.bf16.gmra.mxu1 %v18482_v18 }
 0x2c1   :  { %v18997_v24 = vadd.f32 %v2176_v5, %v1667_v9  ;;  %13704 = vmatprep.mubr.msk.bf16.mxu1 %vm1526_vm1, %v18520_v45 }
 0x2c2   :  { %v1669_v13 = vpop.f32.mrf.mxu1  ;;  %v2188_v48 = vpop.f32.mrf.mxu0 }
 0x2c3   :  { %23396 = vst [vmem:[#allocation30_spill] sm:$0xff] %v18997_v24  ;;  %v19001_v6 = vadd.f32 %v2178_v56, %v1669_v13 }
 0x2c4   :  { %v1671_v38 = vpop.f32.mrf.mxu1  ;;  %v2190_v12 = vpop.f32.mrf.mxu0 }
 0x2c5   :  { %23397 = vst [vmem:[#allocation31_spill] sm:$0xff] %v19001_v6  ;;  %v19003_v31 = vadd.f32 %v2180_v41, %v1671_v38 }
 0x2c6   :  { %v19005_v15 = vpop.f32.mrf.mxu1  ;;  %v19007_v16 = vpop.f32.mrf.mxu0 }
 0x2c7   :  { %23398 = vst [vmem:[#allocation32_spill] sm:$0xff] %v19003_v31  ;;  %23399 = vst [vmem:[#allocation33_spill] sm:$0xff] %v19005_v15 }
 0x2c8   :  { %23400 = vst [vmem:[#allocation34_spill] sm:$0xff] %v19007_v16  ;;  %v1677_v28 = vpop.f32.mrf.mxu1  ;;  %v2196_v61 = vpop.f32.mrf.mxu0  ;;  %2322 = vmatmul.mubr.bf16.gmra.mxu1 %v18516_v44 }
 0x2c9   :  { %v19010_v5 = vadd.f32 %v2186_v23, %v1677_v28  ;;  %13705 = vmatprep.mubr.msk.bf16.mxu1 %vm1526_vm1, %v18543_v46 }
 0x2ca   :  { %v1679_v9 = vpop.f32.mrf.mxu1  ;;  %v2198_v56 = vpop.f32.mrf.mxu0 }
 0x2cb   :  { %23401 = vst [vmem:[#allocation35_spill] sm:$0xff] %v19010_v5  ;;  %v19014_v13 = vadd.f32 %v2188_v48, %v1679_v9 }
 0x2cc   :  { %v1681_v6 = vpop.f32.mrf.mxu1  ;;  %v2200_v41 = vpop.f32.mrf.mxu0 }
 0x2cd   :  { %23402 = vst [vmem:[#allocation36_spill] sm:$0xff] %v19014_v13  ;;  %v19016_v38 = vadd.f32 %v2190_v12, %v1681_v6 }
 0x2ce   :  { %v19018_v31 = vpop.f32.mrf.mxu1  ;;  %v19020_v16 = vpop.f32.mrf.mxu0 }
 0x2cf   :  { %23403 = vst [vmem:[#allocation37_spill] sm:$0xff] %v19016_v38  ;;  %23404 = vst [vmem:[#allocation38_spill] sm:$0xff] %v19018_v31 }
 0x2d0   :  { %23405 = vst [vmem:[#allocation39_spill] sm:$0xff] %v19020_v16  ;;  %v1687_v15 = vpop.f32.mrf.mxu1  ;;  %v2206_v24 = vpop.f32.mrf.mxu0  ;;  %2330 = vmatmul.mubr.bf16.gmra.mxu1 %v18539_v59 }
 0x2d1   :  { %v19023_v23 = vadd.f32 %v2196_v61, %v1687_v15  ;;  %13706 = vmatprep.mubr.msk.bf16.mxu1 %vm1526_vm1, %v18564_v19 }
 0x2d2   :  { %v1689_v28 = vpop.f32.mrf.mxu1  ;;  %v2208_v48 = vpop.f32.mrf.mxu0 }
 0x2d3   :  { %23406 = vst [vmem:[#allocation40_spill] sm:$0xff] %v19023_v23  ;;  %v19027_v9 = vadd.f32 %v2198_v56, %v1689_v28 }
 0x2d4   :  { %v1691_v13 = vpop.f32.mrf.mxu1  ;;  %v2210_v6 = vpop.f32.mrf.mxu0 }
 0x2d5   :  { %23407 = vst [vmem:[#allocation41_spill] sm:$0xff] %v19027_v9  ;;  %v19029_v12 = vadd.f32 %v2200_v41, %v1691_v13 }
 0x2d6   :  { %v19031_v38 = vpop.f32.mrf.mxu1  ;;  %v19033_v16 = vpop.f32.mrf.mxu0 }
 0x2d7   :  { %23408 = vst [vmem:[#allocation42_spill] sm:$0xff] %v19029_v12  ;;  %23409 = vst [vmem:[#allocation43_spill] sm:$0xff] %v19031_v38  ;;  %v2992_v38 = vld [vmem:[#allocation6] sm:$0x7] }
 0x2d8   :  { %23410 = vst [vmem:[#allocation44_spill] sm:$0xff] %v19033_v16  ;;  %v1697_v31 = vpop.f32.mrf.mxu1  ;;  %v2216_v5 = vpop.f32.mrf.mxu0  ;;  %2338 = vmatmul.mubr.bf16.gmra.mxu1 %v18561_v27 }
 0x2d9   :  { %v19036_v15 = vadd.f32 %v2206_v24, %v1697_v31  ;;  %13707 = vmatprep.mubr.msk.bf16.mxu1 %vm1526_vm1, %v18584_v33  ;;  %v23416_v33 = vld [vmem:[#allocation54_spill] sm:$0xff] }
 0x2da   :  { %v1699_v61 = vpop.f32.mrf.mxu1  ;;  %v2218_v56 = vpop.f32.mrf.mxu0 }
 0x2db   :  { %23411 = vst [vmem:[#allocation46_spill] sm:$0xff] %v19036_v15  ;;  %v19040_v28 = vadd.f32 %v2208_v48, %v1699_v61  ;;  %v19053_v48 = vrot.slane %v2992_v38, %v23416_v33 }
 0x2dc   :  { %v1701_v9 = vpop.f32.mrf.mxu1  ;;  %v2220_v13 = vpop.f32.mrf.mxu0 }
 0x2dd   :  { %23412 = vst [vmem:[#allocation47_spill] sm:$0xff] %v19040_v28  ;;  %v19042_v41 = vadd.f32 %v2210_v6, %v1701_v9 }
 0x2de   :  { %v19044_v12 = vpop.f32.mrf.mxu1  ;;  %v19046_v16 = vpop.f32.mrf.mxu0 }
 0x2df   :  { %23413 = vst [vmem:[#allocation49_spill] sm:$0xff] %v19042_v41  ;;  %23414 = vst [vmem:[#allocation53_spill] sm:$0xff] %v19044_v12  ;;  %v23417_v41 = vld [vmem:[#allocation56_spill] sm:$0xff] }
 0x2e0   :  { %23415 = vst [vmem:[#allocation55_spill] sm:$0xff] %v19046_v16  ;;  %v1707_v23 = vpop.f32.mrf.mxu1  ;;  %2346 = vmatmul.mubr.bf16.gmra.mxu1 %v18579_v57  ;;  %v2672_v24 = vpop.f32.mrf.mxu0  ;;  %v19061_v12 = vrot.slane %v2992_v38, %v23417_v41  ;;  %v15914_v38 = vld [vmem:[%s23247_s5 + $0x398] ss:$12 sps:$4 sm:$0xff]   ;;  %v23464_v33 = vld [vmem:[#allocation44_spill] sm:$0xff] }
 0x2e1   :  { %v19049_v31 = vadd.f32 %v2216_v5, %v1707_v23  ;;  %v2920_v15 = vadd.f32 %v2672_v24, %v18851_v26  ;;  %13818 = vmatprep.mubr.msk.bf16.mxu1 %vm1526_vm1, %v18270_v51  ;;  %v2113_v26 = vadd.f32 %v18848_v50, %v18866_v36 }
 0x2e2   :  { %v1709_v9 = vpop.f32.mrf.mxu1  ;;  %v2674_v6 = vpop.f32.mrf.mxu0 }
 0x2e3   :  { %v19057_v61 = vadd.f32 %v2218_v56, %v1709_v9  ;;  %v2921_v16 = vadd.f32 %v2674_v6, %v18859_v1  ;;  %v3009_v23 = vadd.f32 %v19053_v48, %v2920_v15  ;;  %v15913_v56 = vld [vmem:[%s23247_s5 + $0x2f0] ss:$12 sps:$4 sm:$0xff]  }
 0x2e4   :  { %v1711_v28 = vpop.f32.mrf.mxu1  ;;  %v2676_v5 = vpop.f32.mrf.mxu0 }
 0x2e5   :  { %v19066_v24 = vadd.f32 %v2220_v13, %v1711_v28  ;;  %v2923_v51 = vadd.f32 %v2676_v5, %v18861_v43  ;;  %v3010_v6 = vadd.f32 %v19061_v12, %v2921_v16  ;;  %v3081_v43 = vmax.f32 %v3009_v23, 0.0  ;;  %v15915_v16 = vld [vmem:[%s23247_s5 + $0x2d8] ss:$12 sps:$4 sm:$0xff]  }
 0x2e6   :  { %v19072_v9 = vpop.f32.mrf.mxu1  ;;  %v2678_v1 = vpop.f32.mrf.mxu0 }
 0x2e7   :  { %v3012_v50 = vadd.f32 %v19053_v48, %v2923_v51  ;;  %v2924_v36 = vadd.f32 %v2678_v1, %v2113_v26  ;;  %v3082_v23 = vmax.f32 %v3010_v6, 0.0  ;;  %v15917_v6 = vld [vmem:[%s23247_s5 + $0x2c0] ss:$12 sps:$4 sm:$0xff]  }
 0x2e8   :  { %v19079_v15 = vpop.f32.mrf.mxu1  ;;  %v2682_v28 = vpop.f32.mrf.mxu0  ;;  %2824 = vmatmul.mubr.bf16.vlgmr.msra.gmra.mxu1 %v18255_v47  ;;  %v15916_v47 = vld [vmem:[%s23247_s5 + $0x380] ss:$12 sps:$4 sm:$0xff]  }
 0x2e9   :  { %v3084_v13 = vmax.f32 %v3012_v50, 0.0  ;;  %v3013_v5 = vadd.f32 %v19061_v12, %v2924_v36  ;;  %v2926_v41 = vadd.f32 %v2682_v28, %v18872_v40  ;;  %13819 = vmatprep.mubr.msk.bf16.mxu1 %vm1526_vm1, %v18316_v34  ;;  %15216 = vmatpush3.bf16.msra.mxu1 %v15913_v56  ;;  %v2123_v56 = vadd.f32 %v18868_v11, %v18887_v49  ;;  %v15918_v11 = vld [vmem:[%s23247_s5 + $0x368] ss:$12 sps:$4 sm:$0xff]  }
 0x2ea   :  { %v1752_v26 = vpop.f32.mrf.mxu1  ;;  %v2684_v51 = vpop.f32.mrf.mxu0  ;;  %15217 = vmatprep.subr.bf16.mxu1 %v15914_v38 }
 0x2eb   :  { %v19092_v1 = vpack.c.bf16 %v3084_v13, %v3081_v43  ;;  %v3085_v50 = vmax.f32 %v3013_v5, 0.0  ;;  %v2927_v40 = vadd.f32 %v2684_v51, %v18880_v32  ;;  %v3015_v28 = vadd.f32 %v19053_v48, %v2926_v41  ;;  %v15948_v43 = vld [vmem:[%s23247_s5 + $0x46c] ss:$12 sps:$4 sm:$0xff]  }
 0x2ec   :  { %v19095_v36 = vpop.f32.mrf.mxu1  ;;  %v2686_v34 = vpop.f32.mrf.mxu0  ;;  %3899 = vmatprep.subr.bf16.mxu0 %v15948_v43 }
 0x2ed   :  { %v2929_v38 = vadd.f32 %v2686_v34, %v18882_v54  ;;  %15218 = vmatpush3.bf16.msra.mxu1 %v15915_v16  ;;  %v19107_v32 = vpack.c.bf16 %v3085_v50, %v3082_v23  ;;  %v3016_v54 = vadd.f32 %v19061_v12, %v2927_v40  ;;  %v3087_v51 = vmax.f32 %v3015_v28, 0.0  ;;  %v15919_v40 = vld [vmem:[%s23247_s5 + $0x2a8] ss:$12 sps:$4 sm:$0xff]  }
 0x2ee   :  { %v1755_v13 = vpop.f32.mrf.mxu1  ;;  %v2688_v5 = vpop.f32.mrf.mxu0  ;;  %15219 = vmatprep.subr.bf16.mxu1 %v15916_v47 }
 0x2ef   :  { %v3018_v49 = vadd.f32 %v19053_v48, %v2929_v38  ;;  %v2930_v41 = vadd.f32 %v2688_v5, %v2123_v56  ;;  %v3088_v28 = vmax.f32 %v3016_v54, 0.0  ;;  %v15921_v54 = vld [vmem:[%s23247_s5 + $0x290] ss:$12 sps:$4 sm:$0xff]  }
 0x2f0   :  { %v19114_v16 = vpop.f32.mrf.mxu1  ;;  %v2692_v26 = vpop.f32.mrf.mxu0  ;;  %2832 = vmatmul.mubr.bf16.gmra.mxu1 %v18301_v58  ;;  %v15920_v58 = vld [vmem:[%s23247_s5 + $0x350] ss:$12 sps:$4 sm:$0xff]  }
 0x2f1   :  { %v3090_v23 = vmax.f32 %v3018_v49, 0.0  ;;  %v3019_v50 = vadd.f32 %v19061_v12, %v2930_v41  ;;  %v2932_v47 = vadd.f32 %v2692_v26, %v18893_v3  ;;  %13820 = vmatprep.mubr.msk.bf16.mxu1 %vm1526_vm1, %v18362_v60  ;;  %15220 = vmatpush3.bf16.msra.mxu1 %v15917_v6  ;;  %v2133_v6 = vadd.f32 %v18889_v63, %v18908_v30  ;;  %v15946_v63 = vld [vmem:[%s23247_s5 + $0x468] ss:$12 sps:$4 sm:$0xff]  }
 0x2f2   :  { %v1760_v34 = vpop.f32.mrf.mxu1  ;;  %v2694_v56 = vpop.f32.mrf.mxu0  ;;  %15221 = vmatprep.subr.bf16.mxu1 %v15918_v11 }
 0x2f3   :  { %v19127_v38 = vpack.c.bf16 %v3090_v23, %v3087_v51  ;;  %v3091_v43 = vmax.f32 %v3019_v50, 0.0  ;;  %v2933_v3 = vadd.f32 %v2694_v56, %v18901_v14  ;;  %v3021_v11 = vadd.f32 %v19053_v48, %v2932_v47  ;;  %v15922_v14 = vld [vmem:[%s23247_s5 + $0x338] ss:$12 sps:$4 sm:$0xff]   ;;  %v15957_v23 = vld [vmem:[%s23247_s5 + $0x454] ss:$12 sps:$4 sm:$0xff]  }
 0x2f4   :  { %v19130_v13 = vpop.f32.mrf.mxu1  ;;  %v2696_v60 = vpop.f32.mrf.mxu0 }
 0x2f5   :  { %v19134_v5 = vpack.c.bf16 %v3091_v43, %v3088_v28  ;;  %v2935_v49 = vadd.f32 %v2696_v60, %v18903_v55  ;;  %15222 = vmatpush3.bf16.msra.mxu1 %v15919_v40  ;;  %v3022_v30 = vadd.f32 %v19061_v12, %v2933_v3  ;;  %v3093_v40 = vmax.f32 %v3021_v11, 0.0  ;;  %v15923_v28 = vld [vmem:[%s23247_s5 + $0x278] ss:$12 sps:$4 sm:$0xff]  }
 0x2f6   :  { %v1763_v41 = vpop.f32.mrf.mxu1  ;;  %v2698_v26 = vpop.f32.mrf.mxu0  ;;  %15223 = vmatprep.subr.bf16.mxu1 %v15920_v58 }
 0x2f7   :  { %v3024_v55 = vadd.f32 %v19053_v48, %v2935_v49  ;;  %v2936_v51 = vadd.f32 %v2698_v26, %v2133_v6  ;;  %3798 = vmatprep.mubr.bf16.mxu0 %v19134_v5  ;;  %v3094_v60 = vmax.f32 %v3022_v30, 0.0  ;;  %v2143_v41 = vadd.f32 %v18910_v37, %v18929_v42  ;;  %v15925_v30 = vld [vmem:[%s23247_s5 + $0x260] ss:$12 sps:$4 sm:$0xff]  }
 0x2f8   :  { %v19153_v50 = vpop.f32.mrf.mxu1  ;;  %v2702_v47 = vpop.f32.mrf.mxu0  ;;  %2840 = vmatmul.mubr.bf16.gmra.mxu1 %v18347_v20  ;;  %3799 = vmatmul.mubr.bf16.vlgmr.msra.gmra.mxu0 %v19127_v38  ;;  %v15924_v20 = vld [vmem:[%s23247_s5 + $0x320] ss:$12 sps:$4 sm:$0xff]  }
 0x2f9   :  { %v3096_v34 = vmax.f32 %v3024_v55, 0.0  ;;  %v3025_v56 = vadd.f32 %v19061_v12, %v2936_v51  ;;  %v2938_v58 = vadd.f32 %v2702_v47, %v18914_v21  ;;  %13821 = vmatprep.mubr.msk.bf16.mxu1 %vm1526_vm1, %v18408_v52  ;;  %15224 = vmatpush3.bf16.msra.mxu1 %v15921_v54  ;;  %v15955_v21 = vld [vmem:[%s23247_s5 + $0x450] ss:$12 sps:$4 sm:$0xff]   ;;  %v15926_v51 = vld [vmem:[%s23247_s5 + $0x308] ss:$12 sps:$4 sm:$0xff]  }
 0x2fa   :  { %v1768_v43 = vpop.f32.mrf.mxu1  ;;  %v2704_v3 = vpop.f32.mrf.mxu0  ;;  %15225 = vmatprep.subr.bf16.mxu1 %v15922_v14  ;;  %3900 = vmatpush1.bf16.msra.mxu0 %v15946_v63 }
 0x2fb   :  { %v19170_v6 = vpack.c.bf16 %v3096_v34, %v3093_v40  ;;  %v3097_v52 = vmax.f32 %v3025_v56, 0.0  ;;  %v2939_v11 = vadd.f32 %v2704_v3, %v18922_v25  ;;  %3901 = vmatprep.subr.bf16.mxu0 %v15957_v23  ;;  %v3027_v14 = vadd.f32 %v19053_v48, %v2938_v58  ;;  %v15927_v40 = vld [vmem:[%s23247_s5 + $0x248] ss:$12 sps:$4 sm:$0xff]  }
 0x2fc   :  { %v19173_v49 = vpop.f32.mrf.mxu1  ;;  %v2706_v54 = vpop.f32.mrf.mxu0  ;;  %v15969_v43 = vld [vmem:[%s23247_s5 + $0x43c] ss:$12 sps:$4 sm:$0xff]  }
 0x2fd   :  { %23418 = vst [vmem:[#allocation51_spill] sm:$0xff] %v19170_v6  ;;  %v19177_v26 = vpack.c.bf16 %v3097_v52, %v3094_v60  ;;  %v2941_v63 = vadd.f32 %v2706_v54, %v18924_v22  ;;  %15226 = vmatpush3.bf16.msra.mxu1 %v15923_v28  ;;  %v3028_v37 = vadd.f32 %v19061_v12, %v2939_v11  ;;  %v3099_v34 = vmax.f32 %v3027_v14, 0.0 }
 0x2fe   :  { %v1771_v55 = vpop.f32.mrf.mxu1  ;;  %v2708_v25 = vpop.f32.mrf.mxu0  ;;  %15227 = vmatprep.subr.bf16.mxu1 %v15924_v20  ;;  %3902 = vmatpush1.bf16.msra.mxu0 %v15955_v21  ;;  %v15930_v21 = vld [vmem:[%s23247_s5 + $0xac] ss:$12 sps:$4 sm:$0xff]  }
 0x2ff   :  { %23419 = vst [vmem:[#allocation58_spill] sm:$0xff] %v19177_v26  ;;  %v3030_v42 = vadd.f32 %v19053_v48, %v2941_v63  ;;  %v2942_v23 = vadd.f32 %v2708_v25, %v2143_v41  ;;  %3808 = vmatprep.mubr.bf16.mxu0 %v19177_v26  ;;  %3903 = vmatprep.subr.bf16.mxu0 %v15969_v43 }
 0x300   :  { %v19190_v22 = vpop.f32.mrf.mxu1  ;;  %v2712_v47 = vpop.f32.mrf.mxu0  ;;  %2848 = vmatmul.mubr.bf16.gmra.mxu1 %v18393_v35  ;;  %3809 = vmatmul.mubr.bf16.gmra.mxu0 %v19170_v6  ;;  %v15967_v35 = vld [vmem:[%s23247_s5 + $0x438] ss:$12 sps:$4 sm:$0xff]   ;;  %v2153_v41 = vadd.f32 %v18931_v10, %v18950_v53 }
 0x301   :  { %v3102_v56 = vmax.f32 %v3030_v42, 0.0  ;;  %v3031_v58 = vadd.f32 %v19061_v12, %v2942_v23  ;;  %v2944_v28 = vadd.f32 %v2712_v47, %v18935_v0  ;;  %13822 = vmatprep.mubr.msk.bf16.mxu1 %vm1526_vm1, %v18454_v39  ;;  %15228 = vmatpush3.bf16.msra.mxu1 %v15925_v30  ;;  %v3100_v0 = vmax.f32 %v3028_v37, 0.0 }
 0x302   :  { %v1776_v3 = vpop.f32.mrf.mxu1  ;;  %v2714_v20 = vpop.f32.mrf.mxu0  ;;  %15229 = vmatprep.subr.bf16.mxu1 %v15926_v51  ;;  %3904 = vmatpush1.bf16.msra.mxu0 %v15967_v35 }
 0x303   :  { %v19210_v60 = vpack.c.bf16 %v3102_v56, %v3099_v34  ;;  %v3103_v39 = vmax.f32 %v3031_v58, 0.0  ;;  %v2945_v52 = vadd.f32 %v2714_v20, %v18943_v17  ;;  %v3033_v63 = vadd.f32 %v19053_v48, %v2944_v28  ;;  %v15976_v56 = vld [vmem:[%s23247_s5 + $0x420] ss:$12 sps:$4 sm:$0xff]  }
 0x304   :  { %v19213_v11 = vpop.f32.mrf.mxu1  ;;  %v2716_v54 = vpop.f32.mrf.mxu0 }
 0x305   :  { %23420 = vst [vmem:[#allocation59_spill] sm:$0xff] %v19210_v60  ;;  %v19217_v14 = vpack.c.bf16 %v3103_v39, %v3100_v0  ;;  %v2947_v30 = vadd.f32 %v2716_v54, %v18945_v4  ;;  %15230 = vmatpush3.bf16.msra.mxu1 %v15927_v40  ;;  %v3034_v17 = vadd.f32 %v19061_v12, %v2945_v52  ;;  %v3105_v53 = vmax.f32 %v3033_v63, 0.0  ;;  %v23425_v39 = vld [vmem:[#allocation57_spill] sm:$0xff] }
 0x306   :  { %v1779_v55 = vpop.f32.mrf.mxu1  ;;  %v2718_v25 = vpop.f32.mrf.mxu0  ;;  %4642 = vmatprep.subr.bf16.mxu1 %v15930_v21 }
 0x307   :  { %23421 = vst [vmem:[#allocation60_spill] sm:$0xff] %v19217_v14  ;;  %v3036_v51 = vadd.f32 %v19053_v48, %v2947_v30  ;;  %v2948_v37 = vadd.f32 %v2718_v25, %v2153_v41  ;;  %3818 = vmatprep.mubr.bf16.mxu0 %v19217_v14  ;;  %v3106_v58 = vmax.f32 %v3034_v17, 0.0 }
 0x308   :  { %v19224_v42 = vpop.f32.mrf.mxu1  ;;  %v2722_v10 = vpop.f32.mrf.mxu0  ;;  %2856 = vmatmul.mubr.bf16.gmra.mxu1 %v18439_v29  ;;  %3819 = vmatmul.mubr.bf16.gmra.mxu0 %v19210_v60  ;;  %v15978_v29 = vld [vmem:[%s23247_s5 + $0x424] ss:$12 sps:$4 sm:$0xff]  }
 0x309   :  { %v3108_v4 = vmax.f32 %v3036_v51, 0.0  ;;  %v3037_v23 = vadd.f32 %v19061_v12, %v2948_v37  ;;  %v2950_v47 = vadd.f32 %v2722_v10, %v18956_v7  ;;  %13823 = vmatprep.mubr.msk.bf16.mxu1 %vm1526_vm1, %v18491_v8  ;;  %3905 = vmatprep.subr.bf16.mxu0 %v15978_v29  ;;  %v23423_v8 = vld [vmem:[#allocation23_spill] sm:$0xff]  ;;  %v23426_v37 = vld [vmem:[#allocation25_spill] sm:$0xff] }
 0x30a   :  { %v1784_v40 = vpop.f32.mrf.mxu1  ;;  %v2724_v34 = vpop.f32.mrf.mxu0  ;;  %v2163_v20 = vadd.f32 %v23423_v8, %v18971_v2  ;;  %3906 = vmatpush1.bf16.msra.mxu0 %v15976_v56 }
 0x30b   :  { %v19238_v28 = vpack.c.bf16 %v3108_v4, %v3105_v53  ;;  %v3109_v35 = vmax.f32 %v3037_v23, 0.0  ;;  %v2951_v43 = vadd.f32 %v2724_v34, %v18964_v62  ;;  %v3039_v0 = vadd.f32 %v19053_v48, %v2950_v47  ;;  %v23428_v34 = vld [vmem:[#allocation26_spill] sm:$0xff] }
 0x30c   :  { %v19241_v7 = vpop.f32.mrf.mxu1  ;;  %v2726_v3 = vpop.f32.mrf.mxu0 }
 0x30d   :  { %23422 = vst [vmem:[#allocation61_spill] sm:$0xff] %v19238_v28  ;;  %v19245_v21 = vpack.c.bf16 %v3109_v35, %v3106_v58  ;;  %v2953_v52 = vadd.f32 %v2726_v3, %v23425_v39  ;;  %v3040_v63 = vadd.f32 %v19061_v12, %v2951_v43  ;;  %v3111_v2 = vmax.f32 %v3039_v0, 0.0  ;;  %v23429_v58 = vld [vmem:[#allocation28_spill] sm:$0xff] }
 0x30e   :  { %v1787_v54 = vpop.f32.mrf.mxu1  ;;  %v2728_v41 = vpop.f32.mrf.mxu0  ;;  %v23430_v35 = vld [vmem:[#allocation24_spill] sm:$0xff] }
 0x30f   :  { %23424 = vst [vmem:[#allocation23_spill] sm:$0xff] %v19245_v21  ;;  %v3042_v62 = vadd.f32 %v19053_v48, %v2953_v52  ;;  %v2954_v30 = vadd.f32 %v2728_v41, %v2163_v20  ;;  %3828 = vmatprep.mubr.bf16.mxu0 %v19245_v21  ;;  %v3112_v23 = vmax.f32 %v3040_v63, 0.0  ;;  %v2173_v43 = vadd.f32 %v23430_v35, %v23429_v58  ;;  %v23432_v20 = vld [vmem:[#allocation27_spill] sm:$0xff]  ;;  %v15990_v39 = vld [vmem:[%s23247_s5 + $0x40c] ss:$12 sps:$4 sm:$0xff]  }
 0x310   :  { %v19252_v55 = vpop.f32.mrf.mxu1  ;;  %v2732_v25 = vpop.f32.mrf.mxu0  ;;  %2864 = vmatmul.mubr.bf16.gmra.mxu1 %v18482_v18  ;;  %3829 = vmatmul.mubr.bf16.gmra.mxu0 %v19238_v28  ;;  %v15988_v0 = vld [vmem:[%s23247_s5 + $0x408] ss:$12 sps:$4 sm:$0xff]  }
 0x311   :  { %v3114_v17 = vmax.f32 %v3042_v62, 0.0  ;;  %v3043_v51 = vadd.f32 %v19061_v12, %v2954_v30  ;;  %v2956_v10 = vadd.f32 %v2732_v25, %v23426_v37  ;;  %13824 = vmatprep.mubr.msk.bf16.mxu1 %vm1526_vm1, %v18520_v45  ;;  %3907 = vmatprep.subr.bf16.mxu0 %v15990_v39  ;;  %v23433_v37 = vld [vmem:[#allocation30_spill] sm:$0xff]  ;;  %v23436_v35 = vld [vmem:[#allocation33_spill] sm:$0xff] }
 0x312   :  { %v1792_v53 = vpop.f32.mrf.mxu1  ;;  %v2734_v4 = vpop.f32.mrf.mxu0  ;;  %3908 = vmatpush1.bf16.msra.mxu0 %v15988_v0 }
 0x313   :  { %v19260_v47 = vpack.c.bf16 %v3114_v17, %v3111_v2  ;;  %v3115_v40 = vmax.f32 %v3043_v51, 0.0  ;;  %v2957_v56 = vadd.f32 %v2734_v4, %v23428_v34  ;;  %v3045_v8 = vadd.f32 %v19053_v48, %v2956_v10 }
 0x314   :  { %v19263_v18 = vpop.f32.mrf.mxu1  ;;  %v2736_v29 = vpop.f32.mrf.mxu0 }
 0x315   :  { %23427 = vst [vmem:[#allocation57_spill] sm:$0xff] %v19260_v47  ;;  %v19267_v3 = vpack.c.bf16 %v3115_v40, %v3112_v23  ;;  %v2959_v45 = vadd.f32 %v2736_v29, %v23432_v20  ;;  %v3046_v41 = vadd.f32 %v19061_v12, %v2957_v56  ;;  %v3117_v2 = vmax.f32 %v3045_v8, 0.0  ;;  %v23435_v56 = vld [vmem:[#allocation31_spill] sm:$0xff] }
 0x316   :  { %v1795_v52 = vpop.f32.mrf.mxu1  ;;  %v2738_v54 = vpop.f32.mrf.mxu0 }
 0x317   :  { %23431 = vst [vmem:[#allocation25_spill] sm:$0xff] %v19267_v3  ;;  %v3048_v63 = vadd.f32 %v19053_v48, %v2959_v45  ;;  %v2960_v62 = vadd.f32 %v2738_v54, %v2173_v43  ;;  %3838 = vmatprep.mubr.bf16.mxu0 %v19267_v3  ;;  %v3118_v23 = vmax.f32 %v3046_v41, 0.0  ;;  %v23437_v43 = vld [vmem:[#allocation29_spill] sm:$0xff] }
 0x318   :  { %v19280_v30 = vpop.f32.mrf.mxu1  ;;  %v2742_v25 = vpop.f32.mrf.mxu0  ;;  %2872 = vmatmul.mubr.bf16.gmra.mxu1 %v18516_v44  ;;  %3839 = vmatmul.mubr.bf16.gmra.mxu0 %v19260_v47  ;;  %v2183_v8 = vadd.f32 %v23437_v43, %v23436_v35  ;;  %v15991_v54 = vld [vmem:[%s23247_s5 + $0x3f0] ss:$12 sps:$4 sm:$0xff]   ;;  %v15993_v41 = vld [vmem:[%s23247_s5 + $0x3f4] ss:$12 sps:$4 sm:$0xff]  }
 0x319   :  { %v3120_v17 = vmax.f32 %v3048_v63, 0.0  ;;  %v3049_v51 = vadd.f32 %v19061_v12, %v2960_v62  ;;  %v2962_v10 = vadd.f32 %v2742_v25, %v23433_v37  ;;  %13825 = vmatprep.mubr.msk.bf16.mxu1 %vm1526_vm1, %v18543_v46  ;;  %v23439_v46 = vld [vmem:[#allocation32_spill] sm:$0xff]  ;;  %3909 = vmatprep.subr.bf16.mxu0 %v15993_v41 }
 0x31a   :  { %v1800_v53 = vpop.f32.mrf.mxu1  ;;  %v2744_v4 = vpop.f32.mrf.mxu0  ;;  %3910 = vmatpush1.bf16.msra.mxu0 %v15991_v54 }
 0x31b   :  { %v19288_v40 = vpack.c.bf16 %v3120_v17, %v3117_v2  ;;  %v3121_v34 = vmax.f32 %v3049_v51, 0.0  ;;  %v2963_v44 = vadd.f32 %v2744_v4, %v23435_v56  ;;  %v3051_v45 = vadd.f32 %v19053_v48, %v2962_v10  ;;  %v23440_v53 = vld [vmem:[#allocation35_spill] sm:$0xff] }
 0x31c   :  { %v19291_v29 = vpop.f32.mrf.mxu1  ;;  %v2746_v58 = vpop.f32.mrf.mxu0 }
 0x31d   :  { %23434 = vst [vmem:[#allocation26_spill] sm:$0xff] %v19288_v40  ;;  %v19295_v20 = vpack.c.bf16 %v3121_v34, %v3118_v23  ;;  %v2965_v0 = vadd.f32 %v2746_v58, %v23439_v46  ;;  %v3052_v63 = vadd.f32 %v19061_v12, %v2963_v44  ;;  %v3123_v51 = vmax.f32 %v3051_v45, 0.0  ;;  %v23443_v45 = vld [vmem:[#allocation38_spill] sm:$0xff] }
 0x31e   :  { %v1803_v39 = vpop.f32.mrf.mxu1  ;;  %v2748_v52 = vpop.f32.mrf.mxu0  ;;  %v23444_v46 = vld [vmem:[#allocation34_spill] sm:$0xff] }
 0x31f   :  { %23438 = vst [vmem:[#allocation28_spill] sm:$0xff] %v19295_v20  ;;  %v3054_v62 = vadd.f32 %v19053_v48, %v2965_v0  ;;  %v2966_v25 = vadd.f32 %v2748_v52, %v2183_v8  ;;  %3848 = vmatprep.mubr.bf16.mxu0 %v19295_v20  ;;  %v3124_v56 = vmax.f32 %v3052_v63, 0.0  ;;  %v2193_v0 = vadd.f32 %v23444_v46, %v23443_v45  ;;  %v23446_v52 = vld [vmem:[#allocation37_spill] sm:$0xff] }
 0x320   :  { %v19308_v2 = vpop.f32.mrf.mxu1  ;;  %v2752_v17 = vpop.f32.mrf.mxu0  ;;  %2880 = vmatmul.mubr.bf16.gmra.mxu1 %v18539_v59  ;;  %3849 = vmatmul.mubr.bf16.gmra.mxu0 %v19288_v40  ;;  %v23442_v59 = vld [vmem:[#allocation36_spill] sm:$0xff]  ;;  %v23451_v46 = vld [vmem:[#allocation41_spill] sm:$0xff] }
 0x321   :  { %v3126_v37 = vmax.f32 %v3054_v62, 0.0  ;;  %v3055_v10 = vadd.f32 %v19061_v12, %v2966_v25  ;;  %v2968_v4 = vadd.f32 %v2752_v17, %v23440_v53  ;;  %13826 = vmatprep.mubr.msk.bf16.mxu1 %vm1526_vm1, %v18564_v19 }
 0x322   :  { %v1808_v23 = vpop.f32.mrf.mxu1  ;;  %v2754_v34 = vpop.f32.mrf.mxu0 }
 0x323   :  { %v19316_v44 = vpack.c.bf16 %v3126_v37, %v3123_v51  ;;  %v3127_v58 = vmax.f32 %v3055_v10, 0.0  ;;  %v2969_v35 = vadd.f32 %v2754_v34, %v23442_v59  ;;  %v3057_v19 = vadd.f32 %v19053_v48, %v2968_v4  ;;  %v23448_v23 = vld [vmem:[#allocation40_spill] sm:$0xff] }
 0x324   :  { %v19319_v43 = vpop.f32.mrf.mxu1  ;;  %v2756_v8 = vpop.f32.mrf.mxu0 }
 0x325   :  { %23441 = vst [vmem:[#allocation24_spill] sm:$0xff] %v19316_v44  ;;  %v19323_v39 = vpack.c.bf16 %v3127_v58, %v3124_v56  ;;  %v2971_v41 = vadd.f32 %v2756_v8, %v23446_v52  ;;  %v3058_v63 = vadd.f32 %v19061_v12, %v2969_v35  ;;  %v3129_v10 = vmax.f32 %v3057_v19, 0.0  ;;  %v23449_v56 = vld [vmem:[#allocation45_spill] sm:$0xff]  ;;  %v23453_v19 = vld [vmem:[#allocation43_spill] sm:$0xff] }
 0x326   :  { %v1811_v62 = vpop.f32.mrf.mxu1  ;;  %v2758_v54 = vpop.f32.mrf.mxu0 }
 0x327   :  { %23445 = vst [vmem:[#allocation27_spill] sm:$0xff] %v19323_v39  ;;  %v3060_v25 = vadd.f32 %v19053_v48, %v2971_v41  ;;  %v2972_v17 = vadd.f32 %v2758_v54, %v2193_v0  ;;  %3858 = vmatprep.mubr.bf16.mxu0 %v19323_v39  ;;  %v3130_v35 = vmax.f32 %v3058_v63, 0.0  ;;  %v23454_v41 = vld [vmem:[#allocation39_spill] sm:$0xff] }
 0x328   :  { %v19330_v51 = vpop.f32.mrf.mxu1  ;;  %v2762_v37 = vpop.f32.mrf.mxu0  ;;  %2888 = vmatmul.mubr.bf16.gmra.mxu1 %v18561_v27  ;;  %3859 = vmatmul.mubr.bf16.gmra.mxu0 %v19316_v44  ;;  %v2203_v62 = vadd.f32 %v23454_v41, %v23453_v19  ;;  %v15994_v63 = vld [vmem:[%s23247_s5 + $0x3d8] ss:$12 sps:$4 sm:$0xff]  }
 0x329   :  { %23447 = vst [vmem:[#allocation30_spill] sm:$0xff] %v19330_v51  ;;  %v3132_v53 = vmax.f32 %v3060_v25, 0.0  ;;  %v3061_v4 = vadd.f32 %v19061_v12, %v2972_v17  ;;  %v2974_v34 = vadd.f32 %v2762_v37, %v23448_v23  ;;  %13827 = vmatprep.mubr.msk.bf16.mxu1 %vm1526_vm1, %v23449_v56  ;;  %v23456_v17 = vld [vmem:[#allocation42_spill] sm:$0xff] }
 0x32a   :  { %v1816_v58 = vpop.f32.mrf.mxu1  ;;  %v2764_v59 = vpop.f32.mrf.mxu0 }
 0x32b   :  { %v19338_v8 = vpack.c.bf16 %v3132_v53, %v3129_v10  ;;  %v3133_v45 = vmax.f32 %v3061_v4, 0.0  ;;  %v2975_v0 = vadd.f32 %v2764_v59, %v23451_v46  ;;  %v3063_v25 = vadd.f32 %v19053_v48, %v2974_v34  ;;  %v15996_v10 = vld [vmem:[%s23247_s5 + $0x3dc] ss:$12 sps:$4 sm:$0xff]  }
 0x32c   :  { %v19341_v27 = vpop.f32.mrf.mxu1  ;;  %v2766_v52 = vpop.f32.mrf.mxu0  ;;  %3911 = vmatprep.subr.bf16.mxu0 %v15996_v10 }
 0x32d   :  { %23450 = vst [vmem:[#allocation31_spill] sm:$0xff] %v19338_v8  ;;  %23452 = vst [vmem:[#allocation33_spill] sm:$0xff] %v19341_v27  ;;  %v19345_v54 = vpack.c.bf16 %v3133_v45, %v3130_v35  ;;  %v2977_v37 = vadd.f32 %v2766_v52, %v23456_v17  ;;  %v3064_v23 = vadd.f32 %v19061_v12, %v2975_v0  ;;  %v3135_v35 = vmax.f32 %v3063_v25, 0.0  ;;  %v23458_v52 = vld [vmem:[#allocation46_spill] sm:$0xff]  ;;  %v23459_v0 = vld [vmem:[#allocation48_spill] sm:$0xff] }
 0x32e   :  { %v1819_v53 = vpop.f32.mrf.mxu1  ;;  %v2768_v4 = vpop.f32.mrf.mxu0  ;;  %3912 = vmatpush1.bf16.msra.mxu0 %v15994_v63 }
 0x32f   :  { %23455 = vst [vmem:[#allocation29_spill] sm:$0xff] %v19345_v54  ;;  %v3066_v56 = vadd.f32 %v19053_v48, %v2977_v37  ;;  %v2978_v58 = vadd.f32 %v2768_v4, %v2203_v62  ;;  %3868 = vmatprep.mubr.bf16.mxu0 %v19345_v54  ;;  %v3136_v17 = vmax.f32 %v3064_v23, 0.0  ;;  %v23461_v53 = vld [vmem:[#allocation47_spill] sm:$0xff] }
 0x330   :  { %v19358_v34 = vpop.f32.mrf.mxu1  ;;  %v2772_v59 = vpop.f32.mrf.mxu0  ;;  %2896 = vmatmul.mubr.bf16.gmra.mxu1 %v18579_v57  ;;  %3869 = vmatmul.mubr.bf16.gmra.mxu0 %v19338_v8  ;;  %v15997_v23 = vld [vmem:[%s23247_s5 + $0x3c0] ss:$12 sps:$4 sm:$0xff]  }
 0x331   :  { %23457 = vst [vmem:[#allocation32_spill] sm:$0xff] %v19358_v34  ;;  %v3138_v45 = vmax.f32 %v3066_v56, 0.0  ;;  %v3067_v46 = vadd.f32 %v19061_v12, %v2978_v58  ;;  %v2980_v19 = vadd.f32 %v2772_v59, %v23458_v52  ;;  %13828 = vmatprep.mubr.msk.bf16.mxu1 %vm1526_vm1, %v23459_v0  ;;  %v23463_v56 = vld [vmem:[#allocation53_spill] sm:$0xff] }
 0x332   :  { %v1824_v41 = vpop.f32.mrf.mxu1  ;;  %v2774_v62 = vpop.f32.mrf.mxu0  ;;  %v2213_v58 = vadd.f32 %v23464_v33, %v23463_v56  ;;  %v23466_v52 = vld [vmem:[#allocation49_spill] sm:$0xff] }
 0x333   :  { %v19366_v37 = vpack.c.bf16 %v3138_v45, %v3135_v35  ;;  %v3139_v10 = vmax.f32 %v3067_v46, 0.0  ;;  %v2981_v57 = vadd.f32 %v2774_v62, %v23461_v53  ;;  %v3069_v59 = vadd.f32 %v19053_v48, %v2980_v19  ;;  %v15999_v35 = vld [vmem:[%s23247_s5 + $0x3c4] ss:$12 sps:$4 sm:$0xff]  }
 0x334   :  { %v19369_v4 = vpop.f32.mrf.mxu1  ;;  %v2776_v25 = vpop.f32.mrf.mxu0  ;;  %3913 = vmatprep.subr.bf16.mxu0 %v15999_v35 }
 0x335   :  { %23460 = vst [vmem:[#allocation35_spill] sm:$0xff] %v19366_v37  ;;  %23462 = vst [vmem:[#allocation36_spill] sm:$0xff] %v19369_v4  ;;  %v19373_v34 = vpack.c.bf16 %v3139_v10, %v3136_v17  ;;  %v2983_v63 = vadd.f32 %v2776_v25, %v23466_v52  ;;  %v3070_v0 = vadd.f32 %v19061_v12, %v2981_v57  ;;  %v23468_v17 = vld [vmem:[#allocation21_spill] sm:$0xff]  ;;  %v3141_v10 = vmax.f32 %v3069_v59, 0.0  ;;  %v23469_v57 = vld [vmem:[#allocation52_spill] sm:$0xff] }
 0x336   :  { %v1827_v45 = vpop.f32.mrf.mxu1  ;;  %v2778_v46 = vpop.f32.mrf.mxu0  ;;  %3914 = vmatpush1.bf16.msra.mxu0 %v15997_v23 }
 0x337   :  { %23465 = vst [vmem:[#allocation38_spill] sm:$0xff] %v19373_v34  ;;  %v3072_v33 = vadd.f32 %v19053_v48, %v2983_v63  ;;  %v2984_v41 = vadd.f32 %v2778_v46, %v2213_v58  ;;  %3878 = vmatprep.mubr.bf16.mxu0 %v19373_v34  ;;  %v3142_v63 = vmax.f32 %v3070_v0, 0.0 }
 0x338   :  { %v19386_v19 = vpop.f32.mrf.mxu1  ;;  %v2782_v62 = vpop.f32.mrf.mxu0  ;;  %2904 = vmatmul.mubr.bf16.gmra.mxu1 %v23468_v17  ;;  %3879 = vmatmul.mubr.bf16.gmra.mxu0 %v19366_v37 }
 0x339   :  { %23467 = vst [vmem:[#allocation34_spill] sm:$0xff] %v19386_v19  ;;  %v3144_v53 = vmax.f32 %v3072_v33, 0.0  ;;  %v3073_v25 = vadd.f32 %v19061_v12, %v2984_v41  ;;  %v2986_v56 = vadd.f32 %v2782_v62, %v19049_v31  ;;  %13829 = vmatprep.mubr.msk.bf16.mxu1 %vm1526_vm1, %v23469_v57  ;;  %v23472_v33 = vld [vmem:[#allocation55_spill] sm:$0xff] }
 0x33a   :  { %v1832_v58 = vpop.f32.mrf.mxu1  ;;  %v2784_v52 = vpop.f32.mrf.mxu0  ;;  %v2223_v41 = vadd.f32 %v23472_v33, %v19072_v9 }
 0x33b   :  { %v19394_v35 = vpack.c.bf16 %v3144_v53, %v3141_v10  ;;  %v3145_v45 = vmax.f32 %v3073_v25, 0.0  ;;  %v2987_v46 = vadd.f32 %v2784_v52, %v19057_v61  ;;  %v3075_v31 = vadd.f32 %v19053_v48, %v2986_v56  ;;  %v23475_v25 = vld [vmem:[#allocation22_spill] sm:$0xff] }
 0x33c   :  { %v19397_v17 = vpop.f32.mrf.mxu1  ;;  %v2786_v59 = vpop.f32.mrf.mxu0 }
 0x33d   :  { %23470 = vst [vmem:[#allocation37_spill] sm:$0xff] %v19394_v35  ;;  %23471 = vst [vmem:[#allocation40_spill] sm:$0xff] %v19397_v17  ;;  %v19401_v19 = vpack.c.bf16 %v3145_v45, %v3142_v63  ;;  %v2989_v23 = vadd.f32 %v2786_v59, %v19066_v24  ;;  %v3076_v0 = vadd.f32 %v19061_v12, %v2987_v46  ;;  %v3147_v9 = vmax.f32 %v3075_v31, 0.0  ;;  %v19420_v46 = vld [vmem:[%s23247_s5 + $0x470] ss:$12 sps:$4 sm:$0xff]  }
 0x33e   :  { %v1835_v62 = vpop.f32.mrf.mxu1  ;;  %v2788_v57 = vpop.f32.mrf.mxu0  ;;  %v23476_v24 = vmov 0   ;;  %15519 = vmatprep.subr.bf16.mxu0 %v19420_v46  ;;  %v15933_v31 = vld [vmem:[%s23247_s5 + $0x94] ss:$12 sps:$4 sm:$0xff]  }
 0x33f   :  { %23473 = vst [vmem:[#allocation45_spill] sm:$0xff] %v19401_v19  ;;  %v3078_v10 = vadd.f32 %v19053_v48, %v2989_v23  ;;  %v2990_v53 = vadd.f32 %v2788_v57, %v2223_v41  ;;  %3888 = vmatprep.mubr.bf16.mxu0 %v19401_v19  ;;  %v3148_v63 = vmax.f32 %v3076_v0, 0.0  ;;  %v15931_v62 = vld [vmem:[%s23247_s5 + $0x90] ss:$12 sps:$4 sm:$0xff]  }
 0x340   :  { %v19408_v61 = vpop.f32.mrf.mxu1  ;;  %2912 = vmatmul.mubr.bf16.gmra.mxu1 %v23475_v25  ;;  %3889 = vmatmul.mubr.bf16.gmra.mxu0 %v19394_v35  ;;  %v15936_v0 = vld [vmem:[%s23247_s5 + $0x7c] ss:$12 sps:$4 sm:$0xff]  }
 0x341   :  { %23474 = vst [vmem:[#allocation41_spill] sm:$0xff] %v19408_v61  ;;  %v3150_v58 = vmax.f32 %v3078_v10, 0.0  ;;  %v3079_v56 = vadd.f32 %v19061_v12, %v2990_v53  ;;  %4064 = vmatprep.mubr.bf16.mxu1 %v19134_v5  ;;  %3931 = vmatprep.mubr.bf16.mxu0 %v23476_v24  ;;  %v15928_v12 = vld [vmem:[%s23247_s5 + $0xa8] ss:$12 sps:$4 sm:$0xff]   ;;  %v15934_v53 = vld [vmem:[%s23247_s5 + $0x78] ss:$12 sps:$4 sm:$0xff]  }
 0x342   :  { %v1840_v52 = vpop.f32.mrf.mxu1 }
 0x343   :  { %v19415_v48 = vpack.c.bf16 %v3150_v58, %v3147_v9  ;;  %v3151_v45 = vmax.f32 %v3079_v56, 0.0  ;;  %v15939_v9 = vld [vmem:[%s23247_s5 + $0x64] ss:$12 sps:$4 sm:$0xff]   ;;  %v15937_v56 = vld [vmem:[%s23247_s5 + $0x60] ss:$12 sps:$4 sm:$0xff]  }
 0x344   :  { %v19422_v59 = vpop.f32.mrf.mxu1 }
 0x345   :  { %23477 = vst [vmem:[#allocation43_spill] sm:$0xff] %v19415_v48  ;;  %23478 = vst [vmem:[#allocation39_spill] sm:$0xff] %v19422_v59  ;;  %v19428_v33 = vpack.c.bf16 %v3151_v45, %v3148_v63  ;;  %v15942_v63 = vld [vmem:[%s23247_s5 + $0x4c] ss:$12 sps:$4 sm:$0xff]  }
 0x346   :  { %v1843_v41 = vpop.f32.mrf.mxu1 }
 0x347   :  { %23479 = vst [vmem:[#allocation42_spill] sm:$0xff] %v19428_v33 }
 0x348   :  { %v19433_v23 = vpop.f32.mrf.mxu1  ;;  %4065 = vmatmul.mubr.bf16.vlgmr.msra.gmra.mxu1 %v19127_v38 }
 0x349   :  { %4072 = vmatprep.mubr.bf16.mxu1 %v19177_v26  ;;  %4643 = vmatpush1.bf16.msra.mxu1 %v15928_v12  ;;  %v15940_v12 = vld [vmem:[%s23247_s5 + $0x48] ss:$12 sps:$4 sm:$0xff]  }
 0x34a   :  { %v2261_v57 = vpop.f32.mrf.mxu1  ;;  %4644 = vmatprep.subr.bf16.mxu1 %v15933_v31  ;;  %v15945_v31 = vld [vmem:[%s23247_s5 + $0x34] ss:$12 sps:$4 sm:$0xff]  }
 0x34b   :  { %v15943_v57 = vld [vmem:[%s23247_s5 + $0x30] ss:$12 sps:$4 sm:$0xff]  }
 0x34c   :  { %v19443_v10 = vpop.f32.mrf.mxu1 }
 0x34d   :  { %4645 = vmatpush1.bf16.msra.mxu1 %v15931_v62 }
 0x34e   :  { %v2264_v25 = vpop.f32.mrf.mxu1  ;;  %4646 = vmatprep.subr.bf16.mxu1 %v15936_v0 }
 0x350   :  { %v19451_v58 = vpop.f32.mrf.mxu1  ;;  %4073 = vmatmul.mubr.bf16.gmra.mxu1 %v19170_v6 }
 0x351   :  { %4080 = vmatprep.mubr.bf16.mxu1 %v19217_v14  ;;  %4647 = vmatpush1.bf16.msra.mxu1 %v15934_v53  ;;  %v15951_v53 = vld [vmem:[%s23247_s5 + $0x1c] ss:$12 sps:$4 sm:$0xff]  }
 0x352   :  { %v2269_v52 = vpop.f32.mrf.mxu1  ;;  %4648 = vmatprep.subr.bf16.mxu1 %v15939_v9  ;;  %v15949_v9 = vld [vmem:[%s23247_s5 + $0x18] ss:$12 sps:$4 sm:$0xff]  }
 0x353   :  { %v15954_v52 = vld [vmem:[%s23247_s5 + $0x4] ss:$12 sps:$4 sm:$0xff]  }
 0x354   :  { %v19461_v45 = vpop.f32.mrf.mxu1 }
 0x355   :  { %4649 = vmatpush1.bf16.msra.mxu1 %v15937_v56 }
 0x356   :  { %v2272_v41 = vpop.f32.mrf.mxu1  ;;  %4650 = vmatprep.subr.bf16.mxu1 %v15942_v63 }
 0x358   :  { %v19469_v62 = vpop.f32.mrf.mxu1  ;;  %4081 = vmatmul.mubr.bf16.gmra.mxu1 %v19210_v60 }
 0x359   :  { %4088 = vmatprep.mubr.bf16.mxu1 %v19245_v21  ;;  %4651 = vmatpush1.bf16.msra.mxu1 %v15940_v12  ;;  %v15952_v12 = vld [vmem:[%s23247_s5] ss:$12 sps:$4 sm:$0xff]  }
 0x35a   :  { %v2277_v0 = vpop.f32.mrf.mxu1  ;;  %4652 = vmatprep.subr.bf16.mxu1 %v15945_v31  ;;  %v15960_v31 = vld [vmem:[%s23247_s5 + $0x16c] ss:$12 sps:$4 sm:$0xff]  }
 0x35b   :  { %v15958_v0 = vld [vmem:[%s23247_s5 + $0x168] ss:$12 sps:$4 sm:$0xff]  }
 0x35c   :  { %v19479_v25 = vpop.f32.mrf.mxu1 }
 0x35d   :  { %4653 = vmatpush1.bf16.msra.mxu1 %v15943_v57 }
 0x35e   :  { %v2280_v56 = vpop.f32.mrf.mxu1  ;;  %4654 = vmatprep.subr.bf16.mxu1 %v15951_v53 }
 0x360   :  { %v19487_v63 = vpop.f32.mrf.mxu1  ;;  %4089 = vmatmul.mubr.bf16.gmra.mxu1 %v19238_v28 }
 0x361   :  { %4096 = vmatprep.mubr.bf16.mxu1 %v19267_v3  ;;  %4655 = vmatpush1.bf16.msra.mxu1 %v15949_v9  ;;  %v15963_v9 = vld [vmem:[%s23247_s5 + $0x154] ss:$12 sps:$4 sm:$0xff]  }
 0x362   :  { %v2285_v41 = vpop.f32.mrf.mxu1  ;;  %4656 = vmatprep.subr.bf16.mxu1 %v15954_v52  ;;  %v15961_v52 = vld [vmem:[%s23247_s5 + $0x150] ss:$12 sps:$4 sm:$0xff]  }
 0x363   :  { %v15966_v41 = vld [vmem:[%s23247_s5 + $0x13c] ss:$12 sps:$4 sm:$0xff]  }
 0x364   :  { %v19497_v57 = vpop.f32.mrf.mxu1 }
 0x365   :  { %4657 = vmatpush1.bf16.msra.mxu1 %v15952_v12 }
 0x366   :  { %v2288_v53 = vpop.f32.mrf.mxu1  ;;  %4658 = vmatprep.subr.bf16.mxu1 %v15960_v31 }
 0x367   :  { %v15964_v53 = vld [vmem:[%s23247_s5 + $0x138] ss:$12 sps:$4 sm:$0xff]  }
 0x368   :  { %v19505_v56 = vpop.f32.mrf.mxu1  ;;  %4097 = vmatmul.mubr.bf16.gmra.mxu1 %v19260_v47 }
 0x369   :  { %4104 = vmatprep.mubr.bf16.mxu1 %v19295_v20  ;;  %4659 = vmatpush2.bf16.msra.mxu1 %v15958_v0  ;;  %v15972_v0 = vld [vmem:[%s23247_s5 + $0x124] ss:$12 sps:$4 sm:$0xff]  }
 0x36a   :  { %v2293_v12 = vpop.f32.mrf.mxu1  ;;  %4660 = vmatprep.subr.bf16.mxu1 %v15963_v9  ;;  %v15970_v9 = vld [vmem:[%s23247_s5 + $0x120] ss:$12 sps:$4 sm:$0xff]  }
 0x36c   :  { %v19515_v31 = vpop.f32.mrf.mxu1 }
 0x36d   :  { %4661 = vmatpush2.bf16.msra.mxu1 %v15961_v52 }
 0x36e   :  { %v2296_v48 = vpop.f32.mrf.mxu1  ;;  %4662 = vmatprep.subr.bf16.mxu1 %v15966_v41  ;;  %v15973_v41 = vld [vmem:[%s23247_s5 + $0x108] ss:$12 sps:$4 sm:$0xff]  }
 0x36f   :  { %v15975_v48 = vld [vmem:[%s23247_s5 + $0x10c] ss:$12 sps:$4 sm:$0xff]  }
 0x370   :  { %v19523_v33 = vpop.f32.mrf.mxu1  ;;  %4105 = vmatmul.mubr.bf16.gmra.mxu1 %v19288_v40 }
 0x371   :  { %4112 = vmatprep.mubr.bf16.mxu1 %v19323_v39  ;;  %4663 = vmatpush2.bf16.msra.mxu1 %v15964_v53  ;;  %v15981_v53 = vld [vmem:[%s23247_s5 + $0xf4] ss:$12 sps:$4 sm:$0xff]  }
 0x372   :  { %v2301_v52 = vpop.f32.mrf.mxu1  ;;  %4664 = vmatprep.subr.bf16.mxu1 %v15972_v0  ;;  %v15979_v0 = vld [vmem:[%s23247_s5 + $0xf0] ss:$12 sps:$4 sm:$0xff]  }
 0x374   :  { %v19533_v12 = vpop.f32.mrf.mxu1 }
 0x375   :  { %4665 = vmatpush2.bf16.msra.mxu1 %v15970_v9 }
 0x376   :  { %v2304_v59 = vpop.f32.mrf.mxu1  ;;  %4666 = vmatprep.subr.bf16.mxu1 %v15975_v48  ;;  %v15982_v48 = vld [vmem:[%s23247_s5 + $0xd8] ss:$12 sps:$4 sm:$0xff]  }
 0x377   :  { %v15984_v59 = vld [vmem:[%s23247_s5 + $0xdc] ss:$12 sps:$4 sm:$0xff]  }
 0x378   :  { %v19541_v61 = vpop.f32.mrf.mxu1  ;;  %4113 = vmatmul.mubr.bf16.gmra.mxu1 %v19316_v44 }
 0x379   :  { %4120 = vmatprep.mubr.bf16.mxu1 %v19345_v54  ;;  %4667 = vmatpush2.bf16.msra.mxu1 %v15973_v41  ;;  %v15987_v41 = vld [vmem:[%s23247_s5 + $0xc4] ss:$12 sps:$4 sm:$0xff]  }
 0x37a   :  { %v2309_v9 = vpop.f32.mrf.mxu1  ;;  %4668 = vmatprep.subr.bf16.mxu1 %v15981_v53  ;;  %v15985_v53 = vld [vmem:[%s23247_s5 + $0xc0] ss:$12 sps:$4 sm:$0xff]  }
 0x37c   :  { %v19551_v52 = vpop.f32.mrf.mxu1 }
 0x37d   :  { %4669 = vmatpush2.bf16.msra.mxu1 %v15979_v0 }
 0x37e   :  { %v2312_v17 = vpop.f32.mrf.mxu1  ;;  %4670 = vmatprep.subr.bf16.mxu1 %v15984_v59 }
 0x37f   :  { %v16002_v17 = vld [vmem:[%s23247_s5 + $0x170] ss:$12 sps:$4 sm:$0xff]  }
 0x380   :  { %v19559_v4 = vpop.f32.mrf.mxu1  ;;  %4121 = vmatmul.mubr.bf16.gmra.mxu1 %v19338_v8 }
 0x381   :  { %4128 = vmatprep.mubr.bf16.mxu1 %v19373_v34  ;;  %4671 = vmatpush2.bf16.msra.mxu1 %v15982_v48 }
 0x382   :  { %v2317_v0 = vpop.f32.mrf.mxu1  ;;  %4672 = vmatprep.subr.bf16.mxu1 %v15987_v41 }
 0x384   :  { %v19569_v9 = vpop.f32.mrf.mxu1 }
 0x385   :  { %23480 = vst [vmem:[#allocation46_spill] sm:$0xff] %v19569_v9  ;;  %4673 = vmatpush2.bf16.msra.mxu1 %v15985_v53 }
 0x386   :  { %v2320_v59 = vpop.f32.mrf.mxu1  ;;  %15309 = vmatprep.subr.bf16.mxu1 %v16002_v17  ;;  %v16003_v17 = vld [vmem:[%s23247_s5 + $0xb0] ss:$12 sps:$4 sm:$0xff]  }
 0x388   :  { %v19571_v27 = vpop.f32.mrf.mxu1  ;;  %4129 = vmatmul.mubr.bf16.gmra.mxu1 %v19366_v37 }
 0x389   :  { %4136 = vmatprep.mubr.bf16.mxu1 %v19401_v19 }
 0x38a   :  { %v2325_v48 = vpop.f32.mrf.mxu1 }
 0x38b   :  { %v16004_v48 = vld [vmem:[%s23247_s5 + $0x158] ss:$12 sps:$4 sm:$0xff]  }
 0x38c   :  { %v19575_v51 = vpop.f32.mrf.mxu1 }
 0x38e   :  { %v2328_v0 = vpop.f32.mrf.mxu1 }
 0x390   :  { %v19577_v41 = vpop.f32.mrf.mxu1  ;;  %4137 = vmatmul.mubr.bf16.gmra.mxu1 %v19394_v35 }
 0x391   :  { %23481 = vst [vmem:[#allocation48_spill] sm:$0xff] %v19577_v41  ;;  %4674 = vmatprep.mubr.bf16.mxu1 %v19107_v32 }
 0x392   :  { %v2333_v9 = vpop.f32.mrf.mxu1 }
 0x393   :  { %v16005_v9 = vld [vmem:[%s23247_s5 + $0x98] ss:$12 sps:$4 sm:$0xff]  }
 0x394   :  { %v19581_v53 = vpop.f32.mrf.mxu1 }
 0x395   :  { %23482 = vst [vmem:[#allocation47_spill] sm:$0xff] %v19581_v53 }
 0x396   :  { %v2336_v59 = vpop.f32.mrf.mxu1 }
 0x397   :  { %v16006_v59 = vld [vmem:[%s23247_s5 + $0x140] ss:$12 sps:$4 sm:$0xff]  }
 0x398   :  { %v19589_v19 = vpop.f32.mrf.mxu1  ;;  %4675 = vmatmul.mubr.bf16.vlgmr.msra.gmra.mxu1 %v19092_v1 }
 0x399   :  { %23483 = vst [vmem:[#allocation53_spill] sm:$0xff] %v19589_v19  ;;  %4684 = vmatprep.mubr.bf16.mxu1 %v19134_v5  ;;  %15310 = vmatpush3.bf16.msra.mxu1 %v16003_v17  ;;  %v16008_v19 = vld [vmem:[%s23247_s5 + $0x80] ss:$12 sps:$4 sm:$0xff]   ;;  %v16009_v17 = vld [vmem:[%s23247_s5 + $0x128] ss:$12 sps:$4 sm:$0xff]  }
 0x39a   :  { %v2341_v0 = vpop.f32.mrf.mxu1  ;;  %15311 = vmatprep.subr.bf16.mxu1 %v16004_v48  ;;  %v16010_v48 = vld [vmem:[%s23247_s5 + $0x68] ss:$12 sps:$4 sm:$0xff]  }
 0x39c   :  { %v19599_v35 = vpop.f32.mrf.mxu1 }
 0x39d   :  { %23484 = vst [vmem:[#allocation44_spill] sm:$0xff] %v19599_v35  ;;  %15312 = vmatpush3.bf16.msra.mxu1 %v16005_v9 }
 0x39e   :  { %v2344_v53 = vpop.f32.mrf.mxu1  ;;  %15313 = vmatprep.subr.bf16.mxu1 %v16006_v59  ;;  %v23487_v59 = vld [vmem:[#allocation50_spill] sm:$0xff] }
 0x39f   :  { %v16011_v53 = vld [vmem:[%s23247_s5 + $0x110] ss:$12 sps:$4 sm:$0xff]   ;;  %v19620_v35 = vsub.s32 2, %v23487_v59  ;;  %v17296_v59 = vld [vmem:[#allocation6] sm:$0x7] }
 0x3a0   :  { %v19607_v41 = vpop.f32.mrf.mxu1  ;;  %4685 = vmatmul.mubr.bf16.gmra.mxu1 %v19127_v38 }
 0x3a1   :  { %23485 = vst [vmem:[#allocation49_spill] sm:$0xff] %v19607_v41  ;;  %4694 = vmatprep.mubr.bf16.mxu1 %v19177_v26  ;;  %15314 = vmatpush3.bf16.msra.mxu1 %v16008_v19  ;;  %23488 = vst [vmem:[#allocation52_spill] sm:$0xff] %v19620_v35  ;;  %v16012_v19 = vld [vmem:[%s23247_s5 + $0x50] ss:$12 sps:$4 sm:$0xff]  }
 0x3a2   :  { %v2349_v9 = vpop.f32.mrf.mxu1  ;;  %15315 = vmatprep.subr.bf16.mxu1 %v16009_v17  ;;  %v16014_v17 = vld [vmem:[%s23247_s5 + $0xf8] ss:$12 sps:$4 sm:$0xff]  }
 0x3a3   :  { %v2260_v9 = vadd.f32 %v19433_v23, %v19079_v15  ;;  %v16016_v15 = vld [vmem:[%s23247_s5 + $0xe0] ss:$12 sps:$4 sm:$0xff]  }
 0x3a4   :  { %v19617_v0 = vpop.f32.mrf.mxu1 }
 0x3a5   :  { %23486 = vst [vmem:[#allocation21_spill] sm:$0xff] %v19617_v0  ;;  %15316 = vmatpush3.bf16.msra.mxu1 %v16010_v48  ;;  %v19632_v48 = vrot.slane %v17296_v59, %v19620_v35 }
 0x3a6   :  { %v2352_v41 = vpop.f32.mrf.mxu1  ;;  %15317 = vmatprep.subr.bf16.mxu1 %v16011_v53 }
 0x3a7   :  { %v16015_v41 = vld [vmem:[%s23247_s5 + $0x38] ss:$12 sps:$4 sm:$0xff]  }
 0x3a8   :  { %v2825_v26 = vpop.f32.mrf.mxu1  ;;  %4695 = vmatmul.mubr.bf16.gmra.mxu1 %v19170_v6 }
 0x3a9   :  { %v2922_v0 = vadd.f32 %v2825_v26, %v2260_v9  ;;  %4704 = vmatprep.mubr.bf16.mxu1 %v19217_v14  ;;  %15318 = vmatpush3.bf16.msra.mxu1 %v16012_v19  ;;  %v2263_v26 = vadd.f32 %v19443_v10, %v19095_v36  ;;  %v16017_v19 = vld [vmem:[%s23247_s5 + $0x20] ss:$12 sps:$4 sm:$0xff]  }
 0x3aa   :  { %v2827_v53 = vpop.f32.mrf.mxu1  ;;  %15319 = vmatprep.subr.bf16.mxu1 %v16014_v17  ;;  %v16018_v17 = vld [vmem:[%s23247_s5 + $0xc8] ss:$12 sps:$4 sm:$0xff]  }
 0x3ab   :  { %v3011_v59 = vadd.f32 %v19632_v48, %v2922_v0  ;;  %v2268_v53 = vadd.f32 %v19451_v58, %v19114_v16  ;;  %v16024_v16 = vld [vmem:[%s23247_s5 + $0x52c] ss:$12 sps:$4 sm:$0xff]   ;;  %v2271_v58 = vadd.f32 %v19461_v45, %v19130_v13 }
 0x3ac   :  { %v2828_v23 = vpop.f32.mrf.mxu1 }
 0x3ad   :  { %v2925_v9 = vadd.f32 %v2828_v23, %v2263_v26  ;;  %15320 = vmatpush3.bf16.msra.mxu1 %v16015_v41  ;;  %v3083_v0 = vmax.f32 %v3011_v59, 0.0 }
 0x3ae   :  { %v2830_v35 = vpop.f32.mrf.mxu1  ;;  %15321 = vmatprep.subr.bf16.mxu1 %v16016_v15 }
 0x3af   :  { %v3014_v36 = vadd.f32 %v19632_v48, %v2925_v9  ;;  %v16020_v35 = vld [vmem:[%s23247_s5 + $0x8] ss:$12 sps:$4 sm:$0xff]  }
 0x3b0   :  { %v2833_v10 = vpop.f32.mrf.mxu1  ;;  %4705 = vmatmul.mubr.bf16.gmra.mxu1 %v19210_v60 }
 0x3b1   :  { %v3086_v41 = vmax.f32 %v3014_v36, 0.0  ;;  %v2928_v26 = vadd.f32 %v2833_v10, %v2268_v53  ;;  %4714 = vmatprep.mubr.bf16.mxu1 %v19245_v21  ;;  %15322 = vmatpush3.bf16.msra.mxu1 %v16017_v19  ;;  %v2276_v36 = vadd.f32 %v19469_v62, %v19153_v50  ;;  %v16001_v50 = vld [vmem:[%s23247_s5 + $0x458] ss:$12 sps:$4 sm:$0xff]  }
 0x3b2   :  { %v2835_v15 = vpop.f32.mrf.mxu1  ;;  %15323 = vmatprep.subr.bf16.mxu1 %v16018_v17 }
 0x3b3   :  { %v19663_v23 = vpack.c.bf16 %v3086_v41, %v3083_v0  ;;  %v3017_v9 = vadd.f32 %v19632_v48, %v2928_v26  ;;  %v2279_v0 = vadd.f32 %v19479_v25, %v19173_v49  ;;  %v2284_v49 = vadd.f32 %v19487_v63, %v19190_v22  ;;  %v16007_v25 = vld [vmem:[%s23247_s5 + $0x440] ss:$12 sps:$4 sm:$0xff]  }
 0x3b4   :  { %v2836_v59 = vpop.f32.mrf.mxu1  ;;  %v2287_v22 = vadd.f32 %v19497_v57, %v19213_v11  ;;  %v2292_v11 = vadd.f32 %v19505_v56, %v19224_v42  ;;  %v2295_v42 = vadd.f32 %v19515_v31, %v19241_v7  ;;  %v2300_v7 = vadd.f32 %v19523_v33, %v19252_v55 }
 0x3b5   :  { %v2931_v53 = vadd.f32 %v2836_v59, %v2271_v58  ;;  %15324 = vmatpush3.bf16.msra.mxu1 %v16020_v35  ;;  %v3089_v15 = vmax.f32 %v3017_v9, 0.0  ;;  %v2303_v55 = vadd.f32 %v19533_v12, %v19263_v18  ;;  %v2308_v18 = vadd.f32 %v19541_v61, %v19280_v30 }
 0x3b6   :  { %v2838_v19 = vpop.f32.mrf.mxu1  ;;  %5615 = vmatprep.subr.bf16.mxu1 %v16024_v16  ;;  %v2311_v30 = vadd.f32 %v19551_v52, %v19291_v29 }
 0x3b7   :  { %v3020_v17 = vadd.f32 %v19632_v48, %v2931_v53  ;;  %v16013_v19 = vld [vmem:[%s23247_s5 + $0x428] ss:$12 sps:$4 sm:$0xff]  }
 0x3b8   :  { %v2841_v10 = vpop.f32.mrf.mxu1  ;;  %4715 = vmatmul.mubr.bf16.gmra.mxu1 %v19238_v28 }
 0x3b9   :  { %v3092_v21 = vmax.f32 %v3020_v17, 0.0  ;;  %v2934_v13 = vadd.f32 %v2841_v10, %v2276_v36  ;;  %4724 = vmatprep.mubr.bf16.mxu1 %v19267_v3 }
 0x3ba   :  { %v2843_v45 = vpop.f32.mrf.mxu1 }
 0x3bb   :  { %v19673_v41 = vpack.c.bf16 %v3092_v21, %v3089_v15  ;;  %v3023_v26 = vadd.f32 %v19632_v48, %v2934_v13  ;;  %v16019_v13 = vld [vmem:[%s23247_s5 + $0x410] ss:$12 sps:$4 sm:$0xff]  }
 0x3bc   :  { %v2844_v62 = vpop.f32.mrf.mxu1 }
 0x3bd   :  { %v2937_v35 = vadd.f32 %v2844_v62, %v2279_v0  ;;  %3932 = vmatmul.mubr.bf16.vlgmr.msra.gmra.mxu0 %v19673_v41  ;;  %v3095_v59 = vmax.f32 %v3023_v26, 0.0 }
 0x3be   :  { %v2846_v16 = vpop.f32.mrf.mxu1  ;;  %15520 = vmatpush3.bf16.msra.mxu0 %v19420_v46  ;;  %3941 = vmatprep.mubr.bf16.mxu0 %v23476_v24 }
 0x3bf   :  { %v3026_v21 = vadd.f32 %v19632_v48, %v2937_v35  ;;  %15521 = vmatprep.subr.bf16.mxu0 %v16001_v50  ;;  %v16021_v35 = vld [vmem:[%s23247_s5 + $0x3f8] ss:$12 sps:$4 sm:$0xff]  }
 0x3c0   :  { %v2849_v58 = vpop.f32.mrf.mxu1  ;;  %4725 = vmatmul.mubr.bf16.gmra.mxu1 %v19260_v47 }
 0x3c1   :  { %v3098_v9 = vmax.f32 %v3026_v21, 0.0  ;;  %v2940_v53 = vadd.f32 %v2849_v58, %v2284_v49  ;;  %4734 = vmatprep.mubr.bf16.mxu1 %v19295_v20  ;;  %v16025_v58 = vld [vmem:[%s23247_s5 + $0x3e0] ss:$12 sps:$4 sm:$0xff]  }
 0x3c2   :  { %v2851_v46 = vpop.f32.mrf.mxu1  ;;  %15522 = vmatpush3.bf16.msra.mxu0 %v16001_v50 }
 0x3c3   :  { %v19692_v63 = vpack.c.bf16 %v3098_v9, %v3095_v59  ;;  %15523 = vmatprep.subr.bf16.mxu0 %v16007_v25  ;;  %v3029_v17 = vadd.f32 %v19632_v48, %v2940_v53 }
 0x3c4   :  { %v2852_v36 = vpop.f32.mrf.mxu1 }
 0x3c5   :  { %v2943_v10 = vadd.f32 %v2852_v36, %v2287_v22  ;;  %3942 = vmatmul.mubr.bf16.gmra.mxu0 %v19692_v63  ;;  %v3101_v0 = vmax.f32 %v3029_v17, 0.0 }
 0x3c6   :  { %v2854_v15 = vpop.f32.mrf.mxu1  ;;  %3951 = vmatprep.mubr.bf16.mxu0 %v23476_v24  ;;  %15524 = vmatpush3.bf16.msra.mxu0 %v16007_v25 }
 0x3c7   :  { %v3032_v57 = vadd.f32 %v19632_v48, %v2943_v10  ;;  %15525 = vmatprep.subr.bf16.mxu0 %v16013_v19 }
 0x3c8   :  { %v2857_v45 = vpop.f32.mrf.mxu1  ;;  %4735 = vmatmul.mubr.bf16.gmra.mxu1 %v19288_v40 }
 0x3c9   :  { %v3104_v50 = vmax.f32 %v3032_v57, 0.0  ;;  %v2946_v62 = vadd.f32 %v2857_v45, %v2292_v11  ;;  %4744 = vmatprep.mubr.bf16.mxu1 %v19323_v39  ;;  %v16044_v11 = vld [vmem:[%s23247_s5 + $0x22c] ss:$12 sps:$4 sm:$0xff]  }
 0x3ca   :  { %v2859_v26 = vpop.f32.mrf.mxu1  ;;  %15526 = vmatpush3.bf16.msra.mxu0 %v16013_v19  ;;  %v16032_v19 = vld [vmem:[%s23247_s5 + $0x3c8] ss:$12 sps:$4 sm:$0xff]  }
 0x3cb   :  { %v19710_v56 = vpack.c.bf16 %v3104_v50, %v3101_v0  ;;  %15527 = vmatprep.subr.bf16.mxu0 %v16019_v13  ;;  %v3035_v49 = vadd.f32 %v19632_v48, %v2946_v62 }
 0x3cc   :  { %v2860_v16 = vpop.f32.mrf.mxu1 }
 0x3cd   :  { %v2949_v21 = vadd.f32 %v2860_v16, %v2295_v42  ;;  %3952 = vmatmul.mubr.bf16.gmra.mxu0 %v19710_v56  ;;  %v3107_v9 = vmax.f32 %v3035_v49, 0.0  ;;  %v2316_v16 = vadd.f32 %v19559_v4, %v19308_v2  ;;  %v19753_v49 = vpop.f32.mrf.mxu0 }
 0x3ce   :  { %v2862_v25 = vpop.f32.mrf.mxu1  ;;  %3961 = vmatprep.mubr.bf16.mxu0 %v23476_v24  ;;  %15528 = vmatpush3.bf16.msra.mxu0 %v16019_v13 }
 0x3cf   :  { %v3038_v31 = vadd.f32 %v19632_v48, %v2949_v21  ;;  %15529 = vmatprep.subr.bf16.mxu0 %v16021_v35 }
 0x3d0   :  { %v2865_v59 = vpop.f32.mrf.mxu1  ;;  %4745 = vmatmul.mubr.bf16.gmra.mxu1 %v19316_v44 }
 0x3d1   :  { %v3110_v53 = vmax.f32 %v3038_v31, 0.0  ;;  %v2952_v46 = vadd.f32 %v2865_v59, %v2300_v7  ;;  %4754 = vmatprep.mubr.bf16.mxu1 %v19345_v54 }
 0x3d2   :  { %v2867_v22 = vpop.f32.mrf.mxu1  ;;  %15530 = vmatpush3.bf16.msra.mxu0 %v16021_v35 }
 0x3d3   :  { %v19728_v33 = vpack.c.bf16 %v3110_v53, %v3107_v9  ;;  %15531 = vmatprep.subr.bf16.mxu0 %v16025_v58  ;;  %v3041_v17 = vadd.f32 %v19632_v48, %v2952_v46  ;;  %v19760_v9 = vpop.f32.mrf.mxu0  ;;  %v16022_v22 = vld [vmem:[%s23247_s5 + $0x528] ss:$12 sps:$4 sm:$0xff]  }
 0x3d4   :  { %v2868_v36 = vpop.f32.mrf.mxu1 }
 0x3d5   :  { %v2955_v10 = vadd.f32 %v2868_v36, %v2303_v55  ;;  %3962 = vmatmul.mubr.bf16.gmra.mxu0 %v19728_v33  ;;  %v3113_v13 = vmax.f32 %v3041_v17, 0.0  ;;  %v19775_v36 = vpop.f32.mrf.mxu0 }
 0x3d6   :  { %v2870_v15 = vpop.f32.mrf.mxu1  ;;  %3971 = vmatprep.mubr.bf16.mxu0 %v23476_v24  ;;  %15532 = vmatpush3.bf16.msra.mxu0 %v16025_v58  ;;  %v23489_v58 = vld [vmem:[#allocation46_spill] sm:$0xff] }
 0x3d7   :  { %v3044_v12 = vadd.f32 %v19632_v48, %v2955_v10  ;;  %15533 = vmatprep.subr.bf16.mxu0 %v16032_v19  ;;  %v2319_v59 = vadd.f32 %v23489_v58, %v19319_v43  ;;  %v23490_v43 = vld [vmem:[#allocation30_spill] sm:$0xff] }
 0x3d8   :  { %v2873_v57 = vpop.f32.mrf.mxu1  ;;  %4755 = vmatmul.mubr.bf16.gmra.mxu1 %v19338_v8  ;;  %v23494_v58 = vld [vmem:[#allocation58_spill] sm:$0xff] }
 0x3d9   :  { %v3116_v45 = vmax.f32 %v3044_v12, 0.0  ;;  %v2958_v0 = vadd.f32 %v2873_v57, %v2308_v18  ;;  %4764 = vmatprep.mubr.bf16.mxu1 %v19373_v34 }
 0x3da   :  { %v2875_v50 = vpop.f32.mrf.mxu1  ;;  %15534 = vmatpush3.bf16.msra.mxu0 %v16032_v19  ;;  %v2324_v19 = vadd.f32 %v19571_v27, %v23490_v43  ;;  %v16031_v27 = vld [vmem:[%s23247_s5 + $0x4fc] ss:$12 sps:$4 sm:$0xff]  }
 0x3db   :  { %v19746_v61 = vpack.c.bf16 %v3116_v45, %v3113_v13  ;;  %4775 = vmatprep.subr.bf16.mxu0 %v16044_v11  ;;  %v3047_v26 = vadd.f32 %v19632_v48, %v2958_v0  ;;  %v16026_v11 = vld [vmem:[%s23247_s5 + $0x510] ss:$12 sps:$4 sm:$0xff]  }
 0x3dc   :  { %v2876_v62 = vpop.f32.mrf.mxu1  ;;  %v23491_v13 = vld [vmem:[#allocation33_spill] sm:$0xff] }
 0x3dd   :  { %v2961_v42 = vadd.f32 %v2876_v62, %v2311_v30  ;;  %3972 = vmatmul.mubr.bf16.gmra.mxu0 %v19746_v61  ;;  %v3119_v52 = vmax.f32 %v3047_v26, 0.0  ;;  %v2327_v45 = vadd.f32 %v19575_v51, %v23491_v13  ;;  %v16029_v62 = vld [vmem:[%s23247_s5 + $0x4f8] ss:$12 sps:$4 sm:$0xff]  }
 0x3de   :  { %v2878_v35 = vpop.f32.mrf.mxu1  ;;  %3981 = vmatprep.mubr.bf16.mxu0 %v23476_v24  ;;  %v16035_v51 = vld [vmem:[%s23247_s5 + $0x4e4] ss:$12 sps:$4 sm:$0xff]  }
 0x3df   :  { %v3050_v21 = vadd.f32 %v19632_v48, %v2961_v42  ;;  %v23492_v42 = vld [vmem:[#allocation32_spill] sm:$0xff] }
 0x3e0   :  { %v2881_v29 = vpop.f32.mrf.mxu1  ;;  %4765 = vmatmul.mubr.bf16.gmra.mxu1 %v19366_v37  ;;  %v23493_v35 = vld [vmem:[#allocation48_spill] sm:$0xff] }
 0x3e1   :  { %v3122_v25 = vmax.f32 %v3050_v21, 0.0  ;;  %v2964_v7 = vadd.f32 %v2881_v29, %v2316_v16  ;;  %4940 = vmatprep.mubr.bf16.mxu1 %v19107_v32  ;;  %v16028_v32 = vld [vmem:[%s23247_s5 + $0x514] ss:$12 sps:$4 sm:$0xff]   ;;  %v2332_v16 = vadd.f32 %v23493_v35, %v23492_v42  ;;  %v23499_v42 = vld [vmem:[#allocation40_spill] sm:$0xff] }
 0x3e2   :  { %v2883_v31 = vpop.f32.mrf.mxu1  ;;  %v23500_v35 = vld [vmem:[#allocation44_spill] sm:$0xff] }
 0x3e3   :  { %v19762_v53 = vpack.c.bf16 %v3122_v25, %v3119_v52  ;;  %v3053_v4 = vadd.f32 %v19632_v48, %v2964_v7 }
 0x3e4   :  { %v2884_v2 = vpop.f32.mrf.mxu1 }
 0x3e5   :  { %v2967_v46 = vadd.f32 %v2884_v2, %v2319_v59  ;;  %3982 = vmatmul.mubr.bf16.gmra.mxu0 %v19762_v53  ;;  %v3125_v15 = vmax.f32 %v3053_v4, 0.0  ;;  %v16033_v59 = vld [vmem:[%s23247_s5 + $0x4e0] ss:$12 sps:$4 sm:$0xff]  }
 0x3e6   :  { %v2886_v55 = vpop.f32.mrf.mxu1  ;;  %3991 = vmatprep.mubr.bf16.mxu0 %v23476_v24  ;;  %v16038_v4 = vld [vmem:[%s23247_s5 + $0x4cc] ss:$12 sps:$4 sm:$0xff]  }
 0x3e7   :  { %v3056_v17 = vadd.f32 %v19632_v48, %v2967_v46  ;;  %v23495_v46 = vld [vmem:[#allocation36_spill] sm:$0xff] }
 0x3e8   :  { %v2889_v10 = vpop.f32.mrf.mxu1  ;;  %4941 = vmatmul.mubr.bf16.vlgmr.msra.gmra.mxu1 %v19092_v1  ;;  %v19788_v1 = vpop.f32.mrf.mxu0 }
 0x3e9   :  { %v3128_v18 = vmax.f32 %v3056_v17, 0.0  ;;  %v2970_v12 = vadd.f32 %v2889_v10, %v2324_v19  ;;  %4948 = vmatprep.mubr.bf16.mxu1 %v19134_v5  ;;  %5616 = vmatpush1.bf16.msra.mxu1 %v16022_v22  ;;  %v23496_v22 = vld [vmem:[#allocation47_spill] sm:$0xff] }
 0x3ea   :  { %v2891_v57 = vpop.f32.mrf.mxu1  ;;  %5617 = vmatprep.subr.bf16.mxu1 %v16028_v32  ;;  %v19803_v21 = vpop.f32.mrf.mxu0  ;;  %v2335_v55 = vadd.f32 %v23496_v22, %v23495_v46  ;;  %v16036_v10 = vld [vmem:[%s23247_s5 + $0x4c8] ss:$12 sps:$4 sm:$0xff]  }
 0x3eb   :  { %v19790_v0 = vpack.c.bf16 %v3128_v18, %v3125_v15  ;;  %v3059_v5 = vadd.f32 %v19632_v48, %v2970_v12  ;;  %v16041_v18 = vld [vmem:[%s23247_s5 + $0x4b4] ss:$12 sps:$4 sm:$0xff]  }
 0x3ec   :  { %v2892_v50 = vpop.f32.mrf.mxu1  ;;  %v23497_v12 = vld [vmem:[#allocation34_spill] sm:$0xff]  ;;  %v23501_v46 = vld [vmem:[#allocation41_spill] sm:$0xff] }
 0x3ed   :  { %v2973_v30 = vadd.f32 %v2892_v50, %v2327_v45  ;;  %3992 = vmatmul.mubr.bf16.gmra.mxu0 %v19790_v0  ;;  %5618 = vmatpush1.bf16.msra.mxu1 %v16026_v11  ;;  %v3131_v25 = vmax.f32 %v3059_v5, 0.0  ;;  %v23498_v11 = vld [vmem:[#allocation53_spill] sm:$0xff] }
 0x3ee   :  { %v2894_v26 = vpop.f32.mrf.mxu1  ;;  %4001 = vmatprep.mubr.bf16.mxu0 %v23476_v24  ;;  %5619 = vmatprep.subr.bf16.mxu1 %v16031_v27  ;;  %v2340_v57 = vadd.f32 %v23498_v11, %v23497_v12  ;;  %v23502_v22 = vld [vmem:[#allocation49_spill] sm:$0xff]  ;;  %v23503_v12 = vld [vmem:[#allocation23_spill] sm:$0xff] }
 0x3ef   :  { %v3062_v29 = vadd.f32 %v19632_v48, %v2973_v30  ;;  %v16051_v11 = vld [vmem:[%s23247_s5 + $0x480] ss:$12 sps:$4 sm:$0xff]  }
 0x3f0   :  { %v2897_v52 = vpop.f32.mrf.mxu1  ;;  %4949 = vmatmul.mubr.bf16.gmra.mxu1 %v19127_v38  ;;  %v19816_v38 = vpop.f32.mrf.mxu0 }
 0x3f1   :  { %v3134_v7 = vmax.f32 %v3062_v29, 0.0  ;;  %v2976_v31 = vadd.f32 %v2897_v52, %v2332_v16  ;;  %4956 = vmatprep.mubr.bf16.mxu1 %v23494_v58  ;;  %5620 = vmatpush1.bf16.msra.mxu1 %v16029_v62  ;;  %v16039_v62 = vld [vmem:[%s23247_s5 + $0x4b0] ss:$12 sps:$4 sm:$0xff]   ;;  %v2343_v16 = vadd.f32 %v23500_v35, %v23499_v42  ;;  %v16057_v35 = vld [vmem:[%s23247_s5 + $0x5e8] ss:$12 sps:$4 sm:$0xff]  }
 0x3f2   :  { %v2899_v2 = vpop.f32.mrf.mxu1  ;;  %5621 = vmatprep.subr.bf16.mxu1 %v16035_v51  ;;  %v19831_v27 = vpop.f32.mrf.mxu0  ;;  %v16047_v51 = vld [vmem:[%s23247_s5 + $0x49c] ss:$12 sps:$4 sm:$0xff]  }
 0x3f3   :  { %v19818_v32 = vpack.c.bf16 %v3134_v7, %v3131_v25  ;;  %v3065_v19 = vadd.f32 %v19632_v48, %v2976_v31 }
 0x3f4   :  { %v2900_v43 = vpop.f32.mrf.mxu1  ;;  %v19844_v29 = vpop.f32.mrf.mxu0 }
 0x3f5   :  { %v2979_v17 = vadd.f32 %v2900_v43, %v2335_v55  ;;  %4002 = vmatmul.mubr.bf16.gmra.mxu0 %v19818_v32  ;;  %5622 = vmatpush1.bf16.msra.mxu1 %v16033_v59  ;;  %v3137_v50 = vmax.f32 %v3065_v19, 0.0  ;;  %v16045_v59 = vld [vmem:[%s23247_s5 + $0x498] ss:$12 sps:$4 sm:$0xff]   ;;  %v2348_v55 = vadd.f32 %v23502_v22, %v23501_v46  ;;  %v16063_v46 = vld [vmem:[%s23247_s5 + $0x5d0] ss:$12 sps:$4 sm:$0xff]  }
 0x3f6   :  { %v2902_v15 = vpop.f32.mrf.mxu1  ;;  %4011 = vmatprep.mubr.bf16.mxu0 %v23476_v24  ;;  %5623 = vmatprep.subr.bf16.mxu1 %v16038_v4  ;;  %v16053_v4 = vld [vmem:[%s23247_s5 + $0x484] ss:$12 sps:$4 sm:$0xff]   ;;  %v19859_v43 = vpop.f32.mrf.mxu0 }
 0x3f7   :  { %v3068_v13 = vadd.f32 %v19632_v48, %v2979_v17 }
 0x3f8   :  { %v2905_v45 = vpop.f32.mrf.mxu1  ;;  %4957 = vmatmul.mubr.bf16.gmra.mxu1 %v19170_v6 }
 0x3f9   :  { %v3140_v5 = vmax.f32 %v3068_v13, 0.0  ;;  %v2982_v30 = vadd.f32 %v2905_v45, %v2340_v57  ;;  %4964 = vmatprep.mubr.bf16.mxu1 %v19217_v14  ;;  %5624 = vmatpush1.bf16.msra.mxu1 %v16036_v10  ;;  %v16059_v13 = vld [vmem:[%s23247_s5 + $0x5ec] ss:$12 sps:$4 sm:$0xff]   ;;  %v23504_v45 = vld [vmem:[#allocation39_spill] sm:$0xff] }
 0x3fa   :  { %v2907_v26 = vpop.f32.mrf.mxu1  ;;  %5625 = vmatprep.subr.bf16.mxu1 %v16041_v18 }
 0x3fb   :  { %v19846_v52 = vpack.c.bf16 %v3140_v5, %v3137_v50  ;;  %v3071_v7 = vadd.f32 %v19632_v48, %v2982_v30  ;;  %v23505_v50 = vld [vmem:[#allocation21_spill] sm:$0xff]  ;;  %v19872_v30 = vpop.f32.mrf.mxu0 }
 0x3fc   :  { %v2908_v25 = vpop.f32.mrf.mxu1  ;;  %v2351_v5 = vadd.f32 %v23505_v50, %v23504_v45  ;;  %v16074_v45 = vld [vmem:[%s23247_s5 + $0x5a4] ss:$12 sps:$4 sm:$0xff]  }
 0x3fd   :  { %v2985_v31 = vadd.f32 %v2908_v25, %v2343_v16  ;;  %4012 = vmatmul.mubr.bf16.gmra.mxu0 %v19846_v52  ;;  %5626 = vmatpush1.bf16.msra.mxu1 %v16039_v62  ;;  %v3143_v10 = vmax.f32 %v3071_v7, 0.0  ;;  %v16065_v25 = vld [vmem:[%s23247_s5 + $0x5d4] ss:$12 sps:$4 sm:$0xff]   ;;  %v19885_v7 = vpop.f32.mrf.mxu0 }
 0x3fe   :  { %v2910_v2 = vpop.f32.mrf.mxu1  ;;  %4021 = vmatprep.mubr.bf16.mxu0 %v23476_v24  ;;  %5627 = vmatprep.subr.bf16.mxu1 %v16047_v51 }
 0x3ff   :  { %v3074_v19 = vadd.f32 %v19632_v48, %v2985_v31 }
 0x400   :  { %v2913_v17 = vpop.f32.mrf.mxu1  ;;  %4965 = vmatmul.mubr.bf16.gmra.mxu1 %v19210_v60 }
 0x401   :  { %v3146_v15 = vmax.f32 %v3074_v19, 0.0  ;;  %v2988_v18 = vadd.f32 %v2913_v17, %v2348_v55  ;;  %4972 = vmatprep.mubr.bf16.mxu1 %v23503_v12  ;;  %5628 = vmatpush1.bf16.msra.mxu1 %v16045_v59  ;;  %v16042_v55 = vld [vmem:[%s23247_s5 + $0x228] ss:$12 sps:$4 sm:$0xff]   ;;  %v19896_v19 = vpop.f32.mrf.mxu0 }
 0x402   :  { %v2915_v57 = vpop.f32.mrf.mxu1  ;;  %5629 = vmatprep.subr.bf16.mxu1 %v16053_v4 }
 0x403   :  { %v19874_v62 = vpack.c.bf16 %v3146_v15, %v3143_v10  ;;  %v3077_v51 = vadd.f32 %v19632_v48, %v2988_v18  ;;  %v16050_v10 = vld [vmem:[%s23247_s5 + $0x214] ss:$12 sps:$4 sm:$0xff]   ;;  %v16068_v15 = vld [vmem:[%s23247_s5 + $0x5bc] ss:$12 sps:$4 sm:$0xff]   ;;  %v19919_v50 = vpop.f32.mrf.mxu0 }
 0x404   :  { %v2916_v26 = vpop.f32.mrf.mxu1 }
 0x405   :  { %v2991_v42 = vadd.f32 %v2916_v26, %v2351_v5  ;;  %4022 = vmatmul.mubr.bf16.gmra.mxu0 %v19874_v62  ;;  %5630 = vmatpush1.bf16.msra.mxu1 %v16051_v11  ;;  %v3149_v2 = vmax.f32 %v3077_v51, 0.0  ;;  %v16066_v11 = vld [vmem:[%s23247_s5 + $0x5b8] ss:$12 sps:$4 sm:$0xff]   ;;  %v16056_v26 = vld [vmem:[%s23247_s5 + $0x1fc] ss:$12 sps:$4 sm:$0xff]  }
 0x406   :  { %v2918_v16 = vpop.f32.mrf.mxu1  ;;  %15535 = vmatprep.mubr.bf16.mxu0 %v19673_v41  ;;  %5631 = vmatprep.subr.bf16.mxu1 %v16059_v13  ;;  %v16048_v13 = vld [vmem:[%s23247_s5 + $0x210] ss:$12 sps:$4 sm:$0xff]  }
 0x407   :  { %v3080_v31 = vadd.f32 %v19632_v48, %v2991_v42  ;;  %v16072_v42 = vld [vmem:[%s23247_s5 + $0x5a0] ss:$12 sps:$4 sm:$0xff]   ;;  %v16054_v16 = vld [vmem:[%s23247_s5 + $0x1f8] ss:$12 sps:$4 sm:$0xff]  }
 0x408   :  { %v15231_v59 = vpop.f32.mrf.mxu1  ;;  %4973 = vmatmul.mubr.bf16.gmra.mxu1 %v19238_v28 }
 0x409   :  { %v3152_v4 = vmax.f32 %v3080_v31, 0.0  ;;  %4980 = vmatprep.mubr.bf16.mxu1 %v19267_v3  ;;  %5632 = vmatpush2.bf16.msra.mxu1 %v16057_v35 }
 0x40a   :  { %v15232_v22 = vpop.f32.mrf.mxu1  ;;  %5633 = vmatprep.subr.bf16.mxu1 %v16065_v25  ;;  %v19934_v25 = vpop.f32.mrf.mxu0 }
 0x40b   :  { %v19898_v48 = vpack.c.bf16 %v3152_v4, %v3149_v2  ;;  %v19900_v17 = vadd.f32 %v15232_v22, %v15231_v59  ;;  %v16062_v59 = vld [vmem:[%s23247_s5 + $0x1e4] ss:$12 sps:$4 sm:$0xff]   ;;  %v16080_v2 = vld [vmem:[%s23247_s5 + $0x58c] ss:$12 sps:$4 sm:$0xff]  }
 0x40c   :  { %v15234_v18 = vpop.f32.mrf.mxu1 }
 0x40d   :  { %23506 = vst [vmem:[#allocation55_spill] sm:$0xff] %v19898_v48  ;;  %23507 = vst [vmem:[#allocation22_spill] sm:$0xff] %v19900_v17  ;;  %15536 = vmatmul.mubr.bf16.vlgmr.msra.gmra.mxu0 %v19692_v63  ;;  %5634 = vmatpush2.bf16.msra.mxu1 %v16063_v46  ;;  %v16078_v46 = vld [vmem:[%s23247_s5 + $0x588] ss:$12 sps:$4 sm:$0xff]  }
 0x40e   :  { %v15235_v57 = vpop.f32.mrf.mxu1  ;;  %15539 = vmatprep.mubr.bf16.mxu0 %v19710_v56  ;;  %4776 = vmatpush1.bf16.msra.mxu0 %v16042_v55  ;;  %v16060_v55 = vld [vmem:[%s23247_s5 + $0x1e0] ss:$12 sps:$4 sm:$0xff]  }
 0x40f   :  { %v19921_v5 = vadd.f32 %v15235_v57, %v15234_v18  ;;  %4777 = vmatprep.subr.bf16.mxu0 %v16050_v10  ;;  %5635 = vmatprep.subr.bf16.mxu1 %v16068_v15  ;;  %v16086_v10 = vld [vmem:[%s23247_s5 + $0x574] ss:$12 sps:$4 sm:$0xff]   ;;  %v19955_v15 = vpop.f32.mrf.mxu0 }
 0x410   :  { %v15237_v51 = vpop.f32.mrf.mxu1  ;;  %4981 = vmatmul.mubr.bf16.gmra.mxu1 %v19260_v47 }
 0x411   :  { %23508 = vst [vmem:[#allocation46_spill] sm:$0xff] %v19921_v5  ;;  %4988 = vmatprep.mubr.bf16.mxu1 %v19295_v20  ;;  %5636 = vmatpush2.bf16.msra.mxu1 %v16066_v11  ;;  %v16071_v11 = vld [vmem:[%s23247_s5 + $0x1cc] ss:$12 sps:$4 sm:$0xff]  }
 0x412   :  { %v15238_v35 = vpop.f32.mrf.mxu1  ;;  %4778 = vmatpush1.bf16.msra.mxu0 %v16048_v13  ;;  %5637 = vmatprep.subr.bf16.mxu1 %v16074_v45  ;;  %v16084_v13 = vld [vmem:[%s23247_s5 + $0x570] ss:$12 sps:$4 sm:$0xff]  }
 0x413   :  { %v19936_v31 = vadd.f32 %v15238_v35, %v15237_v51  ;;  %4779 = vmatprep.subr.bf16.mxu0 %v16056_v26  ;;  %v16069_v26 = vld [vmem:[%s23247_s5 + $0x1c8] ss:$12 sps:$4 sm:$0xff]   ;;  %v19970_v51 = vpop.f32.mrf.mxu0 }
 0x414   :  { %v15240_v4 = vpop.f32.mrf.mxu1  ;;  %v16077_v35 = vld [vmem:[%s23247_s5 + $0x1b4] ss:$12 sps:$4 sm:$0xff]  }
 0x415   :  { %23509 = vst [vmem:[#allocation30_spill] sm:$0xff] %v19936_v31  ;;  %15540 = vmatmul.mubr.bf16.gmra.mxu0 %v19728_v33  ;;  %5638 = vmatpush2.bf16.msra.mxu1 %v16072_v42 }
 0x416   :  { %v15241_v22 = vpop.f32.mrf.mxu1  ;;  %15543 = vmatprep.mubr.bf16.mxu0 %v19746_v61  ;;  %4780 = vmatpush1.bf16.msra.mxu0 %v16054_v16  ;;  %v16092_v16 = vld [vmem:[%s23247_s5 + $0x55c] ss:$12 sps:$4 sm:$0xff]  }
 0x417   :  { %v19957_v18 = vadd.f32 %v15241_v22, %v15240_v4  ;;  %4781 = vmatprep.subr.bf16.mxu0 %v16062_v59  ;;  %5639 = vmatprep.subr.bf16.mxu1 %v16080_v2  ;;  %v16090_v2 = vld [vmem:[%s23247_s5 + $0x558] ss:$12 sps:$4 sm:$0xff]  }
 0x418   :  { %v15243_v57 = vpop.f32.mrf.mxu1  ;;  %4989 = vmatmul.mubr.bf16.gmra.mxu1 %v19288_v40  ;;  %v16095_v22 = vld [vmem:[%s23247_s5 + $0x544] ss:$12 sps:$4 sm:$0xff]  }
 0x419   :  { %23510 = vst [vmem:[#allocation33_spill] sm:$0xff] %v19957_v18  ;;  %4996 = vmatprep.mubr.bf16.mxu1 %v19323_v39  ;;  %5640 = vmatpush2.bf16.msra.mxu1 %v16078_v46  ;;  %v16075_v46 = vld [vmem:[%s23247_s5 + $0x1b0] ss:$12 sps:$4 sm:$0xff]  }
 0x41a   :  { %v15244_v45 = vpop.f32.mrf.mxu1  ;;  %4782 = vmatpush1.bf16.msra.mxu0 %v16060_v55  ;;  %5641 = vmatprep.subr.bf16.mxu1 %v16086_v10  ;;  %v19991_v55 = vpop.f32.mrf.mxu0 }
 0x41b   :  { %v19972_v42 = vadd.f32 %v15244_v45, %v15243_v57  ;;  %4783 = vmatprep.subr.bf16.mxu0 %v16071_v11  ;;  %v16083_v11 = vld [vmem:[%s23247_s5 + $0x19c] ss:$12 sps:$4 sm:$0xff]  }
 0x41c   :  { %v15246_v59 = vpop.f32.mrf.mxu1 }
 0x41d   :  { %23511 = vst [vmem:[#allocation32_spill] sm:$0xff] %v19972_v42  ;;  %15544 = vmatmul.mubr.bf16.gmra.mxu0 %v19762_v53  ;;  %5642 = vmatpush2.bf16.msra.mxu1 %v16084_v13  ;;  %v16093_v13 = vld [vmem:[%s23247_s5 + $0x540] ss:$12 sps:$4 sm:$0xff]  }
 0x41e   :  { %v15247_v4 = vpop.f32.mrf.mxu1  ;;  %15547 = vmatprep.mubr.bf16.mxu0 %v19790_v0  ;;  %4784 = vmatpush1.bf16.msra.mxu0 %v16069_v26  ;;  %v16081_v26 = vld [vmem:[%s23247_s5 + $0x198] ss:$12 sps:$4 sm:$0xff]  }
 0x41f   :  { %v19993_v10 = vadd.f32 %v15247_v4, %v15246_v59  ;;  %4785 = vmatprep.subr.bf16.mxu0 %v16077_v35  ;;  %5643 = vmatprep.subr.bf16.mxu1 %v16092_v16  ;;  %v20006_v35 = vpop.f32.mrf.mxu0  ;;  %v16089_v59 = vld [vmem:[%s23247_s5 + $0x184] ss:$12 sps:$4 sm:$0xff]  }
 0x420   :  { %v15249_v57 = vpop.f32.mrf.mxu1  ;;  %4997 = vmatmul.mubr.bf16.gmra.mxu1 %v19316_v44 }
 0x421   :  { %23512 = vst [vmem:[#allocation48_spill] sm:$0xff] %v19993_v10  ;;  %5004 = vmatprep.mubr.bf16.mxu1 %v19345_v54  ;;  %5644 = vmatpush2.bf16.msra.mxu1 %v16090_v2  ;;  %v16102_v2 = vld [vmem:[%s23247_s5 + $0x6b0] ss:$12 sps:$4 sm:$0xff]  }
 0x422   :  { %v15250_v45 = vpop.f32.mrf.mxu1  ;;  %4786 = vmatpush1.bf16.msra.mxu0 %v16075_v46  ;;  %5645 = vmatprep.subr.bf16.mxu1 %v16095_v22  ;;  %v16087_v22 = vld [vmem:[%s23247_s5 + $0x180] ss:$12 sps:$4 sm:$0xff]  }
 0x423   :  { %v20008_v16 = vadd.f32 %v15250_v45, %v15249_v57  ;;  %4787 = vmatprep.subr.bf16.mxu0 %v16083_v11  ;;  %v20021_v11 = vpop.f32.mrf.mxu0  ;;  %v16096_v45 = vld [vmem:[%s23247_s5 + $0x230] ss:$12 sps:$4 sm:$0xff]  }
 0x424   :  { %v15252_v4 = vpop.f32.mrf.mxu1 }
 0x425   :  { %23513 = vst [vmem:[#allocation36_spill] sm:$0xff] %v20008_v16  ;;  %15548 = vmatmul.mubr.bf16.gmra.mxu0 %v19818_v32  ;;  %5646 = vmatpush2.bf16.msra.mxu1 %v16093_v13 }
 0x426   :  { %v15253_v46 = vpop.f32.mrf.mxu1  ;;  %15551 = vmatprep.mubr.bf16.mxu0 %v19846_v52  ;;  %4788 = vmatpush1.bf16.msra.mxu0 %v16081_v26  ;;  %v20030_v26 = vpop.f32.mrf.mxu0 }
 0x427   :  { %v20023_v57 = vadd.f32 %v15253_v46, %v15252_v4  ;;  %4789 = vmatprep.subr.bf16.mxu0 %v16089_v59  ;;  %15591 = vmatprep.subr.bf16.mxu1 %v16102_v2 }
 0x428   :  { %v15255_v10 = vpop.f32.mrf.mxu1  ;;  %5005 = vmatmul.mubr.bf16.gmra.mxu1 %v19338_v8  ;;  %v20036_v46 = vpop.f32.mrf.mxu0 }
 0x429   :  { %23514 = vst [vmem:[#allocation47_spill] sm:$0xff] %v20023_v57  ;;  %5012 = vmatprep.mubr.bf16.mxu1 %v19373_v34 }
 0x42a   :  { %v15256_v13 = vpop.f32.mrf.mxu1  ;;  %4790 = vmatpush1.bf16.msra.mxu0 %v16087_v22  ;;  %v20042_v5 = vpop.f32.mrf.mxu0 }
 0x42b   :  { %v20032_v42 = vadd.f32 %v15256_v13, %v15255_v10  ;;  %15555 = vmatprep.subr.bf16.mxu0 %v16096_v45  ;;  %v16097_v13 = vld [vmem:[%s23247_s5 + $0x218] ss:$12 sps:$4 sm:$0xff]  }
 0x42c   :  { %v15258_v4 = vpop.f32.mrf.mxu1 }
 0x42d   :  { %23515 = vst [vmem:[#allocation34_spill] sm:$0xff] %v20032_v42  ;;  %15552 = vmatmul.mubr.bf16.gmra.mxu0 %v19874_v62 }
 0x42e   :  { %v15259_v59 = vpop.f32.mrf.mxu1  ;;  %4807 = vmatprep.mubr.bf16.mxu0 %v23476_v24 }
 0x42f   :  { %v20038_v57 = vadd.f32 %v15259_v59, %v15258_v4  ;;  %v16103_v4 = vld [vmem:[%s23247_s5 + $0x698] ss:$12 sps:$4 sm:$0xff]   ;;  %v20054_v59 = vpop.f32.mrf.mxu0 }
 0x430   :  { %v15261_v16 = vpop.f32.mrf.mxu1  ;;  %5013 = vmatmul.mubr.bf16.gmra.mxu1 %v19366_v37  ;;  %23518 = vst [vmem:[#allocation44_spill] sm:$0xff] %v20054_v59 }
 0x431   :  { %23516 = vst [vmem:[#allocation53_spill] sm:$0xff] %v20038_v57  ;;  %5647 = vmatprep.mubr.bf16.mxu1 %v23494_v58  ;;  %v20063_v57 = vpop.f32.mrf.mxu0 }
 0x432   :  { %v15262_v22 = vpop.f32.mrf.mxu1  ;;  %23520 = vst [vmem:[#allocation49_spill] sm:$0xff] %v20063_v57 }
 0x433   :  { %v20044_v10 = vadd.f32 %v15262_v22, %v15261_v16  ;;  %v16098_v16 = vld [vmem:[%s23247_s5 + $0x200] ss:$12 sps:$4 sm:$0xff]  }
 0x434   :  { %v15264_v42 = vpop.f32.mrf.mxu1 }
 0x435   :  { %23517 = vst [vmem:[#allocation40_spill] sm:$0xff] %v20044_v10  ;;  %4808 = vmatmul.mubr.bf16.vlgmr.msra.gmra.mxu0 %v19663_v23 }
 0x436   :  { %v15265_v18 = vpop.f32.mrf.mxu1  ;;  %15556 = vmatpush3.bf16.msra.mxu0 %v16096_v45  ;;  %4817 = vmatprep.mubr.bf16.mxu0 %v23476_v24 }
 0x437   :  { %v20056_v58 = vadd.f32 %v15265_v18, %v15264_v42  ;;  %15557 = vmatprep.subr.bf16.mxu0 %v16097_v13  ;;  %v16099_v18 = vld [vmem:[%s23247_s5 + $0x1e8] ss:$12 sps:$4 sm:$0xff]   ;;  %v16104_v42 = vld [vmem:[%s23247_s5 + $0x680] ss:$12 sps:$4 sm:$0xff]  }
 0x438   :  { %v15267_v22 = vpop.f32.mrf.mxu1  ;;  %5648 = vmatmul.mubr.bf16.vlgmr.msra.gmra.mxu1 %v19170_v6 }
 0x439   :  { %23519 = vst [vmem:[#allocation41_spill] sm:$0xff] %v20056_v58  ;;  %5657 = vmatprep.mubr.bf16.mxu1 %v19217_v14  ;;  %15592 = vmatpush3.bf16.msra.mxu1 %v16102_v2  ;;  %v16100_v14 = vld [vmem:[%s23247_s5 + $0x1d0] ss:$12 sps:$4 sm:$0xff]  }
 0x43a   :  { %v15268_v45 = vpop.f32.mrf.mxu1  ;;  %15558 = vmatpush3.bf16.msra.mxu0 %v16097_v13  ;;  %15593 = vmatprep.subr.bf16.mxu1 %v16103_v4  ;;  %v16106_v13 = vld [vmem:[%s23247_s5 + $0x668] ss:$12 sps:$4 sm:$0xff]  }
 0x43b   :  { %v20065_v10 = vadd.f32 %v15268_v45, %v15267_v22  ;;  %15559 = vmatprep.subr.bf16.mxu0 %v16098_v16  ;;  %v20078_v22 = vpop.f32.mrf.mxu0 }
 0x43c   :  { %v15270_v6 = vpop.f32.mrf.mxu1  ;;  %23522 = vst [vmem:[#allocation21_spill] sm:$0xff] %v20078_v22 }
 0x43d   :  { %23521 = vst [vmem:[#allocation39_spill] sm:$0xff] %v20065_v10  ;;  %4818 = vmatmul.mubr.bf16.gmra.mxu0 %v19673_v41  ;;  %15594 = vmatpush3.bf16.msra.mxu1 %v16103_v4 }
 0x43e   :  { %v15271_v2 = vpop.f32.mrf.mxu1  ;;  %4827 = vmatprep.mubr.bf16.mxu0 %v23476_v24  ;;  %15560 = vmatpush3.bf16.msra.mxu0 %v16098_v16  ;;  %v20087_v16 = vpop.f32.mrf.mxu0 }
 0x43f   :  { %v20080_v45 = vadd.f32 %v15271_v2, %v15270_v6  ;;  %15561 = vmatprep.subr.bf16.mxu0 %v16099_v18  ;;  %15595 = vmatprep.subr.bf16.mxu1 %v16104_v42  ;;  %23524 = vst [vmem:[#allocation63_spill] sm:$0xff] %v20087_v16  ;;  %v16101_v6 = vld [vmem:[%s23247_s5 + $0x1b8] ss:$12 sps:$4 sm:$0xff]   ;;  %v16107_v2 = vld [vmem:[%s23247_s5 + $0x650] ss:$12 sps:$4 sm:$0xff]  }
 0x440   :  { %v15273_v10 = vpop.f32.mrf.mxu1  ;;  %5658 = vmatmul.mubr.bf16.gmra.mxu1 %v19210_v60 }
 0x441   :  { %23523 = vst [vmem:[#allocation62_spill] sm:$0xff] %v20080_v45  ;;  %5667 = vmatprep.mubr.bf16.mxu1 %v23503_v12  ;;  %15596 = vmatpush3.bf16.msra.mxu1 %v16104_v42  ;;  %v16105_v12 = vld [vmem:[%s23247_s5 + $0x1a0] ss:$12 sps:$4 sm:$0xff]  }
 0x442   :  { %v15274_v4 = vpop.f32.mrf.mxu1  ;;  %15562 = vmatpush3.bf16.msra.mxu0 %v16099_v18  ;;  %15597 = vmatprep.subr.bf16.mxu1 %v16106_v13  ;;  %v20102_v18 = vpop.f32.mrf.mxu0 }
 0x443   :  { %v20089_v58 = vadd.f32 %v15274_v4, %v15273_v10  ;;  %15563 = vmatprep.subr.bf16.mxu0 %v16100_v14  ;;  %v16109_v10 = vld [vmem:[%s23247_s5 + $0x638] ss:$12 sps:$4 sm:$0xff]   ;;  %23526 = vst [vmem:[#allocation65_spill] sm:$0xff] %v20102_v18 }
 0x444   :  { %v15276_v60 = vpop.f32.mrf.mxu1 }
 0x445   :  { %23525 = vst [vmem:[#allocation64_spill] sm:$0xff] %v20089_v58  ;;  %4828 = vmatmul.mubr.bf16.gmra.mxu0 %v19692_v63  ;;  %15598 = vmatpush3.bf16.msra.mxu1 %v16106_v13  ;;  %v20111_v13 = vpop.f32.mrf.mxu0 }
 0x446   :  { %v15277_v42 = vpop.f32.mrf.mxu1  ;;  %4837 = vmatprep.mubr.bf16.mxu0 %v23476_v24  ;;  %15564 = vmatpush3.bf16.msra.mxu0 %v16100_v14  ;;  %23528 = vst [vmem:[#allocation67_spill] sm:$0xff] %v20111_v13 }
 0x447   :  { %v20104_v4 = vadd.f32 %v15277_v42, %v15276_v60  ;;  %15565 = vmatprep.subr.bf16.mxu0 %v16101_v6  ;;  %15599 = vmatprep.subr.bf16.mxu1 %v16107_v2  ;;  %v16108_v60 = vld [vmem:[%s23247_s5 + $0x188] ss:$12 sps:$4 sm:$0xff]   ;;  %v16110_v42 = vld [vmem:[%s23247_s5 + $0x620] ss:$12 sps:$4 sm:$0xff]  }
 0x448   :  { %v15279_v45 = vpop.f32.mrf.mxu1  ;;  %5668 = vmatmul.mubr.bf16.gmra.mxu1 %v19238_v28 }
 0x449   :  { %23527 = vst [vmem:[#allocation66_spill] sm:$0xff] %v20104_v4  ;;  %5677 = vmatprep.mubr.bf16.mxu1 %v19267_v3  ;;  %15600 = vmatpush3.bf16.msra.mxu1 %v16107_v2  ;;  %v16114_v3 = vld [vmem:[%s23247_s5 + $0x6ac] ss:$12 sps:$4 sm:$0xff]  }
 0x44a   :  { %v15280_v14 = vpop.f32.mrf.mxu1  ;;  %15566 = vmatpush3.bf16.msra.mxu0 %v16101_v6  ;;  %15601 = vmatprep.subr.bf16.mxu1 %v16109_v10  ;;  %v20126_v6 = vpop.f32.mrf.mxu0 }
 0x44b   :  { %v20113_v58 = vadd.f32 %v15280_v14, %v15279_v45  ;;  %15567 = vmatprep.subr.bf16.mxu0 %v16105_v12  ;;  %v16111_v45 = vld [vmem:[%s23247_s5 + $0x608] ss:$12 sps:$4 sm:$0xff]   ;;  %23530 = vst [vmem:[#allocation69_spill] sm:$0xff] %v20126_v6 }
 0x44c   :  { %v15282_v28 = vpop.f32.mrf.mxu1 }
 0x44d   :  { %23529 = vst [vmem:[#allocation68_spill] sm:$0xff] %v20113_v58  ;;  %4838 = vmatmul.mubr.bf16.gmra.mxu0 %v19710_v56  ;;  %15602 = vmatpush3.bf16.msra.mxu1 %v16109_v10  ;;  %v20135_v10 = vpop.f32.mrf.mxu0 }
 0x44e   :  { %v15283_v2 = vpop.f32.mrf.mxu1  ;;  %4847 = vmatprep.mubr.bf16.mxu0 %v23476_v24  ;;  %15568 = vmatpush3.bf16.msra.mxu0 %v16105_v12  ;;  %23532 = vst [vmem:[#allocation71_spill] sm:$0xff] %v20135_v10  ;;  %v23545_v10 = vld [vmem:[#allocation37_spill] sm:$0xff] }
 0x44f   :  { %v20128_v14 = vadd.f32 %v15283_v2, %v15282_v28  ;;  %15569 = vmatprep.subr.bf16.mxu0 %v16108_v60  ;;  %15603 = vmatprep.subr.bf16.mxu1 %v16110_v42 }
 0x450   :  { %v15285_v58 = vpop.f32.mrf.mxu1  ;;  %5678 = vmatmul.mubr.bf16.gmra.mxu1 %v19260_v47 }
 0x451   :  { %23531 = vst [vmem:[#allocation70_spill] sm:$0xff] %v20128_v14  ;;  %5687 = vmatprep.mubr.bf16.mxu1 %v19295_v20  ;;  %15604 = vmatpush3.bf16.msra.mxu1 %v16110_v42  ;;  %v20141_v14 = vpop.f32.mrf.mxu0 }
 0x452   :  { %v15286_v12 = vpop.f32.mrf.mxu1  ;;  %15570 = vmatpush3.bf16.msra.mxu0 %v16108_v60  ;;  %15605 = vmatprep.subr.bf16.mxu1 %v16111_v45  ;;  %23534 = vst [vmem:[#allocation73_spill] sm:$0xff] %v20141_v14 }
 0x453   :  { %v20137_v4 = vadd.f32 %v15286_v12, %v15285_v58  ;;  %5748 = vmatprep.subr.bf16.mxu0 %v16114_v3  ;;  %v20147_v58 = vpop.f32.mrf.mxu0 }
 0x454   :  { %v15288_v28 = vpop.f32.mrf.mxu1  ;;  %23536 = vst [vmem:[#allocation75_spill] sm:$0xff] %v20147_v58 }
 0x455   :  { %23533 = vst [vmem:[#allocation72_spill] sm:$0xff] %v20137_v4  ;;  %4848 = vmatmul.mubr.bf16.gmra.mxu0 %v19728_v33  ;;  %15606 = vmatpush3.bf16.msra.mxu1 %v16111_v45  ;;  %v20153_v45 = vpop.f32.mrf.mxu0 }
 0x456   :  { %v15289_v2 = vpop.f32.mrf.mxu1  ;;  %4857 = vmatprep.mubr.bf16.mxu0 %v23476_v24  ;;  %23537 = vst [vmem:[#allocation76_spill] sm:$0xff] %v20153_v45 }
 0x457   :  { %v20143_v47 = vadd.f32 %v15289_v2, %v15288_v28  ;;  %v20161_v2 = vpop.f32.mrf.mxu0 }
 0x458   :  { %v4676_v42 = vpop.f32.mrf.mxu1  ;;  %5688 = vmatmul.mubr.bf16.gmra.mxu1 %v19288_v40  ;;  %23538 = vst [vmem:[#allocation77_spill] sm:$0xff] %v20161_v2 }
 0x459   :  { %23535 = vst [vmem:[#allocation74_spill] sm:$0xff] %v20143_v47  ;;  %5697 = vmatprep.mubr.bf16.mxu1 %v19323_v39  ;;  %v20169_v40 = vpop.f32.mrf.mxu0 }
 0x45a   :  { %v4678_v60 = vpop.f32.mrf.mxu1  ;;  %23539 = vst [vmem:[#allocation78_spill] sm:$0xff] %v20169_v40 }
 0x45c   :  { %v4680_v3 = vpop.f32.mrf.mxu1 }
 0x45d   :  { %4858 = vmatmul.mubr.bf16.gmra.mxu0 %v19746_v61 }
 0x45e   :  { %v20150_v12 = vpop.f32.mrf.mxu1  ;;  %4867 = vmatprep.mubr.bf16.mxu0 %v23476_v24 }
 0x460   :  { %v20155_v20 = vpop.f32.mrf.mxu1  ;;  %5698 = vmatmul.mubr.bf16.gmra.mxu1 %v19316_v44  ;;  %v20177_v44 = vpop.f32.mrf.mxu0 }
 0x461   :  { %5707 = vmatprep.mubr.bf16.mxu1 %v19345_v54  ;;  %23540 = vst [vmem:[#allocation79_spill] sm:$0xff] %v20177_v44 }
 0x462   :  { %v20159_v28 = vpop.f32.mrf.mxu1  ;;  %v20185_v31 = vpop.f32.mrf.mxu0 }
 0x463   :  { %23541 = vst [vmem:[#allocation80_spill] sm:$0xff] %v20185_v31 }
 0x464   :  { %v20163_v58 = vpop.f32.mrf.mxu1  ;;  %v20193_v2 = vpop.f32.mrf.mxu0 }
 0x465   :  { %4868 = vmatmul.mubr.bf16.gmra.mxu0 %v19762_v53  ;;  %23543 = vst [vmem:[#allocation81_spill] sm:$0xff] %v20193_v2 }
 0x466   :  { %v20166_v39 = vpop.f32.mrf.mxu1  ;;  %4877 = vmatprep.mubr.bf16.mxu0 %v23476_v24  ;;  %v20201_v14 = vpop.f32.mrf.mxu0 }
 0x467   :  { %23544 = vst [vmem:[#allocation82_spill] sm:$0xff] %v20201_v14 }
 0x468   :  { %v20171_v47 = vpop.f32.mrf.mxu1  ;;  %5708 = vmatmul.mubr.bf16.gmra.mxu1 %v19338_v8  ;;  %v23542_v8 = vld [vmem:[#allocation45_spill] sm:$0xff]  ;;  %v20209_v6 = vpop.f32.mrf.mxu0 }
 0x469   :  { %5717 = vmatprep.mubr.bf16.mxu1 %v19373_v34  ;;  %23547 = vst [vmem:[#allocation83_spill] sm:$0xff] %v20209_v6 }
 0x46a   :  { %v20175_v54 = vpop.f32.mrf.mxu1 }
 0x46c   :  { %v20179_v4 = vpop.f32.mrf.mxu1 }
 0x46d   :  { %4878 = vmatmul.mubr.bf16.gmra.mxu0 %v19790_v0 }
 0x46e   :  { %v20182_v17 = vpop.f32.mrf.mxu1  ;;  %4887 = vmatprep.mubr.bf16.mxu0 %v23476_v24 }
 0x470   :  { %v20187_v40 = vpop.f32.mrf.mxu1  ;;  %5718 = vmatmul.mubr.bf16.gmra.mxu1 %v19366_v37  ;;  %v23546_v37 = vld [vmem:[#allocation42_spill] sm:$0xff] }
 0x471   :  { %5727 = vmatprep.mubr.bf16.mxu1 %v23542_v8 }
 0x472   :  { %v20191_v34 = vpop.f32.mrf.mxu1 }
 0x474   :  { %v20195_v44 = vpop.f32.mrf.mxu1 }
 0x475   :  { %4888 = vmatmul.mubr.bf16.gmra.mxu0 %v19818_v32 }
 0x476   :  { %v20198_v45 = vpop.f32.mrf.mxu1  ;;  %4897 = vmatprep.mubr.bf16.mxu0 %v23476_v24 }
 0x478   :  { %v20203_v31 = vpop.f32.mrf.mxu1  ;;  %5728 = vmatmul.mubr.bf16.gmra.mxu1 %v23545_v10 }
 0x479   :  { %5737 = vmatprep.mubr.bf16.mxu1 %v23546_v37  ;;  %v23548_v37 = vld [vmem:[#allocation43_spill] sm:$0xff] }
 0x47a   :  { %v20207_v8 = vpop.f32.mrf.mxu1 }
 0x47c   :  { %v20211_v2 = vpop.f32.mrf.mxu1 }
 0x47d   :  { %v3933_v13 = vpop.f32.mrf.mxu0  ;;  %4898 = vmatmul.mubr.bf16.gmra.mxu0 %v19846_v52 }
 0x47e   :  { %v3934_v18 = vadd.f32 %v3933_v13, %v19753_v49  ;;  %v20215_v16 = vpop.f32.mrf.mxu1  ;;  %15571 = vmatprep.mubr.bf16.mxu0 %v19663_v23  ;;  %v16112_v23 = vld [vmem:[%s23247_s5 + $0x6a8] ss:$12 sps:$4 sm:$0xff]  }
 0x47f   :  { %v3935_v14 = vpop.f32.mrf.mxu0  ;;  %v16117_v13 = vld [vmem:[%s23247_s5 + $0x694] ss:$12 sps:$4 sm:$0xff]  }
 0x480   :  { %v3936_v10 = vadd.f32 %v3935_v14, %v19760_v9  ;;  %v20219_v22 = vpop.f32.mrf.mxu1  ;;  %5738 = vmatmul.mubr.bf16.gmra.mxu1 %v23548_v37  ;;  %v20222_v57 = vadd.f32 %v4676_v42, %v3934_v18 }
 0x481   :  { %v3937_v6 = vpop.f32.mrf.mxu0  ;;  %15607 = vmatprep.mubr.bf16.mxu1 %v19692_v63 }
 0x482   :  { %v3938_v59 = vadd.f32 %v3937_v6, %v19775_v36  ;;  %v20226_v48 = vpop.f32.mrf.mxu1  ;;  %v20231_v49 = vadd.f32 %v4678_v60, %v3936_v10  ;;  %v16115_v10 = vld [vmem:[%s23247_s5 + $0x690] ss:$12 sps:$4 sm:$0xff]  }
 0x483   :  { %v3939_v9 = vpop.f32.mrf.mxu0 }
 0x484   :  { %v3940_v18 = vadd.f32 %v3939_v9, %v19788_v1  ;;  %v20237_v14 = vpop.f32.mrf.mxu1  ;;  %v20239_v42 = vadd.f32 %v4680_v3, %v3938_v59 }
 0x485   :  { %v3943_v36 = vpop.f32.mrf.mxu0  ;;  %15572 = vmatmul.mubr.bf16.vlgmr.msra.gmra.mxu0 %v19673_v41  ;;  %v16120_v41 = vld [vmem:[%s23247_s5 + $0x67c] ss:$12 sps:$4 sm:$0xff]  }
 0x486   :  { %v3944_v6 = vadd.f32 %v3943_v36, %v19803_v21  ;;  %v20243_v37 = vpop.f32.mrf.mxu1  ;;  %15575 = vmatprep.mubr.bf16.mxu0 %v19692_v63  ;;  %5749 = vmatpush1.bf16.msra.mxu0 %v16112_v23  ;;  %v20250_v1 = vadd.f32 %v20150_v12, %v3940_v18 }
 0x487   :  { %v3945_v60 = vpop.f32.mrf.mxu0  ;;  %5750 = vmatprep.subr.bf16.mxu0 %v16117_v13  ;;  %v16118_v13 = vld [vmem:[%s23247_s5 + $0x678] ss:$12 sps:$4 sm:$0xff]  }
 0x488   :  { %v3946_v21 = vadd.f32 %v3945_v60, %v19816_v38  ;;  %v20256_v59 = vpop.f32.mrf.mxu1  ;;  %15608 = vmatmul.mubr.bf16.vlgmr.msra.gmra.mxu1 %v19710_v56  ;;  %v20260_v3 = vadd.f32 %v20155_v20, %v3944_v6  ;;  %v16123_v20 = vld [vmem:[%s23247_s5 + $0x664] ss:$12 sps:$4 sm:$0xff]  }
 0x489   :  { %v3947_v23 = vpop.f32.mrf.mxu0  ;;  %15611 = vmatprep.mubr.bf16.mxu1 %v19728_v33 }
 0x48a   :  { %v3948_v12 = vadd.f32 %v3947_v23, %v19831_v27  ;;  %v20264_v9 = vpop.f32.mrf.mxu1  ;;  %5751 = vmatpush1.bf16.msra.mxu0 %v16115_v10  ;;  %v20270_v38 = vadd.f32 %v20159_v28, %v3946_v21 }
 0x48b   :  { %v3949_v18 = vpop.f32.mrf.mxu0  ;;  %5752 = vmatprep.subr.bf16.mxu0 %v16120_v41  ;;  %v16121_v41 = vld [vmem:[%s23247_s5 + $0x660] ss:$12 sps:$4 sm:$0xff]  }
 0x48c   :  { %v3950_v36 = vadd.f32 %v3949_v18, %v19844_v29  ;;  %v20276_v6 = vpop.f32.mrf.mxu1  ;;  %v20279_v27 = vadd.f32 %v20163_v58, %v3948_v12  ;;  %v16126_v58 = vld [vmem:[%s23247_s5 + $0x64c] ss:$12 sps:$4 sm:$0xff]  }
 0x48d   :  { %v3953_v10 = vpop.f32.mrf.mxu0  ;;  %15576 = vmatmul.mubr.bf16.gmra.mxu0 %v19710_v56 }
 0x48e   :  { %v3954_v60 = vadd.f32 %v3953_v10, %v19859_v43  ;;  %v20283_v28 = vpop.f32.mrf.mxu1  ;;  %15579 = vmatprep.mubr.bf16.mxu0 %v19728_v33  ;;  %5753 = vmatpush1.bf16.msra.mxu0 %v16118_v13  ;;  %v20290_v29 = vadd.f32 %v20166_v39, %v3950_v36 }
 0x48f   :  { %v3955_v21 = vpop.f32.mrf.mxu0  ;;  %5754 = vmatprep.subr.bf16.mxu0 %v16123_v20  ;;  %v16124_v20 = vld [vmem:[%s23247_s5 + $0x648] ss:$12 sps:$4 sm:$0xff]  }
 0x490   :  { %v3956_v43 = vadd.f32 %v3955_v21, %v19872_v30  ;;  %v20296_v23 = vpop.f32.mrf.mxu1  ;;  %15612 = vmatmul.mubr.bf16.gmra.mxu1 %v19746_v61  ;;  %v20300_v12 = vadd.f32 %v20171_v47, %v3954_v60  ;;  %v16129_v47 = vld [vmem:[%s23247_s5 + $0x634] ss:$12 sps:$4 sm:$0xff]  }
 0x491   :  { %v3957_v13 = vpop.f32.mrf.mxu0  ;;  %15615 = vmatprep.mubr.bf16.mxu1 %v19762_v53 }
 0x492   :  { %v3958_v39 = vadd.f32 %v3957_v13, %v19885_v7  ;;  %v20304_v18 = vpop.f32.mrf.mxu1  ;;  %5755 = vmatpush1.bf16.msra.mxu0 %v16121_v41  ;;  %v20310_v30 = vadd.f32 %v20175_v54, %v3956_v43 }
 0x493   :  { %v3959_v36 = vpop.f32.mrf.mxu0  ;;  %5756 = vmatprep.subr.bf16.mxu0 %v16126_v58  ;;  %v16127_v58 = vld [vmem:[%s23247_s5 + $0x630] ss:$12 sps:$4 sm:$0xff]  }
 0x494   :  { %v3960_v10 = vadd.f32 %v3959_v36, %v19896_v19  ;;  %v20316_v60 = vpop.f32.mrf.mxu1  ;;  %v20319_v7 = vadd.f32 %v20179_v4, %v3958_v39  ;;  %v16132_v4 = vld [vmem:[%s23247_s5 + $0x61c] ss:$12 sps:$4 sm:$0xff]  }
 0x495   :  { %v3963_v41 = vpop.f32.mrf.mxu0  ;;  %15580 = vmatmul.mubr.bf16.gmra.mxu0 %v19746_v61 }
 0x496   :  { %v3964_v21 = vadd.f32 %v3963_v41, %v19919_v50  ;;  %v20323_v54 = vpop.f32.mrf.mxu1  ;;  %15583 = vmatprep.mubr.bf16.mxu0 %v19762_v53  ;;  %5757 = vmatpush1.bf16.msra.mxu0 %v16124_v20  ;;  %v20330_v19 = vadd.f32 %v20182_v17, %v3960_v10 }
 0x497   :  { %23549 = vst [vmem:[#allocation84_spill] sm:$0xff] %v20323_v54  ;;  %v3965_v43 = vpop.f32.mrf.mxu0  ;;  %5758 = vmatprep.subr.bf16.mxu0 %v16129_v47  ;;  %v16130_v47 = vld [vmem:[%s23247_s5 + $0x618] ss:$12 sps:$4 sm:$0xff]  }
 0x498   :  { %v3966_v50 = vadd.f32 %v3965_v43, %v19934_v25  ;;  %v20336_v13 = vpop.f32.mrf.mxu1  ;;  %15616 = vmatmul.mubr.bf16.gmra.mxu1 %v19790_v0  ;;  %v20340_v39 = vadd.f32 %v20187_v40, %v3964_v21  ;;  %v16135_v40 = vld [vmem:[%s23247_s5 + $0x604] ss:$12 sps:$4 sm:$0xff]  }
 0x499   :  { %v3967_v20 = vpop.f32.mrf.mxu0  ;;  %15619 = vmatprep.mubr.bf16.mxu1 %v19818_v32 }
 0x49a   :  { %v3968_v17 = vadd.f32 %v3967_v20, %v19955_v15  ;;  %v20344_v36 = vpop.f32.mrf.mxu1  ;;  %5759 = vmatpush1.bf16.msra.mxu0 %v16127_v58  ;;  %v20350_v25 = vadd.f32 %v20191_v34, %v3966_v50 }
 0x49b   :  { %v3969_v10 = vpop.f32.mrf.mxu0  ;;  %5760 = vmatprep.subr.bf16.mxu0 %v16132_v4  ;;  %v16133_v4 = vld [vmem:[%s23247_s5 + $0x600] ss:$12 sps:$4 sm:$0xff]  }
 0x49c   :  { %v3970_v41 = vadd.f32 %v3969_v10, %v19970_v51  ;;  %v20356_v21 = vpop.f32.mrf.mxu1  ;;  %v20359_v15 = vadd.f32 %v20195_v44, %v3968_v17  ;;  %v16136_v44 = vld [vmem:[%s23247_s5 + $0x5f0] ss:$12 sps:$4 sm:$0xff]  }
 0x49d   :  { %v3973_v58 = vpop.f32.mrf.mxu0  ;;  %15584 = vmatmul.mubr.bf16.gmra.mxu0 %v19790_v0 }
 0x49e   :  { %v3974_v43 = vadd.f32 %v3973_v58, %v19991_v55  ;;  %v20363_v34 = vpop.f32.mrf.mxu1  ;;  %15587 = vmatprep.mubr.bf16.mxu0 %v19818_v32  ;;  %5761 = vmatpush1.bf16.msra.mxu0 %v16130_v47  ;;  %v20370_v51 = vadd.f32 %v20198_v45, %v3970_v41 }
 0x49f   :  { %23550 = vst [vmem:[#allocation85_spill] sm:$0xff] %v20363_v34  ;;  %v3975_v50 = vpop.f32.mrf.mxu0  ;;  %5762 = vmatprep.subr.bf16.mxu0 %v16135_v40  ;;  %v23556_v34 = vld [vmem:[#allocation21_spill] sm:$0xff] }
 0x4a0   :  { %v3976_v55 = vadd.f32 %v3975_v50, %v20006_v35  ;;  %v20376_v20 = vpop.f32.mrf.mxu1  ;;  %15620 = vmatmul.mubr.bf16.gmra.mxu1 %v19846_v52  ;;  %v20380_v17 = vadd.f32 %v20203_v31, %v3974_v43 }
 0x4a1   :  { %v3977_v47 = vpop.f32.mrf.mxu0  ;;  %15623 = vmatprep.mubr.bf16.mxu1 %v19874_v62 }
 0x4a2   :  { %v3978_v45 = vadd.f32 %v3977_v47, %v20021_v11  ;;  %v20384_v10 = vpop.f32.mrf.mxu1  ;;  %5763 = vmatpush1.bf16.msra.mxu0 %v16133_v4  ;;  %v20387_v40 = vadd.f32 %v20207_v8, %v3976_v55  ;;  %v23552_v55 = vld [vmem:[#allocation55_spill] sm:$0xff] }
 0x4a3   :  { %v3979_v41 = vpop.f32.mrf.mxu0  ;;  %15403 = vmatprep.subr.bf16.mxu0 %v16136_v44 }
 0x4a4   :  { %v3980_v35 = vadd.f32 %v3979_v41, %v20030_v26  ;;  %v20390_v58 = vpop.f32.mrf.mxu1  ;;  %v20393_v31 = vadd.f32 %v20211_v2, %v3978_v45  ;;  %v23553_v45 = vld [vmem:[#allocation44_spill] sm:$0xff] }
 0x4a5   :  { %v3983_v43 = vpop.f32.mrf.mxu0  ;;  %15588 = vmatmul.mubr.bf16.gmra.mxu0 %v19846_v52 }
 0x4a6   :  { %v3984_v11 = vadd.f32 %v3983_v43, %v20036_v46  ;;  %v20397_v50 = vpop.f32.mrf.mxu1  ;;  %5780 = vmatprep.mubr.bf16.mxu0 %v23476_v24  ;;  %v20401_v8 = vadd.f32 %v20215_v16, %v3980_v35  ;;  %v16137_v43 = vld [vmem:[%s23247_s5 + $0x530] ss:$12 sps:$4 sm:$0xff]  }
 0x4a7   :  { %23551 = vst [vmem:[#allocation86_spill] sm:$0xff] %v20397_v50  ;;  %v3985_v4 = vpop.f32.mrf.mxu0 }
 0x4a8   :  { %v3986_v26 = vadd.f32 %v3985_v4, %v20042_v5  ;;  %v15325_v44 = vpop.f32.mrf.mxu1  ;;  %15624 = vmatmul.mubr.bf16.gmra.mxu1 %v23552_v55  ;;  %v20406_v2 = vadd.f32 %v20219_v22, %v3984_v11  ;;  %v16138_v4 = vld [vmem:[%s23247_s5 + $0x5d8] ss:$12 sps:$4 sm:$0xff]  }
 0x4a9   :  { %v3987_v47 = vpop.f32.mrf.mxu0  ;;  %v23554_v22 = vld [vmem:[#allocation49_spill] sm:$0xff] }
 0x4aa   :  { %v3988_v41 = vadd.f32 %v3987_v47, %v23553_v45  ;;  %v15326_v46 = vpop.f32.mrf.mxu1  ;;  %v20413_v16 = vadd.f32 %v20226_v48, %v3986_v26 }
 0x4ab   :  { %v20415_v35 = vadd.f32 %v15326_v46, %v15325_v44  ;;  %v3989_v5 = vpop.f32.mrf.mxu0  ;;  %v16139_v44 = vld [vmem:[%s23247_s5 + $0x518] ss:$12 sps:$4 sm:$0xff]  }
 0x4ac   :  { %v3990_v11 = vadd.f32 %v3989_v5, %v23554_v22  ;;  %v20421_v50 = vpop.f32.mrf.mxu1  ;;  %v20424_v47 = vadd.f32 %v20237_v14, %v3988_v41  ;;  %v23558_v14 = vld [vmem:[#allocation63_spill] sm:$0xff] }
 0x4ad   :  { %v3993_v45 = vpop.f32.mrf.mxu0  ;;  %5781 = vmatmul.mubr.bf16.vlgmr.msra.gmra.mxu0 %v19692_v63  ;;  %v16140_v63 = vld [vmem:[%s23247_s5 + $0x5c0] ss:$12 sps:$4 sm:$0xff]  }
 0x4ae   :  { %23555 = vst [vmem:[#allocation55_spill] sm:$0xff] %v20424_v47  ;;  %v3994_v48 = vadd.f32 %v3993_v45, %v23556_v34  ;;  %v20428_v26 = vpop.f32.mrf.mxu1  ;;  %15404 = vmatpush3.bf16.msra.mxu0 %v16137_v43  ;;  %5790 = vmatprep.mubr.bf16.mxu0 %v23476_v24  ;;  %v20435_v46 = vadd.f32 %v20243_v37, %v3990_v11  ;;  %v23559_v45 = vld [vmem:[#allocation65_spill] sm:$0xff]  ;;  %v16141_v37 = vld [vmem:[%s23247_s5 + $0x500] ss:$12 sps:$4 sm:$0xff]  }
 0x4af   :  { %v3995_v5 = vpop.f32.mrf.mxu0  ;;  %15405 = vmatprep.subr.bf16.mxu0 %v16138_v4 }
 0x4b0   :  { %23557 = vst [vmem:[#allocation44_spill] sm:$0xff] %v20435_v46  ;;  %v3996_v34 = vadd.f32 %v3995_v5, %v23558_v14  ;;  %v15331_v41 = vpop.f32.mrf.mxu1  ;;  %v20442_v43 = vadd.f32 %v20256_v59, %v3994_v48  ;;  %v16142_v59 = vld [vmem:[%s23247_s5 + $0x5a8] ss:$12 sps:$4 sm:$0xff]  }
 0x4b1   :  { %v3997_v22 = vpop.f32.mrf.mxu0  ;;  %v23560_v48 = vld [vmem:[#allocation67_spill] sm:$0xff] }
 0x4b2   :  { %v3998_v54 = vadd.f32 %v3997_v22, %v23559_v45  ;;  %v15332_v47 = vpop.f32.mrf.mxu1  ;;  %15406 = vmatpush3.bf16.msra.mxu0 %v16139_v44  ;;  %v20449_v4 = vadd.f32 %v20264_v9, %v3996_v34  ;;  %v23562_v9 = vld [vmem:[#allocation69_spill] sm:$0xff] }
 0x4b3   :  { %v20451_v11 = vadd.f32 %v15332_v47, %v15331_v41  ;;  %v3999_v46 = vpop.f32.mrf.mxu0  ;;  %15407 = vmatprep.subr.bf16.mxu0 %v16140_v63  ;;  %v16143_v63 = vld [vmem:[%s23247_s5 + $0x4e8] ss:$12 sps:$4 sm:$0xff]  }
 0x4b4   :  { %v4000_v5 = vadd.f32 %v3999_v46, %v23560_v48  ;;  %v20457_v14 = vpop.f32.mrf.mxu1  ;;  %v20460_v44 = vadd.f32 %v20276_v6, %v3998_v54  ;;  %v23564_v6 = vld [vmem:[#allocation71_spill] sm:$0xff] }
 0x4b5   :  { %v4003_v22 = vpop.f32.mrf.mxu0  ;;  %5791 = vmatmul.mubr.bf16.gmra.mxu0 %v19710_v56  ;;  %v16144_v56 = vld [vmem:[%s23247_s5 + $0x590] ss:$12 sps:$4 sm:$0xff]  }
 0x4b6   :  { %23561 = vst [vmem:[#allocation49_spill] sm:$0xff] %v20460_v44  ;;  %v4004_v34 = vadd.f32 %v4003_v22, %v23562_v9  ;;  %v20464_v47 = vpop.f32.mrf.mxu1  ;;  %5800 = vmatprep.mubr.bf16.mxu0 %v23476_v24  ;;  %15408 = vmatpush3.bf16.msra.mxu0 %v16141_v37  ;;  %v20471_v46 = vadd.f32 %v20283_v28, %v4000_v5  ;;  %v23565_v22 = vld [vmem:[#allocation73_spill] sm:$0xff] }
 0x4b7   :  { %v4005_v41 = vpop.f32.mrf.mxu0  ;;  %15409 = vmatprep.subr.bf16.mxu0 %v16142_v59  ;;  %v16145_v28 = vld [vmem:[%s23247_s5 + $0x4d0] ss:$12 sps:$4 sm:$0xff]  }
 0x4b8   :  { %23563 = vst [vmem:[#allocation21_spill] sm:$0xff] %v20471_v46  ;;  %v4006_v54 = vadd.f32 %v4005_v41, %v23564_v6  ;;  %v15337_v45 = vpop.f32.mrf.mxu1  ;;  %v20478_v48 = vadd.f32 %v20296_v23, %v4004_v34  ;;  %v16146_v23 = vld [vmem:[%s23247_s5 + $0x578] ss:$12 sps:$4 sm:$0xff]   ;;  %v23569_v6 = vld [vmem:[#allocation76_spill] sm:$0xff] }
 0x4b9   :  { %v4007_v37 = vpop.f32.mrf.mxu0 }
 0x4ba   :  { %v4008_v9 = vadd.f32 %v4007_v37, %v23565_v22  ;;  %v15338_v44 = vpop.f32.mrf.mxu1  ;;  %15410 = vmatpush3.bf16.msra.mxu0 %v16143_v63  ;;  %v20485_v59 = vadd.f32 %v20304_v18, %v4006_v54 }
 0x4bb   :  { %v20487_v5 = vadd.f32 %v15338_v44, %v15337_v45  ;;  %v20489_v46 = vpop.f32.mrf.mxu0  ;;  %15411 = vmatprep.subr.bf16.mxu0 %v16144_v56  ;;  %v16147_v44 = vld [vmem:[%s23247_s5 + $0x4b8] ss:$12 sps:$4 sm:$0xff]  }
 0x4bc   :  { %23566 = vst [vmem:[#allocation63_spill] sm:$0xff] %v20485_v59  ;;  %23567 = vst [vmem:[#allocation65_spill] sm:$0xff] %v20489_v46  ;;  %v20494_v34 = vpop.f32.mrf.mxu1  ;;  %v20497_v63 = vadd.f32 %v20316_v60, %v4008_v9  ;;  %v16148_v60 = vld [vmem:[%s23247_s5 + $0x560] ss:$12 sps:$4 sm:$0xff]   ;;  %v23570_v45 = vld [vmem:[#allocation77_spill] sm:$0xff] }
 0x4bd   :  { %v4013_v41 = vpop.f32.mrf.mxu0  ;;  %5801 = vmatmul.mubr.bf16.gmra.mxu0 %v19728_v33  ;;  %v16149_v46 = vld [vmem:[%s23247_s5 + $0x4a0] ss:$12 sps:$4 sm:$0xff]  }
 0x4be   :  { %23568 = vst [vmem:[#allocation67_spill] sm:$0xff] %v20497_v63  ;;  %v4014_v18 = vadd.f32 %v4013_v41, %v23569_v6  ;;  %v20501_v54 = vpop.f32.mrf.mxu1  ;;  %5810 = vmatprep.mubr.bf16.mxu0 %v23476_v24  ;;  %15412 = vmatpush3.bf16.msra.mxu0 %v16145_v28  ;;  %v23571_v41 = vld [vmem:[#allocation78_spill] sm:$0xff] }
 0x4bf   :  { %v4015_v56 = vpop.f32.mrf.mxu0  ;;  %15413 = vmatprep.subr.bf16.mxu0 %v16146_v23 }
 0x4c0   :  { %v4016_v37 = vadd.f32 %v4015_v56, %v23570_v45  ;;  %v15343_v33 = vpop.f32.mrf.mxu1  ;;  %v20512_v22 = vadd.f32 %v20336_v13, %v4014_v18  ;;  %v16150_v13 = vld [vmem:[%s23247_s5 + $0x548] ss:$12 sps:$4 sm:$0xff]  }
 0x4c1   :  { %v4017_v9 = vpop.f32.mrf.mxu0  ;;  %v23575_v45 = vld [vmem:[#allocation80_spill] sm:$0xff] }
 0x4c2   :  { %v4018_v6 = vadd.f32 %v4017_v9, %v23571_v41  ;;  %v15344_v28 = vpop.f32.mrf.mxu1  ;;  %15414 = vmatpush3.bf16.msra.mxu0 %v16147_v44  ;;  %v20519_v23 = vadd.f32 %v20344_v36, %v4016_v37  ;;  %v23576_v9 = vld [vmem:[#allocation81_spill] sm:$0xff] }
 0x4c3   :  { %v20521_v63 = vadd.f32 %v15344_v28, %v15343_v33  ;;  %v20523_v59 = vpop.f32.mrf.mxu0  ;;  %15415 = vmatprep.subr.bf16.mxu0 %v16148_v60  ;;  %v16151_v60 = vld [vmem:[%s23247_s5 + $0x488] ss:$12 sps:$4 sm:$0xff]  }
 0x4c4   :  { %23572 = vst [vmem:[#allocation69_spill] sm:$0xff] %v20519_v23  ;;  %23573 = vst [vmem:[#allocation71_spill] sm:$0xff] %v20523_v59  ;;  %v20528_v18 = vpop.f32.mrf.mxu1  ;;  %v20531_v44 = vadd.f32 %v20356_v21, %v4018_v6  ;;  %v16154_v33 = vld [vmem:[%s23249_s7 + $0x364] ss:$16 sps:$4 sm:$0xff]  }
 0x4c5   :  { %v4023_v56 = vpop.f32.mrf.mxu0  ;;  %5811 = vmatmul.mubr.bf16.gmra.mxu0 %v19746_v61  ;;  %v16152_v61 = vld [vmem:[%s23249_s7 + $0x360] ss:$16 sps:$4 sm:$0xff]   ;;  %6919 = vmatprep.subr.bf16.mxu1 %v16154_v33 }
 0x4c6   :  { %23574 = vst [vmem:[#allocation73_spill] sm:$0xff] %v20531_v44  ;;  %v4024_v36 = vadd.f32 %v4023_v56, %v23575_v45  ;;  %v20535_v37 = vpop.f32.mrf.mxu1  ;;  %5820 = vmatprep.mubr.bf16.mxu0 %v23476_v24  ;;  %15416 = vmatpush3.bf16.msra.mxu0 %v16149_v46  ;;  %v23577_v56 = vld [vmem:[#allocation82_spill] sm:$0xff] }
 0x4c7   :  { %v4025_v21 = vpop.f32.mrf.mxu0  ;;  %15417 = vmatprep.subr.bf16.mxu0 %v16150_v13  ;;  %6920 = vmatpush1.bf16.msra.mxu1 %v16152_v61  ;;  %v16157_v13 = vld [vmem:[%s23249_s7 + $0x344] ss:$16 sps:$4 sm:$0xff]  }
 0x4c8   :  { %v4026_v41 = vadd.f32 %v4025_v21, %v23576_v9  ;;  %v15349_v6 = vpop.f32.mrf.mxu1  ;;  %v20549_v28 = vadd.f32 %v20376_v20, %v4024_v36  ;;  %v16155_v20 = vld [vmem:[%s23249_s7 + $0x340] ss:$16 sps:$4 sm:$0xff]   ;;  %6921 = vmatprep.subr.bf16.mxu1 %v16157_v13  ;;  %v16160_v9 = vld [vmem:[%s23249_s7 + $0x324] ss:$16 sps:$4 sm:$0xff]   ;;  %v15336_v13 = vadd.f32 %v20464_v47, %v20457_v14 }
 0x4c9   :  { %v4027_v46 = vpop.f32.mrf.mxu0  ;;  %v23583_v14 = vld [vmem:[#allocation46_spill] sm:$0xff] }
 0x4ca   :  { %v4028_v45 = vadd.f32 %v4027_v46, %v23577_v56  ;;  %v15350_v59 = vpop.f32.mrf.mxu1  ;;  %15418 = vmatpush3.bf16.msra.mxu0 %v16151_v60  ;;  %v20553_v44 = vadd.f32 %v20384_v10, %v4026_v41  ;;  %v23580_v60 = vld [vmem:[#allocation30_spill] sm:$0xff] }
 0x4cb   :  { %v20558_v23 = vadd.f32 %v15350_v59, %v15349_v6  ;;  %v20560_v21 = vpop.f32.mrf.mxu0  ;;  %6922 = vmatpush1.bf16.msra.mxu1 %v16155_v20  ;;  %v23581_v6 = vld [vmem:[#allocation22_spill] sm:$0xff]  ;;  %v23582_v20 = vld [vmem:[#allocation33_spill] sm:$0xff] }
 0x4cc   :  { %23578 = vst [vmem:[#allocation76_spill] sm:$0xff] %v20560_v21  ;;  %v20565_v36 = vpop.f32.mrf.mxu1  ;;  %v20568_v33 = vadd.f32 %v20390_v58, %v4028_v45  ;;  %v16158_v58 = vld [vmem:[%s23249_s7 + $0x320] ss:$16 sps:$4 sm:$0xff]   ;;  %6923 = vmatprep.subr.bf16.mxu1 %v16160_v9 }
 0x4cd   :  { %v15537_v10 = vpop.f32.mrf.mxu0  ;;  %5821 = vmatmul.mubr.bf16.gmra.mxu0 %v19762_v53 }
 0x4ce   :  { %23579 = vst [vmem:[#allocation77_spill] sm:$0xff] %v20568_v33  ;;  %v4188_v61 = vadd.f32 %v15537_v10, %v23580_v60  ;;  %v20572_v59 = vpop.f32.mrf.mxu1  ;;  %5830 = vmatprep.mubr.bf16.mxu0 %v23476_v24 }
 0x4cf   :  { %v4179_v41 = vpop.f32.mrf.mxu0  ;;  %6924 = vmatpush1.bf16.msra.mxu1 %v16158_v58 }
 0x4d0   :  { %v4180_v46 = vadd.f32 %v23581_v6, %v4179_v41  ;;  %v15355_v56 = vpop.f32.mrf.mxu1  ;;  %v20583_v53 = vadd.f32 %v20451_v11, %v4188_v61  ;;  %v16163_v41 = vld [vmem:[%s23249_s7 + $0x304] ss:$16 sps:$4 sm:$0xff]   ;;  %v16161_v11 = vld [vmem:[%s23249_s7 + $0x300] ss:$16 sps:$4 sm:$0xff]   ;;  %v15330_v61 = vadd.f32 %v20428_v26, %v20421_v50 }
 0x4d1   :  { %v15538_v45 = vpop.f32.mrf.mxu0  ;;  %6925 = vmatprep.subr.bf16.mxu1 %v16163_v41  ;;  %v16166_v50 = vld [vmem:[%s23249_s7 + $0x2e4] ss:$16 sps:$4 sm:$0xff]  }
 0x4d2   :  { %v4191_v10 = vadd.f32 %v15538_v45, %v23582_v20  ;;  %v15356_v60 = vpop.f32.mrf.mxu1  ;;  %v20589_v21 = vadd.f32 %v20415_v35, %v4180_v46  ;;  %v23584_v46 = vld [vmem:[#allocation36_spill] sm:$0xff] }
 0x4d3   :  { %v15357_v6 = vadd.f32 %v15356_v60, %v15355_v56  ;;  %v4182_v33 = vpop.f32.mrf.mxu0  ;;  %6926 = vmatpush1.bf16.msra.mxu1 %v16161_v11  ;;  %v15348_v11 = vadd.f32 %v20535_v37, %v20528_v18  ;;  %v23588_v18 = vld [vmem:[#allocation48_spill] sm:$0xff] }
 0x4d4   :  { %v4183_v47 = vadd.f32 %v23583_v14, %v4182_v33  ;;  %v15358_v9 = vpop.f32.mrf.mxu1  ;;  %v20600_v58 = vadd.f32 %v15336_v13, %v4191_v10  ;;  %v16164_v33 = vld [vmem:[%s23249_s7 + $0x2e0] ss:$16 sps:$4 sm:$0xff]   ;;  %6927 = vmatprep.subr.bf16.mxu1 %v16166_v50 }
 0x4d5   :  { %v15541_v35 = vpop.f32.mrf.mxu0  ;;  %5831 = vmatmul.mubr.bf16.gmra.mxu0 %v19790_v0  ;;  %v23586_v13 = vld [vmem:[#allocation32_spill] sm:$0xff] }
 0x4d6   :  { %v4204_v56 = vadd.f32 %v15541_v35, %v23584_v46  ;;  %v15359_v45 = vpop.f32.mrf.mxu1  ;;  %5840 = vmatprep.mubr.bf16.mxu0 %v23476_v24  ;;  %v20605_v20 = vadd.f32 %v15330_v61, %v4183_v47  ;;  %v23587_v61 = vld [vmem:[#allocation47_spill] sm:$0xff] }
 0x4d7   :  { %v4195_v26 = vpop.f32.mrf.mxu0  ;;  %6928 = vmatpush1.bf16.msra.mxu1 %v16164_v33  ;;  %v16169_v46 = vld [vmem:[%s23249_s7 + $0x2c4] ss:$16 sps:$4 sm:$0xff]  }
 0x4d8   :  { %23585 = vst [vmem:[#allocation78_spill] sm:$0xff] %v20605_v20  ;;  %v4196_v10 = vadd.f32 %v23586_v13, %v4195_v26  ;;  %v15361_v0 = vpop.f32.mrf.mxu1  ;;  %v20615_v60 = vadd.f32 %v20521_v63, %v4204_v56  ;;  %v16167_v63 = vld [vmem:[%s23249_s7 + $0x2c0] ss:$16 sps:$4 sm:$0xff]   ;;  %v15342_v56 = vadd.f32 %v20501_v54, %v20494_v34  ;;  %6929 = vmatprep.subr.bf16.mxu1 %v16169_v46  ;;  %v16172_v34 = vld [vmem:[%s23249_s7 + $0x2a4] ss:$16 sps:$4 sm:$0xff]  }
 0x4d9   :  { %v15542_v41 = vpop.f32.mrf.mxu0 }
 0x4da   :  { %v4207_v14 = vadd.f32 %v15542_v41, %v23587_v61  ;;  %v15362_v47 = vpop.f32.mrf.mxu1  ;;  %v20621_v35 = vadd.f32 %v20487_v5, %v4196_v10  ;;  %v23589_v10 = vld [vmem:[#allocation40_spill] sm:$0xff] }
 0x4db   :  { %v15363_v26 = vadd.f32 %v15362_v47, %v15361_v0  ;;  %v4198_v13 = vpop.f32.mrf.mxu0  ;;  %6930 = vmatpush1.bf16.msra.mxu1 %v16167_v63  ;;  %v15360_v63 = vadd.f32 %v15359_v45, %v15358_v9  ;;  %v23593_v9 = vld [vmem:[#allocation53_spill] sm:$0xff] }
 0x4dc   :  { %v4199_v37 = vadd.f32 %v23588_v18, %v4198_v13  ;;  %v15364_v50 = vpop.f32.mrf.mxu1  ;;  %v20632_v33 = vadd.f32 %v15348_v11, %v4207_v14  ;;  %v16170_v11 = vld [vmem:[%s23249_s7 + $0x2a0] ss:$16 sps:$4 sm:$0xff]   ;;  %6931 = vmatprep.subr.bf16.mxu1 %v16172_v34 }
 0x4dd   :  { %v15545_v5 = vpop.f32.mrf.mxu0  ;;  %5841 = vmatmul.mubr.bf16.gmra.mxu0 %v19818_v32  ;;  %v23591_v14 = vld [vmem:[#allocation34_spill] sm:$0xff] }
 0x4de   :  { %v4220_v0 = vadd.f32 %v15545_v5, %v23589_v10  ;;  %v15365_v41 = vpop.f32.mrf.mxu1  ;;  %5850 = vmatprep.mubr.bf16.mxu0 %v23476_v24  ;;  %v20637_v61 = vadd.f32 %v15342_v56, %v4199_v37  ;;  %v23592_v56 = vld [vmem:[#allocation41_spill] sm:$0xff] }
 0x4df   :  { %v4211_v54 = vpop.f32.mrf.mxu0  ;;  %6932 = vmatpush1.bf16.msra.mxu1 %v16170_v11  ;;  %v16175_v10 = vld [vmem:[%s23249_s7 + $0x284] ss:$16 sps:$4 sm:$0xff]   ;;  %v23594_v11 = vld [vmem:[#allocation64_spill] sm:$0xff] }
 0x4e0   :  { %23590 = vst [vmem:[#allocation80_spill] sm:$0xff] %v20637_v61  ;;  %v4212_v47 = vadd.f32 %v23591_v14, %v4211_v54  ;;  %v15367_v32 = vpop.f32.mrf.mxu1  ;;  %v20646_v46 = vadd.f32 %v15357_v6, %v4220_v0  ;;  %v16173_v6 = vld [vmem:[%s23249_s7 + $0x280] ss:$16 sps:$4 sm:$0xff]   ;;  %v15354_v0 = vadd.f32 %v20572_v59, %v20565_v36  ;;  %6933 = vmatprep.subr.bf16.mxu1 %v16175_v10  ;;  %v16178_v36 = vld [vmem:[%s23249_s7 + $0x464] ss:$16 sps:$4 sm:$0xff]  }
 0x4e1   :  { %v15546_v13 = vpop.f32.mrf.mxu0  ;;  %v23597_v10 = vld [vmem:[#allocation66_spill] sm:$0xff] }
 0x4e2   :  { %v4223_v18 = vadd.f32 %v15546_v13, %v23592_v56  ;;  %v15368_v37 = vpop.f32.mrf.mxu1  ;;  %v20650_v5 = vadd.f32 %v20558_v23, %v4212_v47  ;;  %v23596_v13 = vld [vmem:[#allocation39_spill] sm:$0xff] }
 0x4e3   :  { %v15369_v61 = vadd.f32 %v15368_v37, %v15367_v32  ;;  %v4214_v20 = vpop.f32.mrf.mxu0  ;;  %6934 = vmatpush1.bf16.msra.mxu1 %v16173_v6 }
 0x4e4   :  { %v4215_v45 = vadd.f32 %v23593_v9, %v4214_v20  ;;  %v15370_v34 = vpop.f32.mrf.mxu1  ;;  %v20661_v54 = vadd.f32 %v15360_v63, %v4223_v18  ;;  %v16176_v20 = vld [vmem:[%s23249_s7 + $0x460] ss:$16 sps:$4 sm:$0xff]   ;;  %6935 = vmatprep.subr.bf16.mxu1 %v16178_v36 }
 0x4e5   :  { %v15549_v23 = vpop.f32.mrf.mxu0  ;;  %5851 = vmatmul.mubr.bf16.gmra.mxu0 %v19846_v52  ;;  %v23598_v36 = vld [vmem:[#allocation62_spill] sm:$0xff] }
 0x4e6   :  { %v4236_v14 = vadd.f32 %v15549_v23, %v23594_v11  ;;  %v15371_v47 = vpop.f32.mrf.mxu1  ;;  %5860 = vmatprep.mubr.bf16.mxu0 %v23476_v24  ;;  %v20666_v32 = vadd.f32 %v15354_v0, %v4215_v45  ;;  %v16181_v45 = vld [vmem:[%s23249_s7 + $0x444] ss:$16 sps:$4 sm:$0xff]  }
 0x4e7   :  { %v4227_v59 = vpop.f32.mrf.mxu0  ;;  %6936 = vmatpush2.bf16.msra.mxu1 %v16176_v20  ;;  %v15372_v37 = vadd.f32 %v15371_v47, %v15370_v34 }
 0x4e8   :  { %23595 = vst [vmem:[#allocation81_spill] sm:$0xff] %v20666_v32  ;;  %v4228_v63 = vadd.f32 %v23596_v13, %v4227_v59  ;;  %v15373_v52 = vpop.f32.mrf.mxu1  ;;  %v20675_v56 = vadd.f32 %v15369_v61, %v4236_v14  ;;  %v16179_v61 = vld [vmem:[%s23249_s7 + $0x440] ss:$16 sps:$4 sm:$0xff]   ;;  %v15366_v14 = vadd.f32 %v15365_v41, %v15364_v50  ;;  %6937 = vmatprep.subr.bf16.mxu1 %v16181_v45  ;;  %v16184_v50 = vld [vmem:[%s23249_s7 + $0x424] ss:$16 sps:$4 sm:$0xff]  }
 0x4e9   :  { %v15550_v18 = vpop.f32.mrf.mxu0  ;;  %v23625_v32 = vld [vmem:[#allocation21_spill] sm:$0xff] }
 0x4ea   :  { %v4239_v6 = vadd.f32 %v15550_v18, %v23597_v10  ;;  %v15374_v0 = vpop.f32.mrf.mxu1  ;;  %v20678_v9 = vadd.f32 %v15363_v26, %v4228_v63  ;;  %v23599_v26 = vld [vmem:[#allocation72_spill] sm:$0xff] }
 0x4eb   :  { %v15375_v23 = vadd.f32 %v15374_v0, %v15373_v52  ;;  %v4230_v11 = vpop.f32.mrf.mxu0  ;;  %6938 = vmatpush2.bf16.msra.mxu1 %v16179_v61  ;;  %v16182_v18 = vld [vmem:[%s23249_s7 + $0x420] ss:$16 sps:$4 sm:$0xff]  }
 0x4ec   :  { %v4231_v59 = vadd.f32 %v23598_v36, %v4230_v11  ;;  %v15376_v20 = vpop.f32.mrf.mxu1  ;;  %v20687_v34 = vadd.f32 %v15372_v37, %v4239_v6  ;;  %v23601_v37 = vld [vmem:[#allocation68_spill] sm:$0xff]  ;;  %6939 = vmatprep.subr.bf16.mxu1 %v16184_v50  ;;  %v23602_v0 = vld [vmem:[#allocation74_spill] sm:$0xff] }
 0x4ed   :  { %v15553_v47 = vpop.f32.mrf.mxu0  ;;  %5861 = vmatmul.mubr.bf16.gmra.mxu0 %v19874_v62 }
 0x4ee   :  { %v4252_v13 = vadd.f32 %v15553_v47, %v23599_v26  ;;  %v15377_v63 = vpop.f32.mrf.mxu1  ;;  %5870 = vmatprep.mubr.bf16.mxu0 %v23476_v24  ;;  %v20692_v52 = vadd.f32 %v15366_v14, %v4231_v59  ;;  %v16187_v14 = vld [vmem:[%s23249_s7 + $0x404] ss:$16 sps:$4 sm:$0xff]   ;;  %v16185_v47 = vld [vmem:[%s23249_s7 + $0x400] ss:$16 sps:$4 sm:$0xff]  }
 0x4ef   :  { %v4243_v41 = vpop.f32.mrf.mxu0  ;;  %6940 = vmatpush2.bf16.msra.mxu1 %v16182_v18  ;;  %v15378_v26 = vadd.f32 %v15377_v63, %v15376_v20  ;;  %v16190_v20 = vld [vmem:[%s23249_s7 + $0x3e4] ss:$16 sps:$4 sm:$0xff]  }
 0x4f0   :  { %23600 = vst [vmem:[#allocation82_spill] sm:$0xff] %v20692_v52  ;;  %v4244_v10 = vadd.f32 %v23601_v37, %v4243_v41  ;;  %v15379_v62 = vpop.f32.mrf.mxu1  ;;  %v23603_v41 = vld [vmem:[#allocation70_spill] sm:$0xff]  ;;  %6941 = vmatprep.subr.bf16.mxu1 %v16187_v14 }
 0x4f1   :  { %v15554_v6 = vpop.f32.mrf.mxu0 }
 0x4f2   :  { %v4255_v45 = vadd.f32 %v15554_v6, %v23602_v0  ;;  %v15380_v11 = vpop.f32.mrf.mxu1  ;;  %v20702_v61 = vadd.f32 %v15375_v23, %v4244_v10  ;;  %v23604_v6 = vld [vmem:[#allocation58_spill] sm:$0xff] }
 0x4f3   :  { %v15381_v36 = vadd.f32 %v15380_v11, %v15379_v62  ;;  %v4246_v59 = vpop.f32.mrf.mxu0  ;;  %6942 = vmatpush2.bf16.msra.mxu1 %v16185_v47 }
 0x4f4   :  { %v4247_v50 = vadd.f32 %v23603_v41, %v4246_v59  ;;  %v15382_v37 = vpop.f32.mrf.mxu1  ;;  %6943 = vmatprep.subr.bf16.mxu1 %v16190_v20  ;;  %v16193_v59 = vld [vmem:[%s23249_s7 + $0x3c4] ss:$16 sps:$4 sm:$0xff]  }
 0x4f5   :  { %v4809_v18 = vpop.f32.mrf.mxu0  ;;  %5871 = vmatmul.mubr.bf16.gmra.mxu0 %v23552_v55  ;;  %v20712_v23 = vadd.f32 %v15381_v36, %v4252_v13  ;;  %v16188_v55 = vld [vmem:[%s23249_s7 + $0x3e0] ss:$16 sps:$4 sm:$0xff]   ;;  %v16199_v20 = vld [vmem:[%s23249_s7 + $0x384] ss:$16 sps:$4 sm:$0xff]  }
 0x4f6   :  { %v20715_v10 = vadd.f32 %v4809_v18, %v20222_v57  ;;  %v15383_v62 = vpop.f32.mrf.mxu1  ;;  %5913 = vmatprep.mubr.bf16.mxu0 %v23604_v6  ;;  %v20718_v0 = vadd.f32 %v15378_v26, %v4247_v50  ;;  %v16191_v26 = vld [vmem:[%s23249_s7 + $0x3c0] ss:$16 sps:$4 sm:$0xff]  }
 0x4f7   :  { %v15384_v63 = vadd.f32 %v15383_v62, %v15382_v37  ;;  %v4811_v11 = vpop.f32.mrf.mxu0  ;;  %6944 = vmatpush2.bf16.msra.mxu1 %v16188_v55  ;;  %v23607_v50 = vld [vmem:[#allocation60_spill] sm:$0xff]  ;;  %v16196_v37 = vld [vmem:[%s23249_s7 + $0x3a4] ss:$16 sps:$4 sm:$0xff]  }
 0x4f8   :  { %23605 = vst [vmem:[#allocation30_spill] sm:$0xff] %v20718_v0  ;;  %v20727_v13 = vadd.f32 %v4811_v11, %v20231_v49  ;;  %6945 = vmatprep.subr.bf16.mxu1 %v16193_v59  ;;  %v16197_v11 = vld [vmem:[%s23249_s7 + $0x380] ss:$16 sps:$4 sm:$0xff]  }
 0x4f9   :  { %v4813_v57 = vpop.f32.mrf.mxu0  ;;  %v20729_v14 = vadd.f32 %v15384_v63, %v4255_v45  ;;  %v23606_v45 = vld [vmem:[#allocation51_spill] sm:$0xff] }
 0x4fa   :  { %v20732_v36 = vadd.f32 %v4813_v57, %v20239_v42  ;;  %v23608_v57 = vld [vmem:[#allocation59_spill] sm:$0xff] }
 0x4fb   :  { %v4815_v47 = vpop.f32.mrf.mxu0  ;;  %6946 = vmatpush2.bf16.msra.mxu1 %v16191_v26  ;;  %v23609_v59 = vld [vmem:[#allocation23_spill] sm:$0xff] }
 0x4fc   :  { %v20741_v49 = vadd.f32 %v4815_v47, %v20250_v1  ;;  %v16194_v1 = vld [vmem:[%s23249_s7 + $0x3a0] ss:$16 sps:$4 sm:$0xff]   ;;  %6947 = vmatprep.subr.bf16.mxu1 %v16196_v37  ;;  %v16202_v47 = vld [vmem:[%s23249_s7 + $0x36c] ss:$16 sps:$4 sm:$0xff]  }
 0x4fd   :  { %v4819_v41 = vpop.f32.mrf.mxu0  ;;  %5914 = vmatmul.mubr.bf16.vlgmr.msra.gmra.mxu0 %v23606_v45 }
 0x4fe   :  { %v20745_v42 = vadd.f32 %v4819_v41, %v20260_v3  ;;  %5921 = vmatprep.mubr.bf16.mxu0 %v23607_v50 }
 0x4ff   :  { %v4821_v18 = vpop.f32.mrf.mxu0  ;;  %6948 = vmatpush2.bf16.msra.mxu1 %v16194_v1 }
 0x500   :  { %v20755_v62 = vadd.f32 %v4821_v18, %v20270_v38  ;;  %6949 = vmatprep.subr.bf16.mxu1 %v16199_v20  ;;  %v23610_v18 = vld [vmem:[#allocation61_spill] sm:$0xff] }
 0x501   :  { %v4823_v6 = vpop.f32.mrf.mxu0 }
 0x502   :  { %v20758_v3 = vadd.f32 %v4823_v6, %v20279_v27  ;;  %v23611_v6 = vld [vmem:[#allocation25_spill] sm:$0xff] }
 0x503   :  { %v4825_v63 = vpop.f32.mrf.mxu0  ;;  %6950 = vmatpush2.bf16.msra.mxu1 %v16197_v11 }
 0x504   :  { %v20767_v55 = vadd.f32 %v4825_v63, %v20290_v29  ;;  %7145 = vmatprep.subr.bf16.mxu1 %v16202_v47 }
 0x505   :  { %v4829_v38 = vpop.f32.mrf.mxu0  ;;  %5922 = vmatmul.mubr.bf16.gmra.mxu0 %v23608_v57 }
 0x506   :  { %v20771_v27 = vadd.f32 %v4829_v38, %v20300_v12  ;;  %5929 = vmatprep.mubr.bf16.mxu0 %v23609_v59  ;;  %v23612_v59 = vld [vmem:[#allocation57_spill] sm:$0xff] }
 0x507   :  { %v4831_v26 = vpop.f32.mrf.mxu0 }
 0x508   :  { %v20778_v41 = vadd.f32 %v4831_v26, %v20310_v30  ;;  %v16203_v30 = vld [vmem:[%s23249_s7 + $0x4e0] ss:$16 sps:$4 sm:$0xff]  }
 0x509   :  { %v4833_v29 = vpop.f32.mrf.mxu0  ;;  %v23613_v26 = vld [vmem:[#allocation28_spill] sm:$0xff] }
 0x50a   :  { %v20781_v45 = vadd.f32 %v4833_v29, %v20319_v7  ;;  %v16205_v7 = vld [vmem:[%s23249_s7 + $0x4e4] ss:$16 sps:$4 sm:$0xff]  }
 0x50b   :  { %v4835_v50 = vpop.f32.mrf.mxu0  ;;  %7040 = vmatprep.subr.bf16.mxu0 %v16205_v7 }
 0x50c   :  { %v20784_v37 = vadd.f32 %v4835_v50, %v20330_v19  ;;  %7041 = vmatpush1.bf16.msra.mxu0 %v16203_v30  ;;  %v20814_v50 = vpop.f32.mrf.mxu1  ;;  %v23614_v30 = vld [vmem:[#allocation26_spill] sm:$0xff] }
 0x50d   :  { %v4839_v12 = vpop.f32.mrf.mxu0  ;;  %5930 = vmatmul.mubr.bf16.gmra.mxu0 %v23610_v18 }
 0x50e   :  { %v20788_v1 = vadd.f32 %v4839_v12, %v20340_v39  ;;  %5937 = vmatprep.mubr.bf16.mxu0 %v23611_v6  ;;  %v20822_v6 = vpop.f32.mrf.mxu1 }
 0x50f   :  { %v4841_v20 = vpop.f32.mrf.mxu0 }
 0x510   :  { %v20798_v19 = vadd.f32 %v4841_v20, %v20350_v25 }
 0x511   :  { %v4843_v63 = vpop.f32.mrf.mxu0 }
 0x512   :  { %v20801_v39 = vadd.f32 %v4843_v63, %v20359_v15 }
 0x513   :  { %v4845_v11 = vpop.f32.mrf.mxu0 }
 0x514   :  { %v20804_v38 = vadd.f32 %v4845_v11, %v20370_v51 }
 0x515   :  { %v4849_v57 = vpop.f32.mrf.mxu0  ;;  %5938 = vmatmul.mubr.bf16.gmra.mxu0 %v23612_v59 }
 0x516   :  { %v20808_v47 = vadd.f32 %v4849_v57, %v20380_v17  ;;  %5945 = vmatprep.mubr.bf16.mxu0 %v23613_v26  ;;  %v23616_v57 = vld [vmem:[#allocation55_spill] sm:$0xff]  ;;  %v23617_v26 = vld [vmem:[#allocation44_spill] sm:$0xff] }
 0x517   :  { %v4851_v25 = vpop.f32.mrf.mxu0 }
 0x518   :  { %v20812_v29 = vadd.f32 %v4851_v25, %v20387_v40  ;;  %v23615_v40 = vld [vmem:[#allocation27_spill] sm:$0xff] }
 0x519   :  { %v4853_v15 = vpop.f32.mrf.mxu0 }
 0x51a   :  { %v20817_v12 = vadd.f32 %v4853_v15, %v20393_v31  ;;  %v20832_v31 = vpop.f32.mrf.mxu1  ;;  %v16223_v15 = vld [vmem:[%s23249_s7 + $0x4c4] ss:$16 sps:$4 sm:$0xff]  }
 0x51b   :  { %v4855_v51 = vpop.f32.mrf.mxu0  ;;  %7042 = vmatprep.subr.bf16.mxu0 %v16223_v15 }
 0x51c   :  { %v20820_v18 = vadd.f32 %v4855_v51, %v20401_v8 }
 0x51d   :  { %v4859_v17 = vpop.f32.mrf.mxu0  ;;  %5946 = vmatmul.mubr.bf16.gmra.mxu0 %v23614_v30 }
 0x51e   :  { %v20826_v7 = vadd.f32 %v4859_v17, %v20406_v2  ;;  %5953 = vmatprep.mubr.bf16.mxu0 %v23615_v40  ;;  %v16221_v2 = vld [vmem:[%s23249_s7 + $0x4c0] ss:$16 sps:$4 sm:$0xff]  }
 0x51f   :  { %v4861_v20 = vpop.f32.mrf.mxu0  ;;  %v23619_v17 = vld [vmem:[#allocation24_spill] sm:$0xff]  ;;  %v23621_v40 = vld [vmem:[#allocation29_spill] sm:$0xff]  ;;  %7043 = vmatpush1.bf16.msra.mxu0 %v16221_v2 }
 0x520   :  { %v20830_v63 = vadd.f32 %v4861_v20, %v20413_v16  ;;  %v20846_v16 = vpop.f32.mrf.mxu1 }
 0x521   :  { %v4863_v11 = vpop.f32.mrf.mxu0 }
 0x522   :  { %v20835_v8 = vadd.f32 %v4863_v11, %v23616_v57  ;;  %v20856_v57 = vpop.f32.mrf.mxu1 }
 0x523   :  { %v4865_v59 = vpop.f32.mrf.mxu0 }
 0x524   :  { %v20838_v25 = vadd.f32 %v4865_v59, %v23617_v26  ;;  %v23623_v26 = vld [vmem:[#allocation49_spill] sm:$0xff] }
 0x525   :  { %v4869_v51 = vpop.f32.mrf.mxu0  ;;  %5954 = vmatmul.mubr.bf16.gmra.mxu0 %v23619_v17 }
 0x526   :  { %23618 = vst [vmem:[#allocation22_spill] sm:$0xff] %v20838_v25  ;;  %v20850_v30 = vadd.f32 %v4869_v51, %v20442_v43  ;;  %5961 = vmatprep.mubr.bf16.mxu0 %v23621_v40  ;;  %v20864_v43 = vpop.f32.mrf.mxu1  ;;  %v23627_v40 = vld [vmem:[#allocation31_spill] sm:$0xff] }
 0x527   :  { %v4871_v20 = vpop.f32.mrf.mxu0  ;;  %v23647_v25 = vld [vmem:[#allocation43_spill] sm:$0xff] }
 0x528   :  { %23620 = vst [vmem:[#allocation33_spill] sm:$0xff] %v20850_v30  ;;  %v20854_v11 = vadd.f32 %v4871_v20, %v20449_v4  ;;  %v23629_v4 = vld [vmem:[#allocation38_spill] sm:$0xff]  ;;  %v23630_v20 = vld [vmem:[#allocation63_spill] sm:$0xff] }
 0x529   :  { %v4873_v59 = vpop.f32.mrf.mxu0  ;;  %v23635_v30 = vld [vmem:[#allocation35_spill] sm:$0xff] }
 0x52a   :  { %23622 = vst [vmem:[#allocation46_spill] sm:$0xff] %v20854_v11  ;;  %v20859_v0 = vadd.f32 %v4873_v59, %v23623_v26  ;;  %v20874_v59 = vpop.f32.mrf.mxu1 }
 0x52b   :  { %v4875_v52 = vpop.f32.mrf.mxu0 }
 0x52c   :  { %23624 = vst [vmem:[#allocation36_spill] sm:$0xff] %v20859_v0  ;;  %v20862_v17 = vadd.f32 %v4875_v52, %v23625_v32  ;;  %v23632_v0 = vld [vmem:[#allocation67_spill] sm:$0xff] }
 0x52d   :  { %v4879_v51 = vpop.f32.mrf.mxu0  ;;  %5962 = vmatmul.mubr.bf16.gmra.mxu0 %v23627_v40 }
 0x52e   :  { %23626 = vst [vmem:[#allocation32_spill] sm:$0xff] %v20862_v17  ;;  %v20868_v2 = vadd.f32 %v4879_v51, %v20478_v48  ;;  %5969 = vmatprep.mubr.bf16.mxu0 %v23629_v4  ;;  %v20881_v17 = vpop.f32.mrf.mxu1  ;;  %v23637_v51 = vld [vmem:[#allocation45_spill] sm:$0xff] }
 0x52f   :  { %v4881_v15 = vpop.f32.mrf.mxu0  ;;  %v16239_v4 = vld [vmem:[%s23249_s7 + $0x4a0] ss:$16 sps:$4 sm:$0xff]  }
 0x530   :  { %23628 = vst [vmem:[#allocation47_spill] sm:$0xff] %v20868_v2  ;;  %v20872_v11 = vadd.f32 %v4881_v15, %v23630_v20  ;;  %v23638_v20 = vld [vmem:[#allocation69_spill] sm:$0xff] }
 0x531   :  { %v4883_v26 = vpop.f32.mrf.mxu0 }
 0x532   :  { %23631 = vst [vmem:[#allocation48_spill] sm:$0xff] %v20872_v11  ;;  %v20877_v32 = vadd.f32 %v4883_v26, %v23632_v0  ;;  %v16241_v0 = vld [vmem:[%s23249_s7 + $0x4a4] ss:$16 sps:$4 sm:$0xff]  }
 0x533   :  { %v20879_v52 = vpop.f32.mrf.mxu0  ;;  %7044 = vmatprep.subr.bf16.mxu0 %v16241_v0  ;;  %v23643_v11 = vld [vmem:[#allocation37_spill] sm:$0xff] }
 0x534   :  { %23633 = vst [vmem:[#allocation40_spill] sm:$0xff] %v20877_v32  ;;  %23634 = vst [vmem:[#allocation34_spill] sm:$0xff] %v20879_v52  ;;  %v20897_v32 = vpop.f32.mrf.mxu1  ;;  %7045 = vmatpush1.bf16.msra.mxu0 %v16239_v4 }
 0x535   :  { %v4889_v40 = vpop.f32.mrf.mxu0  ;;  %5970 = vmatmul.mubr.bf16.gmra.mxu0 %v23635_v30 }
 0x536   :  { %v20885_v48 = vadd.f32 %v4889_v40, %v20512_v22  ;;  %5977 = vmatprep.mubr.bf16.mxu0 %v23637_v51  ;;  %v23640_v22 = vld [vmem:[#allocation73_spill] sm:$0xff] }
 0x537   :  { %v4891_v15 = vpop.f32.mrf.mxu0 }
 0x538   :  { %23636 = vst [vmem:[#allocation41_spill] sm:$0xff] %v20885_v48  ;;  %v20895_v26 = vadd.f32 %v4891_v15, %v23638_v20  ;;  %v20904_v48 = vpop.f32.mrf.mxu1  ;;  %v23644_v15 = vld [vmem:[#allocation42_spill] sm:$0xff] }
 0x539   :  { %v4893_v30 = vpop.f32.mrf.mxu0 }
 0x53a   :  { %23639 = vst [vmem:[#allocation53_spill] sm:$0xff] %v20895_v26  ;;  %v20900_v40 = vadd.f32 %v4893_v30, %v23640_v22  ;;  %v20914_v4 = vpop.f32.mrf.mxu1  ;;  %v23645_v22 = vld [vmem:[#allocation77_spill] sm:$0xff] }
 0x53b   :  { %v20902_v51 = vpop.f32.mrf.mxu0 }
 0x53c   :  { %23641 = vst [vmem:[#allocation64_spill] sm:$0xff] %v20900_v40  ;;  %23642 = vst [vmem:[#allocation39_spill] sm:$0xff] %v20902_v51  ;;  %v20921_v26 = vpop.f32.mrf.mxu1 }
 0x53d   :  { %v4899_v52 = vpop.f32.mrf.mxu0  ;;  %5978 = vmatmul.mubr.bf16.gmra.mxu0 %v23643_v11 }
 0x53e   :  { %v20908_v2 = vadd.f32 %v4899_v52, %v20549_v28  ;;  %5985 = vmatprep.mubr.bf16.mxu0 %v23644_v15  ;;  %v20931_v15 = vpop.f32.mrf.mxu1 }
 0x53f   :  { %v4901_v0 = vpop.f32.mrf.mxu0 }
 0x540   :  { %v20912_v20 = vadd.f32 %v4901_v0, %v20553_v44 }
 0x541   :  { %v4903_v30 = vpop.f32.mrf.mxu0 }
 0x542   :  { %v20917_v40 = vadd.f32 %v4903_v30, %v23645_v22 }
 0x543   :  { %v20919_v51 = vpop.f32.mrf.mxu0 }
 0x544   :  { %23646 = vst [vmem:[#allocation66_spill] sm:$0xff] %v20917_v40  ;;  %v20938_v40 = vpop.f32.mrf.mxu1 }
 0x545   :  { %v15573_v11 = vpop.f32.mrf.mxu0  ;;  %5986 = vmatmul.mubr.bf16.gmra.mxu0 %v23647_v25 }
 0x546   :  { %v20925_v28 = vadd.f32 %v15573_v11, %v20583_v53  ;;  %7064 = vmatprep.mubr.bf16.mxu0 %v23476_v24  ;;  %v16257_v11 = vld [vmem:[%s23249_s7 + $0x480] ss:$16 sps:$4 sm:$0xff]  }
 0x547   :  { %v5055_v44 = vpop.f32.mrf.mxu0 }
 0x548   :  { %23648 = vst [vmem:[#allocation62_spill] sm:$0xff] %v20925_v28  ;;  %v20929_v52 = vadd.f32 %v5055_v44, %v20589_v21  ;;  %v16259_v21 = vld [vmem:[%s23249_s7 + $0x484] ss:$16 sps:$4 sm:$0xff]  }
 0x549   :  { %v15574_v0 = vpop.f32.mrf.mxu0  ;;  %7046 = vmatprep.subr.bf16.mxu0 %v16259_v21 }
 0x54a   :  { %v20934_v30 = vadd.f32 %v15574_v0, %v20600_v58  ;;  %v20952_v0 = vpop.f32.mrf.mxu1  ;;  %7047 = vmatpush1.bf16.msra.mxu0 %v16257_v11 }
 0x54b   :  { %v20936_v22 = vpop.f32.mrf.mxu0 }
 0x54c   :  { %23649 = vst [vmem:[#allocation72_spill] sm:$0xff] %v20934_v30  ;;  %23650 = vst [vmem:[#allocation68_spill] sm:$0xff] %v20936_v22 }
 0x54d   :  { %v15577_v25 = vpop.f32.mrf.mxu0 }
 0x54e   :  { %v20941_v53 = vadd.f32 %v15577_v25, %v20615_v60 }
 0x54f   :  { %v5071_v44 = vpop.f32.mrf.mxu0 }
 0x550   :  { %23651 = vst [vmem:[#allocation74_spill] sm:$0xff] %v20941_v53  ;;  %v20950_v58 = vadd.f32 %v5071_v44, %v20621_v35  ;;  %v20959_v53 = vpop.f32.mrf.mxu1 }
 0x551   :  { %v15578_v24 = vpop.f32.mrf.mxu0 }
 0x552   :  { %23652 = vst [vmem:[#allocation70_spill] sm:$0xff] %v20950_v58  ;;  %v20955_v60 = vadd.f32 %v15578_v24, %v20632_v33  ;;  %v20967_v21 = vpop.f32.mrf.mxu1 }
 0x553   :  { %v20957_v25 = vpop.f32.mrf.mxu0 }
 0x554   :  { %23653 = vst [vmem:[#allocation58_spill] sm:$0xff] %v20955_v60  ;;  %23654 = vst [vmem:[#allocation51_spill] sm:$0xff] %v20957_v25  ;;  %v20974_v33 = vpop.f32.mrf.mxu1 }
 0x555   :  { %v15581_v30 = vpop.f32.mrf.mxu0 }
 0x556   :  { %v20962_v28 = vadd.f32 %v15581_v30, %v20646_v46 }
 0x557   :  { %v5087_v22 = vpop.f32.mrf.mxu0 }
 0x558   :  { %23655 = vst [vmem:[#allocation60_spill] sm:$0xff] %v20962_v28  ;;  %v20965_v35 = vadd.f32 %v5087_v22, %v20650_v5  ;;  %v16277_v5 = vld [vmem:[%s23249_s7 + $0x4ec] ss:$16 sps:$4 sm:$0xff]   ;;  %v20985_v22 = vpop.f32.mrf.mxu1 }
 0x559   :  { %v15582_v44 = vpop.f32.mrf.mxu0  ;;  %7266 = vmatprep.subr.bf16.mxu0 %v16277_v5  ;;  %v21007_v5 = vld [vmem:[#allocation7] sm:$0x7] }
 0x55a   :  { %23656 = vst [vmem:[#allocation59_spill] sm:$0xff] %v20965_v35  ;;  %v20970_v11 = vadd.f32 %v15582_v44, %v20661_v54  ;;  %v20992_v28 = vpop.f32.mrf.mxu1  ;;  %23667 = vst [vmem:[#allocation29_spill] sm:$0xff] %v21007_v5  ;;  %v23669_v35 = vld [vmem:[#allocation56_spill] sm:$0xff] }
 0x55b   :  { %v20972_v24 = vpop.f32.mrf.mxu0 }
 0x55c   :  { %23657 = vst [vmem:[#allocation23_spill] sm:$0xff] %v20970_v11  ;;  %23658 = vst [vmem:[#allocation61_spill] sm:$0xff] %v20972_v24 }
 0x55d   :  { %v15585_v60 = vpop.f32.mrf.mxu0 }
 0x55e   :  { %v20977_v25 = vadd.f32 %v15585_v60, %v20675_v56 }
 0x55f   :  { %v5103_v46 = vpop.f32.mrf.mxu0 }
 0x560   :  { %23659 = vst [vmem:[#allocation25_spill] sm:$0xff] %v20977_v25  ;;  %v20980_v30 = vadd.f32 %v5103_v46, %v20678_v9  ;;  %v21000_v25 = vpop.f32.mrf.mxu1 }
 0x561   :  { %v15586_v54 = vpop.f32.mrf.mxu0 }
 0x562   :  { %23660 = vst [vmem:[#allocation57_spill] sm:$0xff] %v20980_v30  ;;  %v20988_v44 = vadd.f32 %v15586_v54, %v20687_v34  ;;  %v21009_v54 = vpop.f32.mrf.mxu1 }
 0x563   :  { %v20990_v11 = vpop.f32.mrf.mxu0 }
 0x564   :  { %23661 = vst [vmem:[#allocation28_spill] sm:$0xff] %v20988_v44  ;;  %23662 = vst [vmem:[#allocation26_spill] sm:$0xff] %v20990_v11 }
 0x565   :  { %v15589_v56 = vpop.f32.mrf.mxu0 }
 0x566   :  { %v20995_v60 = vadd.f32 %v15589_v56, %v20712_v23  ;;  %v23668_v56 = vld [vmem:[#allocation54_spill] sm:$0xff] }
 0x567   :  { %v5119_v9 = vpop.f32.mrf.mxu0 }
 0x568   :  { %23663 = vst [vmem:[#allocation27_spill] sm:$0xff] %v20995_v60  ;;  %v20998_v46 = vadd.f32 %v5119_v9, %v20702_v61  ;;  %v21014_v60 = vrot.slane %v21007_v5, %v23668_v56 }
 0x569   :  { %v15590_v30 = vpop.f32.mrf.mxu0 }
 0x56a   :  { %23664 = vst [vmem:[#allocation55_spill] sm:$0xff] %v20998_v46  ;;  %v21003_v24 = vadd.f32 %v15590_v30, %v20729_v14  ;;  %v21018_v14 = vpop.f32.mrf.mxu1 }
 0x56b   :  { %v21005_v34 = vpop.f32.mrf.mxu0 }
 0x56c   :  { %23665 = vst [vmem:[#allocation44_spill] sm:$0xff] %v21003_v24  ;;  %23666 = vst [vmem:[#allocation24_spill] sm:$0xff] %v21005_v34 }
 0x56d   :  { %v5782_v44 = vpop.f32.mrf.mxu0 }
 0x56e   :  { %v5783_v23 = vadd.f32 %v5782_v44, %v20814_v50  ;;  %v21025_v50 = vrot.slane %v21007_v5, %v23669_v35 }
 0x56f   :  { %v5784_v61 = vpop.f32.mrf.mxu0 }
 0x570   :  { %v6107_v9 = vadd.f32 %v5783_v23, %v20715_v10  ;;  %v5785_v46 = vadd.f32 %v5784_v61, %v20822_v6  ;;  %v21029_v23 = vpop.f32.mrf.mxu1 }
 0x571   :  { %v5786_v30 = vpop.f32.mrf.mxu0 }
 0x572   :  { %v6108_v24 = vadd.f32 %v5785_v46, %v20727_v13  ;;  %v5787_v34 = vadd.f32 %v5786_v30, %v20832_v31  ;;  %v6184_v11 = vadd.f32 %v21014_v60, %v6107_v9 }
 0x573   :  { %v5788_v44 = vpop.f32.mrf.mxu0 }
 0x574   :  { %v6110_v56 = vadd.f32 %v5787_v34, %v20732_v36  ;;  %v5789_v10 = vadd.f32 %v5788_v44, %v20846_v16  ;;  %v6244_v46 = vmax.f32 %v6184_v11, 0.0  ;;  %v6185_v9 = vadd.f32 %v21025_v50, %v6108_v24  ;;  %v21038_v34 = vpop.f32.mrf.mxu1 }
 0x575   :  { %v5792_v6 = vpop.f32.mrf.mxu0 }
 0x576   :  { %v6187_v61 = vadd.f32 %v21014_v60, %v6110_v56  ;;  %v6111_v13 = vadd.f32 %v5789_v10, %v20741_v49  ;;  %v5793_v31 = vadd.f32 %v5792_v6, %v20856_v57  ;;  %v6245_v11 = vmax.f32 %v6185_v9, 0.0 }
 0x577   :  { %v5794_v30 = vpop.f32.mrf.mxu0 }
 0x578   :  { %v6247_v35 = vmax.f32 %v6187_v61, 0.0  ;;  %v6188_v58 = vadd.f32 %v21025_v50, %v6111_v13  ;;  %v6113_v36 = vadd.f32 %v5793_v31, %v20745_v42  ;;  %v5795_v16 = vadd.f32 %v5794_v30, %v20864_v43  ;;  %v21047_v61 = vpop.f32.mrf.mxu1 }
 0x579   :  { %v5796_v44 = vpop.f32.mrf.mxu0 }
 0x57a   :  { %v21040_v5 = vpack.c.bf16 %v6247_v35, %v6244_v46  ;;  %v6114_v49 = vadd.f32 %v5795_v16, %v20755_v62  ;;  %v5797_v57 = vadd.f32 %v5796_v44, %v20874_v59  ;;  %v6248_v24 = vmax.f32 %v6188_v58, 0.0  ;;  %v21057_v30 = vpop.f32.mrf.mxu1 }
 0x57b   :  { %v5798_v56 = vpop.f32.mrf.mxu0  ;;  %v6190_v10 = vadd.f32 %v21014_v60, %v6113_v36 }
 0x57c   :  { %v6116_v6 = vadd.f32 %v5797_v57, %v20758_v3  ;;  %v5799_v42 = vadd.f32 %v5798_v56, %v20881_v17  ;;  %v21049_v13 = vpack.c.bf16 %v6248_v24, %v6245_v11  ;;  %v6191_v35 = vadd.f32 %v21025_v50, %v6114_v49 }
 0x57d   :  { %v5802_v43 = vpop.f32.mrf.mxu0  ;;  %v6250_v46 = vmax.f32 %v6190_v10, 0.0  ;;  %v21070_v10 = vpop.f32.mrf.mxu1 }
 0x57e   :  { %v6193_v62 = vadd.f32 %v21014_v60, %v6116_v6  ;;  %v6117_v59 = vadd.f32 %v5799_v42, %v20767_v55  ;;  %v5803_v31 = vadd.f32 %v5802_v43, %v20897_v32  ;;  %v6251_v44 = vmax.f32 %v6191_v35, 0.0 }
 0x57f   :  { %v5804_v58 = vpop.f32.mrf.mxu0 }
 0x580   :  { %v6253_v9 = vmax.f32 %v6193_v62, 0.0  ;;  %v6194_v3 = vadd.f32 %v21025_v50, %v6117_v59  ;;  %v5805_v17 = vadd.f32 %v5804_v58, %v20904_v48  ;;  %v6119_v36 = vadd.f32 %v5803_v31, %v20771_v27  ;;  %v16200_v48 = vld [vmem:[%s23249_s7 + $0x368] ss:$16 sps:$4 sm:$0xff]   ;;  %v21089_v58 = vpop.f32.mrf.mxu1 }
 0x581   :  { %v5806_v16 = vpop.f32.mrf.mxu0 }
 0x582   :  { %v21060_v49 = vpack.c.bf16 %v6253_v9, %v6250_v46  ;;  %v6254_v57 = vmax.f32 %v6194_v3, 0.0  ;;  %v6120_v55 = vadd.f32 %v5805_v17, %v20778_v41  ;;  %v5807_v32 = vadd.f32 %v5806_v16, %v20914_v4  ;;  %v16208_v41 = vld [vmem:[%s23249_s7 + $0x34c] ss:$16 sps:$4 sm:$0xff]  }
 0x583   :  { %v5808_v11 = vpop.f32.mrf.mxu0  ;;  %v6196_v27 = vadd.f32 %v21014_v60, %v6119_v36  ;;  %v16211_v3 = vld [vmem:[%s23249_s7 + $0x32c] ss:$16 sps:$4 sm:$0xff]  }
 0x584   :  { %v5809_v56 = vadd.f32 %v5808_v11, %v20921_v26  ;;  %v21065_v24 = vpack.c.bf16 %v6254_v57, %v6251_v44  ;;  %v6122_v6 = vadd.f32 %v5807_v32, %v20781_v45  ;;  %v6197_v4 = vadd.f32 %v21025_v50, %v6120_v55  ;;  %v16209_v11 = vld [vmem:[%s23249_s7 + $0x328] ss:$16 sps:$4 sm:$0xff]  }
 0x585   :  { %v5812_v42 = vpop.f32.mrf.mxu0 }
 0x586   :  { %v6123_v26 = vadd.f32 %v5809_v56, %v20784_v37  ;;  %v5813_v43 = vadd.f32 %v5812_v42, %v20931_v15  ;;  %6951 = vmatprep.mubr.bf16.mxu1 %v21065_v24  ;;  %v6199_v35 = vadd.f32 %v21014_v60, %v6122_v6  ;;  %v16206_v37 = vld [vmem:[%s23249_s7 + $0x348] ss:$16 sps:$4 sm:$0xff]   ;;  %v6256_v15 = vmax.f32 %v6196_v27, 0.0  ;;  %v21105_v56 = vpop.f32.mrf.mxu1 }
 0x587   :  { %v5814_v62 = vpop.f32.mrf.mxu0  ;;  %6952 = vmatmul.mubr.bf16.vlgmr.msra.gmra.mxu1 %v21060_v49  ;;  %v6257_v17 = vmax.f32 %v6197_v4, 0.0 }
 0x588   :  { %v6200_v45 = vadd.f32 %v21025_v50, %v6123_v26  ;;  %v6125_v59 = vadd.f32 %v5813_v43, %v20788_v1  ;;  %v5815_v31 = vadd.f32 %v5814_v62, %v20938_v40  ;;  %7146 = vmatpush1.bf16.msra.mxu1 %v16200_v48  ;;  %v6259_v46 = vmax.f32 %v6199_v35, 0.0  ;;  %v21122_v35 = vpop.f32.mrf.mxu1 }
 0x589   :  { %v5816_v9 = vpop.f32.mrf.mxu0  ;;  %7147 = vmatprep.subr.bf16.mxu1 %v16208_v41 }
 0x58a   :  { %v6260_v36 = vmax.f32 %v6200_v45, 0.0  ;;  %v5817_v1 = vadd.f32 %v5816_v9, %v20952_v0  ;;  %v21095_v40 = vpack.c.bf16 %v6259_v46, %v6256_v15  ;;  %v6126_v16 = vadd.f32 %v5815_v31, %v20798_v19  ;;  %v16214_v19 = vld [vmem:[%s23249_s7 + $0x30c] ss:$16 sps:$4 sm:$0xff]  }
 0x58b   :  { %v5818_v44 = vpop.f32.mrf.mxu0  ;;  %v6202_v55 = vadd.f32 %v21014_v60, %v6125_v59 }
 0x58c   :  { %v21098_v57 = vpack.c.bf16 %v6260_v36, %v6257_v17  ;;  %v6128_v32 = vadd.f32 %v5817_v1, %v20801_v39  ;;  %7148 = vmatpush1.bf16.msra.mxu1 %v16206_v37  ;;  %v5819_v0 = vadd.f32 %v5818_v44, %v20959_v53  ;;  %v6203_v39 = vadd.f32 %v21025_v50, %v6126_v16  ;;  %v21135_v17 = vpop.f32.mrf.mxu1 }
 0x58d   :  { %v5822_v48 = vpop.f32.mrf.mxu0  ;;  %7149 = vmatprep.subr.bf16.mxu1 %v16211_v3  ;;  %v6262_v53 = vmax.f32 %v6202_v55, 0.0 }
 0x58e   :  { %v6205_v27 = vadd.f32 %v21014_v60, %v6128_v32  ;;  %v5823_v6 = vadd.f32 %v5822_v48, %v20967_v21  ;;  %6961 = vmatprep.mubr.bf16.mxu1 %v21098_v57  ;;  %v6129_v42 = vadd.f32 %v5819_v0, %v20804_v38  ;;  %v16212_v21 = vld [vmem:[%s23249_s7 + $0x308] ss:$16 sps:$4 sm:$0xff]   ;;  %v16217_v38 = vld [vmem:[%s23249_s7 + $0x2ec] ss:$16 sps:$4 sm:$0xff]   ;;  %v6263_v31 = vmax.f32 %v6203_v39, 0.0 }
 0x58f   :  { %v5824_v41 = vpop.f32.mrf.mxu0  ;;  %6962 = vmatmul.mubr.bf16.gmra.mxu1 %v21095_v40 }
 0x590   :  { %v6265_v4 = vmax.f32 %v6205_v27, 0.0  ;;  %v6131_v26 = vadd.f32 %v5823_v6, %v20808_v47  ;;  %v5825_v43 = vadd.f32 %v5824_v41, %v20974_v33  ;;  %7150 = vmatpush1.bf16.msra.mxu1 %v16209_v11  ;;  %v6206_v62 = vadd.f32 %v21025_v50, %v6129_v42  ;;  %v16218_v27 = vld [vmem:[%s23249_s7 + $0x2c8] ss:$16 sps:$4 sm:$0xff]  }
 0x591   :  { %v5826_v45 = vpop.f32.mrf.mxu0  ;;  %7151 = vmatprep.subr.bf16.mxu1 %v16214_v19  ;;  %v21153_v19 = vpop.f32.mrf.mxu1 }
 0x592   :  { %v21128_v59 = vpack.c.bf16 %v6265_v4, %v6262_v53  ;;  %v6132_v47 = vadd.f32 %v5825_v43, %v20812_v29  ;;  %v5827_v33 = vadd.f32 %v5826_v45, %v20985_v22  ;;  %v6266_v37 = vmax.f32 %v6206_v62, 0.0  ;;  %v16215_v29 = vld [vmem:[%s23249_s7 + $0x2e8] ss:$16 sps:$4 sm:$0xff]  }
 0x593   :  { %v5828_v15 = vpop.f32.mrf.mxu0  ;;  %v6208_v46 = vadd.f32 %v21014_v60, %v6131_v26  ;;  %v21169_v43 = vpop.f32.mrf.mxu1  ;;  %v16224_v45 = vld [vmem:[%s23249_s7 + $0x2a8] ss:$16 sps:$4 sm:$0xff]  }
 0x594   :  { %v6134_v9 = vadd.f32 %v5827_v33, %v20817_v12  ;;  %v5829_v3 = vadd.f32 %v5828_v15, %v20992_v28  ;;  %7152 = vmatpush1.bf16.msra.mxu1 %v16212_v21  ;;  %v21137_v36 = vpack.c.bf16 %v6266_v37, %v6263_v31  ;;  %v6209_v22 = vadd.f32 %v21025_v50, %v6132_v47  ;;  %v16220_v28 = vld [vmem:[%s23249_s7 + $0x2cc] ss:$16 sps:$4 sm:$0xff]   ;;  %v23671_v15 = vld [vmem:[#allocation33_spill] sm:$0xff] }
 0x595   :  { %v5832_v1 = vpop.f32.mrf.mxu0  ;;  %7153 = vmatprep.subr.bf16.mxu1 %v16217_v38  ;;  %v6268_v32 = vmax.f32 %v6208_v46, 0.0 }
 0x596   :  { %v6211_v16 = vadd.f32 %v21014_v60, %v6134_v9  ;;  %v6135_v44 = vadd.f32 %v5829_v3, %v20820_v18  ;;  %v5833_v12 = vadd.f32 %v5832_v1, %v21000_v25  ;;  %6971 = vmatprep.mubr.bf16.mxu1 %v21137_v36  ;;  %v6269_v6 = vmax.f32 %v6209_v22, 0.0  ;;  %v21188_v3 = vpop.f32.mrf.mxu1  ;;  %v16227_v22 = vld [vmem:[%s23249_s7 + $0x288] ss:$16 sps:$4 sm:$0xff]  }
 0x597   :  { %v5834_v55 = vpop.f32.mrf.mxu0  ;;  %6972 = vmatmul.mubr.bf16.gmra.mxu1 %v21128_v59 }
 0x598   :  { %v6271_v11 = vmax.f32 %v6211_v16, 0.0  ;;  %v6212_v0 = vadd.f32 %v21025_v50, %v6135_v44  ;;  %v5835_v48 = vadd.f32 %v5834_v55, %v21009_v54  ;;  %v6137_v18 = vadd.f32 %v5833_v12, %v20826_v7  ;;  %7154 = vmatpush1.bf16.msra.mxu1 %v16215_v29  ;;  %v16226_v54 = vld [vmem:[%s23249_s7 + $0x2ac] ss:$16 sps:$4 sm:$0xff]  }
 0x599   :  { %v5836_v25 = vpop.f32.mrf.mxu0  ;;  %7155 = vmatprep.subr.bf16.mxu1 %v16220_v28  ;;  %v23672_v55 = vld [vmem:[#allocation46_spill] sm:$0xff] }
 0x59a   :  { %v21159_v39 = vpack.c.bf16 %v6271_v11, %v6268_v32  ;;  %v6272_v42 = vmax.f32 %v6212_v0, 0.0  ;;  %v6138_v41 = vadd.f32 %v5835_v48, %v20830_v63  ;;  %v5837_v53 = vadd.f32 %v5836_v25, %v21018_v14  ;;  %v23670_v14 = vld [vmem:[#allocation22_spill] sm:$0xff] }
 0x59b   :  { %v5838_v7 = vpop.f32.mrf.mxu0  ;;  %v6214_v21 = vadd.f32 %v21014_v60, %v6137_v18  ;;  %v23673_v18 = vld [vmem:[#allocation36_spill] sm:$0xff] }
 0x59c   :  { %v21166_v4 = vpack.c.bf16 %v6272_v42, %v6269_v6  ;;  %v5839_v26 = vadd.f32 %v5838_v7, %v21029_v23  ;;  %v6140_v62 = vadd.f32 %v5837_v53, %v20835_v8  ;;  %7156 = vmatpush1.bf16.msra.mxu1 %v16218_v27  ;;  %v6215_v38 = vadd.f32 %v21025_v50, %v6138_v41  ;;  %v16229_v23 = vld [vmem:[%s23249_s7 + $0x28c] ss:$16 sps:$4 sm:$0xff]   ;;  %v21204_v27 = vpop.f32.mrf.mxu1  ;;  %v16230_v42 = vld [vmem:[%s23249_s7 + $0x468] ss:$16 sps:$4 sm:$0xff]  }
 0x59d   :  { %v5842_v63 = vpop.f32.mrf.mxu0  ;;  %7157 = vmatprep.subr.bf16.mxu1 %v16226_v54  ;;  %v23674_v41 = vld [vmem:[#allocation75_spill] sm:$0xff]  ;;  %v23675_v54 = vld [vmem:[#allocation65_spill] sm:$0xff] }
 0x59e   :  { %v6141_v47 = vadd.f32 %v5839_v26, %v23670_v14  ;;  %v5843_v33 = vadd.f32 %v5842_v63, %v21038_v34  ;;  %6981 = vmatprep.mubr.bf16.mxu1 %v21166_v4  ;;  %v6217_v8 = vadd.f32 %v21014_v60, %v6140_v62  ;;  %v6274_v34 = vmax.f32 %v6214_v21, 0.0  ;;  %v23676_v62 = vld [vmem:[#allocation32_spill] sm:$0xff] }
 0x59f   :  { %v5844_v31 = vpop.f32.mrf.mxu0  ;;  %6982 = vmatmul.mubr.bf16.gmra.mxu1 %v21159_v39  ;;  %v6275_v16 = vmax.f32 %v6215_v38, 0.0  ;;  %v4010_v53 = vadd.f32 %v23675_v54, %v23674_v41  ;;  %v16236_v41 = vld [vmem:[%s23249_s7 + $0x428] ss:$16 sps:$4 sm:$0xff]  }
 0x5a0   :  { %v6218_v37 = vadd.f32 %v21025_v50, %v6141_v47  ;;  %v6143_v46 = vadd.f32 %v5843_v33, %v23671_v15  ;;  %v5845_v9 = vadd.f32 %v5844_v31, %v21047_v61  ;;  %v6277_v1 = vmax.f32 %v6217_v8, 0.0  ;;  %7158 = vmatpush1.bf16.msra.mxu1 %v16224_v45  ;;  %v16232_v61 = vld [vmem:[%s23249_s7 + $0x46c] ss:$16 sps:$4 sm:$0xff]   ;;  %v23677_v47 = vld [vmem:[#allocation47_spill] sm:$0xff] }
 0x5a1   :  { %v5846_v29 = vpop.f32.mrf.mxu0  ;;  %7159 = vmatprep.subr.bf16.mxu1 %v16229_v23  ;;  %v23678_v15 = vld [vmem:[#allocation84_spill] sm:$0xff] }
 0x5a2   :  { %v6278_v44 = vmax.f32 %v6218_v37, 0.0  ;;  %v5847_v12 = vadd.f32 %v5846_v29, %v21057_v30  ;;  %v21197_v28 = vpack.c.bf16 %v6277_v1, %v6274_v34  ;;  %v6144_v32 = vadd.f32 %v5845_v9, %v23672_v55  ;;  %v16233_v37 = vld [vmem:[%s23249_s7 + $0x448] ss:$16 sps:$4 sm:$0xff]  }
 0x5a3   :  { %v5848_v11 = vpop.f32.mrf.mxu0  ;;  %v6220_v48 = vadd.f32 %v21014_v60, %v6143_v46  ;;  %v4753_v46 = vadd.f32 %v23678_v15, %v4010_v53  ;;  %v23679_v34 = vld [vmem:[#allocation48_spill] sm:$0xff] }
 0x5a4   :  { %v21200_v0 = vpack.c.bf16 %v6278_v44, %v6275_v16  ;;  %v6146_v25 = vadd.f32 %v5847_v12, %v23673_v18  ;;  %v5849_v30 = vadd.f32 %v5848_v11, %v21070_v10  ;;  %7160 = vmatpush1.bf16.msra.mxu1 %v16227_v22  ;;  %v16235_v10 = vld [vmem:[%s23249_s7 + $0x44c] ss:$16 sps:$4 sm:$0xff]   ;;  %v6221_v21 = vadd.f32 %v21025_v50, %v6144_v32  ;;  %v23682_v18 = vld [vmem:[#allocation79_spill] sm:$0xff] }
 0x5a5   :  { %v5852_v6 = vpop.f32.mrf.mxu0  ;;  %7161 = vmatprep.subr.bf16.mxu1 %v16232_v61  ;;  %v6280_v38 = vmax.f32 %v6220_v48, 0.0  ;;  %v23680_v12 = vld [vmem:[#allocation34_spill] sm:$0xff]  ;;  %v23681_v32 = vld [vmem:[#allocation40_spill] sm:$0xff] }
 0x5a6   :  { %v6223_v7 = vadd.f32 %v21014_v60, %v6146_v25  ;;  %v5853_v26 = vadd.f32 %v5852_v6, %v21089_v58  ;;  %6991 = vmatprep.mubr.bf16.mxu1 %v21200_v0  ;;  %v6147_v63 = vadd.f32 %v5849_v30, %v23676_v62  ;;  %v5739_v58 = vpop.f32.mrf.mxu1  ;;  %v6281_v22 = vmax.f32 %v6221_v21, 0.0  ;;  %v23683_v25 = vld [vmem:[#allocation71_spill] sm:$0xff] }
 0x5a7   :  { %v5854_v45 = vpop.f32.mrf.mxu0  ;;  %6992 = vmatmul.mubr.bf16.gmra.mxu1 %v21197_v28  ;;  %v4886_v61 = vadd.f32 %v23680_v12, %v4753_v46  ;;  %v4020_v30 = vadd.f32 %v23683_v25, %v23682_v18  ;;  %v23687_v46 = vld [vmem:[#allocation53_spill] sm:$0xff]  ;;  %v23690_v18 = vld [vmem:[#allocation83_spill] sm:$0xff] }
 0x5a8   :  { %v6283_v14 = vmax.f32 %v6223_v7, 0.0  ;;  %v6149_v33 = vadd.f32 %v5853_v26, %v23677_v47  ;;  %v5855_v23 = vadd.f32 %v5854_v45, %v21105_v56  ;;  %v6224_v8 = vadd.f32 %v21025_v50, %v6147_v63  ;;  %7162 = vmatpush2.bf16.msra.mxu1 %v16230_v42  ;;  %v16238_v56 = vld [vmem:[%s23249_s7 + $0x42c] ss:$16 sps:$4 sm:$0xff]  }
 0x5a9   :  { %v5856_v31 = vpop.f32.mrf.mxu0  ;;  %7163 = vmatprep.subr.bf16.mxu1 %v16235_v10 }
 0x5aa   :  { %v21228_v9 = vpack.c.bf16 %v6283_v14, %v6280_v38  ;;  %v6150_v1 = vadd.f32 %v5855_v23, %v23679_v34  ;;  %v5857_v29 = vadd.f32 %v5856_v31, %v21122_v35  ;;  %v6284_v16 = vmax.f32 %v6224_v8, 0.0  ;;  %v5741_v35 = vpop.f32.mrf.mxu1  ;;  %v23684_v14 = vld [vmem:[#allocation41_spill] sm:$0xff] }
 0x5ab   :  { %v5858_v44 = vpop.f32.mrf.mxu0  ;;  %v6226_v55 = vadd.f32 %v21014_v60, %v6149_v33  ;;  %v16242_v33 = vld [vmem:[%s23249_s7 + $0x408] ss:$16 sps:$4 sm:$0xff]  }
 0x5ac   :  { %v6152_v11 = vadd.f32 %v5857_v29, %v23681_v32  ;;  %v5859_v48 = vadd.f32 %v5858_v44, %v21135_v17  ;;  %v21241_v6 = vpack.c.bf16 %v6284_v16, %v6281_v22  ;;  %7164 = vmatpush2.bf16.msra.mxu1 %v16233_v37  ;;  %v6227_v54 = vadd.f32 %v21025_v50, %v6150_v1  ;;  %v16244_v17 = vld [vmem:[%s23249_s7 + $0x40c] ss:$16 sps:$4 sm:$0xff]   ;;  %v5743_v38 = vpop.f32.mrf.mxu1  ;;  %v23685_v23 = vld [vmem:[#allocation85_spill] sm:$0xff] }
 0x5ad   :  { %v5862_v42 = vpop.f32.mrf.mxu0  ;;  %7165 = vmatprep.subr.bf16.mxu1 %v16238_v56  ;;  %v6286_v21 = vmax.f32 %v6226_v55, 0.0  ;;  %v4763_v8 = vadd.f32 %v23685_v23, %v4020_v30  ;;  %v23688_v56 = vld [vmem:[#allocation39_spill] sm:$0xff]  ;;  %v23689_v55 = vld [vmem:[#allocation64_spill] sm:$0xff] }
 0x5ae   :  { %v6229_v53 = vadd.f32 %v21014_v60, %v6152_v11  ;;  %v6153_v7 = vadd.f32 %v5859_v48, %v4886_v61  ;;  %v5863_v26 = vadd.f32 %v5862_v42, %v21153_v19  ;;  %7001 = vmatprep.mubr.bf16.mxu1 %v21241_v6  ;;  %v6287_v31 = vmax.f32 %v6227_v54, 0.0  ;;  %v5745_v12 = vpop.f32.mrf.mxu1  ;;  %v16245_v48 = vld [vmem:[%s23249_s7 + $0x3e8] ss:$16 sps:$4 sm:$0xff]  }
 0x5af   :  { %v5864_v10 = vpop.f32.mrf.mxu0  ;;  %7002 = vmatmul.mubr.bf16.gmra.mxu1 %v21228_v9  ;;  %v4896_v22 = vadd.f32 %v23688_v56, %v4763_v8 }
 0x5b0   :  { %v6289_v62 = vmax.f32 %v6229_v53, 0.0  ;;  %v6230_v63 = vadd.f32 %v21025_v50, %v6153_v7  ;;  %v5865_v45 = vadd.f32 %v5864_v10, %v21169_v43  ;;  %v6155_v47 = vadd.f32 %v5863_v26, %v23684_v14  ;;  %7166 = vmatpush2.bf16.msra.mxu1 %v16236_v41  ;;  %v16247_v43 = vld [vmem:[%s23249_s7 + $0x3ec] ss:$16 sps:$4 sm:$0xff]  }
 0x5b1   :  { %v5866_v19 = vpop.f32.mrf.mxu0  ;;  %7167 = vmatprep.subr.bf16.mxu1 %v16244_v17 }
 0x5b2   :  { %v21261_v37 = vpack.c.bf16 %v6289_v62, %v6286_v21  ;;  %v6290_v15 = vmax.f32 %v6230_v63, 0.0  ;;  %v6156_v34 = vadd.f32 %v5865_v45, %v23687_v46  ;;  %v5867_v1 = vadd.f32 %v5866_v19, %v21188_v3  ;;  %v23691_v3 = vld [vmem:[#allocation76_spill] sm:$0xff]  ;;  %v23692_v45 = vld [vmem:[#allocation86_spill] sm:$0xff] }
 0x5b3   :  { %v5868_v29 = vpop.f32.mrf.mxu0  ;;  %v6232_v61 = vadd.f32 %v21014_v60, %v6155_v47  ;;  %v4030_v25 = vadd.f32 %v23691_v3, %v23690_v18  ;;  %v16248_v63 = vld [vmem:[%s23249_s7 + $0x3c8] ss:$16 sps:$4 sm:$0xff]  }
 0x5b4   :  { %23686 = vst [vmem:[#allocation49_spill] sm:$0xff] %v21261_v37  ;;  %v21269_v16 = vpack.c.bf16 %v6290_v15, %v6287_v31  ;;  %v5869_v44 = vadd.f32 %v5868_v29, %v21204_v27  ;;  %v6158_v32 = vadd.f32 %v5867_v1, %v23689_v55  ;;  %7168 = vmatpush2.bf16.msra.mxu1 %v16242_v33  ;;  %v16250_v27 = vld [vmem:[%s23249_s7 + $0x3cc] ss:$16 sps:$4 sm:$0xff]   ;;  %v16251_v29 = vld [vmem:[%s23249_s7 + $0x3a8] ss:$16 sps:$4 sm:$0xff]  }
 0x5b5   :  { %v5872_v11 = vpop.f32.mrf.mxu0  ;;  %7169 = vmatprep.subr.bf16.mxu1 %v16247_v43  ;;  %v6233_v41 = vadd.f32 %v21025_v50, %v6156_v34  ;;  %v6292_v10 = vmax.f32 %v6232_v61, 0.0  ;;  %v4773_v14 = vadd.f32 %v23692_v45, %v4030_v25  ;;  %v23694_v43 = vld [vmem:[#allocation66_spill] sm:$0xff]  ;;  %v23701_v45 = vld [vmem:[#allocation68_spill] sm:$0xff] }
 0x5b6   :  { %v6159_v30 = vadd.f32 %v5869_v44, %v4896_v22  ;;  %v5873_v42 = vadd.f32 %v5872_v11, %v5739_v58  ;;  %7011 = vmatprep.mubr.bf16.mxu1 %v21269_v16  ;;  %v6235_v54 = vadd.f32 %v21014_v60, %v6158_v32  ;;  %v21288_v58 = vpop.f32.mrf.mxu1  ;;  %v16254_v18 = vld [vmem:[%s23249_s7 + $0x388] ss:$16 sps:$4 sm:$0xff]  }
 0x5b7   :  { %v5874_v53 = vpop.f32.mrf.mxu0  ;;  %7012 = vmatmul.mubr.bf16.gmra.mxu1 %v21261_v37  ;;  %v4906_v31 = vadd.f32 %v20919_v51, %v4773_v14  ;;  %v16256_v51 = vld [vmem:[%s23249_s7 + $0x38c] ss:$16 sps:$4 sm:$0xff]  }
 0x5b8   :  { %v6236_v7 = vadd.f32 %v21025_v50, %v6159_v30  ;;  %v6161_v26 = vadd.f32 %v5873_v42, %v20908_v2  ;;  %v5875_v17 = vadd.f32 %v5874_v53, %v5741_v35  ;;  %v6295_v21 = vmax.f32 %v6235_v54, 0.0  ;;  %7170 = vmatpush2.bf16.msra.mxu1 %v16245_v48  ;;  %v16253_v2 = vld [vmem:[%s23249_s7 + $0x3ac] ss:$16 sps:$4 sm:$0xff]   ;;  %v6028_v1 = vpop.f32.mrf.mxu1  ;;  %v23698_v53 = vld [vmem:[#allocation29_spill] sm:$0xff] }
 0x5b9   :  { %v5876_v62 = vpop.f32.mrf.mxu0  ;;  %7171 = vmatprep.subr.bf16.mxu1 %v16250_v27  ;;  %v6293_v35 = vmax.f32 %v6233_v41, 0.0  ;;  %v23697_v54 = vld [vmem:[#allocation52_spill] sm:$0xff] }
 0x5ba   :  { %v6296_v47 = vmax.f32 %v6236_v7, 0.0  ;;  %v6162_v19 = vadd.f32 %v5875_v17, %v20912_v20  ;;  %v5877_v33 = vadd.f32 %v5876_v62, %v5743_v38  ;;  %v21298_v23 = vpack.c.bf16 %v6295_v21, %v6292_v10  ;;  %v15610_v48 = vpop.f32.mrf.mxu1  ;;  %v16260_v62 = vld [vmem:[%s23249_s7 + $0xe0] ss:$16 sps:$4 sm:$0xff]  }
 0x5bb   :  { %v5878_v8 = vpop.f32.mrf.mxu0  ;;  %v6238_v15 = vadd.f32 %v21014_v60, %v6161_v26  ;;  %v21328_v7 = vrot.slane %v23698_v53, %v23697_v54  ;;  %v16274_v53 = vld [vmem:[%s23249_s7 + $0x64] ss:$16 sps:$4 sm:$0xff]  }
 0x5bc   :  { %23693 = vst [vmem:[#allocation21_spill] sm:$0xff] %v21298_v23  ;;  %v6164_v46 = vadd.f32 %v5877_v33, %v23694_v43  ;;  %v5879_v34 = vadd.f32 %v5878_v8, %v5745_v12  ;;  %7172 = vmatpush2.bf16.msra.mxu1 %v16248_v63  ;;  %v21303_v38 = vpack.c.bf16 %v6296_v47, %v6293_v35  ;;  %v6031_v10 = vpop.f32.mrf.mxu1  ;;  %v23700_v63 = vld [vmem:[#allocation78_spill] sm:$0xff] }
 0x5bd   :  { %v15419_v20 = vpop.f32.mrf.mxu0  ;;  %v6239_v56 = vadd.f32 %v21025_v50, %v6162_v19  ;;  %7173 = vmatprep.subr.bf16.mxu1 %v16253_v2  ;;  %v6298_v61 = vmax.f32 %v6238_v15, 0.0  ;;  %v5059_v14 = vadd.f32 %v23701_v45, %v23700_v63  ;;  %v16263_v15 = vld [vmem:[%s23249_s7 + $0xc0] ss:$16 sps:$4 sm:$0xff]  }
 0x5be   :  { %23695 = vst [vmem:[#allocation31_spill] sm:$0xff] %v21303_v38  ;;  %v6241_v22 = vadd.f32 %v21014_v60, %v6164_v46  ;;  %v6165_v44 = vadd.f32 %v5879_v34, %v4906_v31  ;;  %7021 = vmatprep.mubr.bf16.mxu1 %v21303_v38  ;;  %v21342_v8 = vpop.f32.mrf.mxu1  ;;  %v16268_v34 = vld [vmem:[%s23249_s7 + $0xa4] ss:$16 sps:$4 sm:$0xff]  }
 0x5bf   :  { %v15420_v12 = vpop.f32.mrf.mxu0  ;;  %7022 = vmatmul.mubr.bf16.gmra.mxu1 %v21298_v23  ;;  %v6299_v3 = vmax.f32 %v6239_v56, 0.0  ;;  %v23702_v56 = vld [vmem:[#allocation62_spill] sm:$0xff] }
 0x5c0   :  { %v6301_v55 = vmax.f32 %v6241_v22, 0.0  ;;  %v6242_v32 = vadd.f32 %v21025_v50, %v6165_v44  ;;  %v15421_v11 = vadd.f32 %v15420_v12, %v15419_v20  ;;  %7174 = vmatpush2.bf16.msra.mxu1 %v16251_v29  ;;  %7177 = vmatprep.mubr.bf16.mxu1 %v21065_v24  ;;  %v16262_v50 = vld [vmem:[%s23249_s7 + $0xe4] ss:$16 sps:$4 sm:$0xff]  }
 0x5c1   :  { %v15422_v60 = vpop.f32.mrf.mxu0  ;;  %7175 = vmatprep.subr.bf16.mxu1 %v16256_v51  ;;  %v6044_v51 = vpop.f32.mrf.mxu1 }
 0x5c2   :  { %v21320_v25 = vpack.c.bf16 %v6301_v55, %v6298_v61  ;;  %v6029_v30 = vadd.f32 %v15421_v11, %v6028_v1  ;;  %v6302_v42 = vmax.f32 %v6242_v32, 0.0  ;;  %v16266_v61 = vld [vmem:[%s23249_s7 + $0xa0] ss:$16 sps:$4 sm:$0xff]   ;;  %v16271_v32 = vld [vmem:[%s23249_s7 + $0x84] ss:$16 sps:$4 sm:$0xff]  }
 0x5c3   :  { %v15423_v27 = vpop.f32.mrf.mxu0 }
 0x5c4   :  { %23696 = vst [vmem:[#allocation38_spill] sm:$0xff] %v21320_v25  ;;  %v6109_v41 = vadd.f32 %v6029_v30, %v20929_v52  ;;  %v15424_v26 = vadd.f32 %v15423_v27, %v15422_v60  ;;  %v21330_v17 = vpack.c.bf16 %v6302_v42, %v6299_v3  ;;  %7176 = vmatpush2.bf16.msra.mxu1 %v16254_v18  ;;  %v16265_v52 = vld [vmem:[%s23249_s7 + $0xc4] ss:$16 sps:$4 sm:$0xff]   ;;  %v23703_v18 = vld [vmem:[#allocation72_spill] sm:$0xff] }
 0x5c5   :  { %v15425_v21 = vpop.f32.mrf.mxu0  ;;  %7774 = vmatprep.subr.bf16.mxu1 %v16262_v50  ;;  %v15614_v50 = vpop.f32.mrf.mxu1 }
 0x5c6   :  { %23699 = vst [vmem:[#allocation63_spill] sm:$0xff] %v21330_v17  ;;  %v6032_v47 = vadd.f32 %v15424_v26, %v6031_v10  ;;  %v6186_v33 = vadd.f32 %v21328_v7, %v6109_v41 }
 0x5c7   :  { %v15426_v19 = vpop.f32.mrf.mxu0  ;;  %7178 = vmatmul.mubr.bf16.vlgmr.msra.gmra.mxu1 %v21060_v49 }
 0x5c8   :  { %v6112_v2 = vadd.f32 %v6032_v47, %v5059_v14  ;;  %v15427_v35 = vadd.f32 %v15426_v19, %v15425_v21  ;;  %7187 = vmatprep.mubr.bf16.mxu1 %v21098_v57  ;;  %7775 = vmatpush1.bf16.msra.mxu1 %v16260_v62  ;;  %v6246_v20 = vmax.f32 %v6186_v33, 0.0  ;;  %v23704_v62 = vld [vmem:[#allocation70_spill] sm:$0xff]  ;;  %v6047_v14 = vpop.f32.mrf.mxu1  ;;  %v23705_v19 = vld [vmem:[#allocation80_spill] sm:$0xff]  ;;  %v23706_v33 = vld [vmem:[#allocation51_spill] sm:$0xff] }
 0x5c9   :  { %v15428_v31 = vpop.f32.mrf.mxu0  ;;  %7776 = vmatprep.subr.bf16.mxu1 %v16265_v52  ;;  %v16272_v52 = vld [vmem:[%s23249_s7 + $0x60] ss:$16 sps:$4 sm:$0xff]  }
 0x5ca   :  { %v6189_v43 = vadd.f32 %v21328_v7, %v6112_v2  ;;  %v6037_v46 = vadd.f32 %v21288_v58, %v15427_v35  ;;  %v5075_v2 = vadd.f32 %v23706_v33, %v23705_v19  ;;  %v16284_v33 = vld [vmem:[%s23249_s7] ss:$16 sps:$4 sm:$0xff]  }
 0x5cb   :  { %v15429_v1 = vpop.f32.mrf.mxu0 }
 0x5cc   :  { %v6249_v29 = vmax.f32 %v6189_v43, 0.0  ;;  %v6115_v22 = vadd.f32 %v6037_v46, %v23702_v56  ;;  %v15430_v44 = vadd.f32 %v15429_v1, %v15428_v31  ;;  %7777 = vmatpush1.bf16.msra.mxu1 %v16263_v15  ;;  %v16275_v15 = vld [vmem:[%s23249_s7 + $0x4e8] ss:$16 sps:$4 sm:$0xff]   ;;  %v16280_v43 = vld [vmem:[%s23249_s7 + $0x44] ss:$16 sps:$4 sm:$0xff]   ;;  %v21394_v56 = vpop.f32.mrf.mxu1 }
 0x5cd   :  { %v15431_v12 = vpop.f32.mrf.mxu0  ;;  %7778 = vmatprep.subr.bf16.mxu1 %v16268_v34  ;;  %v16292_v34 = vld [vmem:[%s23249_s7 + $0x4cc] ss:$16 sps:$4 sm:$0xff]  }
 0x5ce   :  { %v21357_v55 = vpack.c.bf16 %v6249_v29, %v6246_v20  ;;  %v6040_v58 = vadd.f32 %v15610_v48, %v15430_v44  ;;  %v6192_v60 = vadd.f32 %v21328_v7, %v6115_v22  ;;  %v16269_v48 = vld [vmem:[%s23249_s7 + $0x80] ss:$16 sps:$4 sm:$0xff]  }
 0x5cf   :  { %v15432_v11 = vpop.f32.mrf.mxu0  ;;  %7188 = vmatmul.mubr.bf16.gmra.mxu1 %v21095_v40  ;;  %v16278_v44 = vld [vmem:[%s23249_s7 + $0x40] ss:$16 sps:$4 sm:$0xff]  }
 0x5d0   :  { %v6118_v3 = vadd.f32 %v6040_v58, %v23703_v18  ;;  %v15433_v30 = vadd.f32 %v15432_v11, %v15431_v12  ;;  %7197 = vmatprep.mubr.bf16.mxu1 %v21137_v36  ;;  %7779 = vmatpush1.bf16.msra.mxu1 %v16266_v61  ;;  %v6252_v10 = vmax.f32 %v6192_v60, 0.0  ;;  %v16283_v61 = vld [vmem:[%s23249_s7 + $0x24] ss:$16 sps:$4 sm:$0xff]   ;;  %v16290_v58 = vld [vmem:[%s23249_s7 + $0x4c8] ss:$16 sps:$4 sm:$0xff]   ;;  %v23707_v11 = vmov 0  }
 0x5d1   :  { %v15434_v42 = vpop.f32.mrf.mxu0  ;;  %7780 = vmatprep.subr.bf16.mxu1 %v16271_v32  ;;  %v16307_v60 = vld [vmem:[%s23249_s7 + $0x4ac] ss:$16 sps:$4 sm:$0xff]  }
 0x5d2   :  { %v6195_v27 = vadd.f32 %v21328_v7, %v6118_v3  ;;  %v6045_v41 = vadd.f32 %v15433_v30, %v6044_v51  ;;  %v23708_v3 = vld [vmem:[#allocation74_spill] sm:$0xff] }
 0x5d3   :  { %v15435_v26 = vpop.f32.mrf.mxu0 }
 0x5d4   :  { %v6255_v21 = vmax.f32 %v6195_v27, 0.0  ;;  %v6121_v63 = vadd.f32 %v6045_v41, %v23704_v62  ;;  %v15436_v45 = vadd.f32 %v15435_v26, %v15434_v42  ;;  %7781 = vmatpush1.bf16.msra.mxu1 %v16269_v48  ;;  %v6060_v48 = vpop.f32.mrf.mxu1  ;;  %v16281_v41 = vld [vmem:[%s23249_s7 + $0x20] ss:$16 sps:$4 sm:$0xff]   ;;  %v16305_v62 = vld [vmem:[%s23249_s7 + $0x4a8] ss:$16 sps:$4 sm:$0xff]  }
 0x5d5   :  { %v15437_v47 = vpop.f32.mrf.mxu0  ;;  %7782 = vmatprep.subr.bf16.mxu1 %v16274_v53 }
 0x5d6   :  { %v21379_v35 = vpack.c.bf16 %v6255_v21, %v6252_v10  ;;  %v6048_v31 = vadd.f32 %v15436_v45, %v6047_v14  ;;  %v6198_v1 = vadd.f32 %v21328_v7, %v6121_v63  ;;  %v16286_v10 = vld [vmem:[%s23249_s7 + $0x4] ss:$16 sps:$4 sm:$0xff]   ;;  %v23709_v45 = vld [vmem:[#allocation58_spill] sm:$0xff] }
 0x5d7   :  { %v15438_v46 = vpop.f32.mrf.mxu0  ;;  %7198 = vmatmul.mubr.bf16.gmra.mxu1 %v21128_v59 }
 0x5d8   :  { %v6124_v20 = vadd.f32 %v6048_v31, %v5075_v2  ;;  %v15439_v29 = vadd.f32 %v15438_v46, %v15437_v47  ;;  %14398 = vmatmul.mubr.msk.bf16.vlgmr.msra.gmra.mxu0 %vm314_vm0, %v21379_v35  ;;  %7207 = vmatprep.mubr.bf16.mxu1 %v21166_v4  ;;  %v6258_v18 = vmax.f32 %v6198_v1, 0.0  ;;  %v16320_v46 = vld [vmem:[%s23249_s7 + $0x488] ss:$16 sps:$4 sm:$0xff]  }
 0x5d9   :  { %7783 = vmatpush1.bf16.msra.mxu1 %v16272_v52  ;;  %v15440_v22 = vpop.f32.mrf.mxu0  ;;  %7267 = vmatpush1.bf16.msra.mxu0 %v16275_v15  ;;  %v15618_v52 = vpop.f32.mrf.mxu1  ;;  %v16289_v15 = vld [vmem:[%s23249_s7 + $0x1e4] ss:$16 sps:$4 sm:$0xff]  }
 0x5da   :  { %v6201_v51 = vadd.f32 %v21328_v7, %v6124_v20  ;;  %v6053_v12 = vadd.f32 %v21342_v8, %v15439_v29  ;;  %7784 = vmatprep.subr.bf16.mxu1 %v16280_v43  ;;  %7074 = vmatprep.mubr.bf16.mxu0 %v23707_v11  ;;  %v23710_v20 = vld [vmem:[#allocation59_spill] sm:$0xff] }
 0x5db   :  { %v15441_v32 = vpop.f32.mrf.mxu0  ;;  %7268 = vmatprep.subr.bf16.mxu0 %v16292_v34 }
 0x5dc   :  { %v6261_v8 = vmax.f32 %v6201_v51, 0.0  ;;  %v6127_v30 = vadd.f32 %v6053_v12, %v23708_v3  ;;  %v15442_v42 = vadd.f32 %v15441_v32, %v15440_v22  ;;  %v16287_v12 = vld [vmem:[%s23249_s7 + $0x1e0] ss:$16 sps:$4 sm:$0xff]  }
 0x5dd   :  { %7785 = vmatpush1.bf16.msra.mxu1 %v16278_v44  ;;  %v15443_v27 = vpop.f32.mrf.mxu0  ;;  %7269 = vmatpush1.bf16.msra.mxu0 %v16290_v58  ;;  %v6063_v44 = vpop.f32.mrf.mxu1  ;;  %v23712_v58 = vld [vmem:[#allocation61_spill] sm:$0xff] }
 0x5de   :  { %v21416_v53 = vpack.c.bf16 %v6261_v8, %v6258_v18  ;;  %v6056_v26 = vadd.f32 %v15614_v50, %v15442_v42  ;;  %7786 = vmatprep.subr.bf16.mxu1 %v16283_v61  ;;  %7270 = vmatprep.subr.bf16.mxu0 %v16307_v60  ;;  %v6204_v63 = vadd.f32 %v21328_v7, %v6127_v30  ;;  %v16322_v50 = vld [vmem:[%s23249_s7 + $0x48c] ss:$16 sps:$4 sm:$0xff]   ;;  %v23711_v61 = vld [vmem:[#allocation81_spill] sm:$0xff] }
 0x5df   :  { %v15444_v21 = vpop.f32.mrf.mxu0  ;;  %7208 = vmatmul.mubr.bf16.gmra.mxu1 %v21159_v39  ;;  %v5091_v32 = vadd.f32 %v23712_v58, %v23711_v61  ;;  %v16295_v8 = vld [vmem:[%s23249_s7 + $0x1c4] ss:$16 sps:$4 sm:$0xff]  }
 0x5e0   :  { %v6130_v14 = vadd.f32 %v6056_v26, %v23709_v45  ;;  %v15445_v47 = vadd.f32 %v15444_v21, %v15443_v27  ;;  %14399 = vmatmul.mubr.msk.bf16.gmra.mxu0 %vm314_vm0, %v21416_v53  ;;  %7217 = vmatprep.mubr.bf16.mxu1 %v21200_v0  ;;  %v6264_v34 = vmax.f32 %v6204_v63, 0.0  ;;  %v16337_v30 = vld [vmem:[%s23249_s7 + $0x264] ss:$16 sps:$4 sm:$0xff]  }
 0x5e1   :  { %7787 = vmatpush1.bf16.msra.mxu1 %v16281_v41  ;;  %v15446_v19 = vpop.f32.mrf.mxu0  ;;  %7084 = vmatprep.mubr.bf16.mxu0 %v23707_v11  ;;  %v21462_v41 = vpop.f32.mrf.mxu1  ;;  %v16298_v63 = vld [vmem:[%s23249_s7 + $0x1a4] ss:$16 sps:$4 sm:$0xff]  }
 0x5e2   :  { %v6207_v2 = vadd.f32 %v21328_v7, %v6130_v14  ;;  %v6061_v31 = vadd.f32 %v15445_v47, %v6060_v48  ;;  %7788 = vmatprep.subr.bf16.mxu1 %v16286_v10  ;;  %7271 = vmatpush1.bf16.msra.mxu0 %v16305_v62  ;;  %v16293_v10 = vld [vmem:[%s23249_s7 + $0x1c0] ss:$16 sps:$4 sm:$0xff]   ;;  %v16304_v58 = vld [vmem:[%s23249_s7 + $0x164] ss:$16 sps:$4 sm:$0xff]  }
 0x5e3   :  { %v15447_v43 = vpop.f32.mrf.mxu0  ;;  %7272 = vmatprep.subr.bf16.mxu0 %v16322_v50  ;;  %v23713_v50 = vld [vmem:[#allocation60_spill] sm:$0xff] }
 0x5e4   :  { %v6267_v1 = vmax.f32 %v6207_v2, 0.0  ;;  %v6133_v29 = vadd.f32 %v6061_v31, %v23710_v20  ;;  %v15448_v22 = vadd.f32 %v15447_v43, %v15446_v19  ;;  %v6076_v2 = vpop.f32.mrf.mxu1  ;;  %v23714_v20 = vld [vmem:[#allocation23_spill] sm:$0xff] }
 0x5e5   :  { %7789 = vmatpush1.bf16.msra.mxu1 %v16284_v33  ;;  %v15449_v51 = vpop.f32.mrf.mxu0 }
 0x5e6   :  { %v21450_v60 = vpack.c.bf16 %v6267_v1, %v6264_v34  ;;  %v6064_v18 = vadd.f32 %v15448_v22, %v6063_v44  ;;  %7790 = vmatprep.subr.bf16.mxu1 %v16289_v15  ;;  %7273 = vmatpush1.bf16.msra.mxu0 %v16320_v46  ;;  %v6210_v42 = vadd.f32 %v21328_v7, %v6133_v29  ;;  %v16301_v46 = vld [vmem:[%s23249_s7 + $0x184] ss:$16 sps:$4 sm:$0xff]   ;;  %v15622_v44 = vpop.f32.mrf.mxu1 }
 0x5e7   :  { %v15450_v3 = vpop.f32.mrf.mxu0  ;;  %7218 = vmatmul.mubr.bf16.gmra.mxu1 %v21197_v28  ;;  %7895 = vmatprep.subr.bf16.mxu0 %v16337_v30 }
 0x5e8   :  { %v6136_v48 = vadd.f32 %v6064_v18, %v5091_v32  ;;  %v15451_v27 = vadd.f32 %v15450_v3, %v15449_v51  ;;  %14400 = vmatmul.mubr.msk.bf16.gmra.mxu0 %vm314_vm0, %v21450_v60  ;;  %7227 = vmatprep.mubr.bf16.mxu1 %v21241_v6  ;;  %v6270_v14 = vmax.f32 %v6210_v42, 0.0  ;;  %v16299_v51 = vld [vmem:[%s23249_s7 + $0x180] ss:$16 sps:$4 sm:$0xff]  }
 0x5e9   :  { %7791 = vmatpush2.bf16.msra.mxu1 %v16287_v12  ;;  %v15452_v26 = vpop.f32.mrf.mxu0  ;;  %7094 = vmatprep.mubr.bf16.mxu0 %v23707_v11  ;;  %v23715_v3 = vld [vmem:[#allocation57_spill] sm:$0xff] }
 0x5ea   :  { %v6213_v21 = vadd.f32 %v21328_v7, %v6136_v48  ;;  %v6069_v62 = vadd.f32 %v21394_v56, %v15451_v27  ;;  %7792 = vmatprep.subr.bf16.mxu1 %v16295_v8  ;;  %v16296_v56 = vld [vmem:[%s23249_s7 + $0x1a0] ss:$16 sps:$4 sm:$0xff]   ;;  %v6079_v48 = vpop.f32.mrf.mxu1 }
 0x5eb   :  { %v15453_v45 = vpop.f32.mrf.mxu0 }
 0x5ec   :  { %v6273_v47 = vmax.f32 %v6213_v21, 0.0  ;;  %v6139_v19 = vadd.f32 %v6069_v62, %v23713_v50  ;;  %v15454_v33 = vadd.f32 %v15453_v45, %v15452_v26  ;;  %v16302_v26 = vld [vmem:[%s23249_s7 + $0x160] ss:$16 sps:$4 sm:$0xff]  }
 0x5ed   :  { %7793 = vmatpush2.bf16.msra.mxu1 %v16293_v10  ;;  %v15455_v31 = vpop.f32.mrf.mxu0  ;;  %v23716_v10 = vld [vmem:[#allocation82_spill] sm:$0xff] }
 0x5ee   :  { %v21478_v15 = vpack.c.bf16 %v6273_v47, %v6270_v14  ;;  %v6072_v43 = vadd.f32 %v15618_v52, %v15454_v33  ;;  %7794 = vmatprep.subr.bf16.mxu1 %v16298_v63  ;;  %v6216_v1 = vadd.f32 %v21328_v7, %v6139_v19  ;;  %v23717_v21 = vld [vmem:[#allocation26_spill] sm:$0xff]  ;;  %v16310_v14 = vld [vmem:[%s23249_s7 + $0x144] ss:$16 sps:$4 sm:$0xff]  }
 0x5ef   :  { %v15456_v34 = vpop.f32.mrf.mxu0  ;;  %7228 = vmatmul.mubr.bf16.gmra.mxu1 %v21228_v9  ;;  %v5107_v62 = vadd.f32 %v23717_v21, %v23716_v10 }
 0x5f0   :  { %v6142_v29 = vadd.f32 %v6072_v43, %v23714_v20  ;;  %v15457_v22 = vadd.f32 %v15456_v34, %v15455_v31  ;;  %14401 = vmatmul.mubr.msk.bf16.gmra.mxu0 %vm314_vm0, %v21478_v15  ;;  %7237 = vmatprep.mubr.bf16.mxu1 %v21269_v16  ;;  %v6276_v18 = vmax.f32 %v6216_v1, 0.0  ;;  %v16313_v34 = vld [vmem:[%s23249_s7 + $0x124] ss:$16 sps:$4 sm:$0xff]  }
 0x5f1   :  { %7795 = vmatpush2.bf16.msra.mxu1 %v16296_v56  ;;  %v15458_v52 = vpop.f32.mrf.mxu0  ;;  %7104 = vmatprep.mubr.bf16.mxu0 %v23707_v11  ;;  %v16308_v56 = vld [vmem:[%s23249_s7 + $0x140] ss:$16 sps:$4 sm:$0xff]  }
 0x5f2   :  { %v6219_v12 = vadd.f32 %v21328_v7, %v6142_v29  ;;  %v6077_v61 = vadd.f32 %v15457_v22, %v6076_v2  ;;  %7796 = vmatprep.subr.bf16.mxu1 %v16301_v46  ;;  %v21512_v2 = vpop.f32.mrf.mxu1  ;;  %v23719_v22 = vld [vmem:[#allocation25_spill] sm:$0xff] }
 0x5f3   :  { %v15459_v32 = vpop.f32.mrf.mxu0 }
 0x5f4   :  { %v6279_v8 = vmax.f32 %v6219_v12, 0.0  ;;  %v6145_v30 = vadd.f32 %v6077_v61, %v23715_v3  ;;  %v15460_v42 = vadd.f32 %v15459_v32, %v15458_v52  ;;  %v6092_v12 = vpop.f32.mrf.mxu1 }
 0x5f5   :  { %7797 = vmatpush2.bf16.msra.mxu1 %v16299_v51  ;;  %v15461_v27 = vpop.f32.mrf.mxu0 }
 0x5f6   :  { %v21503_v63 = vpack.c.bf16 %v6279_v8, %v6276_v18  ;;  %v6080_v45 = vadd.f32 %v15460_v42, %v6079_v48  ;;  %7798 = vmatprep.subr.bf16.mxu1 %v16304_v58  ;;  %v6222_v50 = vadd.f32 %v21328_v7, %v6145_v30  ;;  %v16316_v18 = vld [vmem:[%s23249_s7 + $0x104] ss:$16 sps:$4 sm:$0xff]   ;;  %v23720_v30 = vld [vmem:[#allocation28_spill] sm:$0xff] }
 0x5f7   :  { %v15462_v47 = vpop.f32.mrf.mxu0  ;;  %7238 = vmatmul.mubr.bf16.gmra.mxu1 %v21261_v37 }
 0x5f8   :  { %23718 = vst [vmem:[#allocation67_spill] sm:$0xff] %v21503_v63  ;;  %v6148_v19 = vadd.f32 %v6080_v45, %v5107_v62  ;;  %v15463_v33 = vadd.f32 %v15462_v47, %v15461_v27  ;;  %14402 = vmatmul.mubr.msk.bf16.gmra.mxu0 %vm314_vm0, %v21503_v63  ;;  %7247 = vmatprep.mubr.bf16.mxu1 %v21303_v38  ;;  %v6282_v20 = vmax.f32 %v6222_v50, 0.0  ;;  %v15626_v27 = vpop.f32.mrf.mxu1  ;;  %v16319_v62 = vld [vmem:[%s23249_s7 + $0xec] ss:$16 sps:$4 sm:$0xff]   ;;  %v23721_v50 = vld [vmem:[#allocation55_spill] sm:$0xff] }
 0x5f9   :  { %7799 = vmatpush2.bf16.msra.mxu1 %v16302_v26  ;;  %v15464_v31 = vpop.f32.mrf.mxu0  ;;  %7114 = vmatprep.mubr.bf16.mxu0 %v23707_v11  ;;  %v16314_v26 = vld [vmem:[%s23249_s7 + $0x100] ss:$16 sps:$4 sm:$0xff]  }
 0x5fa   :  { %v6225_v43 = vadd.f32 %v21328_v7, %v6148_v19  ;;  %v6085_v46 = vadd.f32 %v21462_v41, %v15463_v33  ;;  %7800 = vmatprep.subr.bf16.mxu1 %v16310_v14  ;;  %v16311_v41 = vld [vmem:[%s23249_s7 + $0x120] ss:$16 sps:$4 sm:$0xff]  }
 0x5fb   :  { %v15465_v1 = vpop.f32.mrf.mxu0 }
 0x5fc   :  { %v6285_v29 = vmax.f32 %v6225_v43, 0.0  ;;  %v6151_v52 = vadd.f32 %v6085_v46, %v23719_v22  ;;  %v15466_v51 = vadd.f32 %v15465_v1, %v15464_v31  ;;  %v6095_v31 = vpop.f32.mrf.mxu1  ;;  %v16317_v43 = vld [vmem:[%s23249_s7 + $0xe8] ss:$16 sps:$4 sm:$0xff]   ;;  %v16325_v22 = vld [vmem:[%s23249_s7 + $0xcc] ss:$16 sps:$4 sm:$0xff]  }
 0x5fd   :  { %7801 = vmatpush2.bf16.msra.mxu1 %v16308_v56  ;;  %v15467_v61 = vpop.f32.mrf.mxu0  ;;  %v23722_v46 = vld [vmem:[#allocation30_spill] sm:$0xff] }
 0x5fe   :  { %v21528_v58 = vpack.c.bf16 %v6285_v29, %v6282_v20  ;;  %v6088_v32 = vadd.f32 %v15622_v44, %v15466_v51  ;;  %7802 = vmatprep.subr.bf16.mxu1 %v16313_v34  ;;  %v6228_v3 = vadd.f32 %v21328_v7, %v6151_v52  ;;  %v23723_v34 = vld [vmem:[#allocation24_spill] sm:$0xff] }
 0x5ff   :  { %v15468_v8 = vpop.f32.mrf.mxu0  ;;  %7248 = vmatmul.mubr.bf16.gmra.mxu1 %v21298_v23  ;;  %v5123_v1 = vadd.f32 %v23723_v34, %v23722_v46  ;;  %v16340_v34 = vld [vmem:[%s23249_s7 + $0x4c] ss:$16 sps:$4 sm:$0xff]  }
 0x600   :  { %v6154_v42 = vadd.f32 %v6088_v32, %v23720_v30  ;;  %v15469_v48 = vadd.f32 %v15468_v8, %v15467_v61  ;;  %14403 = vmatmul.mubr.msk.bf16.gmra.mxu0 %vm314_vm0, %v21528_v58  ;;  %7806 = vmatprep.mubr.bf16.mxu1 %v21049_v13  ;;  %v6288_v14 = vmax.f32 %v6228_v3, 0.0  ;;  %v16323_v32 = vld [vmem:[%s23249_s7 + $0xc8] ss:$16 sps:$4 sm:$0xff]   ;;  %v16328_v3 = vld [vmem:[%s23249_s7 + $0xac] ss:$16 sps:$4 sm:$0xff]  }
 0x601   :  { %7803 = vmatpush2.bf16.msra.mxu1 %v16311_v41  ;;  %v15470_v44 = vpop.f32.mrf.mxu0  ;;  %7124 = vmatprep.mubr.bf16.mxu0 %v23707_v11 }
 0x602   :  { %v6231_v10 = vadd.f32 %v21328_v7, %v6154_v42  ;;  %v6093_v21 = vadd.f32 %v15469_v48, %v6092_v12  ;;  %7804 = vmatprep.subr.bf16.mxu1 %v16316_v18 }
 0x603   :  { %v15471_v45 = vpop.f32.mrf.mxu0 }
 0x604   :  { %v6291_v47 = vmax.f32 %v6231_v10, 0.0  ;;  %v6157_v19 = vadd.f32 %v6093_v21, %v23721_v50  ;;  %v15472_v33 = vadd.f32 %v15471_v45, %v15470_v44  ;;  %v23724_v44 = vld [vmem:[#allocation27_spill] sm:$0xff]  ;;  %v16331_v45 = vld [vmem:[%s23249_s7 + $0x8c] ss:$16 sps:$4 sm:$0xff]  }
 0x605   :  { %7805 = vmatpush2.bf16.msra.mxu1 %v16314_v26  ;;  %v15473_v56 = vpop.f32.mrf.mxu0  ;;  %v16326_v21 = vld [vmem:[%s23249_s7 + $0xa8] ss:$16 sps:$4 sm:$0xff]  }
 0x606   :  { %v21553_v20 = vpack.c.bf16 %v6291_v47, %v6288_v14  ;;  %v6096_v29 = vadd.f32 %v15472_v33, %v6095_v31  ;;  %8000 = vmatprep.subr.bf16.mxu1 %v16319_v62  ;;  %v6234_v51 = vadd.f32 %v21328_v7, %v6157_v19  ;;  %v23726_v47 = vld [vmem:[#allocation44_spill] sm:$0xff] }
 0x607   :  { %v15474_v52 = vpop.f32.mrf.mxu0  ;;  %v16334_v33 = vld [vmem:[%s23249_s7 + $0x6c] ss:$16 sps:$4 sm:$0xff]  }
 0x608   :  { %v6160_v12 = vadd.f32 %v6096_v29, %v5123_v1  ;;  %v15475_v61 = vadd.f32 %v15474_v52, %v15473_v56  ;;  %7807 = vmatmul.mubr.bf16.vlgmr.msra.gmra.mxu1 %v21040_v5  ;;  %14404 = vmatmul.mubr.msk.bf16.gmra.mxu0 %vm314_vm0, %v21553_v20  ;;  %v6294_v42 = vmax.f32 %v6234_v51, 0.0  ;;  %v16352_v1 = vld [vmem:[%s23249_s7 + $0x244] ss:$16 sps:$4 sm:$0xff]   ;;  %v16338_v29 = vld [vmem:[%s23249_s7 + $0x48] ss:$16 sps:$4 sm:$0xff]  }
 0x609   :  { %7816 = vmatprep.mubr.bf16.mxu1 %v21065_v24  ;;  %8001 = vmatpush1.bf16.msra.mxu1 %v16317_v43  ;;  %v15476_v41 = vpop.f32.mrf.mxu0  ;;  %v16332_v43 = vld [vmem:[%s23249_s7 + $0x68] ss:$16 sps:$4 sm:$0xff]   ;;  %v16350_v52 = vld [vmem:[%s23249_s7 + $0x240] ss:$16 sps:$4 sm:$0xff]   ;;  %v16367_v51 = vld [vmem:[%s23249_s7 + $0x224] ss:$16 sps:$4 sm:$0xff]  }
 0x60a   :  { %v6237_v18 = vadd.f32 %v21328_v7, %v6160_v12  ;;  %v6101_v8 = vadd.f32 %v21512_v2, %v15475_v61  ;;  %8002 = vmatprep.subr.bf16.mxu1 %v16325_v22  ;;  %7134 = vmatprep.mubr.bf16.mxu0 %v23707_v11  ;;  %v16343_v22 = vld [vmem:[%s23249_s7 + $0x2c] ss:$16 sps:$4 sm:$0xff]   ;;  %v16341_v12 = vld [vmem:[%s23249_s7 + $0x28] ss:$16 sps:$4 sm:$0xff]  }
 0x60b   :  { %v15477_v30 = vpop.f32.mrf.mxu0  ;;  %v16346_v61 = vld [vmem:[%s23249_s7 + $0xc] ss:$16 sps:$4 sm:$0xff]  }
 0x60c   :  { %v6297_v48 = vmax.f32 %v6237_v18, 0.0  ;;  %v6163_v26 = vadd.f32 %v6101_v8, %v23724_v44  ;;  %v15478_v10 = vadd.f32 %v15477_v30, %v15476_v41  ;;  %v16365_v41 = vld [vmem:[%s23249_s7 + $0x220] ss:$16 sps:$4 sm:$0xff]   ;;  %v16344_v18 = vld [vmem:[%s23249_s7 + $0x8] ss:$16 sps:$4 sm:$0xff]  }
 0x60d   :  { %8003 = vmatpush1.bf16.msra.mxu1 %v16323_v32  ;;  %v16382_v32 = vld [vmem:[%s23249_s7 + $0x204] ss:$16 sps:$4 sm:$0xff]   ;;  %v16349_v8 = vld [vmem:[%s23249_s7 + $0x1ec] ss:$16 sps:$4 sm:$0xff]   ;;  %v16347_v30 = vld [vmem:[%s23249_s7 + $0x1e8] ss:$16 sps:$4 sm:$0xff]  }
 0x60e   :  { %v21576_v62 = vpack.c.bf16 %v6297_v48, %v6294_v42  ;;  %v6104_v2 = vadd.f32 %v15626_v27, %v15478_v10  ;;  %8004 = vmatprep.subr.bf16.mxu1 %v16328_v3  ;;  %v6240_v14 = vadd.f32 %v21328_v7, %v6163_v26  ;;  %v16329_v27 = vld [vmem:[%s23249_s7 + $0x88] ss:$16 sps:$4 sm:$0xff]   ;;  %v16380_v3 = vld [vmem:[%s23249_s7 + $0x200] ss:$16 sps:$4 sm:$0xff]   ;;  %v16355_v42 = vld [vmem:[%s23249_s7 + $0x1cc] ss:$16 sps:$4 sm:$0xff]  }
 0x60f   :  { %v16397_v48 = vld [vmem:[%s23249_s7 + $0x26c] ss:$16 sps:$4 sm:$0xff]   ;;  %v16353_v44 = vld [vmem:[%s23249_s7 + $0x1c8] ss:$16 sps:$4 sm:$0xff]  }
 0x610   :  { %23725 = vst [vmem:[#allocation35_spill] sm:$0xff] %v21576_v62  ;;  %v6166_v50 = vadd.f32 %v6104_v2, %v23726_v47  ;;  %7817 = vmatmul.mubr.bf16.gmra.mxu1 %v21060_v49  ;;  %14405 = vmatmul.mubr.msk.bf16.gmra.mxu0 %vm314_vm0, %v21576_v62  ;;  %v6300_v31 = vmax.f32 %v6240_v14, 0.0  ;;  %v16358_v26 = vld [vmem:[%s23249_s7 + $0x1ac] ss:$16 sps:$4 sm:$0xff]   ;;  %v16356_v10 = vld [vmem:[%s23249_s7 + $0x1a8] ss:$16 sps:$4 sm:$0xff]  }
 0x611   :  { %7826 = vmatprep.mubr.bf16.mxu1 %v21098_v57  ;;  %8005 = vmatpush1.bf16.msra.mxu1 %v16326_v21  ;;  %v16361_v21 = vld [vmem:[%s23249_s7 + $0x18c] ss:$16 sps:$4 sm:$0xff]   ;;  %v16359_v2 = vld [vmem:[%s23249_s7 + $0x188] ss:$16 sps:$4 sm:$0xff]  }
 0x612   :  { %v6243_v19 = vadd.f32 %v21328_v7, %v6166_v50  ;;  %8006 = vmatprep.subr.bf16.mxu1 %v16331_v45  ;;  %7290 = vmatprep.mubr.bf16.mxu0 %v23707_v11  ;;  %v16335_v7 = vld [vmem:[%s23249_s7 + $0x260] ss:$16 sps:$4 sm:$0xff]   ;;  %v16364_v45 = vld [vmem:[%s23249_s7 + $0x16c] ss:$16 sps:$4 sm:$0xff]   ;;  %v16362_v14 = vld [vmem:[%s23249_s7 + $0x168] ss:$16 sps:$4 sm:$0xff]  }
 0x613   :  { %v16370_v47 = vld [vmem:[%s23249_s7 + $0x14c] ss:$16 sps:$4 sm:$0xff]   ;;  %v16368_v50 = vld [vmem:[%s23249_s7 + $0x148] ss:$16 sps:$4 sm:$0xff]  }
 0x614   :  { %v6303_v56 = vmax.f32 %v6243_v19, 0.0  ;;  %v16371_v19 = vld [vmem:[%s23249_s7 + $0x128] ss:$16 sps:$4 sm:$0xff]  }
 0x615   :  { %8007 = vmatpush1.bf16.msra.mxu1 %v16329_v27  ;;  %v16373_v27 = vld [vmem:[%s23249_s7 + $0x12c] ss:$16 sps:$4 sm:$0xff]  }
 0x616   :  { %v21598_v46 = vpack.c.bf16 %v6303_v56, %v6300_v31  ;;  %8008 = vmatprep.subr.bf16.mxu1 %v16334_v33  ;;  %v16376_v33 = vld [vmem:[%s23249_s7 + $0x10c] ss:$16 sps:$4 sm:$0xff]   ;;  %v16374_v31 = vld [vmem:[%s23249_s7 + $0x108] ss:$16 sps:$4 sm:$0xff]   ;;  %v16379_v56 = vld [vmem:[%s23249_s7 + $0x5e4] ss:$16 sps:$4 sm:$0xff]  }
 0x618   :  { %23727 = vst [vmem:[#allocation45_spill] sm:$0xff] %v21598_v46  ;;  %7827 = vmatmul.mubr.bf16.gmra.mxu1 %v21095_v40  ;;  %14406 = vmatmul.mubr.msk.bf16.vlgmr.msra.gmra.mxu0 %vm314_vm0, %v21379_v35 }
 0x619   :  { %7836 = vmatprep.mubr.bf16.mxu1 %v21137_v36  ;;  %8009 = vmatpush1.bf16.msra.mxu1 %v16332_v43  ;;  %v16377_v43 = vld [vmem:[%s23249_s7 + $0x5e0] ss:$16 sps:$4 sm:$0xff]  }
 0x61a   :  { %7896 = vmatpush1.bf16.msra.mxu0 %v16335_v7  ;;  %8010 = vmatprep.subr.bf16.mxu1 %v16340_v34 }
 0x61b   :  { %7300 = vmatprep.mubr.bf16.mxu0 %v23707_v11  ;;  %7897 = vmatprep.subr.bf16.mxu0 %v16352_v1  ;;  %v16383_v1 = vld [vmem:[%s23249_s7 + $0x5c0] ss:$16 sps:$4 sm:$0xff]  }
 0x61d   :  { %8011 = vmatpush1.bf16.msra.mxu1 %v16338_v29  ;;  %v16388_v29 = vld [vmem:[%s23249_s7 + $0x5a4] ss:$16 sps:$4 sm:$0xff]  }
 0x61e   :  { %8012 = vmatprep.subr.bf16.mxu1 %v16343_v22  ;;  %7898 = vmatpush1.bf16.msra.mxu0 %v16350_v52  ;;  %v16391_v52 = vld [vmem:[%s23249_s7 + $0x584] ss:$16 sps:$4 sm:$0xff]  }
 0x61f   :  { %7899 = vmatprep.subr.bf16.mxu0 %v16367_v51 }
 0x620   :  { %7837 = vmatmul.mubr.bf16.gmra.mxu1 %v21128_v59  ;;  %14407 = vmatmul.mubr.msk.bf16.gmra.mxu0 %vm314_vm0, %v21416_v53 }
 0x621   :  { %7846 = vmatprep.mubr.bf16.mxu1 %v21166_v4  ;;  %8013 = vmatpush1.bf16.msra.mxu1 %v16341_v12 }
 0x622   :  { %8014 = vmatprep.subr.bf16.mxu1 %v16346_v61  ;;  %7310 = vmatprep.mubr.bf16.mxu0 %v23707_v11  ;;  %v16389_v61 = vld [vmem:[%s23249_s7 + $0x580] ss:$16 sps:$4 sm:$0xff]  }
 0x623   :  { %7900 = vmatpush1.bf16.msra.mxu0 %v16365_v41  ;;  %v16394_v41 = vld [vmem:[%s23249_s7 + $0x564] ss:$16 sps:$4 sm:$0xff]  }
 0x624   :  { %7901 = vmatprep.subr.bf16.mxu0 %v16382_v32 }
 0x625   :  { %8015 = vmatpush1.bf16.msra.mxu1 %v16344_v18  ;;  %v16392_v18 = vld [vmem:[%s23249_s7 + $0x560] ss:$16 sps:$4 sm:$0xff]  }
 0x626   :  { %8016 = vmatprep.subr.bf16.mxu1 %v16349_v8  ;;  %v16395_v8 = vld [vmem:[%s23249_s7 + $0x268] ss:$16 sps:$4 sm:$0xff]  }
 0x627   :  { %7902 = vmatpush1.bf16.msra.mxu0 %v16380_v3  ;;  %v16400_v3 = vld [vmem:[%s23249_s7 + $0x544] ss:$16 sps:$4 sm:$0xff]  }
 0x628   :  { %7847 = vmatmul.mubr.bf16.gmra.mxu1 %v21159_v39  ;;  %14408 = vmatmul.mubr.msk.bf16.gmra.mxu0 %vm314_vm0, %v21450_v60 }
 0x629   :  { %7856 = vmatprep.mubr.bf16.mxu1 %v21200_v0  ;;  %8017 = vmatpush2.bf16.msra.mxu1 %v16347_v30  ;;  %v16412_v30 = vld [vmem:[%s23249_s7 + $0x24c] ss:$16 sps:$4 sm:$0xff]  }
 0x62a   :  { %8018 = vmatprep.subr.bf16.mxu1 %v16355_v42  ;;  %7320 = vmatprep.mubr.bf16.mxu0 %v23707_v11 }
 0x62b   :  { %8121 = vmatprep.subr.bf16.mxu0 %v16397_v48  ;;  %v16398_v48 = vld [vmem:[%s23249_s7 + $0x540] ss:$16 sps:$4 sm:$0xff]  }
 0x62d   :  { %8019 = vmatpush2.bf16.msra.mxu1 %v16353_v44 }
 0x62e   :  { %8020 = vmatprep.subr.bf16.mxu1 %v16358_v26  ;;  %v16403_v26 = vld [vmem:[%s23249_s7 + $0x524] ss:$16 sps:$4 sm:$0xff]  }
 0x630   :  { %7857 = vmatmul.mubr.bf16.gmra.mxu1 %v21197_v28  ;;  %14409 = vmatmul.mubr.msk.bf16.gmra.mxu0 %vm314_vm0, %v21478_v15 }
 0x631   :  { %7866 = vmatprep.mubr.bf16.mxu1 %v21241_v6  ;;  %8021 = vmatpush2.bf16.msra.mxu1 %v16356_v10  ;;  %v16410_v10 = vld [vmem:[%s23249_s7 + $0x248] ss:$16 sps:$4 sm:$0xff]  }
 0x632   :  { %8022 = vmatprep.subr.bf16.mxu1 %v16361_v21  ;;  %7330 = vmatprep.mubr.bf16.mxu0 %v23707_v11  ;;  %v16427_v21 = vld [vmem:[%s23249_s7 + $0x22c] ss:$16 sps:$4 sm:$0xff]  }
 0x635   :  { %8023 = vmatpush2.bf16.msra.mxu1 %v16359_v2 }
 0x636   :  { %8024 = vmatprep.subr.bf16.mxu1 %v16364_v45  ;;  %v16401_v45 = vld [vmem:[%s23249_s7 + $0x520] ss:$16 sps:$4 sm:$0xff]  }
 0x638   :  { %7867 = vmatmul.mubr.bf16.gmra.mxu1 %v21228_v9  ;;  %14410 = vmatmul.mubr.msk.bf16.gmra.mxu0 %vm314_vm0, %v21503_v63 }
 0x639   :  { %7876 = vmatprep.mubr.bf16.mxu1 %v21269_v16  ;;  %8025 = vmatpush2.bf16.msra.mxu1 %v16362_v14 }
 0x63a   :  { %8026 = vmatprep.subr.bf16.mxu1 %v16370_v47  ;;  %7340 = vmatprep.mubr.bf16.mxu0 %v23707_v11  ;;  %v16406_v47 = vld [vmem:[%s23249_s7 + $0x504] ss:$16 sps:$4 sm:$0xff]  }
 0x63d   :  { %8027 = vmatpush2.bf16.msra.mxu1 %v16368_v50  ;;  %v16425_v50 = vld [vmem:[%s23249_s7 + $0x228] ss:$16 sps:$4 sm:$0xff]  }
 0x63e   :  { %8028 = vmatprep.subr.bf16.mxu1 %v16373_v27 }
 0x640   :  { %7877 = vmatmul.mubr.bf16.gmra.mxu1 %v21261_v37  ;;  %14411 = vmatmul.mubr.msk.bf16.gmra.mxu0 %vm314_vm0, %v21528_v58 }
 0x641   :  { %8029 = vmatpush2.bf16.msra.mxu1 %v16371_v19  ;;  %8032 = vmatprep.mubr.bf16.mxu1 %v21049_v13  ;;  %v16385_v13 = vld [vmem:[%s23249_s7 + $0x5c4] ss:$16 sps:$4 sm:$0xff]   ;;  %v16442_v19 = vld [vmem:[%s23249_s7 + $0x20c] ss:$16 sps:$4 sm:$0xff]  }
 0x642   :  { %8030 = vmatprep.subr.bf16.mxu1 %v16376_v33  ;;  %7350 = vmatprep.mubr.bf16.mxu0 %v23707_v11  ;;  %v16404_v33 = vld [vmem:[%s23249_s7 + $0x500] ss:$16 sps:$4 sm:$0xff]  }
 0x645   :  { %8031 = vmatpush2.bf16.msra.mxu1 %v16374_v31 }
 0x646   :  { %8710 = vmatprep.subr.bf16.mxu1 %v16379_v56  ;;  %v16409_v56 = vld [vmem:[%s23249_s7 + $0x6e4] ss:$16 sps:$4 sm:$0xff]  }
 0x647   :  { %v21729_v7 = vpop.f32.mrf.mxu1 }
 0x648   :  { %8033 = vmatmul.mubr.bf16.vlgmr.msra.gmra.mxu1 %v21040_v5  ;;  %14412 = vmatmul.mubr.msk.bf16.gmra.mxu0 %vm314_vm0, %v21553_v20 }
 0x649   :  { %8042 = vmatprep.mubr.bf16.mxu1 %v21065_v24  ;;  %8711 = vmatpush1.bf16.msra.mxu1 %v16377_v43  ;;  %v21735_v34 = vpop.f32.mrf.mxu1  ;;  %v16386_v24 = vld [vmem:[%s23249_s7 + $0x5a0] ss:$16 sps:$4 sm:$0xff]   ;;  %v16440_v43 = vld [vmem:[%s23249_s7 + $0x208] ss:$16 sps:$4 sm:$0xff]  }
 0x64a   :  { %8712 = vmatprep.subr.bf16.mxu1 %v16385_v13  ;;  %7360 = vmatprep.mubr.bf16.mxu0 %v23707_v11 }
 0x64b   :  { %v21744_v5 = vpop.f32.mrf.mxu1 }
 0x64d   :  { %8713 = vmatpush1.bf16.msra.mxu1 %v16383_v1  ;;  %v21746_v22 = vpop.f32.mrf.mxu1  ;;  %v16407_v1 = vld [vmem:[%s23249_s7 + $0x6e0] ss:$16 sps:$4 sm:$0xff]  }
 0x64e   :  { %8714 = vmatprep.subr.bf16.mxu1 %v16388_v29 }
 0x64f   :  { %v21754_v51 = vpop.f32.mrf.mxu1 }
 0x650   :  { %8043 = vmatmul.mubr.bf16.gmra.mxu1 %v21060_v49  ;;  %14413 = vmatmul.mubr.msk.bf16.gmra.mxu0 %vm314_vm0, %v21576_v62 }
 0x651   :  { %8052 = vmatprep.mubr.bf16.mxu1 %v21098_v57  ;;  %8715 = vmatpush1.bf16.msra.mxu1 %v16386_v24  ;;  %v21760_v12 = vpop.f32.mrf.mxu1  ;;  %v16415_v24 = vld [vmem:[%s23249_s7 + $0x6c4] ss:$16 sps:$4 sm:$0xff]  }
 0x652   :  { %8716 = vmatprep.subr.bf16.mxu1 %v16391_v52  ;;  %7919 = vmatprep.mubr.bf16.mxu0 %v23707_v11  ;;  %v16457_v52 = vld [vmem:[%s23249_s7 + $0x764] ss:$16 sps:$4 sm:$0xff]  }
 0x653   :  { %v21769_v49 = vpop.f32.mrf.mxu1 }
 0x655   :  { %8717 = vmatpush1.bf16.msra.mxu1 %v16389_v61  ;;  %v21771_v32 = vpop.f32.mrf.mxu1 }
 0x656   :  { %8718 = vmatprep.subr.bf16.mxu1 %v16394_v41  ;;  %v16413_v41 = vld [vmem:[%s23249_s7 + $0x6c0] ss:$16 sps:$4 sm:$0xff]  }
 0x657   :  { %v21785_v42 = vpop.f32.mrf.mxu1 }
 0x658   :  { %8053 = vmatmul.mubr.bf16.gmra.mxu1 %v21095_v40  ;;  %14494 = vmatmul.mubr.msk.bf16.vlgmr.msra.gmra.mxu0 %vm314_vm0, %v21357_v55 }
 0x659   :  { %8062 = vmatprep.mubr.bf16.mxu1 %v21137_v36  ;;  %8719 = vmatpush1.bf16.msra.mxu1 %v16392_v18  ;;  %v21794_v44 = vpop.f32.mrf.mxu1 }
 0x65a   :  { %8122 = vmatpush1.bf16.msra.mxu0 %v16395_v8  ;;  %8720 = vmatprep.subr.bf16.mxu1 %v16400_v3  ;;  %v16418_v8 = vld [vmem:[%s23249_s7 + $0x6a4] ss:$16 sps:$4 sm:$0xff]  }
 0x65b   :  { %7929 = vmatprep.mubr.bf16.mxu0 %v23707_v11  ;;  %8123 = vmatprep.subr.bf16.mxu0 %v16412_v30  ;;  %v21806_v2 = vpop.f32.mrf.mxu1  ;;  %v16416_v30 = vld [vmem:[%s23249_s7 + $0x6a0] ss:$16 sps:$4 sm:$0xff]  }
 0x65d   :  { %8721 = vmatpush1.bf16.msra.mxu1 %v16398_v48  ;;  %v21811_v14 = vpop.f32.mrf.mxu1 }
 0x65e   :  { %8722 = vmatprep.subr.bf16.mxu1 %v16403_v26  ;;  %8124 = vmatpush1.bf16.msra.mxu0 %v16410_v10  ;;  %v16421_v26 = vld [vmem:[%s23249_s7 + $0x684] ss:$16 sps:$4 sm:$0xff]  }
 0x65f   :  { %8125 = vmatprep.subr.bf16.mxu0 %v16427_v21  ;;  %v21819_v27 = vpop.f32.mrf.mxu1  ;;  %v16419_v21 = vld [vmem:[%s23249_s7 + $0x680] ss:$16 sps:$4 sm:$0xff]  }
 0x660   :  { %8063 = vmatmul.mubr.bf16.gmra.mxu1 %v21128_v59  ;;  %14495 = vmatmul.mubr.msk.bf16.gmra.mxu0 %vm314_vm0, %v21379_v35 }
 0x661   :  { %8072 = vmatprep.mubr.bf16.mxu1 %v21166_v4  ;;  %8723 = vmatpush1.bf16.msra.mxu1 %v16401_v45  ;;  %v21831_v31 = vpop.f32.mrf.mxu1 }
 0x662   :  { %8724 = vmatprep.subr.bf16.mxu1 %v16406_v47  ;;  %7939 = vmatprep.mubr.bf16.mxu0 %v23707_v11  ;;  %v16424_v47 = vld [vmem:[%s23249_s7 + $0x664] ss:$16 sps:$4 sm:$0xff]  }
 0x663   :  { %8126 = vmatpush1.bf16.msra.mxu0 %v16425_v50  ;;  %v21840_v13 = vpop.f32.mrf.mxu1 }
 0x664   :  { %8127 = vmatprep.subr.bf16.mxu0 %v16442_v19  ;;  %v16422_v19 = vld [vmem:[%s23249_s7 + $0x660] ss:$16 sps:$4 sm:$0xff]  }
 0x665   :  { %8725 = vmatpush1.bf16.msra.mxu1 %v16404_v33  ;;  %v21845_v29 = vpop.f32.mrf.mxu1 }
 0x666   :  { %8726 = vmatprep.subr.bf16.mxu1 %v16409_v56  ;;  %v16430_v56 = vld [vmem:[%s23249_s7 + $0x644] ss:$16 sps:$4 sm:$0xff]  }
 0x667   :  { %8128 = vmatpush1.bf16.msra.mxu0 %v16440_v43  ;;  %v21853_v61 = vpop.f32.mrf.mxu1 }
 0x668   :  { %8073 = vmatmul.mubr.bf16.gmra.mxu1 %v21159_v39  ;;  %14496 = vmatmul.mubr.msk.bf16.gmra.mxu0 %vm314_vm0, %v21416_v53 }
 0x669   :  { %8082 = vmatprep.mubr.bf16.mxu1 %v21200_v0  ;;  %8727 = vmatpush2.bf16.msra.mxu1 %v16407_v1  ;;  %v21862_v18 = vpop.f32.mrf.mxu1  ;;  %v16428_v1 = vld [vmem:[%s23249_s7 + $0x640] ss:$16 sps:$4 sm:$0xff]  }
 0x66a   :  { %8728 = vmatprep.subr.bf16.mxu1 %v16415_v24  ;;  %7949 = vmatprep.mubr.bf16.mxu0 %v23707_v11 }
 0x66b   :  { %8831 = vmatprep.subr.bf16.mxu0 %v16457_v52  ;;  %v21868_v3 = vpop.f32.mrf.mxu1  ;;  %v16433_v52 = vld [vmem:[%s23249_s7 + $0x624] ss:$16 sps:$4 sm:$0xff]  }
 0x66c   :  { %23728 = vst [vmem:[#allocation69_spill] sm:$0xff] %v21868_v3 }
 0x66d   :  { %8729 = vmatpush2.bf16.msra.mxu1 %v16413_v41  ;;  %v21873_v48 = vpop.f32.mrf.mxu1 }
 0x66e   :  { %23729 = vst [vmem:[#allocation73_spill] sm:$0xff] %v21873_v48  ;;  %8730 = vmatprep.subr.bf16.mxu1 %v16418_v8  ;;  %v16431_v8 = vld [vmem:[%s23249_s7 + $0x620] ss:$16 sps:$4 sm:$0xff]  }
 0x66f   :  { %v21878_v10 = vpop.f32.mrf.mxu1 }
 0x670   :  { %23730 = vst [vmem:[#allocation37_spill] sm:$0xff] %v21878_v10  ;;  %8083 = vmatmul.mubr.bf16.gmra.mxu1 %v21197_v28  ;;  %14497 = vmatmul.mubr.msk.bf16.gmra.mxu0 %vm314_vm0, %v21450_v60 }
 0x671   :  { %8092 = vmatprep.mubr.bf16.mxu1 %v21241_v6  ;;  %8731 = vmatpush2.bf16.msra.mxu1 %v16416_v30  ;;  %v21887_v45 = vpop.f32.mrf.mxu1 }
 0x672   :  { %23731 = vst [vmem:[#allocation42_spill] sm:$0xff] %v21887_v45  ;;  %8732 = vmatprep.subr.bf16.mxu1 %v16421_v26  ;;  %7959 = vmatprep.mubr.bf16.mxu0 %v23707_v11  ;;  %v16436_v26 = vld [vmem:[%s23249_s7 + $0x604] ss:$16 sps:$4 sm:$0xff]  }
 0x673   :  { %v21893_v50 = vpop.f32.mrf.mxu1 }
 0x674   :  { %23732 = vst [vmem:[#allocation77_spill] sm:$0xff] %v21893_v50 }
 0x675   :  { %8733 = vmatpush2.bf16.msra.mxu1 %v16419_v21  ;;  %v21898_v33 = vpop.f32.mrf.mxu1 }
 0x676   :  { %23733 = vst [vmem:[#allocation43_spill] sm:$0xff] %v21898_v33  ;;  %8734 = vmatprep.subr.bf16.mxu1 %v16424_v47  ;;  %v16434_v47 = vld [vmem:[%s23249_s7 + $0x600] ss:$16 sps:$4 sm:$0xff]  }
 0x677   :  { %v21903_v43 = vpop.f32.mrf.mxu1 }
 0x678   :  { %23734 = vst [vmem:[#allocation22_spill] sm:$0xff] %v21903_v43  ;;  %8093 = vmatmul.mubr.bf16.gmra.mxu1 %v21228_v9  ;;  %14498 = vmatmul.mubr.msk.bf16.gmra.mxu0 %vm314_vm0, %v21478_v15 }
 0x679   :  { %8102 = vmatprep.mubr.bf16.mxu1 %v21269_v16  ;;  %8735 = vmatpush2.bf16.msra.mxu1 %v16422_v19  ;;  %v21912_v24 = vpop.f32.mrf.mxu1 }
 0x67a   :  { %23735 = vst [vmem:[#allocation33_spill] sm:$0xff] %v21912_v24  ;;  %8736 = vmatprep.subr.bf16.mxu1 %v16430_v56  ;;  %7969 = vmatprep.mubr.bf16.mxu0 %v23707_v11  ;;  %v16439_v56 = vld [vmem:[%s23249_s7 + $0x5ec] ss:$16 sps:$4 sm:$0xff]  }
 0x67b   :  { %v21918_v41 = vpop.f32.mrf.mxu1 }
 0x67c   :  { %23736 = vst [vmem:[#allocation46_spill] sm:$0xff] %v21918_v41 }
 0x67d   :  { %8737 = vmatpush2.bf16.msra.mxu1 %v16428_v1  ;;  %v21923_v30 = vpop.f32.mrf.mxu1 }
 0x67e   :  { %23737 = vst [vmem:[#allocation36_spill] sm:$0xff] %v21923_v30  ;;  %8738 = vmatprep.subr.bf16.mxu1 %v16433_v52  ;;  %v16437_v52 = vld [vmem:[%s23249_s7 + $0x5e8] ss:$16 sps:$4 sm:$0xff]  }
 0x67f   :  { %v21928_v21 = vpop.f32.mrf.mxu1 }
 0x680   :  { %23738 = vst [vmem:[#allocation75_spill] sm:$0xff] %v21928_v21  ;;  %8103 = vmatmul.mubr.bf16.gmra.mxu1 %v21261_v37  ;;  %14499 = vmatmul.mubr.msk.bf16.gmra.mxu0 %vm314_vm0, %v21503_v63 }
 0x681   :  { %8739 = vmatpush2.bf16.msra.mxu1 %v16431_v8  ;;  %8742 = vmatprep.mubr.bf16.mxu1 %v21098_v57  ;;  %v21937_v19 = vpop.f32.mrf.mxu1 }
 0x682   :  { %23739 = vst [vmem:[#allocation65_spill] sm:$0xff] %v21937_v19  ;;  %8740 = vmatprep.subr.bf16.mxu1 %v16436_v26  ;;  %7979 = vmatprep.mubr.bf16.mxu0 %v23707_v11  ;;  %v16445_v26 = vld [vmem:[%s23249_s7 + $0x5cc] ss:$16 sps:$4 sm:$0xff]  }
 0x683   :  { %v21943_v1 = vpop.f32.mrf.mxu1 }
 0x684   :  { %23740 = vst [vmem:[#allocation32_spill] sm:$0xff] %v21943_v1 }
 0x685   :  { %8741 = vmatpush2.bf16.msra.mxu1 %v16434_v47  ;;  %v21948_v8 = vpop.f32.mrf.mxu1  ;;  %v16443_v47 = vld [vmem:[%s23249_s7 + $0x5c8] ss:$16 sps:$4 sm:$0xff]  }
 0x686   :  { %23741 = vst [vmem:[#allocation47_spill] sm:$0xff] %v21948_v8  ;;  %8936 = vmatprep.subr.bf16.mxu1 %v16439_v56  ;;  %v16448_v56 = vld [vmem:[%s23249_s7 + $0x5ac] ss:$16 sps:$4 sm:$0xff]  }
 0x687   :  { %v21953_v54 = vpop.f32.mrf.mxu1 }
 0x688   :  { %23742 = vst [vmem:[#allocation84_spill] sm:$0xff] %v21953_v54  ;;  %8743 = vmatmul.mubr.bf16.vlgmr.msra.gmra.mxu1 %v21095_v40  ;;  %14500 = vmatmul.mubr.msk.bf16.gmra.mxu0 %vm314_vm0, %v21528_v58 }
 0x689   :  { %8752 = vmatprep.mubr.bf16.mxu1 %v21137_v36  ;;  %8937 = vmatpush1.bf16.msra.mxu1 %v16437_v52  ;;  %v21962_v8 = vpop.f32.mrf.mxu1  ;;  %v16446_v52 = vld [vmem:[%s23249_s7 + $0x5a8] ss:$16 sps:$4 sm:$0xff]  }
 0x68a   :  { %23743 = vst [vmem:[#allocation48_spill] sm:$0xff] %v21962_v8  ;;  %8938 = vmatprep.subr.bf16.mxu1 %v16445_v26  ;;  %7989 = vmatprep.mubr.bf16.mxu0 %v23707_v11  ;;  %v16451_v26 = vld [vmem:[%s23249_s7 + $0x58c] ss:$16 sps:$4 sm:$0xff]  }
 0x68b   :  { %v21968_v30 = vpop.f32.mrf.mxu1 }
 0x68c   :  { %23744 = vst [vmem:[#allocation34_spill] sm:$0xff] %v21968_v30 }
 0x68d   :  { %8939 = vmatpush1.bf16.msra.mxu1 %v16443_v47  ;;  %v21973_v33 = vpop.f32.mrf.mxu1  ;;  %v16449_v47 = vld [vmem:[%s23249_s7 + $0x588] ss:$16 sps:$4 sm:$0xff]  }
 0x68e   :  { %23745 = vst [vmem:[#allocation40_spill] sm:$0xff] %v21973_v33  ;;  %8940 = vmatprep.subr.bf16.mxu1 %v16448_v56  ;;  %v16454_v56 = vld [vmem:[%s23249_s7 + $0x56c] ss:$16 sps:$4 sm:$0xff]  }
 0x68f   :  { %v21978_v48 = vpop.f32.mrf.mxu1 }
 0x690   :  { %23746 = vst [vmem:[#allocation79_spill] sm:$0xff] %v21978_v48  ;;  %8753 = vmatmul.mubr.bf16.gmra.mxu1 %v21128_v59  ;;  %14501 = vmatmul.mubr.msk.bf16.gmra.mxu0 %vm314_vm0, %v21553_v20 }
 0x691   :  { %8762 = vmatprep.mubr.bf16.mxu1 %v21166_v4  ;;  %8941 = vmatpush1.bf16.msra.mxu1 %v16446_v52  ;;  %v21987_v33 = vpop.f32.mrf.mxu1  ;;  %v16452_v52 = vld [vmem:[%s23249_s7 + $0x568] ss:$16 sps:$4 sm:$0xff]  }
 0x692   :  { %23747 = vst [vmem:[#allocation71_spill] sm:$0xff] %v21987_v33  ;;  %8942 = vmatprep.subr.bf16.mxu1 %v16451_v26  ;;  %8145 = vmatprep.mubr.bf16.mxu0 %v23707_v11  ;;  %v16455_v26 = vld [vmem:[%s23249_s7 + $0x760] ss:$16 sps:$4 sm:$0xff]   ;;  %v16460_v33 = vld [vmem:[%s23249_s7 + $0x54c] ss:$16 sps:$4 sm:$0xff]  }
 0x693   :  { %v21993_v46 = vpop.f32.mrf.mxu1 }
 0x694   :  { %23748 = vst [vmem:[#allocation41_spill] sm:$0xff] %v21993_v46  ;;  %v16472_v46 = vld [vmem:[%s23249_s7 + $0x744] ss:$16 sps:$4 sm:$0xff]  }
 0x695   :  { %8943 = vmatpush1.bf16.msra.mxu1 %v16449_v47  ;;  %v21998_v48 = vpop.f32.mrf.mxu1 }
 0x696   :  { %23749 = vst [vmem:[#allocation85_spill] sm:$0xff] %v21998_v48  ;;  %8944 = vmatprep.subr.bf16.mxu1 %v16454_v56  ;;  %v16458_v56 = vld [vmem:[%s23249_s7 + $0x548] ss:$16 sps:$4 sm:$0xff]  }
 0x697   :  { %v22009_v47 = vpop.f32.mrf.mxu1 }
 0x698   :  { %23750 = vst [vmem:[#allocation53_spill] sm:$0xff] %v22009_v47  ;;  %8763 = vmatmul.mubr.bf16.gmra.mxu1 %v21159_v39  ;;  %v22012_v30 = vpop.f32.mrf.mxu0  ;;  %14502 = vmatmul.mubr.msk.bf16.vlgmr.msra.gmra.mxu0 %vm314_vm0, %v21357_v55  ;;  %v16463_v47 = vld [vmem:[%s23249_s7 + $0x52c] ss:$16 sps:$4 sm:$0xff]   ;;  %v16470_v55 = vld [vmem:[%s23249_s7 + $0x740] ss:$16 sps:$4 sm:$0xff]  }
 0x699   :  { %8772 = vmatprep.mubr.bf16.mxu1 %v21200_v0  ;;  %8945 = vmatpush1.bf16.msra.mxu1 %v16452_v52  ;;  %v22020_v48 = vpop.f32.mrf.mxu1  ;;  %v16487_v52 = vld [vmem:[%s23249_s7 + $0x724] ss:$16 sps:$4 sm:$0xff]  }
 0x69a   :  { %23751 = vst [vmem:[#allocation39_spill] sm:$0xff] %v22020_v48  ;;  %8832 = vmatpush1.bf16.msra.mxu0 %v16455_v26  ;;  %v22022_v8 = vpop.f32.mrf.mxu0  ;;  %8946 = vmatprep.subr.bf16.mxu1 %v16460_v33  ;;  %v16461_v33 = vld [vmem:[%s23249_s7 + $0x528] ss:$16 sps:$4 sm:$0xff]  }
 0x69b   :  { %8155 = vmatprep.mubr.bf16.mxu0 %v23707_v11  ;;  %8833 = vmatprep.subr.bf16.mxu0 %v16472_v46  ;;  %v22034_v48 = vpop.f32.mrf.mxu1  ;;  %v16466_v46 = vld [vmem:[%s23249_s7 + $0x50c] ss:$16 sps:$4 sm:$0xff]  }
 0x69c   :  { %23752 = vst [vmem:[#allocation64_spill] sm:$0xff] %v22034_v48  ;;  %v22036_v26 = vpop.f32.mrf.mxu0  ;;  %v16485_v48 = vld [vmem:[%s23249_s7 + $0x720] ss:$16 sps:$4 sm:$0xff]  }
 0x69d   :  { %8947 = vmatpush1.bf16.msra.mxu1 %v16458_v56  ;;  %v22041_v62 = vpop.f32.mrf.mxu1 }
 0x69e   :  { %23753 = vst [vmem:[#allocation83_spill] sm:$0xff] %v22041_v62  ;;  %v22043_v54 = vpop.f32.mrf.mxu0  ;;  %8948 = vmatprep.subr.bf16.mxu1 %v16463_v47  ;;  %8834 = vmatpush1.bf16.msra.mxu0 %v16470_v55  ;;  %v16499_v47 = vld [vmem:[%s23249_s7 + $0x704] ss:$16 sps:$4 sm:$0xff]   ;;  %v16464_v55 = vld [vmem:[%s23249_s7 + $0x508] ss:$16 sps:$4 sm:$0xff]  }
 0x69f   :  { %8835 = vmatprep.subr.bf16.mxu0 %v16487_v52  ;;  %v22051_v56 = vpop.f32.mrf.mxu1 }
 0x6a0   :  { %23754 = vst [vmem:[#allocation76_spill] sm:$0xff] %v22051_v56  ;;  %8773 = vmatmul.mubr.bf16.gmra.mxu1 %v21197_v28  ;;  %v22054_v1 = vpop.f32.mrf.mxu0  ;;  %14503 = vmatmul.mubr.msk.bf16.gmra.mxu0 %vm314_vm0, %v21379_v35  ;;  %v16469_v35 = vld [vmem:[%s23249_s7 + $0x6ec] ss:$16 sps:$4 sm:$0xff]  }
 0x6a1   :  { %8782 = vmatprep.mubr.bf16.mxu1 %v21241_v6  ;;  %8949 = vmatpush1.bf16.msra.mxu1 %v16461_v33  ;;  %v22065_v52 = vpop.f32.mrf.mxu1  ;;  %v16497_v33 = vld [vmem:[%s23249_s7 + $0x700] ss:$16 sps:$4 sm:$0xff]  }
 0x6a2   :  { %23755 = vst [vmem:[#allocation86_spill] sm:$0xff] %v22065_v52  ;;  %v22067_v62 = vpop.f32.mrf.mxu0  ;;  %8950 = vmatprep.subr.bf16.mxu1 %v16466_v46  ;;  %8165 = vmatprep.mubr.bf16.mxu0 %v23707_v11  ;;  %v16467_v46 = vld [vmem:[%s23249_s7 + $0x6e8] ss:$16 sps:$4 sm:$0xff]  }
 0x6a3   :  { %8836 = vmatpush1.bf16.msra.mxu0 %v16485_v48  ;;  %v22076_v56 = vpop.f32.mrf.mxu1  ;;  %v16475_v48 = vld [vmem:[%s23249_s7 + $0x6cc] ss:$16 sps:$4 sm:$0xff]  }
 0x6a4   :  { %23756 = vst [vmem:[#allocation66_spill] sm:$0xff] %v22076_v56  ;;  %v22078_v19 = vpop.f32.mrf.mxu0  ;;  %8837 = vmatprep.subr.bf16.mxu0 %v16499_v47  ;;  %v16502_v56 = vld [vmem:[%s23249_s7 + $0x76c] ss:$16 sps:$4 sm:$0xff]  }
 0x6a5   :  { %8951 = vmatpush1.bf16.msra.mxu1 %v16464_v55  ;;  %v22083_v52 = vpop.f32.mrf.mxu1 }
 0x6a6   :  { %23757 = vst [vmem:[#allocation29_spill] sm:$0xff] %v22083_v52  ;;  %v22085_v21 = vpop.f32.mrf.mxu0  ;;  %8952 = vmatprep.subr.bf16.mxu1 %v16469_v35  ;;  %v16473_v35 = vld [vmem:[%s23249_s7 + $0x6c8] ss:$16 sps:$4 sm:$0xff]  }
 0x6a7   :  { %8838 = vmatpush1.bf16.msra.mxu0 %v16497_v33  ;;  %v22093_v47 = vpop.f32.mrf.mxu1 }
 0x6a8   :  { %23758 = vst [vmem:[#allocation78_spill] sm:$0xff] %v22093_v47  ;;  %8783 = vmatmul.mubr.bf16.gmra.mxu1 %v21228_v9  ;;  %v22096_v55 = vpop.f32.mrf.mxu0  ;;  %14504 = vmatmul.mubr.msk.bf16.gmra.mxu0 %vm314_vm0, %v21416_v53  ;;  %v16478_v47 = vld [vmem:[%s23249_s7 + $0x6ac] ss:$16 sps:$4 sm:$0xff]  }
 0x6a9   :  { %8792 = vmatprep.mubr.bf16.mxu1 %v21269_v16  ;;  %8953 = vmatpush2.bf16.msra.mxu1 %v16467_v46  ;;  %v22104_v33 = vpop.f32.mrf.mxu1  ;;  %v16476_v46 = vld [vmem:[%s23249_s7 + $0x6a8] ss:$16 sps:$4 sm:$0xff]  }
 0x6aa   :  { %23759 = vst [vmem:[#allocation68_spill] sm:$0xff] %v22104_v33  ;;  %v22106_v52 = vpop.f32.mrf.mxu0  ;;  %8954 = vmatprep.subr.bf16.mxu1 %v16475_v48  ;;  %8175 = vmatprep.mubr.bf16.mxu0 %v23707_v11  ;;  %v16481_v48 = vld [vmem:[%s23249_s7 + $0x68c] ss:$16 sps:$4 sm:$0xff]  }
 0x6ab   :  { %9057 = vmatprep.subr.bf16.mxu0 %v16502_v56  ;;  %v22112_v41 = vpop.f32.mrf.mxu1 }
 0x6ac   :  { %23760 = vst [vmem:[#allocation62_spill] sm:$0xff] %v22112_v41  ;;  %v22114_v24 = vpop.f32.mrf.mxu0 }
 0x6ad   :  { %8955 = vmatpush2.bf16.msra.mxu1 %v16473_v35  ;;  %v22119_v33 = vpop.f32.mrf.mxu1 }
 0x6ae   :  { %23761 = vst [vmem:[#allocation72_spill] sm:$0xff] %v22119_v33  ;;  %v22121_v43 = vpop.f32.mrf.mxu0  ;;  %8956 = vmatprep.subr.bf16.mxu1 %v16478_v47  ;;  %v16479_v47 = vld [vmem:[%s23249_s7 + $0x688] ss:$16 sps:$4 sm:$0xff]  }
 0x6af   :  { %v22126_v50 = vpop.f32.mrf.mxu1 }
 0x6b0   :  { %23762 = vst [vmem:[#allocation70_spill] sm:$0xff] %v22126_v50  ;;  %8793 = vmatmul.mubr.bf16.gmra.mxu1 %v21261_v37  ;;  %v22129_v56 = vpop.f32.mrf.mxu0  ;;  %14505 = vmatmul.mubr.msk.bf16.gmra.mxu0 %vm314_vm0, %v21450_v60  ;;  %v16484_v50 = vld [vmem:[%s23249_s7 + $0x66c] ss:$16 sps:$4 sm:$0xff]  }
 0x6b1   :  { %8802 = vmatprep.mubr.bf16.mxu1 %v21303_v38  ;;  %8957 = vmatpush2.bf16.msra.mxu1 %v16476_v46  ;;  %v22137_v35 = vpop.f32.mrf.mxu1  ;;  %v16482_v46 = vld [vmem:[%s23249_s7 + $0x668] ss:$16 sps:$4 sm:$0xff]  }
 0x6b2   :  { %23763 = vst [vmem:[#allocation80_spill] sm:$0xff] %v22137_v35  ;;  %v22139_v33 = vpop.f32.mrf.mxu0  ;;  %8958 = vmatprep.subr.bf16.mxu1 %v16481_v48  ;;  %8185 = vmatprep.mubr.bf16.mxu0 %v23707_v11  ;;  %v16490_v48 = vld [vmem:[%s23249_s7 + $0x64c] ss:$16 sps:$4 sm:$0xff]  }
 0x6b3   :  { %v22145_v41 = vpop.f32.mrf.mxu1 }
 0x6b4   :  { %23764 = vst [vmem:[#allocation51_spill] sm:$0xff] %v22145_v41  ;;  %v22147_v45 = vpop.f32.mrf.mxu0 }
 0x6b5   :  { %8959 = vmatpush2.bf16.msra.mxu1 %v16479_v47  ;;  %v22152_v38 = vpop.f32.mrf.mxu1 }
 0x6b6   :  { %23765 = vst [vmem:[#allocation74_spill] sm:$0xff] %v22152_v38  ;;  %v22154_v35 = vpop.f32.mrf.mxu0  ;;  %8960 = vmatprep.subr.bf16.mxu1 %v16484_v50  ;;  %v16488_v50 = vld [vmem:[%s23249_s7 + $0x648] ss:$16 sps:$4 sm:$0xff]  }
 0x6b7   :  { %v22159_v37 = vpop.f32.mrf.mxu1 }
 0x6b8   :  { %23766 = vst [vmem:[#allocation58_spill] sm:$0xff] %v22159_v37  ;;  %8803 = vmatmul.mubr.bf16.gmra.mxu1 %v21298_v23  ;;  %v22162_v41 = vpop.f32.mrf.mxu0  ;;  %14506 = vmatmul.mubr.msk.bf16.gmra.mxu0 %vm314_vm0, %v21478_v15  ;;  %v16493_v37 = vld [vmem:[%s23249_s7 + $0x62c] ss:$16 sps:$4 sm:$0xff]  }
 0x6b9   :  { %8812 = vmatprep.mubr.bf16.mxu1 %v21330_v17  ;;  %8961 = vmatpush2.bf16.msra.mxu1 %v16482_v46  ;;  %v22170_v47 = vpop.f32.mrf.mxu1  ;;  %v16491_v46 = vld [vmem:[%s23249_s7 + $0x628] ss:$16 sps:$4 sm:$0xff]  }
 0x6ba   :  { %23767 = vst [vmem:[#allocation59_spill] sm:$0xff] %v22170_v47  ;;  %v22172_v38 = vpop.f32.mrf.mxu0  ;;  %8962 = vmatprep.subr.bf16.mxu1 %v16490_v48  ;;  %8195 = vmatprep.mubr.bf16.mxu0 %v23707_v11  ;;  %v16496_v48 = vld [vmem:[%s23249_s7 + $0x60c] ss:$16 sps:$4 sm:$0xff]  }
 0x6bb   :  { %v22178_v23 = vpop.f32.mrf.mxu1 }
 0x6bc   :  { %23768 = vst [vmem:[#allocation81_spill] sm:$0xff] %v22178_v23  ;;  %v22180_v10 = vpop.f32.mrf.mxu0 }
 0x6bd   :  { %8963 = vmatpush2.bf16.msra.mxu1 %v16488_v50  ;;  %v22185_v17 = vpop.f32.mrf.mxu1 }
 0x6be   :  { %23769 = vst [vmem:[#allocation61_spill] sm:$0xff] %v22185_v17  ;;  %v22187_v47 = vpop.f32.mrf.mxu0  ;;  %8964 = vmatprep.subr.bf16.mxu1 %v16493_v37  ;;  %v16494_v37 = vld [vmem:[%s23249_s7 + $0x608] ss:$16 sps:$4 sm:$0xff]  }
 0x6bf   :  { %23770 = vst [vmem:[#allocation60_spill] sm:$0xff] %v22187_v47  ;;  %v22192_v3 = vpop.f32.mrf.mxu1 }
 0x6c0   :  { %23771 = vst [vmem:[#allocation23_spill] sm:$0xff] %v22192_v3  ;;  %8813 = vmatmul.mubr.bf16.gmra.mxu1 %v21320_v25  ;;  %v22195_v23 = vpop.f32.mrf.mxu0  ;;  %14507 = vmatmul.mubr.msk.bf16.gmra.mxu0 %vm314_vm0, %v21503_v63 }
 0x6c1   :  { %8965 = vmatpush2.bf16.msra.mxu1 %v16491_v46  ;;  %8968 = vmatprep.mubr.bf16.mxu1 %v21098_v57  ;;  %v22203_v50 = vpop.f32.mrf.mxu1  ;;  %v7067_v57 = vadd.f32 %v22012_v30, %v21729_v7 }
 0x6c2   :  { %23772 = vst [vmem:[#allocation57_spill] sm:$0xff] %v22203_v50  ;;  %v22205_v47 = vpop.f32.mrf.mxu0  ;;  %8966 = vmatprep.subr.bf16.mxu1 %v16496_v48  ;;  %8205 = vmatprep.mubr.bf16.mxu0 %v23707_v11  ;;  %v7069_v48 = vadd.f32 %v22022_v8, %v21735_v34  ;;  %v7073_v34 = vadd.f32 %v22043_v54, %v21746_v22 }
 0x6c3   :  { %v22208_v3 = vpop.f32.mrf.mxu1  ;;  %v7079_v54 = vadd.f32 %v22067_v62, %v21760_v12  ;;  %v7083_v62 = vadd.f32 %v22085_v21, %v21771_v32  ;;  %v7089_v21 = vadd.f32 %v22106_v52, %v21794_v44  ;;  %v7091_v44 = vadd.f32 %v22114_v24, %v21806_v2 }
 0x6c4   :  { %23773 = vst [vmem:[#allocation82_spill] sm:$0xff] %v22208_v3  ;;  %v22210_v17 = vpop.f32.mrf.mxu0  ;;  %v7097_v2 = vadd.f32 %v22129_v56, %v21819_v27 }
 0x6c5   :  { %8967 = vmatpush2.bf16.msra.mxu1 %v16494_v37  ;;  %v22212_v25 = vpop.f32.mrf.mxu1 }
 0x6c6   :  { %23774 = vst [vmem:[#allocation26_spill] sm:$0xff] %v22212_v25  ;;  %v22214_v46 = vpop.f32.mrf.mxu0 }
 0x6c7   :  { %23775 = vst [vmem:[#allocation25_spill] sm:$0xff] %v22214_v46 }
 0x6c8   :  { %v7808_v63 = vpop.f32.mrf.mxu1  ;;  %8969 = vmatmul.mubr.bf16.vlgmr.msra.gmra.mxu1 %v21095_v40  ;;  %v22219_v50 = vpop.f32.mrf.mxu0  ;;  %14508 = vmatmul.mubr.msk.bf16.gmra.mxu0 %vm314_vm0, %v21528_v58  ;;  %v7071_v40 = vadd.f32 %v22036_v26, %v21744_v5 }
 0x6c9   :  { %v22225_v3 = vadd.f32 %v7808_v63, %v7067_v57  ;;  %8978 = vmatprep.mubr.bf16.mxu1 %v21137_v36  ;;  %8215 = vmatprep.mubr.bf16.mxu0 %v23707_v11  ;;  %v7077_v57 = vadd.f32 %v22054_v1, %v21754_v51 }
 0x6ca   :  { %v7810_v37 = vpop.f32.mrf.mxu1  ;;  %v22229_v46 = vpop.f32.mrf.mxu0 }
 0x6cb   :  { %23776 = vst [vmem:[#allocation28_spill] sm:$0xff] %v22225_v3  ;;  %23777 = vst [vmem:[#allocation55_spill] sm:$0xff] %v22229_v46  ;;  %v22233_v7 = vadd.f32 %v7810_v37, %v7069_v48 }
 0x6cc   :  { %v7812_v30 = vpop.f32.mrf.mxu1  ;;  %v22235_v25 = vpop.f32.mrf.mxu0 }
 0x6cd   :  { %v22239_v63 = vadd.f32 %v7812_v30, %v7071_v40 }
 0x6ce   :  { %v7814_v8 = vpop.f32.mrf.mxu1  ;;  %v22241_v36 = vpop.f32.mrf.mxu0 }
 0x6cf   :  { %23778 = vst [vmem:[#allocation30_spill] sm:$0xff] %v22241_v36  ;;  %v22245_v3 = vadd.f32 %v7814_v8, %v7073_v34  ;;  %v23804_v36 = vld [vmem:[#allocation75_spill] sm:$0xff] }
 0x6d0   :  { %v7818_v46 = vpop.f32.mrf.mxu1  ;;  %8979 = vmatmul.mubr.bf16.gmra.mxu1 %v21128_v59  ;;  %v22248_v5 = vpop.f32.mrf.mxu0  ;;  %14509 = vmatmul.mubr.msk.bf16.gmra.mxu0 %vm314_vm0, %v21553_v20  ;;  %v7081_v59 = vadd.f32 %v22078_v19, %v21769_v49  ;;  %v16505_v49 = vld [vmem:[%s23249_s7 + $0x74c] ss:$16 sps:$4 sm:$0xff]   ;;  %v7087_v19 = vadd.f32 %v22096_v55, %v21785_v42  ;;  %v16503_v42 = vld [vmem:[%s23249_s7 + $0x748] ss:$16 sps:$4 sm:$0xff]  }
 0x6d1   :  { %v22254_v22 = vadd.f32 %v7818_v46, %v7077_v57  ;;  %8988 = vmatprep.mubr.bf16.mxu1 %v21166_v4  ;;  %8855 = vmatprep.mubr.bf16.mxu0 %v23707_v11  ;;  %v16500_v4 = vld [vmem:[%s23249_s7 + $0x768] ss:$16 sps:$4 sm:$0xff]  }
 0x6d2   :  { %v7820_v51 = vpop.f32.mrf.mxu1  ;;  %v22258_v1 = vpop.f32.mrf.mxu0 }
 0x6d3   :  { %v22262_v26 = vadd.f32 %v7820_v51, %v7079_v54  ;;  %v7093_v51 = vadd.f32 %v22121_v43, %v21811_v14  ;;  %v16511_v14 = vld [vmem:[%s23249_s7 + $0x70c] ss:$16 sps:$4 sm:$0xff]  }
 0x6d4   :  { %v7822_v48 = vpop.f32.mrf.mxu1  ;;  %v22264_v37 = vpop.f32.mrf.mxu0 }
 0x6d5   :  { %v22268_v12 = vadd.f32 %v7822_v48, %v7081_v59 }
 0x6d6   :  { %v7824_v46 = vpop.f32.mrf.mxu1  ;;  %v22273_v40 = vpop.f32.mrf.mxu0 }
 0x6d7   :  { %23779 = vst [vmem:[#allocation24_spill] sm:$0xff] %v22273_v40  ;;  %v22280_v30 = vadd.f32 %v7824_v46, %v7083_v62 }
 0x6d8   :  { %v7828_v34 = vpop.f32.mrf.mxu1  ;;  %8989 = vmatmul.mubr.bf16.gmra.mxu1 %v21159_v39  ;;  %v22283_v32 = vpop.f32.mrf.mxu0  ;;  %14670 = vmatmul.mubr.msk.bf16.vlgmr.msra.gmra.mxu0 %vm314_vm0, %v21416_v53  ;;  %v16508_v39 = vld [vmem:[%s23249_s7 + $0x72c] ss:$16 sps:$4 sm:$0xff]  }
 0x6d9   :  { %v22289_v8 = vadd.f32 %v7828_v34, %v7087_v19  ;;  %8998 = vmatprep.mubr.bf16.mxu1 %v21200_v0  ;;  %9058 = vmatpush1.bf16.msra.mxu0 %v16500_v4  ;;  %v16506_v4 = vld [vmem:[%s23249_s7 + $0x728] ss:$16 sps:$4 sm:$0xff]   ;;  %v7101_v34 = vadd.f32 %v22147_v45, %v21840_v13 }
 0x6da   :  { %v7830_v55 = vpop.f32.mrf.mxu1  ;;  %v22295_v57 = vpop.f32.mrf.mxu0  ;;  %8865 = vmatprep.mubr.bf16.mxu0 %v23707_v11  ;;  %9059 = vmatprep.subr.bf16.mxu0 %v16505_v49  ;;  %v7099_v49 = vadd.f32 %v22139_v33, %v21831_v31 }
 0x6db   :  { %v22303_v52 = vadd.f32 %v7830_v55, %v7089_v21 }
 0x6dc   :  { %v7832_v0 = vpop.f32.mrf.mxu1  ;;  %v22305_v54 = vpop.f32.mrf.mxu0 }
 0x6dd   :  { %v22309_v59 = vadd.f32 %v7832_v0, %v7091_v44  ;;  %9060 = vmatpush1.bf16.msra.mxu0 %v16503_v42  ;;  %v7107_v44 = vadd.f32 %v22162_v41, %v21853_v61 }
 0x6de   :  { %v7834_v48 = vpop.f32.mrf.mxu1  ;;  %v22311_v62 = vpop.f32.mrf.mxu0  ;;  %9061 = vmatprep.subr.bf16.mxu0 %v16508_v39 }
 0x6df   :  { %23780 = vst [vmem:[#allocation27_spill] sm:$0xff] %v22311_v62  ;;  %v22318_v24 = vadd.f32 %v7834_v48, %v7093_v51  ;;  %v23782_v51 = vld [vmem:[#allocation69_spill] sm:$0xff] }
 0x6e0   :  { %v7838_v43 = vpop.f32.mrf.mxu1  ;;  %8999 = vmatmul.mubr.bf16.gmra.mxu1 %v21197_v28  ;;  %v22324_v46 = vpop.f32.mrf.mxu0  ;;  %14671 = vmatmul.mubr.msk.bf16.gmra.mxu0 %vm314_vm0, %v21450_v60  ;;  %v16509_v28 = vld [vmem:[%s23249_s7 + $0x708] ss:$16 sps:$4 sm:$0xff]   ;;  %s17501_s7 = smov 127  }
 0x6e1   :  { %v22330_v19 = vadd.f32 %v7838_v43, %v7097_v2  ;;  %9008 = vmatprep.mubr.bf16.mxu1 %v21241_v6  ;;  %8875 = vmatprep.mubr.bf16.mxu0 %v23707_v11  ;;  %v7103_v6 = vadd.f32 %v22154_v35, %v21845_v29  ;;  %v7109_v29 = vadd.f32 %v22172_v38, %v21862_v18 }
 0x6e2   :  { %v7840_v27 = vpop.f32.mrf.mxu1  ;;  %v22334_v56 = vpop.f32.mrf.mxu0  ;;  %9062 = vmatpush1.bf16.msra.mxu0 %v16506_v4 }
 0x6e3   :  { %v22341_v21 = vadd.f32 %v7840_v27, %v7099_v49  ;;  %9063 = vmatprep.subr.bf16.mxu0 %v16511_v14  ;;  %v23786_v27 = vld [vmem:[#allocation49_spill] sm:$0xff] }
 0x6e4   :  { %v7842_v31 = vpop.f32.mrf.mxu1  ;;  %v22343_v33 = vpop.f32.mrf.mxu0 }
 0x6e5   :  { %v22347_v42 = vadd.f32 %v7842_v31, %v7101_v34  ;;  %v16514_v34 = vld [vmem:[#allocation10 + $0x274] ss:$8 sps:$4 sm:$0xff]   ;;  %v23788_v31 = vld [vmem:[#allocation42_spill] sm:$0xff] }
 0x6e6   :  { %v7844_v55 = vpop.f32.mrf.mxu1  ;;  %v22349_v39 = vpop.f32.mrf.mxu0  ;;  %9064 = vmatpush1.bf16.msra.mxu0 %v16509_v28  ;;  %9857 = vmatprep.subr.bf16.mxu1 %v16514_v34 }
 0x6e7   :  { %23781 = vst [vmem:[#allocation44_spill] sm:$0xff] %v22349_v39  ;;  %v22353_v0 = vadd.f32 %v7844_v55, %v7103_v6  ;;  %v7119_v6 = vadd.f32 %v22205_v47, %v23788_v31  ;;  %v16517_v47 = vld [vmem:[#allocation10 + $0x264] ss:$8 sps:$4 sm:$0xff]  }
 0x6e8   :  { %v7848_v13 = vpop.f32.mrf.mxu1  ;;  %9009 = vmatmul.mubr.bf16.gmra.mxu1 %v21228_v9  ;;  %v22356_v45 = vpop.f32.mrf.mxu0  ;;  %14672 = vmatmul.mubr.msk.bf16.gmra.mxu0 %vm314_vm0, %v21478_v15  ;;  %v7111_v9 = vadd.f32 %v22180_v10, %v23782_v51  ;;  %v23787_v10 = vld [vmem:[#allocation67_spill] sm:$0xff] }
 0x6e9   :  { %v22362_v35 = vadd.f32 %v7848_v13, %v7107_v44  ;;  %9018 = vmatprep.mubr.bf16.mxu1 %v21269_v16  ;;  %8885 = vmatprep.mubr.bf16.mxu0 %v23707_v11  ;;  %v23785_v16 = vld [vmem:[#allocation37_spill] sm:$0xff]  ;;  %v23789_v44 = vld [vmem:[#allocation31_spill] sm:$0xff] }
 0x6ea   :  { %v7850_v61 = vpop.f32.mrf.mxu1  ;;  %v22366_v41 = vpop.f32.mrf.mxu0  ;;  %v7117_v43 = vadd.f32 %v22195_v23, %v23785_v16  ;;  %v16512_v13 = vld [vmem:[#allocation10 + $0x270] ss:$8 sps:$4 sm:$0xff]  }
 0x6eb   :  { %v22370_v48 = vadd.f32 %v7850_v61, %v7109_v29  ;;  %v23790_v61 = vld [vmem:[#allocation77_spill] sm:$0xff]  ;;  %9858 = vmatpush1.bf16.msra.mxu1 %v16512_v13 }
 0x6ec   :  { %v7852_v4 = vpop.f32.mrf.mxu1  ;;  %v22372_v2 = vpop.f32.mrf.mxu0  ;;  %v7121_v51 = vadd.f32 %v22210_v17, %v23790_v61  ;;  %9859 = vmatprep.subr.bf16.mxu1 %v16517_v47  ;;  %v23795_v61 = vld [vmem:[#allocation33_spill] sm:$0xff] }
 0x6ed   :  { %v22374_v14 = vadd.f32 %v7852_v4, %v7111_v9 }
 0x6ee   :  { %v22376_v38 = vpop.f32.mrf.mxu1  ;;  %v22378_v18 = vpop.f32.mrf.mxu0 }
 0x6ef   :  { %23783 = vst [vmem:[#allocation69_spill] sm:$0xff] %v22376_v38  ;;  %23784 = vst [vmem:[#allocation87_spill] sm:$0xff] %v22378_v18 }
 0x6f0   :  { %v7858_v49 = vpop.f32.mrf.mxu1  ;;  %9019 = vmatmul.mubr.bf16.gmra.mxu1 %v23786_v27  ;;  %v22383_v28 = vpop.f32.mrf.mxu0  ;;  %14673 = vmatmul.mubr.msk.bf16.gmra.mxu0 %vm314_vm0, %v23787_v10 }
 0x6f1   :  { %v22389_v55 = vadd.f32 %v7858_v49, %v7117_v43  ;;  %9028 = vmatprep.mubr.bf16.mxu1 %v23789_v44  ;;  %8895 = vmatprep.mubr.bf16.mxu0 %v23707_v11  ;;  %v16515_v49 = vld [vmem:[#allocation10 + $0x260] ss:$8 sps:$4 sm:$0xff]   ;;  %v23793_v44 = vld [vmem:[#allocation22_spill] sm:$0xff] }
 0x6f2   :  { %v7860_v23 = vpop.f32.mrf.mxu1  ;;  %v22393_v29 = vpop.f32.mrf.mxu0  ;;  %v7127_v34 = vadd.f32 %v22219_v50, %v23793_v44  ;;  %9860 = vmatpush1.bf16.msra.mxu1 %v16515_v49  ;;  %v16518_v50 = vld [vmem:[#allocation10 + $0x250] ss:$8 sps:$4 sm:$0xff]  }
 0x6f3   :  { %v22397_v9 = vadd.f32 %v7860_v23, %v7119_v6  ;;  %v23794_v6 = vld [vmem:[#allocation21_spill] sm:$0xff]  ;;  %v16520_v23 = vld [vmem:[#allocation10 + $0x254] ss:$8 sps:$4 sm:$0xff]   ;;  %v23799_v44 = vld [vmem:[#allocation46_spill] sm:$0xff] }
 0x6f4   :  { %v7862_v4 = vpop.f32.mrf.mxu1  ;;  %v22399_v16 = vpop.f32.mrf.mxu0  ;;  %9861 = vmatprep.subr.bf16.mxu1 %v16520_v23  ;;  %v7137_v23 = vadd.f32 %v22248_v5, %v23804_v36  ;;  %v23808_v5 = vld [vmem:[#allocation32_spill] sm:$0xff] }
 0x6f5   :  { %v22401_v43 = vadd.f32 %v7862_v4, %v7121_v51  ;;  %v23796_v51 = vld [vmem:[#allocation55_spill] sm:$0xff] }
 0x6f6   :  { %v22403_v27 = vpop.f32.mrf.mxu1  ;;  %v22405_v31 = vpop.f32.mrf.mxu0  ;;  %v7129_v4 = vadd.f32 %v23796_v51, %v23795_v61  ;;  %9862 = vmatpush1.bf16.msra.mxu1 %v16518_v50 }
 0x6f7   :  { %23791 = vst [vmem:[#allocation37_spill] sm:$0xff] %v22403_v27  ;;  %23792 = vst [vmem:[#allocation49_spill] sm:$0xff] %v22405_v31  ;;  %v23798_v31 = vld [vmem:[#allocation63_spill] sm:$0xff] }
 0x6f8   :  { %v7868_v17 = vpop.f32.mrf.mxu1  ;;  %9029 = vmatmul.mubr.bf16.gmra.mxu1 %v23794_v6  ;;  %v22410_v13 = vpop.f32.mrf.mxu0  ;;  %14674 = vmatmul.mubr.msk.bf16.gmra.mxu0 %vm314_vm0, %v21528_v58  ;;  %v7131_v6 = vadd.f32 %v22235_v25, %v23799_v44 }
 0x6f9   :  { %v22416_v18 = vadd.f32 %v7868_v17, %v7127_v34  ;;  %9038 = vmatprep.mubr.bf16.mxu1 %v23798_v31  ;;  %8905 = vmatprep.mubr.bf16.mxu0 %v23707_v11  ;;  %v16523_v34 = vld [vmem:[#allocation10 + $0x244] ss:$8 sps:$4 sm:$0xff]   ;;  %v16521_v31 = vld [vmem:[#allocation10 + $0x240] ss:$8 sps:$4 sm:$0xff]  }
 0x6fa   :  { %v7870_v47 = vpop.f32.mrf.mxu1  ;;  %v22420_v49 = vpop.f32.mrf.mxu0  ;;  %9863 = vmatprep.subr.bf16.mxu1 %v16523_v34  ;;  %v16524_v34 = vld [vmem:[#allocation10 + $0x230] ss:$8 sps:$4 sm:$0xff]  }
 0x6fb   :  { %23797 = vst [vmem:[#allocation67_spill] sm:$0xff] %v22416_v18  ;;  %v22424_v39 = vadd.f32 %v7870_v47, %v7129_v4  ;;  %9864 = vmatpush1.bf16.msra.mxu1 %v16521_v31  ;;  %v23805_v4 = vld [vmem:[#allocation38_spill] sm:$0xff]  ;;  %v23806_v47 = vld [vmem:[#allocation65_spill] sm:$0xff]  ;;  %v7141_v31 = vadd.f32 %v22264_v37, %v23808_v5  ;;  %v23814_v5 = vld [vmem:[#allocation48_spill] sm:$0xff] }
 0x6fc   :  { %v7872_v62 = vpop.f32.mrf.mxu1  ;;  %v22426_v40 = vpop.f32.mrf.mxu0  ;;  %v7139_v44 = vadd.f32 %v22258_v1, %v23806_v47  ;;  %v16541_v18 = vld [vmem:[#allocation10 + $0x2e4] ss:$8 sps:$4 sm:$0xff]  }
 0x6fd   :  { %23800 = vst [vmem:[#allocation42_spill] sm:$0xff] %v22424_v39  ;;  %v22428_v17 = vadd.f32 %v7872_v62, %v7131_v6  ;;  %v16526_v62 = vld [vmem:[#allocation10 + $0x234] ss:$8 sps:$4 sm:$0xff]   ;;  %v16535_v39 = vld [vmem:[#allocation10 + $0x204] ss:$8 sps:$4 sm:$0xff]  }
 0x6fe   :  { %v22430_v61 = vpop.f32.mrf.mxu1  ;;  %v22432_v51 = vpop.f32.mrf.mxu0  ;;  %9865 = vmatprep.subr.bf16.mxu1 %v16526_v62 }
 0x6ff   :  { %23801 = vst [vmem:[#allocation31_spill] sm:$0xff] %v22428_v17  ;;  %23802 = vst [vmem:[#allocation77_spill] sm:$0xff] %v22430_v61  ;;  %9866 = vmatpush1.bf16.msra.mxu1 %v16524_v34  ;;  %v16532_v34 = vld [vmem:[#allocation10 + $0x214] ss:$8 sps:$4 sm:$0xff]  }
 0x700   :  { %23803 = vst [vmem:[#allocation22_spill] sm:$0xff] %v22432_v51  ;;  %v7878_v25 = vpop.f32.mrf.mxu1  ;;  %9039 = vmatmul.mubr.bf16.gmra.mxu1 %v23805_v4  ;;  %v22437_v50 = vpop.f32.mrf.mxu0  ;;  %14675 = vmatmul.mubr.msk.bf16.gmra.mxu0 %vm314_vm0, %v21553_v20  ;;  %v16529_v51 = vld [vmem:[#allocation10 + $0x224] ss:$8 sps:$4 sm:$0xff]  }
 0x701   :  { %v22443_v6 = vadd.f32 %v7878_v25, %v7137_v23  ;;  %8915 = vmatprep.mubr.bf16.mxu0 %v23707_v11  ;;  %v16527_v23 = vld [vmem:[#allocation10 + $0x220] ss:$8 sps:$4 sm:$0xff]   ;;  %9867 = vmatprep.subr.bf16.mxu1 %v16529_v51 }
 0x702   :  { %v7880_v61 = vpop.f32.mrf.mxu1  ;;  %v22446_v36 = vpop.f32.mrf.mxu0 }
 0x703   :  { %23807 = vst [vmem:[#allocation21_spill] sm:$0xff] %v22443_v6  ;;  %v22450_v4 = vadd.f32 %v7880_v61, %v7139_v44  ;;  %v23812_v6 = vld [vmem:[#allocation84_spill] sm:$0xff]  ;;  %9868 = vmatpush1.bf16.msra.mxu1 %v16527_v23  ;;  %v23813_v44 = vld [vmem:[#allocation35_spill] sm:$0xff] }
 0x704   :  { %v7882_v27 = vpop.f32.mrf.mxu1  ;;  %v22452_v38 = vpop.f32.mrf.mxu0  ;;  %v7293_v62 = vadd.f32 %v22283_v32, %v23812_v6  ;;  %9869 = vmatprep.subr.bf16.mxu1 %v16532_v34  ;;  %v23816_v32 = vld [vmem:[#allocation34_spill] sm:$0xff] }
 0x705   :  { %23809 = vst [vmem:[#allocation33_spill] sm:$0xff] %v22450_v4  ;;  %v22454_v1 = vadd.f32 %v7882_v27, %v7141_v31  ;;  %v7295_v27 = vadd.f32 %v22295_v57, %v23814_v5  ;;  %v7297_v6 = vadd.f32 %v22305_v54, %v23816_v32  ;;  %v23822_v32 = vld [vmem:[#allocation71_spill] sm:$0xff] }
 0x706   :  { %v22456_v25 = vpop.f32.mrf.mxu1  ;;  %v22458_v47 = vpop.f32.mrf.mxu0 }
 0x707   :  { %23810 = vst [vmem:[#allocation55_spill] sm:$0xff] %v22454_v1  ;;  %23811 = vst [vmem:[#allocation63_spill] sm:$0xff] %v22456_v25  ;;  %v16530_v25 = vld [vmem:[#allocation10 + $0x210] ss:$8 sps:$4 sm:$0xff]  }
 0x708   :  { %v8034_v37 = vpop.f32.mrf.mxu1  ;;  %v22462_v61 = vpop.f32.mrf.mxu0  ;;  %14676 = vmatmul.mubr.msk.bf16.gmra.mxu0 %vm314_vm0, %v23813_v44  ;;  %9870 = vmatpush1.bf16.msra.mxu1 %v16530_v25  ;;  %v23821_v25 = vld [vmem:[#allocation45_spill] sm:$0xff] }
 0x709   :  { %v22468_v31 = vadd.f32 %v8034_v37, %v7293_v62  ;;  %8925 = vmatprep.mubr.bf16.mxu0 %v23707_v11  ;;  %v16533_v62 = vld [vmem:[#allocation10 + $0x200] ss:$8 sps:$4 sm:$0xff]   ;;  %9871 = vmatprep.subr.bf16.mxu1 %v16535_v39 }
 0x70a   :  { %v8036_v51 = vpop.f32.mrf.mxu1  ;;  %v22471_v1 = vpop.f32.mrf.mxu0 }
 0x70b   :  { %23815 = vst [vmem:[#allocation46_spill] sm:$0xff] %v22468_v31  ;;  %v22475_v23 = vadd.f32 %v8036_v51, %v7295_v27  ;;  %v23820_v31 = vld [vmem:[#allocation79_spill] sm:$0xff] }
 0x70c   :  { %v8038_v4 = vpop.f32.mrf.mxu1  ;;  %v22477_v17 = vpop.f32.mrf.mxu0  ;;  %v7303_v34 = vadd.f32 %v22324_v46, %v23820_v31  ;;  %9872 = vmatpush1.bf16.msra.mxu1 %v16533_v62  ;;  %v16538_v51 = vld [vmem:[#allocation10 + $0x2f4] ss:$8 sps:$4 sm:$0xff]   ;;  %v23824_v46 = vld [vmem:[#allocation41_spill] sm:$0xff] }
 0x70d   :  { %23817 = vst [vmem:[#allocation75_spill] sm:$0xff] %v22475_v23  ;;  %v22479_v57 = vadd.f32 %v8038_v4, %v7297_v6  ;;  %v7305_v4 = vadd.f32 %v22334_v56, %v23822_v32  ;;  %9873 = vmatprep.subr.bf16.mxu1 %v16538_v51  ;;  %v7307_v31 = vadd.f32 %v22343_v33, %v23824_v46 }
 0x70e   :  { %v22481_v37 = vpop.f32.mrf.mxu1  ;;  %v22483_v5 = vpop.f32.mrf.mxu0 }
 0x70f   :  { %23818 = vst [vmem:[#allocation38_spill] sm:$0xff] %v22479_v57  ;;  %23819 = vst [vmem:[#allocation65_spill] sm:$0xff] %v22481_v37  ;;  %v16536_v37 = vld [vmem:[#allocation10 + $0x2f0] ss:$8 sps:$4 sm:$0xff]  }
 0x710   :  { %v8044_v54 = vpop.f32.mrf.mxu1  ;;  %v22487_v27 = vpop.f32.mrf.mxu0  ;;  %14677 = vmatmul.mubr.msk.bf16.gmra.mxu0 %vm314_vm0, %v23821_v25  ;;  %9874 = vmatpush2.bf16.msra.mxu1 %v16536_v37  ;;  %v16544_v37 = vld [vmem:[#allocation10 + $0x2d4] ss:$8 sps:$4 sm:$0xff]  }
 0x711   :  { %v22493_v6 = vadd.f32 %v8044_v54, %v7303_v34  ;;  %9081 = vmatprep.mubr.bf16.mxu0 %v23707_v11  ;;  %v16539_v34 = vld [vmem:[#allocation10 + $0x2e0] ss:$8 sps:$4 sm:$0xff]   ;;  %9875 = vmatprep.subr.bf16.mxu1 %v16541_v18  ;;  %v16542_v18 = vld [vmem:[#allocation10 + $0x2d0] ss:$8 sps:$4 sm:$0xff]  }
 0x712   :  { %v8046_v39 = vpop.f32.mrf.mxu1  ;;  %v22496_v57 = vpop.f32.mrf.mxu0 }
 0x713   :  { %23823 = vst [vmem:[#allocation32_spill] sm:$0xff] %v22493_v6  ;;  %v22500_v62 = vadd.f32 %v8046_v39, %v7305_v4  ;;  %v23828_v6 = vld [vmem:[#allocation53_spill] sm:$0xff]  ;;  %v23829_v39 = vld [vmem:[#allocation39_spill] sm:$0xff] }
 0x714   :  { %v8048_v23 = vpop.f32.mrf.mxu1  ;;  %v22502_v25 = vpop.f32.mrf.mxu0  ;;  %v7313_v51 = vadd.f32 %v22356_v45, %v23828_v6  ;;  %9876 = vmatpush2.bf16.msra.mxu1 %v16539_v34  ;;  %v23832_v6 = vld [vmem:[#allocation64_spill] sm:$0xff] }
 0x715   :  { %23825 = vst [vmem:[#allocation84_spill] sm:$0xff] %v22500_v62  ;;  %v22504_v56 = vadd.f32 %v8048_v23, %v7307_v31  ;;  %v7315_v23 = vadd.f32 %v22366_v41, %v23829_v39  ;;  %v23830_v31 = vld [vmem:[#allocation28_spill] sm:$0xff]  ;;  %9877 = vmatprep.subr.bf16.mxu1 %v16544_v37  ;;  %v7317_v34 = vadd.f32 %v22372_v2, %v23832_v6 }
 0x716   :  { %v22506_v54 = vpop.f32.mrf.mxu1  ;;  %v22508_v32 = vpop.f32.mrf.mxu0  ;;  %v23834_v2 = vld [vmem:[#allocation76_spill] sm:$0xff] }
 0x717   :  { %23826 = vst [vmem:[#allocation35_spill] sm:$0xff] %v22504_v56  ;;  %23827 = vst [vmem:[#allocation48_spill] sm:$0xff] %v22506_v54 }
 0x718   :  { %v8054_v33 = vpop.f32.mrf.mxu1  ;;  %v7921_v4 = vpop.f32.mrf.mxu0  ;;  %14678 = vmatmul.mubr.msk.bf16.vlgmr.msra.gmra.mxu0 %vm314_vm0, %v21416_v53  ;;  %9878 = vmatpush2.bf16.msra.mxu1 %v16542_v18 }
 0x719   :  { %v22516_v46 = vadd.f32 %v8054_v33, %v7313_v51  ;;  %v22519_v54 = vadd.f32 %v7921_v4, %v23830_v31  ;;  %9091 = vmatprep.mubr.bf16.mxu0 %v23707_v11  ;;  %v16547_v33 = vld [vmem:[#allocation10 + $0x2c4] ss:$8 sps:$4 sm:$0xff]   ;;  %v16545_v31 = vld [vmem:[#allocation10 + $0x2c0] ss:$8 sps:$4 sm:$0xff]  }
 0x71a   :  { %v8056_v56 = vpop.f32.mrf.mxu1  ;;  %v7923_v45 = vpop.f32.mrf.mxu0  ;;  %9879 = vmatprep.subr.bf16.mxu1 %v16547_v33  ;;  %v23836_v33 = vld [vmem:[#allocation66_spill] sm:$0xff] }
 0x71b   :  { %23831 = vst [vmem:[#allocation34_spill] sm:$0xff] %v22519_v54  ;;  %v22524_v62 = vadd.f32 %v8056_v56, %v7315_v23  ;;  %v22527_v53 = vadd.f32 %v7923_v45, %v22233_v7  ;;  %v7323_v56 = vadd.f32 %v22383_v28, %v23834_v2  ;;  %v16550_v45 = vld [vmem:[#allocation10 + $0x2b4] ss:$8 sps:$4 sm:$0xff]   ;;  %v16548_v28 = vld [vmem:[#allocation10 + $0x2b0] ss:$8 sps:$4 sm:$0xff]  }
 0x71c   :  { %v8058_v41 = vpop.f32.mrf.mxu1  ;;  %v7925_v51 = vpop.f32.mrf.mxu0  ;;  %9880 = vmatpush2.bf16.msra.mxu1 %v16545_v31  ;;  %v7327_v31 = vadd.f32 %v22399_v16, %v23836_v33  ;;  %v23838_v16 = vld [vmem:[#allocation78_spill] sm:$0xff] }
 0x71d   :  { %v22529_v4 = vadd.f32 %v8058_v41, %v7317_v34  ;;  %v22532_v39 = vadd.f32 %v7925_v51, %v22239_v63  ;;  %v23835_v63 = vld [vmem:[#allocation86_spill] sm:$0xff]  ;;  %9881 = vmatprep.subr.bf16.mxu1 %v16550_v45 }
 0x71e   :  { %v22534_v54 = vpop.f32.mrf.mxu1  ;;  %v7927_v37 = vpop.f32.mrf.mxu0  ;;  %v7325_v6 = vadd.f32 %v22393_v29, %v23835_v63 }
 0x71f   :  { %23833 = vst [vmem:[#allocation79_spill] sm:$0xff] %v22534_v54  ;;  %v22539_v7 = vadd.f32 %v7927_v37, %v22245_v3  ;;  %v16608_v54 = vld [vmem:[#allocation10 + $0x3f0] ss:$8 sps:$4 sm:$0xff]  }
 0x720   :  { %v8064_v23 = vpop.f32.mrf.mxu1  ;;  %v7931_v18 = vpop.f32.mrf.mxu0  ;;  %14679 = vmatmul.mubr.msk.bf16.gmra.mxu0 %vm314_vm0, %v21450_v60  ;;  %9882 = vmatpush2.bf16.msra.mxu1 %v16548_v28 }
 0x721   :  { %v22545_v34 = vadd.f32 %v8064_v23, %v7323_v56  ;;  %v22548_v41 = vadd.f32 %v7931_v18, %v22254_v22  ;;  %9101 = vmatprep.mubr.bf16.mxu0 %v23707_v11  ;;  %v16553_v56 = vld [vmem:[#allocation10 + $0x2a4] ss:$8 sps:$4 sm:$0xff]   ;;  %v16551_v18 = vld [vmem:[#allocation10 + $0x2a0] ss:$8 sps:$4 sm:$0xff]  }
 0x722   :  { %v8066_v3 = vpop.f32.mrf.mxu1  ;;  %v7933_v51 = vpop.f32.mrf.mxu0  ;;  %9883 = vmatprep.subr.bf16.mxu1 %v16553_v56  ;;  %v23840_v56 = vld [vmem:[#allocation62_spill] sm:$0xff] }
 0x723   :  { %v22553_v37 = vadd.f32 %v8066_v3, %v7325_v6  ;;  %v22556_v60 = vadd.f32 %v7933_v51, %v22262_v26  ;;  %v7333_v6 = vadd.f32 %v22410_v13, %v23838_v16  ;;  %v16556_v51 = vld [vmem:[#allocation10 + $0x294] ss:$8 sps:$4 sm:$0xff]   ;;  %v16554_v13 = vld [vmem:[#allocation10 + $0x290] ss:$8 sps:$4 sm:$0xff]  }
 0x724   :  { %v8068_v29 = vpop.f32.mrf.mxu1  ;;  %v7935_v2 = vpop.f32.mrf.mxu0  ;;  %9884 = vmatpush2.bf16.msra.mxu1 %v16551_v18  ;;  %v7337_v18 = vadd.f32 %v22426_v40, %v23840_v56  ;;  %v23841_v40 = vld [vmem:[#allocation70_spill] sm:$0xff]  ;;  %v23842_v56 = vld [vmem:[#allocation80_spill] sm:$0xff] }
 0x725   :  { %v22558_v22 = vadd.f32 %v8068_v29, %v7327_v31  ;;  %v22561_v23 = vadd.f32 %v7935_v2, %v22268_v12  ;;  %v23839_v12 = vld [vmem:[#allocation68_spill] sm:$0xff]  ;;  %9885 = vmatprep.subr.bf16.mxu1 %v16556_v51 }
 0x726   :  { %v22563_v63 = vpop.f32.mrf.mxu1  ;;  %v7937_v45 = vpop.f32.mrf.mxu0  ;;  %v7335_v33 = vadd.f32 %v22420_v49, %v23839_v12 }
 0x727   :  { %23837 = vst [vmem:[#allocation71_spill] sm:$0xff] %v22563_v63  ;;  %v22568_v26 = vadd.f32 %v7937_v45, %v22280_v30 }
 0x728   :  { %v8074_v28 = vpop.f32.mrf.mxu1  ;;  %v7941_v3 = vpop.f32.mrf.mxu0  ;;  %14680 = vmatmul.mubr.msk.bf16.gmra.mxu0 %vm314_vm0, %v21478_v15  ;;  %9886 = vmatpush2.bf16.msra.mxu1 %v16554_v13 }
 0x729   :  { %v22574_v31 = vadd.f32 %v8074_v28, %v7333_v6  ;;  %v22577_v29 = vadd.f32 %v7941_v3, %v22289_v8  ;;  %9111 = vmatprep.mubr.bf16.mxu0 %v23707_v11  ;;  %v16559_v6 = vld [vmem:[#allocation10 + $0x284] ss:$8 sps:$4 sm:$0xff]   ;;  %v16557_v3 = vld [vmem:[#allocation10 + $0x280] ss:$8 sps:$4 sm:$0xff]  }
 0x72a   :  { %v8076_v30 = vpop.f32.mrf.mxu1  ;;  %v7943_v2 = vpop.f32.mrf.mxu0  ;;  %9887 = vmatprep.subr.bf16.mxu1 %v16559_v6 }
 0x72b   :  { %v22582_v45 = vadd.f32 %v8076_v30, %v7335_v33  ;;  %v22585_v15 = vadd.f32 %v7943_v2, %v22303_v52  ;;  %v7343_v33 = vadd.f32 %v22437_v50, %v23841_v40  ;;  %v16562_v2 = vld [vmem:[#allocation10 + $0x374] ss:$8 sps:$4 sm:$0xff]  }
 0x72c   :  { %v8078_v49 = vpop.f32.mrf.mxu1  ;;  %v7945_v16 = vpop.f32.mrf.mxu0  ;;  %9888 = vmatpush2.bf16.msra.mxu1 %v16557_v3  ;;  %9900 = vmatprep.subr.bf16.mxu0 %v16562_v2  ;;  %v23843_v3 = vld [vmem:[#allocation51_spill] sm:$0xff]  ;;  %v16568_v2 = vld [vmem:[#allocation10 + $0x364] ss:$8 sps:$4 sm:$0xff]  }
 0x72d   :  { %v22587_v8 = vadd.f32 %v8078_v49, %v7337_v18  ;;  %v22590_v28 = vadd.f32 %v7945_v16, %v22309_v59  ;;  %v16565_v59 = vld [vmem:[#allocation10 + $0x74] ss:$8 sps:$4 sm:$0xff]   ;;  %v7345_v18 = vadd.f32 %v22446_v36, %v23842_v56 }
 0x72e   :  { %v22592_v12 = vpop.f32.mrf.mxu1  ;;  %v7947_v51 = vpop.f32.mrf.mxu0  ;;  %10263 = vmatprep.subr.bf16.mxu1 %v16565_v59 }
 0x72f   :  { %v22597_v52 = vadd.f32 %v7947_v51, %v22318_v24  ;;  %v16560_v24 = vld [vmem:[#allocation10 + $0x370] ss:$8 sps:$4 sm:$0xff]  }
 0x730   :  { %v8084_v13 = vpop.f32.mrf.mxu1  ;;  %v7951_v30 = vpop.f32.mrf.mxu0  ;;  %14681 = vmatmul.mubr.msk.bf16.gmra.mxu0 %vm314_vm0, %v23787_v10  ;;  %v7347_v10 = vadd.f32 %v22452_v38, %v23843_v3  ;;  %v16566_v38 = vld [vmem:[#allocation10 + $0x360] ss:$8 sps:$4 sm:$0xff]  }
 0x731   :  { %v22603_v49 = vadd.f32 %v8084_v13, %v7343_v33  ;;  %v22606_v16 = vadd.f32 %v7951_v30, %v22330_v19  ;;  %9121 = vmatprep.mubr.bf16.mxu0 %v23707_v11  ;;  %9901 = vmatpush1.bf16.msra.mxu0 %v16560_v24  ;;  %v23844_v19 = vld [vmem:[#allocation74_spill] sm:$0xff] }
 0x732   :  { %v8086_v50 = vpop.f32.mrf.mxu1  ;;  %v7953_v6 = vpop.f32.mrf.mxu0  ;;  %v7349_v13 = vadd.f32 %v22458_v47, %v23844_v19  ;;  %9902 = vmatprep.subr.bf16.mxu0 %v16568_v2  ;;  %v23850_v19 = vld [vmem:[#allocation81_spill] sm:$0xff] }
 0x733   :  { %v22611_v51 = vadd.f32 %v8086_v50, %v7345_v18  ;;  %v22614_v40 = vadd.f32 %v7953_v6, %v22341_v21  ;;  %v23846_v18 = vld [vmem:[#allocation58_spill] sm:$0xff] }
 0x734   :  { %v8088_v36 = vpop.f32.mrf.mxu1  ;;  %v7955_v33 = vpop.f32.mrf.mxu0  ;;  %v7353_v50 = vadd.f32 %v22462_v61, %v23846_v18  ;;  %v16574_v61 = vld [vmem:[#allocation10 + $0x354] ss:$8 sps:$4 sm:$0xff]  }
 0x735   :  { %v22618_v30 = vadd.f32 %v8088_v36, %v7347_v10  ;;  %v22621_v56 = vadd.f32 %v7955_v33, %v22347_v42  ;;  %v23848_v42 = vld [vmem:[#allocation59_spill] sm:$0xff]  ;;  %9903 = vmatpush1.bf16.msra.mxu0 %v16566_v38 }
 0x736   :  { %v8090_v59 = vpop.f32.mrf.mxu1  ;;  %v7957_v63 = vpop.f32.mrf.mxu0  ;;  %v7355_v3 = vadd.f32 %v22471_v1, %v23848_v42  ;;  %v16572_v33 = vld [vmem:[#allocation10 + $0x350] ss:$8 sps:$4 sm:$0xff]   ;;  %9904 = vmatprep.subr.bf16.mxu0 %v16574_v61  ;;  %v16578_v42 = vld [vmem:[#allocation10 + $0x340] ss:$8 sps:$4 sm:$0xff]  }
 0x737   :  { %23845 = vst [vmem:[#allocation41_spill] sm:$0xff] %v22621_v56  ;;  %v22625_v21 = vadd.f32 %v8090_v59, %v7349_v13  ;;  %v22628_v24 = vadd.f32 %v7957_v63, %v22353_v0  ;;  %v7357_v13 = vadd.f32 %v22477_v17, %v23850_v19 }
 0x738   :  { %v8094_v6 = vpop.f32.mrf.mxu1  ;;  %v7961_v47 = vpop.f32.mrf.mxu0  ;;  %14682 = vmatmul.mubr.msk.bf16.gmra.mxu0 %vm314_vm0, %v21528_v58 }
 0x739   :  { %23847 = vst [vmem:[#allocation53_spill] sm:$0xff] %v22628_v24  ;;  %v22634_v10 = vadd.f32 %v8094_v6, %v7353_v50  ;;  %v22637_v36 = vadd.f32 %v7961_v47, %v22362_v35  ;;  %9131 = vmatprep.mubr.bf16.mxu0 %v23707_v11  ;;  %v23852_v35 = vld [vmem:[#allocation61_spill] sm:$0xff]  ;;  %9905 = vmatpush1.bf16.msra.mxu0 %v16572_v33 }
 0x73a   :  { %v8096_v0 = vpop.f32.mrf.mxu1  ;;  %v7963_v63 = vpop.f32.mrf.mxu0  ;;  %v7359_v18 = vadd.f32 %v22483_v5, %v23852_v35  ;;  %v16580_v6 = vld [vmem:[#allocation10 + $0x344] ss:$8 sps:$4 sm:$0xff]  }
 0x73b   :  { %23849 = vst [vmem:[#allocation39_spill] sm:$0xff] %v22637_v36  ;;  %v22642_v2 = vadd.f32 %v8096_v0, %v7355_v3  ;;  %v22645_v58 = vadd.f32 %v7963_v63, %v22370_v48  ;;  %v23855_v3 = vld [vmem:[#allocation23_spill] sm:$0xff]  ;;  %9906 = vmatprep.subr.bf16.mxu0 %v16580_v6  ;;  %v23856_v5 = vld [vmem:[#allocation57_spill] sm:$0xff]  ;;  %v23858_v35 = vld [vmem:[#allocation82_spill] sm:$0xff] }
 0x73c   :  { %v8098_v1 = vpop.f32.mrf.mxu1  ;;  %v7965_v59 = vpop.f32.mrf.mxu0  ;;  %v7363_v48 = vadd.f32 %v22487_v27, %v23855_v3  ;;  %v16586_v27 = vld [vmem:[#allocation10 + $0x334] ss:$8 sps:$4 sm:$0xff]   ;;  %v16640_v24 = vld [vmem:[#allocation10 + $0x3a4] ss:$8 sps:$4 sm:$0xff]  }
 0x73d   :  { %23851 = vst [vmem:[#allocation28_spill] sm:$0xff] %v22645_v58  ;;  %v22649_v50 = vadd.f32 %v8098_v1, %v7357_v13  ;;  %v22652_v38 = vadd.f32 %v7965_v59, %v22374_v14  ;;  %v7365_v14 = vadd.f32 %v22496_v57, %v23856_v5  ;;  %9907 = vmatpush1.bf16.msra.mxu0 %v16578_v42  ;;  %v16584_v59 = vld [vmem:[#allocation10 + $0x330] ss:$8 sps:$4 sm:$0xff]   ;;  %v16590_v5 = vld [vmem:[#allocation10 + $0x320] ss:$8 sps:$4 sm:$0xff]  }
 0x73e   :  { %v8100_v47 = vpop.f32.mrf.mxu1  ;;  %v22654_v17 = vpop.f32.mrf.mxu0  ;;  %9908 = vmatprep.subr.bf16.mxu0 %v16586_v27 }
 0x73f   :  { %23853 = vst [vmem:[#allocation64_spill] sm:$0xff] %v22652_v38  ;;  %23854 = vst [vmem:[#allocation76_spill] sm:$0xff] %v22654_v17  ;;  %v22658_v61 = vadd.f32 %v8100_v47, %v7359_v18  ;;  %v7367_v18 = vadd.f32 %v22502_v25, %v23858_v35  ;;  %v16596_v35 = vld [vmem:[#allocation10 + $0x310] ss:$8 sps:$4 sm:$0xff]   ;;  %v16628_v38 = vld [vmem:[#allocation10 + $0x3c4] ss:$8 sps:$4 sm:$0xff]  }
 0x740   :  { %v8104_v0 = vpop.f32.mrf.mxu1  ;;  %v7971_v63 = vpop.f32.mrf.mxu0  ;;  %14683 = vmatmul.mubr.msk.bf16.gmra.mxu0 %vm314_vm0, %v21553_v20 }
 0x741   :  { %v22664_v33 = vadd.f32 %v8104_v0, %v7363_v48  ;;  %v22667_v19 = vadd.f32 %v7971_v63, %v22389_v55  ;;  %9141 = vmatprep.mubr.bf16.mxu0 %v23707_v11  ;;  %v23860_v55 = vld [vmem:[#allocation26_spill] sm:$0xff]  ;;  %9909 = vmatpush1.bf16.msra.mxu0 %v16584_v59 }
 0x742   :  { %v8106_v13 = vpop.f32.mrf.mxu1  ;;  %v7973_v1 = vpop.f32.mrf.mxu0  ;;  %v7369_v3 = vadd.f32 %v22508_v32, %v23860_v55  ;;  %v16592_v0 = vld [vmem:[#allocation10 + $0x324] ss:$8 sps:$4 sm:$0xff]   ;;  %v23863_v32 = vld [vmem:[#allocation67_spill] sm:$0xff] }
 0x743   :  { %23857 = vst [vmem:[#allocation86_spill] sm:$0xff] %v22667_v19  ;;  %v22672_v6 = vadd.f32 %v8106_v13, %v7365_v14  ;;  %v22675_v20 = vadd.f32 %v7973_v1, %v22397_v9  ;;  %9910 = vmatprep.subr.bf16.mxu0 %v16592_v0  ;;  %v16604_v0 = vld [vmem:[#allocation10 + $0x304] ss:$8 sps:$4 sm:$0xff]  }
 0x744   :  { %v8108_v57 = vpop.f32.mrf.mxu1  ;;  %v7975_v47 = vpop.f32.mrf.mxu0 }
 0x745   :  { %23859 = vst [vmem:[#allocation66_spill] sm:$0xff] %v22675_v20  ;;  %v22679_v48 = vadd.f32 %v8108_v57, %v7367_v18  ;;  %v22682_v42 = vadd.f32 %v7975_v47, %v22401_v43  ;;  %9911 = vmatpush1.bf16.msra.mxu0 %v16590_v5  ;;  %v16598_v43 = vld [vmem:[#allocation10 + $0x314] ss:$8 sps:$4 sm:$0xff]   ;;  %v23865_v18 = vld [vmem:[#allocation42_spill] sm:$0xff]  ;;  %v16602_v5 = vld [vmem:[#allocation10 + $0x300] ss:$8 sps:$4 sm:$0xff]  }
 0x746   :  { %v8110_v63 = vpop.f32.mrf.mxu1  ;;  %v22684_v25 = vpop.f32.mrf.mxu0  ;;  %9912 = vmatprep.subr.bf16.mxu0 %v16598_v43  ;;  %v23871_v43 = vld [vmem:[#allocation21_spill] sm:$0xff] }
 0x747   :  { %23861 = vst [vmem:[#allocation78_spill] sm:$0xff] %v22682_v42  ;;  %23862 = vst [vmem:[#allocation68_spill] sm:$0xff] %v22684_v25  ;;  %v22686_v14 = vadd.f32 %v8110_v63, %v7369_v3  ;;  %v23867_v3 = vld [vmem:[#allocation31_spill] sm:$0xff] }
 0x748   :  { %v22688_v9 = vpop.f32.mrf.mxu1  ;;  %v7981_v27 = vpop.f32.mrf.mxu0  ;;  %14684 = vmatmul.mubr.msk.bf16.gmra.mxu0 %vm314_vm0, %v23813_v44 }
 0x749   :  { %v22693_v13 = vadd.f32 %v7981_v27, %v23863_v32  ;;  %9151 = vmatprep.mubr.bf16.mxu0 %v23707_v11  ;;  %9913 = vmatpush1.bf16.msra.mxu0 %v16596_v35 }
 0x74a   :  { %v22696_v1 = vpop.f32.mrf.mxu1  ;;  %v7983_v59 = vpop.f32.mrf.mxu0  ;;  %9914 = vmatprep.subr.bf16.mxu0 %v16604_v0 }
 0x74b   :  { %23864 = vst [vmem:[#allocation62_spill] sm:$0xff] %v22693_v13  ;;  %v22699_v57 = vadd.f32 %v7983_v59, %v23865_v18  ;;  %v23870_v59 = vld [vmem:[#allocation45_spill] sm:$0xff]  ;;  %v23875_v13 = vld [vmem:[#allocation55_spill] sm:$0xff] }
 0x74c   :  { %v22701_v47 = vpop.f32.mrf.mxu1  ;;  %v7985_v55 = vpop.f32.mrf.mxu0 }
 0x74d   :  { %23866 = vst [vmem:[#allocation70_spill] sm:$0xff] %v22699_v57  ;;  %v22704_v44 = vadd.f32 %v7985_v55, %v23867_v3  ;;  %9915 = vmatpush1.bf16.msra.mxu0 %v16602_v5  ;;  %v16610_v55 = vld [vmem:[#allocation10 + $0x3f4] ss:$8 sps:$4 sm:$0xff]  }
 0x74e   :  { %v22706_v63 = vpop.f32.mrf.mxu1  ;;  %v22708_v11 = vpop.f32.mrf.mxu0  ;;  %9916 = vmatprep.subr.bf16.mxu0 %v16610_v55  ;;  %v16622_v55 = vld [vmem:[#allocation10 + $0x3d4] ss:$8 sps:$4 sm:$0xff]  }
 0x74f   :  { %23868 = vst [vmem:[#allocation80_spill] sm:$0xff] %v22704_v44  ;;  %23869 = vst [vmem:[#allocation51_spill] sm:$0xff] %v22708_v11  ;;  %v23873_v44 = vld [vmem:[#allocation33_spill] sm:$0xff] }
 0x750   :  { %v22710_v27 = vpop.f32.mrf.mxu1  ;;  %v7991_v32 = vpop.f32.mrf.mxu0  ;;  %14685 = vmatmul.mubr.msk.bf16.gmra.mxu0 %vm314_vm0, %v23870_v59  ;;  %v16616_v59 = vld [vmem:[#allocation10 + $0x3e4] ss:$8 sps:$4 sm:$0xff]  }
 0x751   :  { %v22715_v18 = vadd.f32 %v7991_v32, %v23871_v43  ;;  %9917 = vmatpush2.bf16.msra.mxu0 %v16608_v54  ;;  %v16614_v43 = vld [vmem:[#allocation10 + $0x3e0] ss:$8 sps:$4 sm:$0xff]   ;;  %v23880_v54 = vld [vmem:[#allocation75_spill] sm:$0xff] }
 0x752   :  { %v22717_v3 = vpop.f32.mrf.mxu1  ;;  %v7993_v35 = vpop.f32.mrf.mxu0  ;;  %9918 = vmatprep.subr.bf16.mxu0 %v16616_v59  ;;  %v23882_v59 = vld [vmem:[#allocation38_spill] sm:$0xff] }
 0x753   :  { %23872 = vst [vmem:[#allocation74_spill] sm:$0xff] %v22715_v18  ;;  %v22720_v57 = vadd.f32 %v7993_v35, %v23873_v44  ;;  %v23878_v44 = vld [vmem:[#allocation46_spill] sm:$0xff] }
 0x754   :  { %v22722_v0 = vpop.f32.mrf.mxu1  ;;  %v7995_v11 = vpop.f32.mrf.mxu0 }
 0x755   :  { %23874 = vst [vmem:[#allocation58_spill] sm:$0xff] %v22720_v57  ;;  %v22725_v42 = vadd.f32 %v7995_v11, %v23875_v13  ;;  %9919 = vmatpush2.bf16.msra.mxu0 %v16614_v43  ;;  %v16620_v11 = vld [vmem:[#allocation10 + $0x3d0] ss:$8 sps:$4 sm:$0xff]  }
 0x756   :  { %v22727_v32 = vpop.f32.mrf.mxu1  ;;  %v22729_v5 = vpop.f32.mrf.mxu0  ;;  %9920 = vmatprep.subr.bf16.mxu0 %v16622_v55  ;;  %v16634_v55 = vld [vmem:[#allocation10 + $0x3b4] ss:$8 sps:$4 sm:$0xff]  }
 0x757   :  { %23876 = vst [vmem:[#allocation59_spill] sm:$0xff] %v22725_v42  ;;  %23877 = vst [vmem:[#allocation81_spill] sm:$0xff] %v22729_v5 }
 0x758   :  { %v22731_v18 = vpop.f32.mrf.mxu1  ;;  %v8147_v25 = vpop.f32.mrf.mxu0 }
 0x759   :  { %v22734_v35 = vadd.f32 %v8147_v25, %v23878_v44  ;;  %9921 = vmatpush2.bf16.msra.mxu0 %v16620_v11  ;;  %v16626_v44 = vld [vmem:[#allocation10 + $0x3c0] ss:$8 sps:$4 sm:$0xff]  }
 0x75a   :  { %v22736_v57 = vpop.f32.mrf.mxu1  ;;  %v8149_v13 = vpop.f32.mrf.mxu0  ;;  %9922 = vmatprep.subr.bf16.mxu0 %v16628_v38  ;;  %v23887_v11 = vld [vmem:[#allocation84_spill] sm:$0xff]  ;;  %v23889_v38 = vld [vmem:[#allocation35_spill] sm:$0xff] }
 0x75b   :  { %23879 = vst [vmem:[#allocation61_spill] sm:$0xff] %v22734_v35  ;;  %v22739_v42 = vadd.f32 %v8149_v13, %v23880_v54  ;;  %v23885_v13 = vld [vmem:[#allocation32_spill] sm:$0xff] }
 0x75c   :  { %v22741_v20 = vpop.f32.mrf.mxu1  ;;  %v8151_v5 = vpop.f32.mrf.mxu0 }
 0x75d   :  { %23881 = vst [vmem:[#allocation23_spill] sm:$0xff] %v22739_v42  ;;  %v22744_v19 = vadd.f32 %v8151_v5, %v23882_v59  ;;  %9923 = vmatpush2.bf16.msra.mxu0 %v16626_v44  ;;  %v16632_v59 = vld [vmem:[#allocation10 + $0x3b0] ss:$8 sps:$4 sm:$0xff]  }
 0x75e   :  { %v22746_v25 = vpop.f32.mrf.mxu1  ;;  %v22748_v43 = vpop.f32.mrf.mxu0  ;;  %9924 = vmatprep.subr.bf16.mxu0 %v16634_v55  ;;  %v16646_v55 = vld [vmem:[#allocation10 + $0x394] ss:$8 sps:$4 sm:$0xff]  }
 0x75f   :  { %23883 = vst [vmem:[#allocation57_spill] sm:$0xff] %v22744_v19  ;;  %23884 = vst [vmem:[#allocation82_spill] sm:$0xff] %v22748_v43 }
 0x760   :  { %v22750_v35 = vpop.f32.mrf.mxu1  ;;  %v8157_v17 = vpop.f32.mrf.mxu0 }
 0x761   :  { %v22753_v54 = vadd.f32 %v8157_v17, %v23885_v13  ;;  %9925 = vmatpush2.bf16.msra.mxu0 %v16632_v59  ;;  %v16638_v13 = vld [vmem:[#allocation10 + $0x3a0] ss:$8 sps:$4 sm:$0xff]  }
 0x762   :  { %v22755_v42 = vpop.f32.mrf.mxu1  ;;  %v8159_v5 = vpop.f32.mrf.mxu0  ;;  %9926 = vmatprep.subr.bf16.mxu0 %v16640_v24 }
 0x763   :  { %23886 = vst [vmem:[#allocation26_spill] sm:$0xff] %v22753_v54  ;;  %v22758_v19 = vadd.f32 %v8159_v5, %v23887_v11 }
 0x764   :  { %v22760_v58 = vpop.f32.mrf.mxu1  ;;  %v8161_v43 = vpop.f32.mrf.mxu0 }
 0x765   :  { %23888 = vst [vmem:[#allocation67_spill] sm:$0xff] %v22758_v19  ;;  %v22763_v36 = vadd.f32 %v8161_v43, %v23889_v38  ;;  %9927 = vmatpush2.bf16.msra.mxu0 %v16638_v13  ;;  %v16644_v38 = vld [vmem:[#allocation10 + $0x390] ss:$8 sps:$4 sm:$0xff]   ;;  %v16652_v19 = vld [vmem:[#allocation10 + $0x384] ss:$8 sps:$4 sm:$0xff]  }
 0x766   :  { %v22765_v17 = vpop.f32.mrf.mxu1  ;;  %v22767_v44 = vpop.f32.mrf.mxu0  ;;  %9928 = vmatprep.subr.bf16.mxu0 %v16646_v55  ;;  %v16650_v13 = vld [vmem:[#allocation10 + $0x380] ss:$8 sps:$4 sm:$0xff]   ;;  %v16658_v55 = vld [vmem:[#allocation10 + $0x174] ss:$8 sps:$4 sm:$0xff]  }
 0x767   :  { %23890 = vst [vmem:[#allocation42_spill] sm:$0xff] %v22763_v36  ;;  %23891 = vst [vmem:[#allocation31_spill] sm:$0xff] %v22767_v44 }
 0x768   :  { %v22769_v54 = vpop.f32.mrf.mxu1  ;;  %v8167_v56 = vpop.f32.mrf.mxu0 }
 0x769   :  { %v22772_v5 = vadd.f32 %v8167_v56, %v22516_v46  ;;  %9929 = vmatpush2.bf16.msra.mxu0 %v16644_v38 }
 0x76a   :  { %v22774_v11 = vpop.f32.mrf.mxu1  ;;  %v8169_v43 = vpop.f32.mrf.mxu0  ;;  %9930 = vmatprep.subr.bf16.mxu0 %v16652_v19 }
 0x76b   :  { %23892 = vst [vmem:[#allocation45_spill] sm:$0xff] %v22772_v5  ;;  %23893 = vst [vmem:[#allocation21_spill] sm:$0xff] %v22774_v11  ;;  %v22777_v59 = vadd.f32 %v8169_v43, %v22524_v62 }
 0x76c   :  { %v22779_v36 = vpop.f32.mrf.mxu1  ;;  %v8171_v44 = vpop.f32.mrf.mxu0 }
 0x76d   :  { %23894 = vst [vmem:[#allocation33_spill] sm:$0xff] %v22777_v59  ;;  %v22782_v24 = vadd.f32 %v8171_v44, %v22529_v4  ;;  %9931 = vmatpush2.bf16.msra.mxu0 %v16650_v13 }
 0x76e   :  { %v22784_v46 = vpop.f32.mrf.mxu1  ;;  %v22786_v56 = vpop.f32.mrf.mxu0  ;;  %10306 = vmatprep.subr.bf16.mxu0 %v16658_v55 }
 0x76f   :  { %23895 = vst [vmem:[#allocation55_spill] sm:$0xff] %v22782_v24  ;;  %23896 = vst [vmem:[#allocation46_spill] sm:$0xff] %v22786_v56 }
 0x770   :  { %v22788_v5 = vpop.f32.mrf.mxu1  ;;  %v8177_v11 = vpop.f32.mrf.mxu0 }
 0x771   :  { %v22791_v62 = vadd.f32 %v8177_v11, %v22545_v34 }
 0x772   :  { %v22793_v43 = vpop.f32.mrf.mxu1  ;;  %v8179_v4 = vpop.f32.mrf.mxu0 }
 0x773   :  { %23897 = vst [vmem:[#allocation75_spill] sm:$0xff] %v22791_v62  ;;  %v22796_v44 = vadd.f32 %v8179_v4, %v22553_v37  ;;  %v23904_v37 = vld [vmem:[#allocation72_spill] sm:$0xff]  ;;  %v23905_v4 = vld [vmem:[#allocation22_spill] sm:$0xff] }
 0x774   :  { %v22798_v38 = vpop.f32.mrf.mxu1  ;;  %v8181_v24 = vpop.f32.mrf.mxu0  ;;  %v7339_v55 = vadd.f32 %v23905_v4, %v23904_v37 }
 0x775   :  { %23898 = vst [vmem:[#allocation38_spill] sm:$0xff] %v22796_v44  ;;  %23899 = vst [vmem:[#allocation32_spill] sm:$0xff] %v22798_v38  ;;  %v22801_v19 = vadd.f32 %v8181_v24, %v22558_v22 }
 0x776   :  { %v22803_v56 = vpop.f32.mrf.mxu1  ;;  %v22805_v59 = vpop.f32.mrf.mxu0  ;;  %v8081_v22 = vadd.f32 %v22592_v12, %v7339_v55 }
 0x777   :  { %23900 = vst [vmem:[#allocation84_spill] sm:$0xff] %v22801_v19  ;;  %23901 = vst [vmem:[#allocation35_spill] sm:$0xff] %v22805_v59 }
 0x778   :  { %v8187_v34 = vpop.f32.mrf.mxu0  ;;  %v22810_v13 = vpop.f32.mrf.mxu1 }
 0x779   :  { %v22808_v11 = vadd.f32 %v8187_v34, %v22574_v31  ;;  %23903 = vst [vmem:[#allocation89_spill] sm:$0xff] %v22810_v13 }
 0x77a   :  { %v8189_v62 = vpop.f32.mrf.mxu0  ;;  %v22821_v19 = vpop.f32.mrf.mxu1 }
 0x77b   :  { %23902 = vst [vmem:[#allocation88_spill] sm:$0xff] %v22808_v11  ;;  %v22815_v44 = vadd.f32 %v8189_v62, %v22582_v45 }
 0x77c   :  { %v8191_v38 = vpop.f32.mrf.mxu0  ;;  %v22828_v13 = vpop.f32.mrf.mxu1 }
 0x77d   :  { %v22819_v24 = vadd.f32 %v8191_v38, %v22587_v8 }
 0x77e   :  { %v8193_v59 = vpop.f32.mrf.mxu0  ;;  %v22836_v8 = vpop.f32.mrf.mxu1 }
 0x77f   :  { %v22823_v31 = vadd.f32 %v8193_v59, %v8081_v22 }
 0x780   :  { %v8197_v34 = vpop.f32.mrf.mxu0  ;;  %v22844_v55 = vpop.f32.mrf.mxu1 }
 0x781   :  { %v22826_v11 = vadd.f32 %v8197_v34, %v22603_v49 }
 0x782   :  { %v8199_v37 = vpop.f32.mrf.mxu0 }
 0x783   :  { %v22831_v45 = vadd.f32 %v8199_v37, %v22611_v51  ;;  %v22852_v37 = vpop.f32.mrf.mxu1 }
 0x784   :  { %v8201_v62 = vpop.f32.mrf.mxu0 }
 0x785   :  { %23906 = vst [vmem:[#allocation72_spill] sm:$0xff] %v22831_v45  ;;  %v22834_v12 = vadd.f32 %v8201_v62, %v22618_v30 }
 0x786   :  { %v8203_v38 = vpop.f32.mrf.mxu0 }
 0x787   :  { %23907 = vst [vmem:[#allocation22_spill] sm:$0xff] %v22834_v12  ;;  %v22839_v59 = vadd.f32 %v8203_v38, %v22625_v21 }
 0x788   :  { %v8207_v4 = vpop.f32.mrf.mxu0 }
 0x789   :  { %23908 = vst [vmem:[#allocation90_spill] sm:$0xff] %v22839_v59  ;;  %v22842_v49 = vadd.f32 %v8207_v4, %v22634_v10  ;;  %v22860_v4 = vpop.f32.mrf.mxu1 }
 0x78a   :  { %v8209_v22 = vpop.f32.mrf.mxu0 }
 0x78b   :  { %23909 = vst [vmem:[#allocation91_spill] sm:$0xff] %v22842_v49  ;;  %v22847_v51 = vadd.f32 %v8209_v22, %v22642_v2 }
 0x78c   :  { %v8211_v34 = vpop.f32.mrf.mxu0 }
 0x78d   :  { %23910 = vst [vmem:[#allocation92_spill] sm:$0xff] %v22847_v51  ;;  %v22850_v30 = vadd.f32 %v8211_v34, %v22649_v50  ;;  %v22868_v34 = vpop.f32.mrf.mxu1  ;;  %v22870_v51 = vld [vmem:[#allocation9] sm:$0xf] }
 0x78e   :  { %v8213_v62 = vpop.f32.mrf.mxu0 }
 0x78f   :  { %23911 = vst [vmem:[#allocation93_spill] sm:$0xff] %v22850_v30  ;;  %v22855_v21 = vadd.f32 %v8213_v62, %v22658_v61 }
 0x790   :  { %v8217_v38 = vpop.f32.mrf.mxu0 }
 0x791   :  { %23912 = vst [vmem:[#allocation94_spill] sm:$0xff] %v22855_v21  ;;  %v22858_v10 = vadd.f32 %v8217_v38, %v22664_v33  ;;  %v23917_v38 = vld [vmem:[#allocation54_spill] sm:$0xff] }
 0x792   :  { %v8219_v49 = vpop.f32.mrf.mxu0 }
 0x793   :  { %23913 = vst [vmem:[#allocation95_spill] sm:$0xff] %v22858_v10  ;;  %v22863_v2 = vadd.f32 %v8219_v49, %v22672_v6  ;;  %v22878_v10 = vrot.slane %v22870_v51, %v23917_v38  ;;  %v22880_v6 = vpop.f32.mrf.mxu1 }
 0x794   :  { %v8221_v22 = vpop.f32.mrf.mxu0 }
 0x795   :  { %23914 = vst [vmem:[#allocation96_spill] sm:$0xff] %v22863_v2  ;;  %v22866_v50 = vadd.f32 %v8221_v22, %v22679_v48  ;;  %v23918_v48 = vld [vmem:[#allocation34_spill] sm:$0xff] }
 0x796   :  { %v8223_v30 = vpop.f32.mrf.mxu0 }
 0x797   :  { %23915 = vst [vmem:[#allocation97_spill] sm:$0xff] %v22866_v50  ;;  %v22873_v61 = vadd.f32 %v8223_v30, %v22686_v14  ;;  %v23919_v30 = vld [vmem:[#allocation56_spill] sm:$0xff] }
 0x798   :  { %v8857_v33 = vpop.f32.mrf.mxu0 }
 0x799   :  { %23916 = vst [vmem:[#allocation98_spill] sm:$0xff] %v22873_v61  ;;  %v8858_v62 = vadd.f32 %v8857_v33, %v22688_v9  ;;  %v22888_v61 = vrot.slane %v22870_v51, %v23919_v30  ;;  %v22891_v33 = vpop.f32.mrf.mxu1 }
 0x79a   :  { %v8859_v49 = vpop.f32.mrf.mxu0 }
 0x79b   :  { %v9162_v22 = vadd.f32 %v8858_v62, %v23918_v48  ;;  %v8860_v50 = vadd.f32 %v8859_v49, %v22696_v1 }
 0x79c   :  { %v8861_v2 = vpop.f32.mrf.mxu0 }
 0x79d   :  { %v9248_v21 = vadd.f32 %v22878_v10, %v9162_v22  ;;  %v9163_v14 = vadd.f32 %v8860_v50, %v22527_v53  ;;  %v8862_v9 = vadd.f32 %v8861_v2, %v22701_v47  ;;  %v22899_v22 = vpop.f32.mrf.mxu1 }
 0x79e   :  { %v8863_v38 = vpop.f32.mrf.mxu0 }
 0x79f   :  { %v9166_v59 = vadd.f32 %v8862_v9, %v22532_v39  ;;  %v8864_v62 = vadd.f32 %v8863_v38, %v22706_v63  ;;  %v9249_v1 = vadd.f32 %v22888_v61, %v9163_v14  ;;  %v9312_v47 = vmax.f32 %v9248_v21, 0.0  ;;  %v22906_v45 = vpop.f32.mrf.mxu1 }
 0x7a0   :  { %v8867_v48 = vpop.f32.mrf.mxu0 }
 0x7a1   :  { %v9252_v49 = vadd.f32 %v22878_v10, %v9166_v59  ;;  %v9167_v53 = vadd.f32 %v8864_v62, %v22539_v7  ;;  %v8868_v50 = vadd.f32 %v8867_v48, %v22710_v27  ;;  %v9313_v9 = vmax.f32 %v9249_v1, 0.0 }
 0x7a2   :  { %v8869_v30 = vpop.f32.mrf.mxu0 }
 0x7a3   :  { %v9316_v2 = vmax.f32 %v9252_v49, 0.0  ;;  %v9253_v12 = vadd.f32 %v22888_v61, %v9167_v53  ;;  %v8870_v39 = vadd.f32 %v8869_v30, %v22717_v3  ;;  %v9170_v63 = vadd.f32 %v8868_v50, %v22548_v41 }
 0x7a4   :  { %v8871_v38 = vpop.f32.mrf.mxu0 }
 0x7a5   :  { %v22904_v14 = vpack.c.bf16 %v9316_v2, %v9312_v47  ;;  %v9317_v59 = vmax.f32 %v9253_v12, 0.0  ;;  %v9171_v7 = vadd.f32 %v8870_v39, %v22556_v60  ;;  %v8872_v27 = vadd.f32 %v8871_v38, %v22722_v0  ;;  %v22915_v12 = vpop.f32.mrf.mxu1 }
 0x7a6   :  { %v8873_v62 = vpop.f32.mrf.mxu0  ;;  %v9256_v49 = vadd.f32 %v22878_v10, %v9170_v63 }
 0x7a7   :  { %v8874_v21 = vadd.f32 %v8873_v62, %v22727_v32  ;;  %v9377_v48 = vpack.c.bf16 %v9317_v59, %v9313_v9  ;;  %v9174_v3 = vadd.f32 %v8872_v27, %v22561_v23  ;;  %v9257_v53 = vadd.f32 %v22888_v61, %v9171_v7  ;;  %v22925_v9 = vpop.f32.mrf.mxu1 }
 0x7a8   :  { %v8877_v41 = vpop.f32.mrf.mxu0  ;;  %v9320_v2 = vmax.f32 %v9256_v49, 0.0 }
 0x7a9   :  { %v9175_v30 = vadd.f32 %v8874_v21, %v22568_v26  ;;  %v8878_v1 = vadd.f32 %v8877_v41, %v22731_v18  ;;  %v9260_v60 = vadd.f32 %v22878_v10, %v9174_v3  ;;  %v9321_v59 = vmax.f32 %v9257_v53, 0.0  ;;  %v16563_v3 = vld [vmem:[#allocation10 + $0x70] ss:$8 sps:$4 sm:$0xff]  }
 0x7aa   :  { %v8879_v0 = vpop.f32.mrf.mxu0 }
 0x7ab   :  { %v9261_v50 = vadd.f32 %v22888_v61, %v9175_v30  ;;  %v9178_v32 = vadd.f32 %v8878_v1, %v22577_v29  ;;  %v8880_v47 = vadd.f32 %v8879_v0, %v22736_v57  ;;  %v9324_v23 = vmax.f32 %v9260_v60, 0.0  ;;  %v16571_v30 = vld [vmem:[#allocation10 + $0x64] ss:$8 sps:$4 sm:$0xff]   ;;  %v22933_v1 = vpop.f32.mrf.mxu1 }
 0x7ac   :  { %v8881_v39 = vpop.f32.mrf.mxu0 }
 0x7ad   :  { %v9325_v63 = vmax.f32 %v9261_v50, 0.0  ;;  %v9264_v26 = vadd.f32 %v22878_v10, %v9178_v32  ;;  %v9179_v18 = vadd.f32 %v8880_v47, %v22585_v15  ;;  %v8882_v38 = vadd.f32 %v8881_v39, %v22741_v20  ;;  %v16569_v47 = vld [vmem:[#allocation10 + $0x60] ss:$8 sps:$4 sm:$0xff]  }
 0x7ae   :  { %v9380_v7 = vpack.c.bf16 %v9324_v23, %v9320_v2  ;;  %v8883_v27 = vpop.f32.mrf.mxu0 }
 0x7af   :  { %v9265_v62 = vadd.f32 %v22888_v61, %v9179_v18  ;;  %v9182_v29 = vadd.f32 %v8882_v38, %v22590_v28  ;;  %v8884_v57 = vadd.f32 %v8883_v27, %v22746_v25  ;;  %v9381_v49 = vpack.c.bf16 %v9325_v63, %v9321_v59  ;;  %v16577_v63 = vld [vmem:[#allocation10 + $0x54] ss:$8 sps:$4 sm:$0xff]   ;;  %v23920_v59 = vld [vmem:[#allocation41_spill] sm:$0xff] }
 0x7b0   :  { %v8887_v21 = vpop.f32.mrf.mxu0  ;;  %v9328_v53 = vmax.f32 %v9264_v26, 0.0  ;;  %v22942_v26 = vpop.f32.mrf.mxu1 }
 0x7b1   :  { %v9268_v41 = vadd.f32 %v22878_v10, %v9182_v29  ;;  %v9183_v15 = vadd.f32 %v8884_v57, %v22597_v52  ;;  %v8888_v20 = vadd.f32 %v8887_v21, %v22750_v35  ;;  %9889 = vmatprep.mubr.bf16.mxu1 %v9381_v49  ;;  %v9329_v32 = vmax.f32 %v9265_v62, 0.0  ;;  %v16575_v62 = vld [vmem:[#allocation10 + $0x50] ss:$8 sps:$4 sm:$0xff]   ;;  %v23921_v29 = vld [vmem:[#allocation53_spill] sm:$0xff] }
 0x7b2   :  { %v8889_v60 = vpop.f32.mrf.mxu0  ;;  %9890 = vmatmul.mubr.bf16.vlgmr.msra.gmra.mxu1 %v9380_v7  ;;  %v16583_v21 = vld [vmem:[#allocation10 + $0x44] ss:$8 sps:$4 sm:$0xff]  }
 0x7b3   :  { %v9332_v0 = vmax.f32 %v9268_v41, 0.0  ;;  %v9269_v28 = vadd.f32 %v22888_v61, %v9183_v15  ;;  %v9186_v25 = vadd.f32 %v8888_v20, %v22606_v16  ;;  %v8890_v50 = vadd.f32 %v8889_v60, %v22755_v42  ;;  %10264 = vmatpush1.bf16.msra.mxu1 %v16563_v3  ;;  %10295 = vmatprep.mubr.bf16.mxu1 %v9377_v48  ;;  %v23922_v49 = vld [vmem:[#allocation73_spill] sm:$0xff]  ;;  %v22954_v41 = vpop.f32.mrf.mxu1 }
 0x7b4   :  { %v8891_v52 = vpop.f32.mrf.mxu0  ;;  %10265 = vmatprep.subr.bf16.mxu1 %v16571_v30  ;;  %v23924_v30 = vld [vmem:[#allocation39_spill] sm:$0xff]  ;;  %v23925_v60 = vld [vmem:[#allocation21_spill] sm:$0xff] }
 0x7b5   :  { %v22938_v35 = vpack.c.bf16 %v9332_v0, %v9328_v53  ;;  %v9333_v2 = vmax.f32 %v9269_v28, 0.0  ;;  %v9272_v23 = vadd.f32 %v22878_v10, %v9186_v25  ;;  %v9187_v39 = vadd.f32 %v8890_v50, %v22614_v40  ;;  %v23926_v28 = vld [vmem:[#allocation69_spill] sm:$0xff] }
 0x7b6   :  { %v8892_v16 = vadd.f32 %v8891_v52, %v22760_v58  ;;  %v8893_v42 = vpop.f32.mrf.mxu0  ;;  %v23923_v58 = vld [vmem:[#allocation60_spill] sm:$0xff] }
 0x7b7   :  { %v9273_v18 = vadd.f32 %v22888_v61, %v9187_v39  ;;  %v8894_v48 = vadd.f32 %v8893_v42, %v22765_v17  ;;  %v22947_v38 = vpack.c.bf16 %v9333_v2, %v9329_v32  ;;  %10266 = vmatpush1.bf16.msra.mxu1 %v16569_v47  ;;  %v7113_v3 = vadd.f32 %v23923_v58, %v23922_v49  ;;  %v16581_v52 = vld [vmem:[#allocation10 + $0x40] ss:$8 sps:$4 sm:$0xff]   ;;  %v16589_v42 = vld [vmem:[#allocation10 + $0x34] ss:$8 sps:$4 sm:$0xff]  }
 0x7b8   :  { %v9190_v7 = vadd.f32 %v8892_v16, %v23920_v59  ;;  %v8897_v27 = vpop.f32.mrf.mxu0  ;;  %10267 = vmatprep.subr.bf16.mxu1 %v16577_v63  ;;  %v9336_v50 = vmax.f32 %v9272_v23, 0.0  ;;  %v23927_v39 = vld [vmem:[#allocation28_spill] sm:$0xff] }
 0x7b9   :  { %v9191_v40 = vadd.f32 %v8894_v48, %v23921_v29  ;;  %v8898_v57 = vadd.f32 %v8897_v27, %v22769_v54  ;;  %v7855_v25 = vadd.f32 %v23926_v28, %v7113_v3  ;;  %v22964_v48 = vpop.f32.mrf.mxu1  ;;  %v9337_v59 = vmax.f32 %v9273_v18, 0.0  ;;  %v23928_v23 = vld [vmem:[#allocation76_spill] sm:$0xff]  ;;  %v16587_v3 = vld [vmem:[#allocation10 + $0x30] ss:$8 sps:$4 sm:$0xff]  }
 0x7ba   :  { %v9276_v17 = vadd.f32 %v22878_v10, %v9190_v7  ;;  %v8899_v15 = vpop.f32.mrf.mxu0 }
 0x7bb   :  { %v9277_v20 = vadd.f32 %v22888_v61, %v9191_v40  ;;  %v9194_v53 = vadd.f32 %v8898_v57, %v23924_v30  ;;  %v8900_v0 = vadd.f32 %v8899_v15, %v23925_v60  ;;  %10268 = vmatpush1.bf16.msra.mxu1 %v16575_v62  ;;  %v7968_v29 = vadd.f32 %v23928_v23, %v7855_v25  ;;  %v23929_v40 = vld [vmem:[#allocation64_spill] sm:$0xff]  ;;  %v16595_v15 = vld [vmem:[#allocation10 + $0x24] ss:$8 sps:$4 sm:$0xff]   ;;  %v22978_v60 = vpop.f32.mrf.mxu1 }
 0x7bc   :  { %v9340_v54 = vmax.f32 %v9276_v17, 0.0  ;;  %v8901_v32 = vpop.f32.mrf.mxu0  ;;  %10269 = vmatprep.subr.bf16.mxu1 %v16583_v21  ;;  %v23931_v30 = vld [vmem:[#allocation25_spill] sm:$0xff]  ;;  %v16601_v23 = vld [vmem:[#allocation10 + $0x14] ss:$8 sps:$4 sm:$0xff]  }
 0x7bd   :  { %v9341_v47 = vmax.f32 %v9277_v20, 0.0  ;;  %v9280_v2 = vadd.f32 %v22878_v10, %v9194_v53  ;;  %v9195_v63 = vadd.f32 %v8900_v0, %v23927_v39  ;;  %v8902_v16 = vadd.f32 %v8901_v32, %v22779_v36  ;;  %v23930_v20 = vld [vmem:[#allocation43_spill] sm:$0xff] }
 0x7be   :  { %v22966_v7 = vpack.c.bf16 %v9340_v54, %v9336_v50  ;;  %v8903_v27 = vpop.f32.mrf.mxu0  ;;  %v7123_v53 = vadd.f32 %v23931_v30, %v23930_v20  ;;  %v23932_v50 = vld [vmem:[#allocation86_spill] sm:$0xff] }
 0x7bf   :  { %v9281_v62 = vadd.f32 %v22888_v61, %v9195_v63  ;;  %v9198_v57 = vadd.f32 %v8902_v16, %v23929_v40  ;;  %v8904_v49 = vadd.f32 %v8903_v27, %v22784_v46  ;;  %10270 = vmatpush1.bf16.msra.mxu1 %v16581_v52  ;;  %v22972_v36 = vpack.c.bf16 %v9341_v47, %v9337_v59  ;;  %v23933_v52 = vld [vmem:[#allocation37_spill] sm:$0xff]  ;;  %v23935_v40 = vld [vmem:[#allocation32_spill] sm:$0xff]  ;;  %v16599_v30 = vld [vmem:[#allocation10 + $0x10] ss:$8 sps:$4 sm:$0xff]  }
 0x7c0   :  { %v8907_v58 = vpop.f32.mrf.mxu0  ;;  %10271 = vmatprep.subr.bf16.mxu1 %v16589_v42  ;;  %v9344_v0 = vmax.f32 %v9280_v2, 0.0  ;;  %v7865_v47 = vadd.f32 %v23933_v52, %v7123_v53  ;;  %v16593_v63 = vld [vmem:[#allocation10 + $0x20] ss:$8 sps:$4 sm:$0xff]   ;;  %v23934_v2 = vld [vmem:[#allocation66_spill] sm:$0xff] }
 0x7c1   :  { %v9284_v21 = vadd.f32 %v22878_v10, %v9198_v57  ;;  %v9199_v17 = vadd.f32 %v8904_v49, %v7968_v29  ;;  %v8908_v18 = vadd.f32 %v8907_v58, %v22788_v5  ;;  %v9345_v39 = vmax.f32 %v9281_v62, 0.0  ;;  %v22988_v29 = vpop.f32.mrf.mxu1  ;;  %v23936_v49 = vld [vmem:[#allocation68_spill] sm:$0xff]  ;;  %v23938_v53 = vld [vmem:[#allocation89_spill] sm:$0xff] }
 0x7c2   :  { %v8909_v28 = vpop.f32.mrf.mxu0  ;;  %v7978_v58 = vadd.f32 %v23936_v49, %v7865_v47  ;;  %v23941_v47 = vld [vmem:[#allocation62_spill] sm:$0xff] }
 0x7c3   :  { %v9348_v46 = vmax.f32 %v9284_v21, 0.0  ;;  %v9285_v25 = vadd.f32 %v22888_v61, %v9199_v17  ;;  %v9202_v54 = vadd.f32 %v8908_v18, %v23932_v50  ;;  %v8910_v32 = vadd.f32 %v8909_v28, %v22793_v43  ;;  %10272 = vmatpush1.bf16.msra.mxu1 %v16587_v3  ;;  %v23937_v17 = vld [vmem:[#allocation78_spill] sm:$0xff] }
 0x7c4   :  { %v8911_v5 = vpop.f32.mrf.mxu0  ;;  %10273 = vmatprep.subr.bf16.mxu1 %v16595_v15  ;;  %v16607_v28 = vld [vmem:[#allocation10 + $0x4] ss:$8 sps:$4 sm:$0xff]  }
 0x7c5   :  { %v22984_v16 = vpack.c.bf16 %v9348_v46, %v9344_v0  ;;  %v9349_v42 = vmax.f32 %v9285_v25, 0.0  ;;  %v9288_v59 = vadd.f32 %v22878_v10, %v9202_v54  ;;  %v9203_v27 = vadd.f32 %v8910_v32, %v23934_v2  ;;  %v23939_v46 = vld [vmem:[#allocation36_spill] sm:$0xff]  ;;  %v23940_v25 = vld [vmem:[#allocation30_spill] sm:$0xff]  ;;  %v23000_v54 = vpop.f32.mrf.mxu1 }
 0x7c6   :  { %v8912_v57 = vadd.f32 %v8911_v5, %v23935_v40  ;;  %v8913_v43 = vpop.f32.mrf.mxu0  ;;  %v7133_v50 = vadd.f32 %v23940_v25, %v23939_v46  ;;  %v16605_v40 = vld [vmem:[#allocation10] ss:$8 sps:$4 sm:$0xff]   ;;  %v23943_v49 = vld [vmem:[#allocation70_spill] sm:$0xff] }
 0x7c7   :  { %v9289_v62 = vadd.f32 %v22888_v61, %v9203_v27  ;;  %v8914_v3 = vadd.f32 %v8913_v43, %v22803_v56  ;;  %v22994_v21 = vpack.c.bf16 %v9349_v42, %v9345_v39  ;;  %10274 = vmatpush1.bf16.msra.mxu1 %v16593_v63  ;;  %v23942_v63 = vld [vmem:[#allocation77_spill] sm:$0xff]  ;;  %v9352_v2 = vmax.f32 %v9288_v59, 0.0  ;;  %v23944_v59 = vld [vmem:[#allocation51_spill] sm:$0xff] }
 0x7c8   :  { %v9206_v18 = vadd.f32 %v8912_v57, %v23937_v17  ;;  %v8917_v20 = vpop.f32.mrf.mxu0  ;;  %10275 = vmatprep.subr.bf16.mxu1 %v16601_v23  ;;  %v7875_v42 = vadd.f32 %v23942_v63, %v7133_v50  ;;  %v16613_v17 = vld [vmem:[#allocation10 + $0xf4] ss:$8 sps:$4 sm:$0xff]  }
 0x7c9   :  { %v9207_v15 = vadd.f32 %v8914_v3, %v7978_v58  ;;  %v8918_v0 = vadd.f32 %v8917_v20, %v23938_v53  ;;  %v9353_v20 = vmax.f32 %v9289_v62, 0.0 }
 0x7ca   :  { %v9292_v32 = vadd.f32 %v22878_v10, %v9206_v18  ;;  %v8919_v56 = vpop.f32.mrf.mxu0  ;;  %v23010_v18 = vpop.f32.mrf.mxu1  ;;  %v7988_v53 = vadd.f32 %v23944_v59, %v7875_v42 }
 0x7cb   :  { %v9293_v52 = vadd.f32 %v22888_v61, %v9207_v15  ;;  %v9210_v39 = vadd.f32 %v8918_v0, %v23941_v47  ;;  %v8920_v5 = vadd.f32 %v8919_v56, %v22821_v19  ;;  %10276 = vmatpush1.bf16.msra.mxu1 %v16599_v30  ;;  %v23945_v0 = vld [vmem:[#allocation80_spill] sm:$0xff]  ;;  %v23946_v47 = vld [vmem:[#allocation47_spill] sm:$0xff] }
 0x7cc   :  { %v9356_v27 = vmax.f32 %v9292_v32, 0.0  ;;  %v8921_v23 = vpop.f32.mrf.mxu0  ;;  %10277 = vmatprep.subr.bf16.mxu1 %v16607_v28  ;;  %v16611_v32 = vld [vmem:[#allocation10 + $0xf0] ss:$8 sps:$4 sm:$0xff]   ;;  %v23024_v63 = vpop.f32.mrf.mxu1 }
 0x7cd   :  { %v9357_v57 = vmax.f32 %v9293_v52, 0.0  ;;  %v9296_v43 = vadd.f32 %v22878_v10, %v9210_v39  ;;  %v9211_v58 = vadd.f32 %v8920_v5, %v23943_v49  ;;  %v8922_v3 = vadd.f32 %v8921_v23, %v22828_v13  ;;  %v16619_v52 = vld [vmem:[#allocation10 + $0xe4] ss:$8 sps:$4 sm:$0xff]   ;;  %v23947_v39 = vld [vmem:[#allocation24_spill] sm:$0xff]  ;;  %v23949_v49 = vld [vmem:[#allocation63_spill] sm:$0xff] }
 0x7ce   :  { %v23012_v19 = vpack.c.bf16 %v9356_v27, %v9352_v2  ;;  %v8923_v15 = vpop.f32.mrf.mxu0  ;;  %v7143_v5 = vadd.f32 %v23947_v39, %v23946_v47  ;;  %v23948_v23 = vld [vmem:[#allocation74_spill] sm:$0xff] }
 0x7cf   :  { %v9297_v30 = vadd.f32 %v22888_v61, %v9211_v58  ;;  %v9214_v46 = vadd.f32 %v8922_v3, %v23945_v0  ;;  %v8924_v25 = vadd.f32 %v8923_v15, %v22836_v8  ;;  %10278 = vmatpush1.bf16.msra.mxu1 %v16605_v40  ;;  %v23018_v13 = vpack.c.bf16 %v9357_v57, %v9353_v20  ;;  %v16625_v0 = vld [vmem:[#allocation10 + $0xd4] ss:$8 sps:$4 sm:$0xff]  }
 0x7d0   :  { %v8927_v50 = vpop.f32.mrf.mxu0  ;;  %10279 = vmatprep.subr.bf16.mxu1 %v16613_v17  ;;  %v9360_v42 = vmax.f32 %v9296_v43, 0.0  ;;  %v7885_v58 = vadd.f32 %v23949_v49, %v7143_v5  ;;  %v16617_v17 = vld [vmem:[#allocation10 + $0xe0] ss:$8 sps:$4 sm:$0xff]   ;;  %v23950_v43 = vld [vmem:[#allocation58_spill] sm:$0xff] }
 0x7d1   :  { %v9300_v28 = vadd.f32 %v22878_v10, %v9214_v46  ;;  %v9215_v56 = vadd.f32 %v8924_v25, %v7988_v53  ;;  %v8928_v62 = vadd.f32 %v8927_v50, %v22844_v55  ;;  %v9361_v3 = vmax.f32 %v9297_v30, 0.0  ;;  %v23034_v46 = vpop.f32.mrf.mxu1  ;;  %v23951_v50 = vld [vmem:[#allocation81_spill] sm:$0xff]  ;;  %v16623_v5 = vld [vmem:[#allocation10 + $0xd0] ss:$8 sps:$4 sm:$0xff]  }
 0x7d2   :  { %v8929_v2 = vpop.f32.mrf.mxu0 }
 0x7d3   :  { %v9364_v8 = vmax.f32 %v9300_v28, 0.0  ;;  %v9301_v27 = vadd.f32 %v22888_v61, %v9215_v56  ;;  %v9218_v40 = vadd.f32 %v8928_v62, %v23948_v23  ;;  %v8930_v57 = vadd.f32 %v8929_v2, %v22852_v37  ;;  %10280 = vmatpush2.bf16.msra.mxu1 %v16611_v32  ;;  %v23952_v62 = vld [vmem:[#allocation59_spill] sm:$0xff]  ;;  %v16631_v23 = vld [vmem:[#allocation10 + $0xc4] ss:$8 sps:$4 sm:$0xff]   ;;  %v23051_v49 = vpop.f32.mrf.mxu1 }
 0x7d4   :  { %v8931_v55 = vpop.f32.mrf.mxu0  ;;  %10281 = vmatprep.subr.bf16.mxu1 %v16619_v52  ;;  %v7998_v28 = vadd.f32 %v23951_v50, %v7885_v58  ;;  %v23953_v52 = vld [vmem:[#allocation50_spill] sm:$0xff] }
 0x7d5   :  { %v23030_v20 = vpack.c.bf16 %v9364_v8, %v9360_v42  ;;  %v9365_v15 = vmax.f32 %v9301_v27, 0.0  ;;  %v9304_v59 = vadd.f32 %v22878_v10, %v9218_v40  ;;  %v9219_v53 = vadd.f32 %v8930_v57, %v23950_v43  ;;  %v23955_v40 = vld [vmem:[#allocation40_spill] sm:$0xff]  ;;  %v23958_v43 = vld [vmem:[#allocation65_spill] sm:$0xff] }
 0x7d6   :  { %v8932_v25 = vadd.f32 %v8931_v55, %v22860_v4  ;;  %v8933_v37 = vpop.f32.mrf.mxu0  ;;  %v9242_v42 = vsub.s32 3, %v23953_v52  ;;  %v23954_v4 = vld [vmem:[#allocation52_spill] sm:$0xff] }
 0x7d7   :  { %v9305_v30 = vadd.f32 %v22888_v61, %v9219_v53  ;;  %v8934_v32 = vadd.f32 %v8933_v37, %v22868_v34  ;;  %v23040_v56 = vpack.c.bf16 %v9365_v15, %v9361_v3  ;;  %10282 = vmatpush2.bf16.msra.mxu1 %v16617_v17  ;;  %v23047_v27 = vrot.slane %v22870_v51, %v23954_v4  ;;  %v23956_v34 = vld [vmem:[#allocation27_spill] sm:$0xff]  ;;  %v23957_v17 = vld [vmem:[#allocation61_spill] sm:$0xff] }
 0x7d8   :  { %v9222_v47 = vadd.f32 %v8932_v25, %v23952_v62  ;;  %v9083_v39 = vpop.f32.mrf.mxu0  ;;  %10283 = vmatprep.subr.bf16.mxu1 %v16625_v0  ;;  %v7299_v57 = vadd.f32 %v23956_v34, %v23955_v40  ;;  %v9368_v25 = vmax.f32 %v9304_v59, 0.0  ;;  %v23059_v0 = vrot.slane %v22870_v51, %v9242_v42  ;;  %v23959_v62 = vld [vmem:[#allocation23_spill] sm:$0xff]  ;;  %v23960_v51 = vld [vmem:[#allocation82_spill] sm:$0xff] }
 0x7d9   :  { %v9223_v2 = vadd.f32 %v8934_v32, %v7998_v28  ;;  %v9084_v8 = vadd.f32 %v9083_v39, %v22880_v6  ;;  %v16629_v28 = vld [vmem:[#allocation10 + $0xc0] ss:$8 sps:$4 sm:$0xff]   ;;  %v16637_v39 = vld [vmem:[#allocation10 + $0xb4] ss:$8 sps:$4 sm:$0xff]   ;;  %v9369_v52 = vmax.f32 %v9305_v30, 0.0 }
 0x7da   :  { %v9308_v58 = vadd.f32 %v22878_v10, %v9222_v47  ;;  %v9085_v3 = vpop.f32.mrf.mxu0  ;;  %v8041_v53 = vadd.f32 %v23958_v43, %v7299_v57  ;;  %v16635_v34 = vld [vmem:[#allocation10 + $0xb0] ss:$8 sps:$4 sm:$0xff]  }
 0x7db   :  { %v9309_v55 = vadd.f32 %v22888_v61, %v9223_v2  ;;  %v9164_v15 = vadd.f32 %v9084_v8, %v23957_v17  ;;  %v9086_v6 = vadd.f32 %v9085_v3, %v22891_v33  ;;  %10284 = vmatpush2.bf16.msra.mxu1 %v16623_v5  ;;  %v23064_v33 = vpop.f32.mrf.mxu1  ;;  %v23961_v5 = vld [vmem:[#allocation57_spill] sm:$0xff]  ;;  %v23963_v17 = vld [vmem:[#allocation44_spill] sm:$0xff] }
 0x7dc   :  { %v9372_v37 = vmax.f32 %v9308_v58, 0.0  ;;  %v9087_v50 = vpop.f32.mrf.mxu0  ;;  %10285 = vmatprep.subr.bf16.mxu1 %v16631_v23  ;;  %v8154_v42 = vadd.f32 %v23960_v51, %v8041_v53  ;;  %v16643_v3 = vld [vmem:[#allocation10 + $0xa4] ss:$8 sps:$4 sm:$0xff]  }
 0x7dd   :  { %v9373_v32 = vmax.f32 %v9309_v55, 0.0  ;;  %v9250_v10 = vadd.f32 %v23047_v27, %v9164_v15  ;;  %v9165_v47 = vadd.f32 %v9086_v6, %v23959_v62  ;;  %v9088_v61 = vadd.f32 %v9087_v50, %v22899_v22  ;;  %v23962_v55 = vld [vmem:[#allocation85_spill] sm:$0xff]  ;;  %v23078_v6 = vpop.f32.mrf.mxu1  ;;  %v23964_v50 = vld [vmem:[#allocation26_spill] sm:$0xff] }
 0x7de   :  { %v23066_v59 = vpack.c.bf16 %v9372_v37, %v9368_v25  ;;  %v9089_v2 = vpop.f32.mrf.mxu0  ;;  %v7309_v15 = vadd.f32 %v23963_v17, %v23962_v55  ;;  %v16641_v62 = vld [vmem:[#allocation10 + $0xa0] ss:$8 sps:$4 sm:$0xff]  }
 0x7df   :  { %v9168_v8 = vadd.f32 %v9088_v61, %v23961_v5  ;;  %v9090_v4 = vadd.f32 %v9089_v2, %v22906_v45  ;;  %10286 = vmatpush2.bf16.msra.mxu1 %v16629_v28  ;;  %v23071_v57 = vpack.c.bf16 %v9373_v32, %v9369_v52  ;;  %v9251_v22 = vadd.f32 %v23059_v0, %v9165_v47  ;;  %v16649_v2 = vld [vmem:[#allocation10 + $0x94] ss:$8 sps:$4 sm:$0xff]   ;;  %v23086_v51 = vpop.f32.mrf.mxu1 }
 0x7e0   :  { %v9093_v40 = vpop.f32.mrf.mxu0  ;;  %10287 = vmatprep.subr.bf16.mxu1 %v16637_v39  ;;  %v9314_v43 = vmax.f32 %v9250_v10, 0.0  ;;  %v23966_v10 = vld [vmem:[#allocation67_spill] sm:$0xff] }
 0x7e1   :  { %v9254_v23 = vadd.f32 %v23047_v27, %v9168_v8  ;;  %v9169_v58 = vadd.f32 %v9090_v4, %v8154_v42  ;;  %v9094_v30 = vadd.f32 %v9093_v40, %v22915_v12  ;;  %v23965_v12 = vld [vmem:[#allocation48_spill] sm:$0xff]  ;;  %v9315_v61 = vmax.f32 %v9251_v22, 0.0  ;;  %v23967_v8 = vld [vmem:[#allocation31_spill] sm:$0xff] }
 0x7e2   :  { %v9095_v45 = vpop.f32.mrf.mxu0  ;;  %v8051_v47 = vadd.f32 %v23965_v12, %v7309_v15  ;;  %v16655_v15 = vld [vmem:[#allocation10 + $0x84] ss:$8 sps:$4 sm:$0xff]   ;;  %v23972_v12 = vld [vmem:[#allocation79_spill] sm:$0xff] }
 0x7e3   :  { %v9318_v53 = vmax.f32 %v9254_v23, 0.0  ;;  %v9255_v25 = vadd.f32 %v23059_v0, %v9169_v58  ;;  %v9096_v37 = vadd.f32 %v9095_v45, %v22925_v9  ;;  %v9172_v28 = vadd.f32 %v9094_v30, %v23964_v50  ;;  %10288 = vmatpush2.bf16.msra.mxu1 %v16635_v34  ;;  %v23968_v23 = vld [vmem:[#allocation42_spill] sm:$0xff]  ;;  %v23970_v45 = vld [vmem:[#allocation87_spill] sm:$0xff] }
 0x7e4   :  { %v9097_v32 = vpop.f32.mrf.mxu0  ;;  %10289 = vmatprep.subr.bf16.mxu1 %v16643_v3  ;;  %v8164_v4 = vadd.f32 %v23967_v8, %v8051_v47  ;;  %v16647_v3 = vld [vmem:[#allocation10 + $0x90] ss:$8 sps:$4 sm:$0xff]  }
 0x7e5   :  { %v23084_v39 = vpack.c.bf16 %v9318_v53, %v9314_v43  ;;  %v9319_v52 = vmax.f32 %v9255_v25, 0.0  ;;  %v9173_v42 = vadd.f32 %v9096_v37, %v23966_v10  ;;  %v9098_v5 = vadd.f32 %v9097_v32, %v22933_v1  ;;  %v23969_v1 = vld [vmem:[#allocation83_spill] sm:$0xff]  ;;  %v23099_v53 = vpop.f32.mrf.mxu1 }
 0x7e6   :  { %v9099_v9 = vpop.f32.mrf.mxu0  ;;  %v9258_v22 = vadd.f32 %v23047_v27, %v9172_v28  ;;  %v7319_v43 = vadd.f32 %v23970_v45, %v23969_v1  ;;  %v23971_v28 = vld [vmem:[#allocation45_spill] sm:$0xff] }
 0x7e7   :  { %v9100_v40 = vadd.f32 %v9099_v9, %v22942_v26  ;;  %v23092_v34 = vpack.c.bf16 %v9319_v52, %v9315_v61  ;;  %v9176_v58 = vadd.f32 %v9098_v5, %v23968_v23  ;;  %10290 = vmatpush2.bf16.msra.mxu1 %v16641_v62  ;;  %v9259_v26 = vadd.f32 %v23059_v0, %v9173_v42  ;;  %v23973_v42 = vld [vmem:[#allocation33_spill] sm:$0xff] }
 0x7e8   :  { %v9103_v30 = vpop.f32.mrf.mxu0  ;;  %10291 = vmatprep.subr.bf16.mxu1 %v16649_v2  ;;  %v9322_v47 = vmax.f32 %v9258_v22, 0.0  ;;  %v16653_v2 = vld [vmem:[#allocation10 + $0x80] ss:$8 sps:$4 sm:$0xff]  }
 0x7e9   :  { %v9177_v55 = vadd.f32 %v9100_v40, %v8164_v4  ;;  %v9104_v17 = vadd.f32 %v9103_v30, %v22954_v41  ;;  %v9262_v25 = vadd.f32 %v23047_v27, %v9176_v58  ;;  %v8061_v41 = vadd.f32 %v23972_v12, %v7319_v43  ;;  %v16661_v4 = vld [vmem:[#allocation10 + $0x474] ss:$8 sps:$4 sm:$0xff]   ;;  %v23110_v40 = vpop.f32.mrf.mxu1  ;;  %v23974_v30 = vld [vmem:[#allocation46_spill] sm:$0xff] }
 0x7ea   :  { %v9105_v37 = vpop.f32.mrf.mxu0  ;;  %v9323_v23 = vmax.f32 %v9259_v26, 0.0 }
 0x7eb   :  { %v9263_v50 = vadd.f32 %v23059_v0, %v9177_v55  ;;  %v9180_v32 = vadd.f32 %v9104_v17, %v23971_v28  ;;  %v9106_v62 = vadd.f32 %v9105_v37, %v22964_v48  ;;  %v9326_v61 = vmax.f32 %v9262_v25, 0.0  ;;  %10292 = vmatpush2.bf16.msra.mxu1 %v16647_v3  ;;  %v23975_v55 = vld [vmem:[#allocation55_spill] sm:$0xff]  ;;  %v23977_v28 = vld [vmem:[#allocation49_spill] sm:$0xff] }
 0x7ec   :  { %v9107_v52 = vpop.f32.mrf.mxu0  ;;  %10293 = vmatprep.subr.bf16.mxu1 %v16655_v15  ;;  %v8174_v22 = vadd.f32 %v23974_v30, %v8061_v41  ;;  %v16656_v25 = vld [vmem:[#allocation10 + $0x170] ss:$8 sps:$4 sm:$0xff]  }
 0x7ed   :  { %v9327_v10 = vmax.f32 %v9263_v50, 0.0  ;;  %v9266_v5 = vadd.f32 %v23047_v27, %v9180_v32  ;;  %v9181_v9 = vadd.f32 %v9106_v62, %v23973_v42  ;;  %v9108_v8 = vadd.f32 %v9107_v52, %v22978_v60  ;;  %v16659_v60 = vld [vmem:[#allocation10 + $0x470] ss:$8 sps:$4 sm:$0xff]   ;;  %v23976_v50 = vld [vmem:[#allocation29_spill] sm:$0xff]  ;;  %v23120_v62 = vpop.f32.mrf.mxu1 }
 0x7ee   :  { %v9382_v48 = vpack.c.bf16 %v9326_v61, %v9322_v47  ;;  %v9109_v58 = vpop.f32.mrf.mxu0  ;;  %v7329_v32 = vadd.f32 %v23977_v28, %v23976_v50  ;;  %v16667_v47 = vld [vmem:[#allocation10 + $0x464] ss:$8 sps:$4 sm:$0xff]   ;;  %v23979_v42 = vld [vmem:[#allocation71_spill] sm:$0xff] }
 0x7ef   :  { %v9267_v3 = vadd.f32 %v23059_v0, %v9181_v9  ;;  %v9184_v17 = vadd.f32 %v9108_v8, %v23975_v55  ;;  %v9110_v1 = vadd.f32 %v9109_v58, %v22988_v29  ;;  %10294 = vmatpush2.bf16.msra.mxu1 %v16653_v2  ;;  %v9383_v43 = vpack.c.bf16 %v9327_v10, %v9323_v23  ;;  %v16664_v29 = vld [vmem:[#allocation10 + $0x164] ss:$8 sps:$4 sm:$0xff]   ;;  %v23978_v2 = vld [vmem:[#allocation75_spill] sm:$0xff]  ;;  %v16665_v23 = vld [vmem:[#allocation10 + $0x460] ss:$8 sps:$4 sm:$0xff]  }
 0x7f0   :  { %v9113_v45 = vpop.f32.mrf.mxu0  ;;  %10734 = vmatprep.subr.bf16.mxu1 %v16661_v4  ;;  %v9330_v12 = vmax.f32 %v9266_v5, 0.0  ;;  %v8071_v9 = vadd.f32 %v23979_v42, %v7329_v32  ;;  %v16662_v4 = vld [vmem:[#allocation10 + $0x160] ss:$8 sps:$4 sm:$0xff]   ;;  %v23980_v55 = vld [vmem:[#allocation38_spill] sm:$0xff] }
 0x7f1   :  { %v9270_v15 = vadd.f32 %v23047_v27, %v9184_v17  ;;  %v9185_v37 = vadd.f32 %v9110_v1, %v8174_v22  ;;  %v9114_v26 = vadd.f32 %v9113_v45, %v23000_v54  ;;  %9932 = vmatprep.mubr.bf16.mxu0 %v9383_v43  ;;  %v9331_v8 = vmax.f32 %v9267_v3, 0.0  ;;  %v23981_v45 = vld [vmem:[#allocation35_spill] sm:$0xff]  ;;  %v16676_v32 = vld [vmem:[#allocation10 + $0x144] ss:$8 sps:$4 sm:$0xff]   ;;  %v16674_v42 = vld [vmem:[#allocation10 + $0x140] ss:$8 sps:$4 sm:$0xff]  }
 0x7f2   :  { %v9115_v41 = vpop.f32.mrf.mxu0  ;;  %10296 = vmatmul.mubr.bf16.vlgmr.msra.gmra.mxu1 %v22904_v14  ;;  %9933 = vmatmul.mubr.bf16.vlgmr.msra.gmra.mxu0 %v9382_v48  ;;  %v16670_v14 = vld [vmem:[#allocation10 + $0x154] ss:$8 sps:$4 sm:$0xff]   ;;  %v23133_v48 = vpop.f32.mrf.mxu1  ;;  %v8184_v43 = vadd.f32 %v23981_v45, %v8071_v9  ;;  %v16671_v50 = vld [vmem:[#allocation10 + $0x450] ss:$8 sps:$4 sm:$0xff]   ;;  %v16677_v9 = vld [vmem:[#allocation10 + $0x440] ss:$8 sps:$4 sm:$0xff]  }
 0x7f3   :  { %v9334_v61 = vmax.f32 %v9270_v15, 0.0  ;;  %v9271_v52 = vadd.f32 %v23059_v0, %v9185_v37  ;;  %v9188_v10 = vadd.f32 %v9114_v26, %v23978_v2  ;;  %v9116_v54 = vadd.f32 %v9115_v41, %v23010_v18  ;;  %10307 = vmatpush1.bf16.msra.mxu0 %v16656_v25  ;;  %10735 = vmatpush1.bf16.msra.mxu1 %v16659_v60  ;;  %v16673_v18 = vld [vmem:[#allocation10 + $0x454] ss:$8 sps:$4 sm:$0xff]   ;;  %v16668_v26 = vld [vmem:[#allocation10 + $0x150] ss:$8 sps:$4 sm:$0xff]  }
 0x7f4   :  { %v9117_v5 = vpop.f32.mrf.mxu0  ;;  %10766 = vmatprep.mubr.bf16.mxu1 %v22947_v38  ;;  %10338 = vmatprep.mubr.bf16.mxu0 %v23092_v34  ;;  %v23982_v38 = vld [vmem:[#allocation84_spill] sm:$0xff]  ;;  %v23143_v41 = vpop.f32.mrf.mxu1  ;;  %v16683_v45 = vld [vmem:[#allocation10 + $0x430] ss:$8 sps:$4 sm:$0xff]  }
 0x7f5   :  { %v23127_v58 = vpack.c.bf16 %v9334_v61, %v9330_v12  ;;  %v9335_v30 = vmax.f32 %v9271_v52, 0.0  ;;  %v9274_v22 = vadd.f32 %v23047_v27, %v9188_v10  ;;  %v9189_v17 = vadd.f32 %v9116_v54, %v23980_v55  ;;  %10308 = vmatprep.subr.bf16.mxu0 %v16664_v29  ;;  %10736 = vmatprep.subr.bf16.mxu1 %v16667_v47  ;;  %v16679_v12 = vld [vmem:[#allocation10 + $0x444] ss:$8 sps:$4 sm:$0xff]   ;;  %v23983_v61 = vld [vmem:[#allocation88_spill] sm:$0xff] }
 0x7f6   :  { %v9118_v3 = vadd.f32 %v9117_v5, %v23024_v63  ;;  %v9119_v1 = vpop.f32.mrf.mxu0  ;;  %v16685_v55 = vld [vmem:[#allocation10 + $0x434] ss:$8 sps:$4 sm:$0xff]  }
 0x7f7   :  { %v9275_v25 = vadd.f32 %v23059_v0, %v9189_v17  ;;  %v9120_v60 = vadd.f32 %v9119_v1, %v23034_v46  ;;  %v23139_v15 = vpack.c.bf16 %v9335_v30, %v9331_v8  ;;  %10309 = vmatpush1.bf16.msra.mxu0 %v16662_v4  ;;  %10737 = vmatpush1.bf16.msra.mxu1 %v16665_v23  ;;  %v9338_v10 = vmax.f32 %v9274_v22, 0.0  ;;  %v16682_v30 = vld [vmem:[#allocation10 + $0x134] ss:$8 sps:$4 sm:$0xff]   ;;  %v23152_v17 = vpop.f32.mrf.mxu1 }
 0x7f8   :  { %v9192_v37 = vadd.f32 %v9118_v3, %v23982_v38  ;;  %v9123_v34 = vpop.f32.mrf.mxu0  ;;  %10310 = vmatprep.subr.bf16.mxu0 %v16670_v14  ;;  %10738 = vmatprep.subr.bf16.mxu1 %v16673_v18 }
 0x7f9   :  { %v9193_v28 = vadd.f32 %v9120_v60, %v8184_v43  ;;  %v9124_v63 = vadd.f32 %v9123_v34, %v23051_v49  ;;  %v16691_v34 = vld [vmem:[#allocation10 + $0x424] ss:$8 sps:$4 sm:$0xff]  }
 0x7fa   :  { %v9278_v46 = vadd.f32 %v23047_v27, %v9192_v37  ;;  %v9125_v29 = vpop.f32.mrf.mxu0  ;;  %v16688_v37 = vld [vmem:[#allocation10 + $0x124] ss:$8 sps:$4 sm:$0xff]  }
 0x7fb   :  { %v9279_v47 = vadd.f32 %v23059_v0, %v9193_v28  ;;  %v9196_v52 = vadd.f32 %v9124_v63, %v23983_v61  ;;  %v9126_v2 = vadd.f32 %v9125_v29, %v23064_v33  ;;  %10311 = vmatpush1.bf16.msra.mxu0 %v16668_v26  ;;  %10739 = vmatpush1.bf16.msra.mxu1 %v16671_v50  ;;  %v9339_v33 = vmax.f32 %v9275_v25, 0.0 }
 0x7fc   :  { %v9342_v54 = vmax.f32 %v9278_v46, 0.0  ;;  %v9127_v49 = vpop.f32.mrf.mxu0  ;;  %10312 = vmatprep.subr.bf16.mxu0 %v16676_v32  ;;  %10740 = vmatprep.subr.bf16.mxu1 %v16679_v12  ;;  %v16686_v46 = vld [vmem:[#allocation10 + $0x120] ss:$8 sps:$4 sm:$0xff]  }
 0x7fd   :  { %v9343_v8 = vmax.f32 %v9279_v47, 0.0  ;;  %v9282_v5 = vadd.f32 %v23047_v27, %v9196_v52  ;;  %v9197_v4 = vadd.f32 %v9126_v2, %v22815_v44  ;;  %v9128_v23 = vadd.f32 %v9127_v49, %v23078_v6  ;;  %v16680_v6 = vld [vmem:[#allocation10 + $0x130] ss:$8 sps:$4 sm:$0xff]   ;;  %v23984_v52 = vld [vmem:[#allocation72_spill] sm:$0xff] }
 0x7fe   :  { %v23154_v22 = vpack.c.bf16 %v9342_v54, %v9338_v10  ;;  %v9129_v14 = vpop.f32.mrf.mxu0  ;;  %v16694_v10 = vld [vmem:[#allocation10 + $0x114] ss:$8 sps:$4 sm:$0xff]  }
 0x7ff   :  { %v9283_v18 = vadd.f32 %v23059_v0, %v9197_v4  ;;  %v9200_v3 = vadd.f32 %v9128_v23, %v22819_v24  ;;  %v9130_v1 = vadd.f32 %v9129_v14, %v23086_v51  ;;  %10313 = vmatpush1.bf16.msra.mxu0 %v16674_v42  ;;  %10741 = vmatpush1.bf16.msra.mxu1 %v16677_v9  ;;  %v9034_v24 = vpop.f32.mrf.mxu1  ;;  %v9346_v26 = vmax.f32 %v9282_v5, 0.0  ;;  %v16697_v54 = vld [vmem:[#allocation10 + $0x414] ss:$8 sps:$4 sm:$0xff]   ;;  %v23985_v5 = vld [vmem:[#allocation22_spill] sm:$0xff] }
 0x800   :  { %v9133_v44 = vpop.f32.mrf.mxu0  ;;  %v23159_v43 = vpack.c.bf16 %v9343_v8, %v9339_v33  ;;  %10314 = vmatprep.subr.bf16.mxu0 %v16682_v30  ;;  %10742 = vmatprep.subr.bf16.mxu1 %v16685_v55  ;;  %v16692_v30 = vld [vmem:[#allocation10 + $0x110] ss:$8 sps:$4 sm:$0xff]  }
 0x801   :  { %v9286_v60 = vadd.f32 %v23047_v27, %v9200_v3  ;;  %v9201_v25 = vadd.f32 %v9130_v1, %v22823_v31  ;;  %v9134_v38 = vadd.f32 %v9133_v44, %v23099_v53  ;;  %v9347_v12 = vmax.f32 %v9283_v18, 0.0  ;;  %v16689_v53 = vld [vmem:[#allocation10 + $0x420] ss:$8 sps:$4 sm:$0xff]   ;;  %v16695_v55 = vld [vmem:[#allocation10 + $0x410] ss:$8 sps:$4 sm:$0xff]  }
 0x802   :  { %v9135_v51 = vpop.f32.mrf.mxu0  ;;  %v23986_v33 = vld [vmem:[#allocation90_spill] sm:$0xff] }
 0x803   :  { %v9350_v50 = vmax.f32 %v9286_v60, 0.0  ;;  %v9287_v28 = vadd.f32 %v23059_v0, %v9201_v25  ;;  %v9204_v63 = vadd.f32 %v9134_v38, %v22826_v11  ;;  %v9136_v32 = vadd.f32 %v9135_v51, %v23110_v40  ;;  %10315 = vmatpush1.bf16.msra.mxu0 %v16680_v6  ;;  %10743 = vmatpush1.bf16.msra.mxu1 %v16683_v45  ;;  %v9036_v11 = vpop.f32.mrf.mxu1  ;;  %v16703_v3 = vld [vmem:[#allocation10 + $0x404] ss:$8 sps:$4 sm:$0xff]   ;;  %v23987_v45 = vld [vmem:[#allocation91_spill] sm:$0xff] }
 0x804   :  { %v9137_v31 = vpop.f32.mrf.mxu0  ;;  %10316 = vmatprep.subr.bf16.mxu0 %v16688_v37  ;;  %10744 = vmatprep.subr.bf16.mxu1 %v16691_v34 }
 0x805   :  { %v23167_v29 = vpack.c.bf16 %v9350_v50, %v9346_v26  ;;  %v9351_v47 = vmax.f32 %v9287_v28, 0.0  ;;  %v9290_v61 = vadd.f32 %v23047_v27, %v9204_v63  ;;  %v9205_v2 = vadd.f32 %v9136_v32, %v23984_v52  ;;  %v9040_v1 = vpop.f32.mrf.mxu1  ;;  %v16701_v26 = vld [vmem:[#allocation10 + $0x400] ss:$8 sps:$4 sm:$0xff]  }
 0x806   :  { %v9138_v40 = vadd.f32 %v9137_v31, %v23120_v62  ;;  %v9139_v49 = vpop.f32.mrf.mxu0  ;;  %v16700_v62 = vld [vmem:[#allocation10 + $0x104] ss:$8 sps:$4 sm:$0xff]   ;;  %v23988_v28 = vld [vmem:[#allocation92_spill] sm:$0xff] }
 0x807   :  { %v9291_v42 = vadd.f32 %v23059_v0, %v9205_v2  ;;  %v9140_v9 = vadd.f32 %v9139_v49, %v23133_v48  ;;  %v23174_v8 = vpack.c.bf16 %v9351_v47, %v9347_v12  ;;  %10317 = vmatpush1.bf16.msra.mxu0 %v16686_v46  ;;  %10745 = vmatpush1.bf16.msra.mxu1 %v16689_v53  ;;  %v9354_v38 = vmax.f32 %v9290_v61, 0.0  ;;  %v16706_v12 = vld [vmem:[#allocation10 + $0x1f4] ss:$8 sps:$4 sm:$0xff]   ;;  %v9042_v46 = vpop.f32.mrf.mxu1  ;;  %v23989_v52 = vld [vmem:[#allocation93_spill] sm:$0xff]  ;;  %v16707_v49 = vld [vmem:[#allocation10 + $0x4f0] ss:$8 sps:$4 sm:$0xff]  }
 0x808   :  { %v9208_v4 = vadd.f32 %v9138_v40, %v23985_v5  ;;  %v9143_v23 = vpop.f32.mrf.mxu0  ;;  %10318 = vmatprep.subr.bf16.mxu0 %v16694_v10  ;;  %10746 = vmatprep.subr.bf16.mxu1 %v16697_v54  ;;  %v16709_v31 = vld [vmem:[#allocation10 + $0x4f4] ss:$8 sps:$4 sm:$0xff]   ;;  %v16704_v40 = vld [vmem:[#allocation10 + $0x1f0] ss:$8 sps:$4 sm:$0xff]  }
 0x809   :  { %v9209_v14 = vadd.f32 %v9140_v9, %v23986_v33  ;;  %v9144_v18 = vadd.f32 %v9143_v23, %v23143_v41  ;;  %v16698_v41 = vld [vmem:[#allocation10 + $0x100] ss:$8 sps:$4 sm:$0xff]   ;;  %v9355_v53 = vmax.f32 %v9291_v42, 0.0  ;;  %v23990_v5 = vld [vmem:[#allocation94_spill] sm:$0xff] }
 0x80a   :  { %v9294_v48 = vadd.f32 %v23047_v27, %v9208_v4  ;;  %v9145_v44 = vpop.f32.mrf.mxu0  ;;  %v16712_v23 = vld [vmem:[#allocation10 + $0x1e4] ss:$8 sps:$4 sm:$0xff]  }
 0x80b   :  { %v9295_v6 = vadd.f32 %v23059_v0, %v9209_v14  ;;  %v9212_v60 = vadd.f32 %v9144_v18, %v23987_v45  ;;  %v9146_v25 = vadd.f32 %v9145_v44, %v23152_v17  ;;  %10319 = vmatpush1.bf16.msra.mxu0 %v16692_v30  ;;  %10747 = vmatpush1.bf16.msra.mxu1 %v16695_v55  ;;  %v16715_v30 = vld [vmem:[#allocation10 + $0x4e4] ss:$8 sps:$4 sm:$0xff]   ;;  %v9044_v55 = vpop.f32.mrf.mxu1  ;;  %v16710_v45 = vld [vmem:[#allocation10 + $0x1e0] ss:$8 sps:$4 sm:$0xff]  }
 0x80c   :  { %v9358_v37 = vmax.f32 %v9294_v48, 0.0  ;;  %v9147_v34 = vpop.f32.mrf.mxu0  ;;  %10320 = vmatprep.subr.bf16.mxu0 %v16700_v62  ;;  %10748 = vmatprep.subr.bf16.mxu1 %v16703_v3  ;;  %v23991_v62 = vld [vmem:[#allocation95_spill] sm:$0xff] }
 0x80d   :  { %v9359_v51 = vmax.f32 %v9295_v6, 0.0  ;;  %v9298_v50 = vadd.f32 %v23047_v27, %v9212_v60  ;;  %v9213_v63 = vadd.f32 %v9146_v25, %v23988_v28  ;;  %v9148_v32 = vadd.f32 %v9147_v34, %v9034_v24  ;;  %v16713_v60 = vld [vmem:[#allocation10 + $0x4e0] ss:$8 sps:$4 sm:$0xff]  }
 0x80e   :  { %v23185_v17 = vpack.c.bf16 %v9358_v37, %v9354_v38  ;;  %v9149_v47 = vpop.f32.mrf.mxu0  ;;  %v23992_v37 = vld [vmem:[#allocation96_spill] sm:$0xff] }
 0x80f   :  { %v9299_v61 = vadd.f32 %v23059_v0, %v9213_v63  ;;  %v9216_v2 = vadd.f32 %v9148_v32, %v23989_v52  ;;  %v9150_v10 = vadd.f32 %v9149_v47, %v9036_v11  ;;  %10321 = vmatpush1.bf16.msra.mxu0 %v16698_v41  ;;  %10749 = vmatpush1.bf16.msra.mxu1 %v16701_v26  ;;  %v9362_v33 = vmax.f32 %v9298_v50, 0.0  ;;  %v16718_v41 = vld [vmem:[#allocation10 + $0x1d4] ss:$8 sps:$4 sm:$0xff]   ;;  %v16719_v47 = vld [vmem:[#allocation10 + $0x4d0] ss:$8 sps:$4 sm:$0xff]  }
 0x810   :  { %v9153_v54 = vpop.f32.mrf.mxu0  ;;  %v23189_v24 = vpack.c.bf16 %v9359_v51, %v9355_v53  ;;  %10322 = vmatprep.subr.bf16.mxu0 %v16706_v12  ;;  %10750 = vmatprep.subr.bf16.mxu1 %v16709_v31  ;;  %v16721_v26 = vld [vmem:[#allocation10 + $0x4d4] ss:$8 sps:$4 sm:$0xff]   ;;  %v9046_v51 = vpop.f32.mrf.mxu1  ;;  %v23993_v31 = vld [vmem:[#allocation97_spill] sm:$0xff]  ;;  %v16716_v53 = vld [vmem:[#allocation10 + $0x1d0] ss:$8 sps:$4 sm:$0xff]  }
 0x811   :  { %v9302_v9 = vadd.f32 %v23047_v27, %v9216_v2  ;;  %v9217_v4 = vadd.f32 %v9150_v10, %v23990_v5  ;;  %v9154_v42 = vadd.f32 %v9153_v54, %v9040_v1  ;;  %v9363_v44 = vmax.f32 %v9299_v61, 0.0  ;;  %v23994_v61 = vld [vmem:[#allocation98_spill] sm:$0xff]  ;;  %v16722_v5 = vld [vmem:[#allocation10 + $0x1c0] ss:$8 sps:$4 sm:$0xff]  }
 0x812   :  { %v9155_v14 = vpop.f32.mrf.mxu0  ;;  %v16724_v2 = vld [vmem:[#allocation10 + $0x1c4] ss:$8 sps:$4 sm:$0xff]  }
 0x813   :  { %v9366_v11 = vmax.f32 %v9302_v9, 0.0  ;;  %v9303_v18 = vadd.f32 %v23059_v0, %v9217_v4  ;;  %v9220_v3 = vadd.f32 %v9154_v42, %v23991_v62  ;;  %v9156_v48 = vadd.f32 %v9155_v14, %v9042_v46  ;;  %10323 = vmatpush2.bf16.msra.mxu0 %v16704_v40  ;;  %10751 = vmatpush2.bf16.msra.mxu1 %v16707_v49  ;;  %v16727_v10 = vld [vmem:[#allocation10 + $0x4c4] ss:$8 sps:$4 sm:$0xff]   ;;  %v16725_v4 = vld [vmem:[#allocation10 + $0x4c0] ss:$8 sps:$4 sm:$0xff]  }
 0x814   :  { %v9157_v6 = vpop.f32.mrf.mxu0  ;;  %10324 = vmatprep.subr.bf16.mxu0 %v16712_v23  ;;  %10752 = vmatprep.subr.bf16.mxu1 %v16715_v30  ;;  %v16730_v30 = vld [vmem:[#allocation10 + $0x1b4] ss:$8 sps:$4 sm:$0xff]   ;;  %v16734_v62 = vld [vmem:[#allocation10 + $0x1a0] ss:$8 sps:$4 sm:$0xff]  }
 0x815   :  { %v23195_v1 = vpack.c.bf16 %v9366_v11, %v9362_v33  ;;  %v9367_v25 = vmax.f32 %v9303_v18, 0.0  ;;  %v9306_v38 = vadd.f32 %v23047_v27, %v9220_v3  ;;  %v9221_v34 = vadd.f32 %v9156_v48, %v23992_v37  ;;  %v16736_v11 = vld [vmem:[#allocation10 + $0x1a4] ss:$8 sps:$4 sm:$0xff]   ;;  %v16737_v3 = vld [vmem:[#allocation10 + $0x4a0] ss:$8 sps:$4 sm:$0xff]  }
 0x816   :  { %v9158_v50 = vadd.f32 %v9157_v6, %v9044_v55  ;;  %v9159_v28 = vpop.f32.mrf.mxu0  ;;  %v16733_v55 = vld [vmem:[#allocation10 + $0x4b4] ss:$8 sps:$4 sm:$0xff]   ;;  %v16739_v18 = vld [vmem:[#allocation10 + $0x4a4] ss:$8 sps:$4 sm:$0xff]   ;;  %v16740_v6 = vld [vmem:[#allocation10 + $0x190] ss:$8 sps:$4 sm:$0xff]  }
 0x817   :  { %v9307_v63 = vadd.f32 %v23059_v0, %v9221_v34  ;;  %v9160_v32 = vadd.f32 %v9159_v28, %v9046_v51  ;;  %v23200_v12 = vpack.c.bf16 %v9367_v25, %v9363_v44  ;;  %10325 = vmatpush2.bf16.msra.mxu0 %v16710_v45  ;;  %10753 = vmatpush2.bf16.msra.mxu1 %v16713_v60  ;;  %v9370_v49 = vmax.f32 %v9306_v38, 0.0  ;;  %v16742_v48 = vld [vmem:[#allocation10 + $0x194] ss:$8 sps:$4 sm:$0xff]   ;;  %v16743_v45 = vld [vmem:[#allocation10 + $0x490] ss:$8 sps:$4 sm:$0xff]  }
 0x818   :  { %v9224_v46 = vadd.f32 %v9158_v50, %v23993_v31  ;;  %10326 = vmatprep.subr.bf16.mxu0 %v16718_v41  ;;  %10754 = vmatprep.subr.bf16.mxu1 %v16721_v26  ;;  %v16745_v44 = vld [vmem:[#allocation10 + $0x494] ss:$8 sps:$4 sm:$0xff]   ;;  %v16748_v60 = vld [vmem:[#allocation10 + $0x184] ss:$8 sps:$4 sm:$0xff]   ;;  %v16746_v38 = vld [vmem:[#allocation10 + $0x180] ss:$8 sps:$4 sm:$0xff]  }
 0x819   :  { %v9225_v52 = vadd.f32 %v9160_v32, %v23994_v61  ;;  %v9371_v42 = vmax.f32 %v9307_v63, 0.0  ;;  %v16751_v25 = vld [vmem:[#allocation10 + $0x484] ss:$8 sps:$4 sm:$0xff]   ;;  %v16749_v37 = vld [vmem:[#allocation10 + $0x480] ss:$8 sps:$4 sm:$0xff]  }
 0x81a   :  { %v9310_v54 = vadd.f32 %v23047_v27, %v9224_v46  ;;  %v16728_v27 = vld [vmem:[#allocation10 + $0x1b0] ss:$8 sps:$4 sm:$0xff]   ;;  %v16754_v34 = vld [vmem:[#allocation10 + $0x574] ss:$8 sps:$4 sm:$0xff]   ;;  %v16760_v50 = vld [vmem:[#allocation10 + $0x564] ss:$8 sps:$4 sm:$0xff]  }
 0x81b   :  { %v9311_v40 = vadd.f32 %v23059_v0, %v9225_v52  ;;  %10327 = vmatpush2.bf16.msra.mxu0 %v16716_v53  ;;  %10755 = vmatpush2.bf16.msra.mxu1 %v16719_v47  ;;  %v16731_v0 = vld [vmem:[#allocation10 + $0x4b0] ss:$8 sps:$4 sm:$0xff]   ;;  %v16757_v41 = vld [vmem:[#allocation10 + $0x674] ss:$8 sps:$4 sm:$0xff]   ;;  %v16763_v28 = vld [vmem:[#allocation10 + $0x664] ss:$8 sps:$4 sm:$0xff]  }
 0x81c   :  { %v9374_v9 = vmax.f32 %v9310_v54, 0.0  ;;  %10328 = vmatprep.subr.bf16.mxu0 %v16724_v2  ;;  %10756 = vmatprep.subr.bf16.mxu1 %v16727_v10  ;;  %v16752_v26 = vld [vmem:[#allocation10 + $0x570] ss:$8 sps:$4 sm:$0xff]   ;;  %v16758_v63 = vld [vmem:[#allocation10 + $0x560] ss:$8 sps:$4 sm:$0xff]  }
 0x81d   :  { %v9375_v23 = vmax.f32 %v9311_v40, 0.0  ;;  %v16755_v51 = vld [vmem:[#allocation10 + $0x670] ss:$8 sps:$4 sm:$0xff]   ;;  %v16761_v32 = vld [vmem:[#allocation10 + $0x660] ss:$8 sps:$4 sm:$0xff]  }
 0x81e   :  { %v23206_v33 = vpack.c.bf16 %v9374_v9, %v9370_v49  ;;  %v16766_v31 = vld [vmem:[#allocation10 + $0x554] ss:$8 sps:$4 sm:$0xff]   ;;  %v16764_v53 = vld [vmem:[#allocation10 + $0x550] ss:$8 sps:$4 sm:$0xff]   ;;  %v16770_v61 = vld [vmem:[#allocation10 + $0x540] ss:$8 sps:$4 sm:$0xff]  }
 0x81f   :  { %v23208_v14 = vpack.c.bf16 %v9375_v23, %v9371_v42  ;;  %10329 = vmatpush2.bf16.msra.mxu0 %v16722_v5  ;;  %10757 = vmatpush2.bf16.msra.mxu1 %v16725_v4  ;;  %v16769_v46 = vld [vmem:[#allocation10 + $0x654] ss:$8 sps:$4 sm:$0xff]   ;;  %v16767_v47 = vld [vmem:[#allocation10 + $0x650] ss:$8 sps:$4 sm:$0xff]   ;;  %v16784_v54 = vld [vmem:[#allocation10 + $0x524] ss:$8 sps:$4 sm:$0xff]  }
 0x820   :  { %10330 = vmatprep.subr.bf16.mxu0 %v16730_v30  ;;  %10758 = vmatprep.subr.bf16.mxu1 %v16733_v55  ;;  %v16778_v52 = vld [vmem:[#allocation10 + $0x534] ss:$8 sps:$4 sm:$0xff]   ;;  %v16776_v2 = vld [vmem:[#allocation10 + $0x530] ss:$8 sps:$4 sm:$0xff]   ;;  %v16787_v40 = vld [vmem:[#allocation10 + $0x624] ss:$8 sps:$4 sm:$0xff]  }
 0x821   :  { %v16779_v10 = vld [vmem:[#allocation10 + $0x630] ss:$8 sps:$4 sm:$0xff]   ;;  %v16782_v49 = vld [vmem:[#allocation10 + $0x520] ss:$8 sps:$4 sm:$0xff]   ;;  %v16790_v5 = vld [vmem:[#allocation10 + $0x514] ss:$8 sps:$4 sm:$0xff]  }
 0x822   :  { %v16785_v9 = vld [vmem:[#allocation10 + $0x620] ss:$8 sps:$4 sm:$0xff]   ;;  %v16793_v4 = vld [vmem:[#allocation10 + $0x614] ss:$8 sps:$4 sm:$0xff]   ;;  %v16788_v42 = vld [vmem:[#allocation10 + $0x510] ss:$8 sps:$4 sm:$0xff]  }
 0x823   :  { %10331 = vmatpush2.bf16.msra.mxu0 %v16728_v27  ;;  %10759 = vmatpush2.bf16.msra.mxu1 %v16731_v0  ;;  %v16791_v23 = vld [vmem:[#allocation10 + $0x610] ss:$8 sps:$4 sm:$0xff]   ;;  %v16796_v30 = vld [vmem:[#allocation10 + $0x504] ss:$8 sps:$4 sm:$0xff]   ;;  %v16794_v27 = vld [vmem:[#allocation10 + $0x500] ss:$8 sps:$4 sm:$0xff]  }
 0x824   :  { %10332 = vmatprep.subr.bf16.mxu0 %v16736_v11  ;;  %10760 = vmatprep.subr.bf16.mxu1 %v16739_v18  ;;  %v16799_v55 = vld [vmem:[#allocation10 + $0x604] ss:$8 sps:$4 sm:$0xff]   ;;  %v16797_v0 = vld [vmem:[#allocation10 + $0x600] ss:$8 sps:$4 sm:$0xff]   ;;  %v16802_v11 = vld [vmem:[#allocation10 + $0x5f4] ss:$8 sps:$4 sm:$0xff]  }
 0x825   :  { %v16805_v18 = vld [vmem:[#allocation10 + $0x6f4] ss:$8 sps:$4 sm:$0xff]  }
 0x827   :  { %10333 = vmatpush2.bf16.msra.mxu0 %v16734_v62  ;;  %10761 = vmatpush2.bf16.msra.mxu1 %v16737_v3  ;;  %v16800_v62 = vld [vmem:[#allocation10 + $0x5f0] ss:$8 sps:$4 sm:$0xff]  }
 0x828   :  { %10334 = vmatprep.subr.bf16.mxu0 %v16742_v48  ;;  %10762 = vmatprep.subr.bf16.mxu1 %v16745_v44  ;;  %v16803_v3 = vld [vmem:[#allocation10 + $0x6f0] ss:$8 sps:$4 sm:$0xff]   ;;  %v16808_v48 = vld [vmem:[#allocation10 + $0x5e4] ss:$8 sps:$4 sm:$0xff]  }
 0x829   :  { %v16811_v44 = vld [vmem:[#allocation10 + $0x6e4] ss:$8 sps:$4 sm:$0xff]  }
 0x82b   :  { %10335 = vmatpush2.bf16.msra.mxu0 %v16740_v6  ;;  %10763 = vmatpush2.bf16.msra.mxu1 %v16743_v45  ;;  %v16806_v6 = vld [vmem:[#allocation10 + $0x5e0] ss:$8 sps:$4 sm:$0xff]  }
 0x82c   :  { %10336 = vmatprep.subr.bf16.mxu0 %v16748_v60  ;;  %10764 = vmatprep.subr.bf16.mxu1 %v16751_v25  ;;  %v16809_v45 = vld [vmem:[#allocation10 + $0x6e0] ss:$8 sps:$4 sm:$0xff]   ;;  %v16814_v60 = vld [vmem:[#allocation10 + $0x5d4] ss:$8 sps:$4 sm:$0xff]  }
 0x82d   :  { %v16817_v25 = vld [vmem:[#allocation10 + $0x6d4] ss:$8 sps:$4 sm:$0xff]  }
 0x82f   :  { %10337 = vmatpush2.bf16.msra.mxu0 %v16746_v38  ;;  %10765 = vmatpush2.bf16.msra.mxu1 %v16749_v37  ;;  %v16812_v38 = vld [vmem:[#allocation10 + $0x5d0] ss:$8 sps:$4 sm:$0xff]  }
 0x830   :  { %10777 = vmatprep.subr.bf16.mxu0 %v16754_v34  ;;  %11209 = vmatprep.subr.bf16.mxu1 %v16757_v41  ;;  %v16815_v37 = vld [vmem:[#allocation10 + $0x6d0] ss:$8 sps:$4 sm:$0xff]   ;;  %v16820_v34 = vld [vmem:[#allocation10 + $0x5c4] ss:$8 sps:$4 sm:$0xff]  }
 0x831   :  { %v16823_v41 = vld [vmem:[#allocation10 + $0x6c4] ss:$8 sps:$4 sm:$0xff]  }
 0x832   :  { %10339 = vmatmul.mubr.bf16.vlgmr.msra.gmra.mxu0 %v23084_v39  ;;  %10767 = vmatmul.mubr.bf16.vlgmr.msra.gmra.mxu1 %v22938_v35  ;;  %v16772_v39 = vld [vmem:[#allocation10 + $0x544] ss:$8 sps:$4 sm:$0xff]  }
 0x833   :  { %10778 = vmatpush1.bf16.msra.mxu0 %v16752_v26  ;;  %10809 = vmatprep.mubr.bf16.mxu0 %v23139_v15  ;;  %v16775_v35 = vld [vmem:[#allocation10 + $0x644] ss:$8 sps:$4 sm:$0xff]   ;;  %v16773_v15 = vld [vmem:[#allocation10 + $0x640] ss:$8 sps:$4 sm:$0xff]  }
 0x834   :  { %11210 = vmatpush1.bf16.msra.mxu1 %v16755_v51  ;;  %11241 = vmatprep.mubr.bf16.mxu1 %v22972_v36  ;;  %v16781_v36 = vld [vmem:[#allocation10 + $0x634] ss:$8 sps:$4 sm:$0xff]   ;;  %v16818_v26 = vld [vmem:[#allocation10 + $0x5c0] ss:$8 sps:$4 sm:$0xff]  }
 0x835   :  { %10779 = vmatprep.subr.bf16.mxu0 %v16760_v50  ;;  %11211 = vmatprep.subr.bf16.mxu1 %v16763_v28  ;;  %v16821_v51 = vld [vmem:[#allocation10 + $0x6c0] ss:$8 sps:$4 sm:$0xff]   ;;  %v16826_v50 = vld [vmem:[#allocation10 + $0x5b4] ss:$8 sps:$4 sm:$0xff]  }
 0x836   :  { %v16829_v28 = vld [vmem:[#allocation10 + $0x6b4] ss:$8 sps:$4 sm:$0xff]  }
 0x837   :  { %10780 = vmatpush1.bf16.msra.mxu0 %v16758_v63  ;;  %v16824_v63 = vld [vmem:[#allocation10 + $0x5b0] ss:$8 sps:$4 sm:$0xff]  }
 0x838   :  { %11212 = vmatpush1.bf16.msra.mxu1 %v16761_v32  ;;  %10781 = vmatprep.subr.bf16.mxu0 %v16766_v31  ;;  %v16827_v32 = vld [vmem:[#allocation10 + $0x6b0] ss:$8 sps:$4 sm:$0xff]   ;;  %v16832_v31 = vld [vmem:[#allocation10 + $0x5a4] ss:$8 sps:$4 sm:$0xff]  }
 0x839   :  { %11213 = vmatprep.subr.bf16.mxu1 %v16769_v46  ;;  %v16835_v46 = vld [vmem:[#allocation10 + $0x6a4] ss:$8 sps:$4 sm:$0xff]  }
 0x83b   :  { %10782 = vmatpush1.bf16.msra.mxu0 %v16764_v53  ;;  %v16830_v53 = vld [vmem:[#allocation10 + $0x5a0] ss:$8 sps:$4 sm:$0xff]  }
 0x83c   :  { %11214 = vmatpush1.bf16.msra.mxu1 %v16767_v47  ;;  %10783 = vmatprep.subr.bf16.mxu0 %v16772_v39  ;;  %v16833_v47 = vld [vmem:[#allocation10 + $0x6a0] ss:$8 sps:$4 sm:$0xff]   ;;  %v16838_v39 = vld [vmem:[#allocation10 + $0x594] ss:$8 sps:$4 sm:$0xff]  }
 0x83d   :  { %11215 = vmatprep.subr.bf16.mxu1 %v16775_v35  ;;  %v16841_v35 = vld [vmem:[#allocation10 + $0x694] ss:$8 sps:$4 sm:$0xff]  }
 0x83f   :  { %10784 = vmatpush1.bf16.msra.mxu0 %v16770_v61  ;;  %v16836_v61 = vld [vmem:[#allocation10 + $0x590] ss:$8 sps:$4 sm:$0xff]  }
 0x840   :  { %11216 = vmatpush1.bf16.msra.mxu1 %v16773_v15  ;;  %10785 = vmatprep.subr.bf16.mxu0 %v16778_v52  ;;  %v16839_v15 = vld [vmem:[#allocation10 + $0x690] ss:$8 sps:$4 sm:$0xff]   ;;  %v16844_v52 = vld [vmem:[#allocation10 + $0x584] ss:$8 sps:$4 sm:$0xff]  }
 0x841   :  { %11217 = vmatprep.subr.bf16.mxu1 %v16781_v36  ;;  %v16847_v36 = vld [vmem:[#allocation10 + $0x684] ss:$8 sps:$4 sm:$0xff]  }
 0x843   :  { %10786 = vmatpush1.bf16.msra.mxu0 %v16776_v2  ;;  %v16842_v2 = vld [vmem:[#allocation10 + $0x580] ss:$8 sps:$4 sm:$0xff]  }
 0x844   :  { %11218 = vmatpush1.bf16.msra.mxu1 %v16779_v10  ;;  %10787 = vmatprep.subr.bf16.mxu0 %v16784_v54  ;;  %v16845_v10 = vld [vmem:[#allocation10 + $0x680] ss:$8 sps:$4 sm:$0xff]   ;;  %v16850_v54 = vld [vmem:[#allocation10 + $0x774] ss:$8 sps:$4 sm:$0xff]  }
 0x845   :  { %11219 = vmatprep.subr.bf16.mxu1 %v16787_v40  ;;  %v16853_v40 = vld [vmem:[#allocation10 + $0x874] ss:$8 sps:$4 sm:$0xff]  }
 0x847   :  { %10788 = vmatpush1.bf16.msra.mxu0 %v16782_v49  ;;  %v16848_v49 = vld [vmem:[#allocation10 + $0x770] ss:$8 sps:$4 sm:$0xff]  }
 0x848   :  { %11220 = vmatpush1.bf16.msra.mxu1 %v16785_v9  ;;  %10789 = vmatprep.subr.bf16.mxu0 %v16790_v5  ;;  %v16851_v9 = vld [vmem:[#allocation10 + $0x870] ss:$8 sps:$4 sm:$0xff]   ;;  %v16856_v5 = vld [vmem:[#allocation10 + $0x764] ss:$8 sps:$4 sm:$0xff]  }
 0x849   :  { %11221 = vmatprep.subr.bf16.mxu1 %v16793_v4  ;;  %v16859_v4 = vld [vmem:[#allocation10 + $0x864] ss:$8 sps:$4 sm:$0xff]  }
 0x84b   :  { %10790 = vmatpush1.bf16.msra.mxu0 %v16788_v42  ;;  %v16854_v42 = vld [vmem:[#allocation10 + $0x760] ss:$8 sps:$4 sm:$0xff]  }
 0x84c   :  { %11222 = vmatpush1.bf16.msra.mxu1 %v16791_v23  ;;  %10791 = vmatprep.subr.bf16.mxu0 %v16796_v30  ;;  %v16857_v23 = vld [vmem:[#allocation10 + $0x860] ss:$8 sps:$4 sm:$0xff]   ;;  %v16862_v30 = vld [vmem:[#allocation10 + $0x754] ss:$8 sps:$4 sm:$0xff]  }
 0x84d   :  { %11223 = vmatprep.subr.bf16.mxu1 %v16799_v55  ;;  %v16865_v55 = vld [vmem:[#allocation10 + $0x854] ss:$8 sps:$4 sm:$0xff]  }
 0x84f   :  { %10792 = vmatpush1.bf16.msra.mxu0 %v16794_v27  ;;  %v16860_v27 = vld [vmem:[#allocation10 + $0x750] ss:$8 sps:$4 sm:$0xff]  }
 0x850   :  { %11224 = vmatpush1.bf16.msra.mxu1 %v16797_v0  ;;  %10793 = vmatprep.subr.bf16.mxu0 %v16802_v11  ;;  %v16868_v0 = vld [vmem:[#allocation10 + $0x744] ss:$8 sps:$4 sm:$0xff]   ;;  %v16866_v11 = vld [vmem:[#allocation10 + $0x740] ss:$8 sps:$4 sm:$0xff]  }
 0x851   :  { %11225 = vmatprep.subr.bf16.mxu1 %v16805_v18  ;;  %v16874_v18 = vld [vmem:[#allocation10 + $0x734] ss:$8 sps:$4 sm:$0xff]  }
 0x853   :  { %10794 = vmatpush2.bf16.msra.mxu0 %v16800_v62  ;;  %v16877_v62 = vld [vmem:[#allocation10 + $0x834] ss:$8 sps:$4 sm:$0xff]  }
 0x854   :  { %11226 = vmatpush2.bf16.msra.mxu1 %v16803_v3  ;;  %10795 = vmatprep.subr.bf16.mxu0 %v16808_v48  ;;  %v16875_v3 = vld [vmem:[#allocation10 + $0x830] ss:$8 sps:$4 sm:$0xff]   ;;  %v16880_v48 = vld [vmem:[#allocation10 + $0x724] ss:$8 sps:$4 sm:$0xff]  }
 0x855   :  { %11227 = vmatprep.subr.bf16.mxu1 %v16811_v44  ;;  %v16883_v44 = vld [vmem:[#allocation10 + $0x824] ss:$8 sps:$4 sm:$0xff]  }
 0x857   :  { %10796 = vmatpush2.bf16.msra.mxu0 %v16806_v6  ;;  %v16878_v6 = vld [vmem:[#allocation10 + $0x720] ss:$8 sps:$4 sm:$0xff]  }
 0x858   :  { %11228 = vmatpush2.bf16.msra.mxu1 %v16809_v45  ;;  %10797 = vmatprep.subr.bf16.mxu0 %v16814_v60  ;;  %v16881_v45 = vld [vmem:[#allocation10 + $0x820] ss:$8 sps:$4 sm:$0xff]   ;;  %v16886_v60 = vld [vmem:[#allocation10 + $0x714] ss:$8 sps:$4 sm:$0xff]  }
 0x859   :  { %11229 = vmatprep.subr.bf16.mxu1 %v16817_v25  ;;  %v16889_v25 = vld [vmem:[#allocation10 + $0x814] ss:$8 sps:$4 sm:$0xff]  }
 0x85b   :  { %10798 = vmatpush2.bf16.msra.mxu0 %v16812_v38  ;;  %v16884_v38 = vld [vmem:[#allocation10 + $0x710] ss:$8 sps:$4 sm:$0xff]  }
 0x85c   :  { %11230 = vmatpush2.bf16.msra.mxu1 %v16815_v37  ;;  %10799 = vmatprep.subr.bf16.mxu0 %v16820_v34  ;;  %v16887_v37 = vld [vmem:[#allocation10 + $0x810] ss:$8 sps:$4 sm:$0xff]   ;;  %v16892_v34 = vld [vmem:[#allocation10 + $0x704] ss:$8 sps:$4 sm:$0xff]  }
 0x85d   :  { %11231 = vmatprep.subr.bf16.mxu1 %v16823_v41  ;;  %v16895_v41 = vld [vmem:[#allocation10 + $0x804] ss:$8 sps:$4 sm:$0xff]  }
 0x85f   :  { %10800 = vmatpush2.bf16.msra.mxu0 %v16818_v26  ;;  %v16890_v26 = vld [vmem:[#allocation10 + $0x700] ss:$8 sps:$4 sm:$0xff]  }
 0x860   :  { %11232 = vmatpush2.bf16.msra.mxu1 %v16821_v51  ;;  %10801 = vmatprep.subr.bf16.mxu0 %v16826_v50  ;;  %v16893_v51 = vld [vmem:[#allocation10 + $0x800] ss:$8 sps:$4 sm:$0xff]   ;;  %v16898_v50 = vld [vmem:[#allocation10 + $0x7f4] ss:$8 sps:$4 sm:$0xff]  }
 0x861   :  { %11233 = vmatprep.subr.bf16.mxu1 %v16829_v28  ;;  %v16901_v28 = vld [vmem:[#allocation10 + $0x8f4] ss:$8 sps:$4 sm:$0xff]  }
 0x863   :  { %10802 = vmatpush2.bf16.msra.mxu0 %v16824_v63  ;;  %v16896_v63 = vld [vmem:[#allocation10 + $0x7f0] ss:$8 sps:$4 sm:$0xff]  }
 0x864   :  { %11234 = vmatpush2.bf16.msra.mxu1 %v16827_v32  ;;  %10803 = vmatprep.subr.bf16.mxu0 %v16832_v31  ;;  %v16899_v32 = vld [vmem:[#allocation10 + $0x8f0] ss:$8 sps:$4 sm:$0xff]   ;;  %v16904_v31 = vld [vmem:[#allocation10 + $0x7e4] ss:$8 sps:$4 sm:$0xff]  }
 0x865   :  { %11235 = vmatprep.subr.bf16.mxu1 %v16835_v46  ;;  %v16907_v46 = vld [vmem:[#allocation10 + $0x8e4] ss:$8 sps:$4 sm:$0xff]  }
 0x867   :  { %10804 = vmatpush2.bf16.msra.mxu0 %v16830_v53  ;;  %v16902_v53 = vld [vmem:[#allocation10 + $0x7e0] ss:$8 sps:$4 sm:$0xff]  }
 0x868   :  { %11236 = vmatpush2.bf16.msra.mxu1 %v16833_v47  ;;  %10805 = vmatprep.subr.bf16.mxu0 %v16838_v39  ;;  %v16905_v47 = vld [vmem:[#allocation10 + $0x8e0] ss:$8 sps:$4 sm:$0xff]   ;;  %v16910_v39 = vld [vmem:[#allocation10 + $0x7d4] ss:$8 sps:$4 sm:$0xff]  }
 0x869   :  { %11237 = vmatprep.subr.bf16.mxu1 %v16841_v35  ;;  %v16913_v35 = vld [vmem:[#allocation10 + $0x8d4] ss:$8 sps:$4 sm:$0xff]  }
 0x86b   :  { %10806 = vmatpush2.bf16.msra.mxu0 %v16836_v61  ;;  %v16908_v61 = vld [vmem:[#allocation10 + $0x7d0] ss:$8 sps:$4 sm:$0xff]  }
 0x86c   :  { %11238 = vmatpush2.bf16.msra.mxu1 %v16839_v15  ;;  %10807 = vmatprep.subr.bf16.mxu0 %v16844_v52  ;;  %v16911_v15 = vld [vmem:[#allocation10 + $0x8d0] ss:$8 sps:$4 sm:$0xff]   ;;  %v16916_v52 = vld [vmem:[#allocation10 + $0x7c4] ss:$8 sps:$4 sm:$0xff]  }
 0x86d   :  { %11239 = vmatprep.subr.bf16.mxu1 %v16847_v36  ;;  %v16919_v36 = vld [vmem:[#allocation10 + $0x8c4] ss:$8 sps:$4 sm:$0xff]  }
 0x86f   :  { %10808 = vmatpush2.bf16.msra.mxu0 %v16842_v2  ;;  %v16914_v2 = vld [vmem:[#allocation10 + $0x7c0] ss:$8 sps:$4 sm:$0xff]  }
 0x870   :  { %11240 = vmatpush2.bf16.msra.mxu1 %v16845_v10  ;;  %11252 = vmatprep.subr.bf16.mxu0 %v16850_v54  ;;  %v16917_v10 = vld [vmem:[#allocation10 + $0x8c0] ss:$8 sps:$4 sm:$0xff]   ;;  %v16922_v54 = vld [vmem:[#allocation10 + $0x7b4] ss:$8 sps:$4 sm:$0xff]  }
 0x871   :  { %11684 = vmatprep.subr.bf16.mxu1 %v16853_v40  ;;  %v16925_v40 = vld [vmem:[#allocation10 + $0x8b4] ss:$8 sps:$4 sm:$0xff]  }
 0x872   :  { %10810 = vmatmul.mubr.bf16.vlgmr.msra.gmra.mxu0 %v23127_v58  ;;  %v16863_v58 = vld [vmem:[#allocation10 + $0x850] ss:$8 sps:$4 sm:$0xff]  }
 0x873   :  { %11242 = vmatmul.mubr.bf16.vlgmr.msra.gmra.mxu1 %v22966_v7  ;;  %11253 = vmatpush1.bf16.msra.mxu0 %v16848_v49  ;;  %v16871_v7 = vld [vmem:[#allocation10 + $0x844] ss:$8 sps:$4 sm:$0xff]   ;;  %v16920_v49 = vld [vmem:[#allocation10 + $0x7b0] ss:$8 sps:$4 sm:$0xff]  }
 0x874   :  { %11284 = vmatprep.mubr.bf16.mxu0 %v23159_v43  ;;  %11685 = vmatpush1.bf16.msra.mxu1 %v16851_v9  ;;  %v16869_v43 = vld [vmem:[#allocation10 + $0x840] ss:$8 sps:$4 sm:$0xff]   ;;  %v16923_v9 = vld [vmem:[#allocation10 + $0x8b0] ss:$8 sps:$4 sm:$0xff]  }
 0x875   :  { %11716 = vmatprep.mubr.bf16.mxu1 %v22994_v21  ;;  %11254 = vmatprep.subr.bf16.mxu0 %v16856_v5  ;;  %v16872_v21 = vld [vmem:[#allocation10 + $0x730] ss:$8 sps:$4 sm:$0xff]   ;;  %v16928_v5 = vld [vmem:[#allocation10 + $0x7a4] ss:$8 sps:$4 sm:$0xff]  }
 0x876   :  { %11686 = vmatprep.subr.bf16.mxu1 %v16859_v4  ;;  %v16931_v4 = vld [vmem:[#allocation10 + $0x8a4] ss:$8 sps:$4 sm:$0xff]  }
 0x877   :  { %11255 = vmatpush1.bf16.msra.mxu0 %v16854_v42  ;;  %v16926_v42 = vld [vmem:[#allocation10 + $0x7a0] ss:$8 sps:$4 sm:$0xff]  }
 0x878   :  { %11687 = vmatpush1.bf16.msra.mxu1 %v16857_v23  ;;  %11256 = vmatprep.subr.bf16.mxu0 %v16862_v30  ;;  %v16929_v23 = vld [vmem:[#allocation10 + $0x8a0] ss:$8 sps:$4 sm:$0xff]   ;;  %v16934_v30 = vld [vmem:[#allocation10 + $0x794] ss:$8 sps:$4 sm:$0xff]  }
 0x879   :  { %11688 = vmatprep.subr.bf16.mxu1 %v16865_v55  ;;  %v16937_v55 = vld [vmem:[#allocation10 + $0x894] ss:$8 sps:$4 sm:$0xff]  }
 0x87b   :  { %11257 = vmatpush1.bf16.msra.mxu0 %v16860_v27  ;;  %v16932_v27 = vld [vmem:[#allocation10 + $0x790] ss:$8 sps:$4 sm:$0xff]  }
 0x87c   :  { %11689 = vmatpush1.bf16.msra.mxu1 %v16863_v58  ;;  %11258 = vmatprep.subr.bf16.mxu0 %v16868_v0  ;;  %v16935_v58 = vld [vmem:[#allocation10 + $0x890] ss:$8 sps:$4 sm:$0xff]   ;;  %v16940_v0 = vld [vmem:[#allocation10 + $0x784] ss:$8 sps:$4 sm:$0xff]  }
 0x87d   :  { %11690 = vmatprep.subr.bf16.mxu1 %v16871_v7  ;;  %v16943_v7 = vld [vmem:[#allocation10 + $0x884] ss:$8 sps:$4 sm:$0xff]  }
 0x87f   :  { %11259 = vmatpush1.bf16.msra.mxu0 %v16866_v11  ;;  %v16938_v11 = vld [vmem:[#allocation10 + $0x780] ss:$8 sps:$4 sm:$0xff]  }
 0x880   :  { %11691 = vmatpush1.bf16.msra.mxu1 %v16869_v43  ;;  %11260 = vmatprep.subr.bf16.mxu0 %v16874_v18  ;;  %v16941_v43 = vld [vmem:[#allocation10 + $0x880] ss:$8 sps:$4 sm:$0xff]   ;;  %v16946_v18 = vld [vmem:[#allocation10 + $0x974] ss:$8 sps:$4 sm:$0xff]  }
 0x881   :  { %11692 = vmatprep.subr.bf16.mxu1 %v16877_v62  ;;  %v16949_v62 = vld [vmem:[#allocation10 + $0xa74] ss:$8 sps:$4 sm:$0xff]  }
 0x883   :  { %11261 = vmatpush1.bf16.msra.mxu0 %v16872_v21  ;;  %v16944_v21 = vld [vmem:[#allocation10 + $0x970] ss:$8 sps:$4 sm:$0xff]  }
 0x884   :  { %11693 = vmatpush1.bf16.msra.mxu1 %v16875_v3  ;;  %11262 = vmatprep.subr.bf16.mxu0 %v16880_v48  ;;  %v16947_v3 = vld [vmem:[#allocation10 + $0xa70] ss:$8 sps:$4 sm:$0xff]   ;;  %v16952_v48 = vld [vmem:[#allocation10 + $0x964] ss:$8 sps:$4 sm:$0xff]  }
 0x885   :  { %11694 = vmatprep.subr.bf16.mxu1 %v16883_v44  ;;  %v16955_v44 = vld [vmem:[#allocation10 + $0xa64] ss:$8 sps:$4 sm:$0xff]  }
 0x887   :  { %11263 = vmatpush1.bf16.msra.mxu0 %v16878_v6  ;;  %v16950_v6 = vld [vmem:[#allocation10 + $0x960] ss:$8 sps:$4 sm:$0xff]  }
 0x888   :  { %11695 = vmatpush1.bf16.msra.mxu1 %v16881_v45  ;;  %11264 = vmatprep.subr.bf16.mxu0 %v16886_v60  ;;  %v16953_v45 = vld [vmem:[#allocation10 + $0xa60] ss:$8 sps:$4 sm:$0xff]   ;;  %v16958_v60 = vld [vmem:[#allocation10 + $0x954] ss:$8 sps:$4 sm:$0xff]  }
 0x889   :  { %11696 = vmatprep.subr.bf16.mxu1 %v16889_v25  ;;  %v16961_v25 = vld [vmem:[#allocation10 + $0xa54] ss:$8 sps:$4 sm:$0xff]  }
 0x88b   :  { %11265 = vmatpush1.bf16.msra.mxu0 %v16884_v38  ;;  %v16956_v38 = vld [vmem:[#allocation10 + $0x950] ss:$8 sps:$4 sm:$0xff]  }
 0x88c   :  { %11697 = vmatpush1.bf16.msra.mxu1 %v16887_v37  ;;  %11266 = vmatprep.subr.bf16.mxu0 %v16892_v34  ;;  %v16964_v37 = vld [vmem:[#allocation10 + $0x944] ss:$8 sps:$4 sm:$0xff]   ;;  %v16962_v34 = vld [vmem:[#allocation10 + $0x940] ss:$8 sps:$4 sm:$0xff]  }
 0x88d   :  { %11698 = vmatprep.subr.bf16.mxu1 %v16895_v41  ;;  %v16970_v41 = vld [vmem:[#allocation10 + $0x934] ss:$8 sps:$4 sm:$0xff]  }
 0x88f   :  { %11267 = vmatpush1.bf16.msra.mxu0 %v16890_v26  ;;  %v16973_v26 = vld [vmem:[#allocation10 + $0xa34] ss:$8 sps:$4 sm:$0xff]  }
 0x890   :  { %11699 = vmatpush1.bf16.msra.mxu1 %v16893_v51  ;;  %11268 = vmatprep.subr.bf16.mxu0 %v16898_v50  ;;  %v16971_v51 = vld [vmem:[#allocation10 + $0xa30] ss:$8 sps:$4 sm:$0xff]   ;;  %v16976_v50 = vld [vmem:[#allocation10 + $0x924] ss:$8 sps:$4 sm:$0xff]  }
 0x891   :  { %11700 = vmatprep.subr.bf16.mxu1 %v16901_v28  ;;  %v16979_v28 = vld [vmem:[#allocation10 + $0xa24] ss:$8 sps:$4 sm:$0xff]  }
 0x893   :  { %11269 = vmatpush2.bf16.msra.mxu0 %v16896_v63  ;;  %v16974_v63 = vld [vmem:[#allocation10 + $0x920] ss:$8 sps:$4 sm:$0xff]  }
 0x894   :  { %11701 = vmatpush2.bf16.msra.mxu1 %v16899_v32  ;;  %11270 = vmatprep.subr.bf16.mxu0 %v16904_v31  ;;  %v16977_v32 = vld [vmem:[#allocation10 + $0xa20] ss:$8 sps:$4 sm:$0xff]   ;;  %v16982_v31 = vld [vmem:[#allocation10 + $0x914] ss:$8 sps:$4 sm:$0xff]  }
 0x895   :  { %11702 = vmatprep.subr.bf16.mxu1 %v16907_v46  ;;  %v16985_v46 = vld [vmem:[#allocation10 + $0xa14] ss:$8 sps:$4 sm:$0xff]  }
 0x897   :  { %11271 = vmatpush2.bf16.msra.mxu0 %v16902_v53  ;;  %v16980_v53 = vld [vmem:[#allocation10 + $0x910] ss:$8 sps:$4 sm:$0xff]  }
 0x898   :  { %11703 = vmatpush2.bf16.msra.mxu1 %v16905_v47  ;;  %11272 = vmatprep.subr.bf16.mxu0 %v16910_v39  ;;  %v16983_v47 = vld [vmem:[#allocation10 + $0xa10] ss:$8 sps:$4 sm:$0xff]   ;;  %v16988_v39 = vld [vmem:[#allocation10 + $0x904] ss:$8 sps:$4 sm:$0xff]  }
 0x899   :  { %11704 = vmatprep.subr.bf16.mxu1 %v16913_v35  ;;  %v16991_v35 = vld [vmem:[#allocation10 + $0xa04] ss:$8 sps:$4 sm:$0xff]  }
 0x89b   :  { %11273 = vmatpush2.bf16.msra.mxu0 %v16908_v61  ;;  %v16986_v61 = vld [vmem:[#allocation10 + $0x900] ss:$8 sps:$4 sm:$0xff]  }
 0x89c   :  { %11705 = vmatpush2.bf16.msra.mxu1 %v16911_v15  ;;  %11274 = vmatprep.subr.bf16.mxu0 %v16916_v52  ;;  %v16989_v15 = vld [vmem:[#allocation10 + $0xa00] ss:$8 sps:$4 sm:$0xff]   ;;  %v16994_v52 = vld [vmem:[#allocation10 + $0x9f4] ss:$8 sps:$4 sm:$0xff]  }
 0x89d   :  { %11706 = vmatprep.subr.bf16.mxu1 %v16919_v36  ;;  %v16997_v36 = vld [vmem:[#allocation10 + $0xaf4] ss:$8 sps:$4 sm:$0xff]  }
 0x89f   :  { %11275 = vmatpush2.bf16.msra.mxu0 %v16914_v2  ;;  %v16992_v2 = vld [vmem:[#allocation10 + $0x9f0] ss:$8 sps:$4 sm:$0xff]  }
 0x8a0   :  { %11707 = vmatpush2.bf16.msra.mxu1 %v16917_v10  ;;  %11276 = vmatprep.subr.bf16.mxu0 %v16922_v54  ;;  %v16995_v10 = vld [vmem:[#allocation10 + $0xaf0] ss:$8 sps:$4 sm:$0xff]   ;;  %v17000_v54 = vld [vmem:[#allocation10 + $0x9e4] ss:$8 sps:$4 sm:$0xff]  }
 0x8a1   :  { %11708 = vmatprep.subr.bf16.mxu1 %v16925_v40  ;;  %v17003_v40 = vld [vmem:[#allocation10 + $0xae4] ss:$8 sps:$4 sm:$0xff]  }
 0x8a3   :  { %11277 = vmatpush2.bf16.msra.mxu0 %v16920_v49  ;;  %v16998_v49 = vld [vmem:[#allocation10 + $0x9e0] ss:$8 sps:$4 sm:$0xff]  }
 0x8a4   :  { %11709 = vmatpush2.bf16.msra.mxu1 %v16923_v9  ;;  %11278 = vmatprep.subr.bf16.mxu0 %v16928_v5  ;;  %v17001_v9 = vld [vmem:[#allocation10 + $0xae0] ss:$8 sps:$4 sm:$0xff]   ;;  %v17006_v5 = vld [vmem:[#allocation10 + $0x9d4] ss:$8 sps:$4 sm:$0xff]  }
 0x8a5   :  { %11710 = vmatprep.subr.bf16.mxu1 %v16931_v4  ;;  %v17009_v4 = vld [vmem:[#allocation10 + $0xad4] ss:$8 sps:$4 sm:$0xff]  }
 0x8a7   :  { %11279 = vmatpush2.bf16.msra.mxu0 %v16926_v42  ;;  %v17004_v42 = vld [vmem:[#allocation10 + $0x9d0] ss:$8 sps:$4 sm:$0xff]  }
 0x8a8   :  { %11711 = vmatpush2.bf16.msra.mxu1 %v16929_v23  ;;  %11280 = vmatprep.subr.bf16.mxu0 %v16934_v30  ;;  %v17007_v23 = vld [vmem:[#allocation10 + $0xad0] ss:$8 sps:$4 sm:$0xff]   ;;  %v17012_v30 = vld [vmem:[#allocation10 + $0x9c4] ss:$8 sps:$4 sm:$0xff]  }
 0x8a9   :  { %11712 = vmatprep.subr.bf16.mxu1 %v16937_v55  ;;  %v17015_v55 = vld [vmem:[#allocation10 + $0xac4] ss:$8 sps:$4 sm:$0xff]  }
 0x8ab   :  { %11281 = vmatpush2.bf16.msra.mxu0 %v16932_v27  ;;  %v17010_v27 = vld [vmem:[#allocation10 + $0x9c0] ss:$8 sps:$4 sm:$0xff]  }
 0x8ac   :  { %11713 = vmatpush2.bf16.msra.mxu1 %v16935_v58  ;;  %11282 = vmatprep.subr.bf16.mxu0 %v16940_v0  ;;  %v17013_v58 = vld [vmem:[#allocation10 + $0xac0] ss:$8 sps:$4 sm:$0xff]   ;;  %v17018_v0 = vld [vmem:[#allocation10 + $0x9b4] ss:$8 sps:$4 sm:$0xff]  }
 0x8ad   :  { %11714 = vmatprep.subr.bf16.mxu1 %v16943_v7  ;;  %v17021_v7 = vld [vmem:[#allocation10 + $0xab4] ss:$8 sps:$4 sm:$0xff]  }
 0x8af   :  { %11283 = vmatpush2.bf16.msra.mxu0 %v16938_v11  ;;  %v17016_v11 = vld [vmem:[#allocation10 + $0x9b0] ss:$8 sps:$4 sm:$0xff]  }
 0x8b0   :  { %11715 = vmatpush2.bf16.msra.mxu1 %v16941_v43  ;;  %11727 = vmatprep.subr.bf16.mxu0 %v16946_v18  ;;  %v17019_v43 = vld [vmem:[#allocation10 + $0xab0] ss:$8 sps:$4 sm:$0xff]   ;;  %v17024_v18 = vld [vmem:[#allocation10 + $0x9a4] ss:$8 sps:$4 sm:$0xff]  }
 0x8b1   :  { %12159 = vmatprep.subr.bf16.mxu1 %v16949_v62  ;;  %v17027_v62 = vld [vmem:[#allocation10 + $0xaa4] ss:$8 sps:$4 sm:$0xff]  }
 0x8b2   :  { %11285 = vmatmul.mubr.bf16.vlgmr.msra.gmra.mxu0 %v23154_v22  ;;  %v16959_v22 = vld [vmem:[#allocation10 + $0xa50] ss:$8 sps:$4 sm:$0xff]  }
 0x8b3   :  { %11717 = vmatmul.mubr.bf16.vlgmr.msra.gmra.mxu1 %v22984_v16  ;;  %11728 = vmatpush1.bf16.msra.mxu0 %v16944_v21  ;;  %v16967_v16 = vld [vmem:[#allocation10 + $0xa44] ss:$8 sps:$4 sm:$0xff]   ;;  %v17022_v21 = vld [vmem:[#allocation10 + $0x9a0] ss:$8 sps:$4 sm:$0xff]  }
 0x8b4   :  { %11759 = vmatprep.mubr.bf16.mxu0 %v23174_v8  ;;  %12160 = vmatpush1.bf16.msra.mxu1 %v16947_v3  ;;  %v16965_v8 = vld [vmem:[#allocation10 + $0xa40] ss:$8 sps:$4 sm:$0xff]  }
 0x8b5   :  { %12191 = vmatprep.mubr.bf16.mxu1 %v23018_v13  ;;  %11729 = vmatprep.subr.bf16.mxu0 %v16952_v48  ;;  %v16968_v13 = vld [vmem:[#allocation10 + $0x930] ss:$8 sps:$4 sm:$0xff]   ;;  %v17025_v3 = vld [vmem:[#allocation10 + $0xaa0] ss:$8 sps:$4 sm:$0xff]   ;;  %v17030_v48 = vld [vmem:[#allocation10 + $0x994] ss:$8 sps:$4 sm:$0xff]  }
 0x8b6   :  { %12161 = vmatprep.subr.bf16.mxu1 %v16955_v44  ;;  %v17033_v44 = vld [vmem:[#allocation10 + $0xa94] ss:$8 sps:$4 sm:$0xff]  }
 0x8b7   :  { %11730 = vmatpush1.bf16.msra.mxu0 %v16950_v6  ;;  %v17028_v6 = vld [vmem:[#allocation10 + $0x990] ss:$8 sps:$4 sm:$0xff]  }
 0x8b8   :  { %12162 = vmatpush1.bf16.msra.mxu1 %v16953_v45  ;;  %11731 = vmatprep.subr.bf16.mxu0 %v16958_v60  ;;  %v17031_v45 = vld [vmem:[#allocation10 + $0xa90] ss:$8 sps:$4 sm:$0xff]   ;;  %v17036_v60 = vld [vmem:[#allocation10 + $0x984] ss:$8 sps:$4 sm:$0xff]  }
 0x8b9   :  { %12163 = vmatprep.subr.bf16.mxu1 %v16961_v25  ;;  %v17039_v25 = vld [vmem:[#allocation10 + $0xa84] ss:$8 sps:$4 sm:$0xff]  }
 0x8bb   :  { %11732 = vmatpush1.bf16.msra.mxu0 %v16956_v38  ;;  %v17034_v38 = vld [vmem:[#allocation10 + $0x980] ss:$8 sps:$4 sm:$0xff]  }
 0x8bc   :  { %12164 = vmatpush1.bf16.msra.mxu1 %v16959_v22  ;;  %11733 = vmatprep.subr.bf16.mxu0 %v16964_v37  ;;  %v17037_v22 = vld [vmem:[#allocation10 + $0xa80] ss:$8 sps:$4 sm:$0xff]   ;;  %v17042_v37 = vld [vmem:[#allocation10 + $0xb74] ss:$8 sps:$4 sm:$0xff]  }
 0x8bd   :  { %12165 = vmatprep.subr.bf16.mxu1 %v16967_v16  ;;  %v17045_v16 = vld [vmem:[#allocation10 + $0xc74] ss:$8 sps:$4 sm:$0xff]  }
 0x8bf   :  { %11734 = vmatpush1.bf16.msra.mxu0 %v16962_v34  ;;  %v17040_v34 = vld [vmem:[#allocation10 + $0xb70] ss:$8 sps:$4 sm:$0xff]  }
 0x8c0   :  { %12166 = vmatpush1.bf16.msra.mxu1 %v16965_v8  ;;  %11735 = vmatprep.subr.bf16.mxu0 %v16970_v41  ;;  %v17043_v8 = vld [vmem:[#allocation10 + $0xc70] ss:$8 sps:$4 sm:$0xff]   ;;  %v17048_v41 = vld [vmem:[#allocation10 + $0xb64] ss:$8 sps:$4 sm:$0xff]  }
 0x8c1   :  { %12167 = vmatprep.subr.bf16.mxu1 %v16973_v26  ;;  %v17051_v26 = vld [vmem:[#allocation10 + $0xc64] ss:$8 sps:$4 sm:$0xff]  }
 0x8c3   :  { %11736 = vmatpush1.bf16.msra.mxu0 %v16968_v13  ;;  %v17046_v13 = vld [vmem:[#allocation10 + $0xb60] ss:$8 sps:$4 sm:$0xff]  }
 0x8c4   :  { %12168 = vmatpush1.bf16.msra.mxu1 %v16971_v51  ;;  %11737 = vmatprep.subr.bf16.mxu0 %v16976_v50  ;;  %v17049_v51 = vld [vmem:[#allocation10 + $0xc60] ss:$8 sps:$4 sm:$0xff]   ;;  %v17054_v50 = vld [vmem:[#allocation10 + $0xb54] ss:$8 sps:$4 sm:$0xff]  }
 0x8c5   :  { %12169 = vmatprep.subr.bf16.mxu1 %v16979_v28  ;;  %v17057_v28 = vld [vmem:[#allocation10 + $0xc54] ss:$8 sps:$4 sm:$0xff]  }
 0x8c7   :  { %11738 = vmatpush1.bf16.msra.mxu0 %v16974_v63  ;;  %v17052_v63 = vld [vmem:[#allocation10 + $0xb50] ss:$8 sps:$4 sm:$0xff]  }
 0x8c8   :  { %12170 = vmatpush1.bf16.msra.mxu1 %v16977_v32  ;;  %11739 = vmatprep.subr.bf16.mxu0 %v16982_v31  ;;  %v17060_v32 = vld [vmem:[#allocation10 + $0xb44] ss:$8 sps:$4 sm:$0xff]   ;;  %v17058_v31 = vld [vmem:[#allocation10 + $0xb40] ss:$8 sps:$4 sm:$0xff]  }
 0x8c9   :  { %12171 = vmatprep.subr.bf16.mxu1 %v16985_v46  ;;  %v17066_v46 = vld [vmem:[#allocation10 + $0xb34] ss:$8 sps:$4 sm:$0xff]  }
 0x8cb   :  { %11740 = vmatpush1.bf16.msra.mxu0 %v16980_v53  ;;  %v17069_v53 = vld [vmem:[#allocation10 + $0xc34] ss:$8 sps:$4 sm:$0xff]  }
 0x8cc   :  { %12172 = vmatpush1.bf16.msra.mxu1 %v16983_v47  ;;  %11741 = vmatprep.subr.bf16.mxu0 %v16988_v39  ;;  %v17067_v47 = vld [vmem:[#allocation10 + $0xc30] ss:$8 sps:$4 sm:$0xff]   ;;  %v17072_v39 = vld [vmem:[#allocation10 + $0xb24] ss:$8 sps:$4 sm:$0xff]  }
 0x8cd   :  { %12173 = vmatprep.subr.bf16.mxu1 %v16991_v35  ;;  %v17075_v35 = vld [vmem:[#allocation10 + $0xc24] ss:$8 sps:$4 sm:$0xff]  }
 0x8cf   :  { %11742 = vmatpush1.bf16.msra.mxu0 %v16986_v61  ;;  %v17070_v61 = vld [vmem:[#allocation10 + $0xb20] ss:$8 sps:$4 sm:$0xff]  }
 0x8d0   :  { %12174 = vmatpush1.bf16.msra.mxu1 %v16989_v15  ;;  %11743 = vmatprep.subr.bf16.mxu0 %v16994_v52  ;;  %v17073_v15 = vld [vmem:[#allocation10 + $0xc20] ss:$8 sps:$4 sm:$0xff]   ;;  %v17078_v52 = vld [vmem:[#allocation10 + $0xb14] ss:$8 sps:$4 sm:$0xff]  }
 0x8d1   :  { %12175 = vmatprep.subr.bf16.mxu1 %v16997_v36  ;;  %v17081_v36 = vld [vmem:[#allocation10 + $0xc14] ss:$8 sps:$4 sm:$0xff]  }
 0x8d3   :  { %11744 = vmatpush2.bf16.msra.mxu0 %v16992_v2  ;;  %v17076_v2 = vld [vmem:[#allocation10 + $0xb10] ss:$8 sps:$4 sm:$0xff]  }
 0x8d4   :  { %12176 = vmatpush2.bf16.msra.mxu1 %v16995_v10  ;;  %11745 = vmatprep.subr.bf16.mxu0 %v17000_v54  ;;  %v17079_v10 = vld [vmem:[#allocation10 + $0xc10] ss:$8 sps:$4 sm:$0xff]   ;;  %v17084_v54 = vld [vmem:[#allocation10 + $0xb04] ss:$8 sps:$4 sm:$0xff]  }
 0x8d5   :  { %12177 = vmatprep.subr.bf16.mxu1 %v17003_v40  ;;  %v17087_v40 = vld [vmem:[#allocation10 + $0xc04] ss:$8 sps:$4 sm:$0xff]  }
 0x8d7   :  { %11746 = vmatpush2.bf16.msra.mxu0 %v16998_v49  ;;  %v17082_v49 = vld [vmem:[#allocation10 + $0xb00] ss:$8 sps:$4 sm:$0xff]  }
 0x8d8   :  { %12178 = vmatpush2.bf16.msra.mxu1 %v17001_v9  ;;  %11747 = vmatprep.subr.bf16.mxu0 %v17006_v5  ;;  %v17085_v9 = vld [vmem:[#allocation10 + $0xc00] ss:$8 sps:$4 sm:$0xff]   ;;  %v17090_v5 = vld [vmem:[#allocation10 + $0xbf4] ss:$8 sps:$4 sm:$0xff]  }
 0x8d9   :  { %12179 = vmatprep.subr.bf16.mxu1 %v17009_v4  ;;  %v17093_v4 = vld [vmem:[#allocation10 + $0xcf4] ss:$8 sps:$4 sm:$0xff]  }
 0x8db   :  { %11748 = vmatpush2.bf16.msra.mxu0 %v17004_v42  ;;  %v17088_v42 = vld [vmem:[#allocation10 + $0xbf0] ss:$8 sps:$4 sm:$0xff]  }
 0x8dc   :  { %12180 = vmatpush2.bf16.msra.mxu1 %v17007_v23  ;;  %11749 = vmatprep.subr.bf16.mxu0 %v17012_v30  ;;  %v17091_v23 = vld [vmem:[#allocation10 + $0xcf0] ss:$8 sps:$4 sm:$0xff]   ;;  %v17096_v30 = vld [vmem:[#allocation10 + $0xbe4] ss:$8 sps:$4 sm:$0xff]  }
 0x8dd   :  { %12181 = vmatprep.subr.bf16.mxu1 %v17015_v55  ;;  %v17099_v55 = vld [vmem:[#allocation10 + $0xce4] ss:$8 sps:$4 sm:$0xff]  }
 0x8df   :  { %11750 = vmatpush2.bf16.msra.mxu0 %v17010_v27  ;;  %v17094_v27 = vld [vmem:[#allocation10 + $0xbe0] ss:$8 sps:$4 sm:$0xff]  }
 0x8e0   :  { %12182 = vmatpush2.bf16.msra.mxu1 %v17013_v58  ;;  %11751 = vmatprep.subr.bf16.mxu0 %v17018_v0  ;;  %v17097_v58 = vld [vmem:[#allocation10 + $0xce0] ss:$8 sps:$4 sm:$0xff]   ;;  %v17102_v0 = vld [vmem:[#allocation10 + $0xbd4] ss:$8 sps:$4 sm:$0xff]  }
 0x8e1   :  { %12183 = vmatprep.subr.bf16.mxu1 %v17021_v7  ;;  %v17105_v7 = vld [vmem:[#allocation10 + $0xcd4] ss:$8 sps:$4 sm:$0xff]  }
 0x8e3   :  { %11752 = vmatpush2.bf16.msra.mxu0 %v17016_v11  ;;  %v17100_v11 = vld [vmem:[#allocation10 + $0xbd0] ss:$8 sps:$4 sm:$0xff]  }
 0x8e4   :  { %12184 = vmatpush2.bf16.msra.mxu1 %v17019_v43  ;;  %11753 = vmatprep.subr.bf16.mxu0 %v17024_v18  ;;  %v17103_v43 = vld [vmem:[#allocation10 + $0xcd0] ss:$8 sps:$4 sm:$0xff]   ;;  %v17108_v18 = vld [vmem:[#allocation10 + $0xbc4] ss:$8 sps:$4 sm:$0xff]  }
 0x8e5   :  { %12185 = vmatprep.subr.bf16.mxu1 %v17027_v62  ;;  %v17111_v62 = vld [vmem:[#allocation10 + $0xcc4] ss:$8 sps:$4 sm:$0xff]  }
 0x8e7   :  { %11754 = vmatpush2.bf16.msra.mxu0 %v17022_v21  ;;  %v17106_v21 = vld [vmem:[#allocation10 + $0xbc0] ss:$8 sps:$4 sm:$0xff]  }
 0x8e8   :  { %12186 = vmatpush2.bf16.msra.mxu1 %v17025_v3  ;;  %11755 = vmatprep.subr.bf16.mxu0 %v17030_v48  ;;  %v17109_v3 = vld [vmem:[#allocation10 + $0xcc0] ss:$8 sps:$4 sm:$0xff]   ;;  %v17114_v48 = vld [vmem:[#allocation10 + $0xbb4] ss:$8 sps:$4 sm:$0xff]  }
 0x8e9   :  { %12187 = vmatprep.subr.bf16.mxu1 %v17033_v44  ;;  %v17117_v44 = vld [vmem:[#allocation10 + $0xcb4] ss:$8 sps:$4 sm:$0xff]  }
 0x8eb   :  { %11756 = vmatpush2.bf16.msra.mxu0 %v17028_v6  ;;  %v17112_v6 = vld [vmem:[#allocation10 + $0xbb0] ss:$8 sps:$4 sm:$0xff]  }
 0x8ec   :  { %12188 = vmatpush2.bf16.msra.mxu1 %v17031_v45  ;;  %11757 = vmatprep.subr.bf16.mxu0 %v17036_v60  ;;  %v17115_v45 = vld [vmem:[#allocation10 + $0xcb0] ss:$8 sps:$4 sm:$0xff]   ;;  %v17120_v60 = vld [vmem:[#allocation10 + $0xba4] ss:$8 sps:$4 sm:$0xff]  }
 0x8ed   :  { %12189 = vmatprep.subr.bf16.mxu1 %v17039_v25  ;;  %v17123_v25 = vld [vmem:[#allocation10 + $0xca4] ss:$8 sps:$4 sm:$0xff]  }
 0x8ef   :  { %11758 = vmatpush2.bf16.msra.mxu0 %v17034_v38  ;;  %v17118_v38 = vld [vmem:[#allocation10 + $0xba0] ss:$8 sps:$4 sm:$0xff]  }
 0x8f0   :  { %12190 = vmatpush2.bf16.msra.mxu1 %v17037_v22  ;;  %12202 = vmatprep.subr.bf16.mxu0 %v17042_v37  ;;  %v17121_v22 = vld [vmem:[#allocation10 + $0xca0] ss:$8 sps:$4 sm:$0xff]   ;;  %v17126_v37 = vld [vmem:[#allocation10 + $0xb94] ss:$8 sps:$4 sm:$0xff]  }
 0x8f1   :  { %12634 = vmatprep.subr.bf16.mxu1 %v17045_v16  ;;  %v17129_v16 = vld [vmem:[#allocation10 + $0xc94] ss:$8 sps:$4 sm:$0xff]  }
 0x8f2   :  { %11760 = vmatmul.mubr.bf16.vlgmr.msra.gmra.mxu0 %v23167_v29  ;;  %v17055_v29 = vld [vmem:[#allocation10 + $0xc50] ss:$8 sps:$4 sm:$0xff]  }
 0x8f3   :  { %12192 = vmatmul.mubr.bf16.vlgmr.msra.gmra.mxu1 %v23012_v19  ;;  %12203 = vmatpush1.bf16.msra.mxu0 %v17040_v34  ;;  %v17063_v19 = vld [vmem:[#allocation10 + $0xc44] ss:$8 sps:$4 sm:$0xff]   ;;  %v17124_v34 = vld [vmem:[#allocation10 + $0xb90] ss:$8 sps:$4 sm:$0xff]  }
 0x8f4   :  { %12234 = vmatprep.mubr.bf16.mxu0 %v23189_v24  ;;  %12635 = vmatpush1.bf16.msra.mxu1 %v17043_v8  ;;  %v17061_v24 = vld [vmem:[#allocation10 + $0xc40] ss:$8 sps:$4 sm:$0xff]   ;;  %v17127_v8 = vld [vmem:[#allocation10 + $0xc90] ss:$8 sps:$4 sm:$0xff]  }
 0x8f5   :  { %12666 = vmatprep.mubr.bf16.mxu1 %v23040_v56  ;;  %12204 = vmatprep.subr.bf16.mxu0 %v17048_v41  ;;  %v17064_v56 = vld [vmem:[#allocation10 + $0xb30] ss:$8 sps:$4 sm:$0xff]   ;;  %v17132_v41 = vld [vmem:[#allocation10 + $0xb84] ss:$8 sps:$4 sm:$0xff]  }
 0x8f6   :  { %12636 = vmatprep.subr.bf16.mxu1 %v17051_v26  ;;  %v17135_v26 = vld [vmem:[#allocation10 + $0xc84] ss:$8 sps:$4 sm:$0xff]  }
 0x8f7   :  { %12205 = vmatpush1.bf16.msra.mxu0 %v17046_v13  ;;  %v17130_v13 = vld [vmem:[#allocation10 + $0xb80] ss:$8 sps:$4 sm:$0xff]  }
 0x8f8   :  { %12637 = vmatpush1.bf16.msra.mxu1 %v17049_v51  ;;  %12206 = vmatprep.subr.bf16.mxu0 %v17054_v50  ;;  %v17133_v51 = vld [vmem:[#allocation10 + $0xc80] ss:$8 sps:$4 sm:$0xff]   ;;  %v17138_v50 = vld [vmem:[#allocation10 + $0xd74] ss:$8 sps:$4 sm:$0xff]  }
 0x8f9   :  { %12638 = vmatprep.subr.bf16.mxu1 %v17057_v28  ;;  %v17141_v28 = vld [vmem:[#allocation10 + $0xe74] ss:$8 sps:$4 sm:$0xff]  }
 0x8fb   :  { %12207 = vmatpush1.bf16.msra.mxu0 %v17052_v63  ;;  %v17136_v63 = vld [vmem:[#allocation10 + $0xd70] ss:$8 sps:$4 sm:$0xff]  }
 0x8fc   :  { %12639 = vmatpush1.bf16.msra.mxu1 %v17055_v29  ;;  %12208 = vmatprep.subr.bf16.mxu0 %v17060_v32  ;;  %v17139_v29 = vld [vmem:[#allocation10 + $0xe70] ss:$8 sps:$4 sm:$0xff]   ;;  %v17144_v32 = vld [vmem:[#allocation10 + $0xd64] ss:$8 sps:$4 sm:$0xff]  }
 0x8fd   :  { %12640 = vmatprep.subr.bf16.mxu1 %v17063_v19  ;;  %v17147_v19 = vld [vmem:[#allocation10 + $0xe64] ss:$8 sps:$4 sm:$0xff]  }
 0x8ff   :  { %12209 = vmatpush1.bf16.msra.mxu0 %v17058_v31  ;;  %v17142_v31 = vld [vmem:[#allocation10 + $0xd60] ss:$8 sps:$4 sm:$0xff]  }
 0x900   :  { %12641 = vmatpush1.bf16.msra.mxu1 %v17061_v24  ;;  %12210 = vmatprep.subr.bf16.mxu0 %v17066_v46  ;;  %v17145_v24 = vld [vmem:[#allocation10 + $0xe60] ss:$8 sps:$4 sm:$0xff]   ;;  %v17150_v46 = vld [vmem:[#allocation10 + $0xd54] ss:$8 sps:$4 sm:$0xff]  }
 0x901   :  { %12642 = vmatprep.subr.bf16.mxu1 %v17069_v53  ;;  %v17153_v53 = vld [vmem:[#allocation10 + $0xe54] ss:$8 sps:$4 sm:$0xff]  }
 0x903   :  { %12211 = vmatpush1.bf16.msra.mxu0 %v17064_v56  ;;  %v17148_v56 = vld [vmem:[#allocation10 + $0xd50] ss:$8 sps:$4 sm:$0xff]  }
 0x904   :  { %12643 = vmatpush1.bf16.msra.mxu1 %v17067_v47  ;;  %12212 = vmatprep.subr.bf16.mxu0 %v17072_v39  ;;  %v17156_v47 = vld [vmem:[#allocation10 + $0xd44] ss:$8 sps:$4 sm:$0xff]   ;;  %v17154_v39 = vld [vmem:[#allocation10 + $0xd40] ss:$8 sps:$4 sm:$0xff]  }
 0x905   :  { %12644 = vmatprep.subr.bf16.mxu1 %v17075_v35  ;;  %v17162_v35 = vld [vmem:[#allocation10 + $0xd34] ss:$8 sps:$4 sm:$0xff]  }
 0x907   :  { %12213 = vmatpush1.bf16.msra.mxu0 %v17070_v61  ;;  %v17165_v61 = vld [vmem:[#allocation10 + $0xe34] ss:$8 sps:$4 sm:$0xff]  }
 0x908   :  { %12645 = vmatpush1.bf16.msra.mxu1 %v17073_v15  ;;  %12214 = vmatprep.subr.bf16.mxu0 %v17078_v52  ;;  %v17163_v15 = vld [vmem:[#allocation10 + $0xe30] ss:$8 sps:$4 sm:$0xff]   ;;  %v17168_v52 = vld [vmem:[#allocation10 + $0xd24] ss:$8 sps:$4 sm:$0xff]  }
 0x909   :  { %12646 = vmatprep.subr.bf16.mxu1 %v17081_v36  ;;  %v17171_v36 = vld [vmem:[#allocation10 + $0xe24] ss:$8 sps:$4 sm:$0xff]  }
 0x90b   :  { %12215 = vmatpush1.bf16.msra.mxu0 %v17076_v2  ;;  %v17166_v2 = vld [vmem:[#allocation10 + $0xd20] ss:$8 sps:$4 sm:$0xff]  }
 0x90c   :  { %12647 = vmatpush1.bf16.msra.mxu1 %v17079_v10  ;;  %12216 = vmatprep.subr.bf16.mxu0 %v17084_v54  ;;  %v17169_v10 = vld [vmem:[#allocation10 + $0xe20] ss:$8 sps:$4 sm:$0xff]   ;;  %v17174_v54 = vld [vmem:[#allocation10 + $0xd14] ss:$8 sps:$4 sm:$0xff]  }
 0x90d   :  { %12648 = vmatprep.subr.bf16.mxu1 %v17087_v40  ;;  %v17177_v40 = vld [vmem:[#allocation10 + $0xe14] ss:$8 sps:$4 sm:$0xff]  }
 0x90f   :  { %12217 = vmatpush1.bf16.msra.mxu0 %v17082_v49  ;;  %v17172_v49 = vld [vmem:[#allocation10 + $0xd10] ss:$8 sps:$4 sm:$0xff]  }
 0x910   :  { %12649 = vmatpush1.bf16.msra.mxu1 %v17085_v9  ;;  %12218 = vmatprep.subr.bf16.mxu0 %v17090_v5  ;;  %v17175_v9 = vld [vmem:[#allocation10 + $0xe10] ss:$8 sps:$4 sm:$0xff]   ;;  %v17180_v5 = vld [vmem:[#allocation10 + $0xd04] ss:$8 sps:$4 sm:$0xff]  }
 0x911   :  { %12650 = vmatprep.subr.bf16.mxu1 %v17093_v4  ;;  %v17183_v4 = vld [vmem:[#allocation10 + $0xe04] ss:$8 sps:$4 sm:$0xff]  }
 0x913   :  { %12219 = vmatpush2.bf16.msra.mxu0 %v17088_v42  ;;  %v17178_v42 = vld [vmem:[#allocation10 + $0xd00] ss:$8 sps:$4 sm:$0xff]  }
 0x914   :  { %12651 = vmatpush2.bf16.msra.mxu1 %v17091_v23  ;;  %12220 = vmatprep.subr.bf16.mxu0 %v17096_v30  ;;  %v17181_v23 = vld [vmem:[#allocation10 + $0xe00] ss:$8 sps:$4 sm:$0xff]   ;;  %v17186_v30 = vld [vmem:[#allocation10 + $0xdf4] ss:$8 sps:$4 sm:$0xff]  }
 0x915   :  { %12652 = vmatprep.subr.bf16.mxu1 %v17099_v55  ;;  %v17189_v55 = vld [vmem:[#allocation10 + $0xef4] ss:$8 sps:$4 sm:$0xff]  }
 0x917   :  { %12221 = vmatpush2.bf16.msra.mxu0 %v17094_v27  ;;  %v17184_v27 = vld [vmem:[#allocation10 + $0xdf0] ss:$8 sps:$4 sm:$0xff]  }
 0x918   :  { %12653 = vmatpush2.bf16.msra.mxu1 %v17097_v58  ;;  %12222 = vmatprep.subr.bf16.mxu0 %v17102_v0  ;;  %v17187_v58 = vld [vmem:[#allocation10 + $0xef0] ss:$8 sps:$4 sm:$0xff]   ;;  %v17192_v0 = vld [vmem:[#allocation10 + $0xde4] ss:$8 sps:$4 sm:$0xff]  }
 0x919   :  { %12654 = vmatprep.subr.bf16.mxu1 %v17105_v7  ;;  %v17195_v7 = vld [vmem:[#allocation10 + $0xee4] ss:$8 sps:$4 sm:$0xff]  }
 0x91b   :  { %12223 = vmatpush2.bf16.msra.mxu0 %v17100_v11  ;;  %v17190_v11 = vld [vmem:[#allocation10 + $0xde0] ss:$8 sps:$4 sm:$0xff]  }
 0x91c   :  { %12655 = vmatpush2.bf16.msra.mxu1 %v17103_v43  ;;  %12224 = vmatprep.subr.bf16.mxu0 %v17108_v18  ;;  %v17193_v43 = vld [vmem:[#allocation10 + $0xee0] ss:$8 sps:$4 sm:$0xff]   ;;  %v17198_v18 = vld [vmem:[#allocation10 + $0xdd4] ss:$8 sps:$4 sm:$0xff]  }
 0x91d   :  { %12656 = vmatprep.subr.bf16.mxu1 %v17111_v62  ;;  %v17201_v62 = vld [vmem:[#allocation10 + $0xed4] ss:$8 sps:$4 sm:$0xff]  }
 0x91f   :  { %12225 = vmatpush2.bf16.msra.mxu0 %v17106_v21  ;;  %v17196_v21 = vld [vmem:[#allocation10 + $0xdd0] ss:$8 sps:$4 sm:$0xff]  }
 0x920   :  { %12657 = vmatpush2.bf16.msra.mxu1 %v17109_v3  ;;  %12226 = vmatprep.subr.bf16.mxu0 %v17114_v48  ;;  %v17199_v3 = vld [vmem:[#allocation10 + $0xed0] ss:$8 sps:$4 sm:$0xff]   ;;  %v17204_v48 = vld [vmem:[#allocation10 + $0xdc4] ss:$8 sps:$4 sm:$0xff]  }
 0x921   :  { %12658 = vmatprep.subr.bf16.mxu1 %v17117_v44  ;;  %v17207_v44 = vld [vmem:[#allocation10 + $0xec4] ss:$8 sps:$4 sm:$0xff]  }
 0x923   :  { %12227 = vmatpush2.bf16.msra.mxu0 %v17112_v6  ;;  %v17202_v6 = vld [vmem:[#allocation10 + $0xdc0] ss:$8 sps:$4 sm:$0xff]  }
 0x924   :  { %12659 = vmatpush2.bf16.msra.mxu1 %v17115_v45  ;;  %12228 = vmatprep.subr.bf16.mxu0 %v17120_v60  ;;  %v17205_v45 = vld [vmem:[#allocation10 + $0xec0] ss:$8 sps:$4 sm:$0xff]   ;;  %v17210_v60 = vld [vmem:[#allocation10 + $0xdb4] ss:$8 sps:$4 sm:$0xff]  }
 0x925   :  { %12660 = vmatprep.subr.bf16.mxu1 %v17123_v25  ;;  %v17213_v25 = vld [vmem:[#allocation10 + $0xeb4] ss:$8 sps:$4 sm:$0xff]  }
 0x927   :  { %12229 = vmatpush2.bf16.msra.mxu0 %v17118_v38  ;;  %v17208_v38 = vld [vmem:[#allocation10 + $0xdb0] ss:$8 sps:$4 sm:$0xff]  }
 0x928   :  { %12661 = vmatpush2.bf16.msra.mxu1 %v17121_v22  ;;  %12230 = vmatprep.subr.bf16.mxu0 %v17126_v37  ;;  %v17211_v22 = vld [vmem:[#allocation10 + $0xeb0] ss:$8 sps:$4 sm:$0xff]   ;;  %v17216_v37 = vld [vmem:[#allocation10 + $0xda4] ss:$8 sps:$4 sm:$0xff]  }
 0x929   :  { %12662 = vmatprep.subr.bf16.mxu1 %v17129_v16  ;;  %v17219_v16 = vld [vmem:[#allocation10 + $0xea4] ss:$8 sps:$4 sm:$0xff]  }
 0x92b   :  { %12231 = vmatpush2.bf16.msra.mxu0 %v17124_v34  ;;  %v17214_v34 = vld [vmem:[#allocation10 + $0xda0] ss:$8 sps:$4 sm:$0xff]  }
 0x92c   :  { %12663 = vmatpush2.bf16.msra.mxu1 %v17127_v8  ;;  %12232 = vmatprep.subr.bf16.mxu0 %v17132_v41  ;;  %v17217_v8 = vld [vmem:[#allocation10 + $0xea0] ss:$8 sps:$4 sm:$0xff]   ;;  %v17222_v41 = vld [vmem:[#allocation10 + $0xd94] ss:$8 sps:$4 sm:$0xff]  }
 0x92d   :  { %12664 = vmatprep.subr.bf16.mxu1 %v17135_v26  ;;  %v17225_v26 = vld [vmem:[#allocation10 + $0xe94] ss:$8 sps:$4 sm:$0xff]  }
 0x92f   :  { %12233 = vmatpush2.bf16.msra.mxu0 %v17130_v13  ;;  %v17220_v13 = vld [vmem:[#allocation10 + $0xd90] ss:$8 sps:$4 sm:$0xff]  }
 0x930   :  { %12665 = vmatpush2.bf16.msra.mxu1 %v17133_v51  ;;  %12677 = vmatprep.subr.bf16.mxu0 %v17138_v50  ;;  %v17223_v51 = vld [vmem:[#allocation10 + $0xe90] ss:$8 sps:$4 sm:$0xff]   ;;  %v17228_v50 = vld [vmem:[#allocation10 + $0xd84] ss:$8 sps:$4 sm:$0xff]  }
 0x931   :  { %13109 = vmatprep.subr.bf16.mxu1 %v17141_v28  ;;  %v17231_v28 = vld [vmem:[#allocation10 + $0xe84] ss:$8 sps:$4 sm:$0xff]  }
 0x932   :  { %12235 = vmatmul.mubr.bf16.vlgmr.msra.gmra.mxu0 %v23185_v17  ;;  %v17151_v17 = vld [vmem:[#allocation10 + $0xe50] ss:$8 sps:$4 sm:$0xff]  }
 0x933   :  { %12667 = vmatmul.mubr.bf16.vlgmr.msra.gmra.mxu1 %v23030_v20  ;;  %12678 = vmatpush1.bf16.msra.mxu0 %v17136_v63  ;;  %v17159_v20 = vld [vmem:[#allocation10 + $0xe44] ss:$8 sps:$4 sm:$0xff]   ;;  %v17226_v63 = vld [vmem:[#allocation10 + $0xd80] ss:$8 sps:$4 sm:$0xff]  }
 0x934   :  { %12709 = vmatprep.mubr.bf16.mxu0 %v23200_v12  ;;  %13110 = vmatpush1.bf16.msra.mxu1 %v17139_v29  ;;  %v17157_v12 = vld [vmem:[#allocation10 + $0xe40] ss:$8 sps:$4 sm:$0xff]  }
 0x935   :  { %13141 = vmatprep.mubr.bf16.mxu1 %v23071_v57  ;;  %12679 = vmatprep.subr.bf16.mxu0 %v17144_v32  ;;  %v17160_v57 = vld [vmem:[#allocation10 + $0xd30] ss:$8 sps:$4 sm:$0xff]   ;;  %v17229_v29 = vld [vmem:[#allocation10 + $0xe80] ss:$8 sps:$4 sm:$0xff]   ;;  %v17234_v32 = vld [vmem:[#allocation10 + $0xf74] ss:$8 sps:$4 sm:$0xff]  }
 0x936   :  { %13111 = vmatprep.subr.bf16.mxu1 %v17147_v19  ;;  %v17232_v19 = vld [vmem:[#allocation10 + $0xf70] ss:$8 sps:$4 sm:$0xff]  }
 0x937   :  { %12680 = vmatpush1.bf16.msra.mxu0 %v17142_v31  ;;  %v17237_v31 = vld [vmem:[#allocation10 + $0xf64] ss:$8 sps:$4 sm:$0xff]  }
 0x938   :  { %13112 = vmatpush1.bf16.msra.mxu1 %v17145_v24  ;;  %12681 = vmatprep.subr.bf16.mxu0 %v17150_v46  ;;  %v17235_v24 = vld [vmem:[#allocation10 + $0xf60] ss:$8 sps:$4 sm:$0xff]   ;;  %v17240_v46 = vld [vmem:[#allocation10 + $0xf54] ss:$8 sps:$4 sm:$0xff]  }
 0x939   :  { %13113 = vmatprep.subr.bf16.mxu1 %v17153_v53  ;;  %v17238_v53 = vld [vmem:[#allocation10 + $0xf50] ss:$8 sps:$4 sm:$0xff]  }
 0x93b   :  { %12682 = vmatpush1.bf16.msra.mxu0 %v17148_v56  ;;  %v17243_v56 = vld [vmem:[#allocation10 + $0xf44] ss:$8 sps:$4 sm:$0xff]  }
 0x93c   :  { %13114 = vmatpush1.bf16.msra.mxu1 %v17151_v17  ;;  %12683 = vmatprep.subr.bf16.mxu0 %v17156_v47  ;;  %v17241_v17 = vld [vmem:[#allocation10 + $0xf40] ss:$8 sps:$4 sm:$0xff]   ;;  %v17246_v47 = vld [vmem:[#allocation10 + $0xf34] ss:$8 sps:$4 sm:$0xff]  }
 0x93d   :  { %13115 = vmatprep.subr.bf16.mxu1 %v17159_v20  ;;  %v17244_v20 = vld [vmem:[#allocation10 + $0xf30] ss:$8 sps:$4 sm:$0xff]  }
 0x93f   :  { %12684 = vmatpush1.bf16.msra.mxu0 %v17154_v39  ;;  %v17252_v39 = vld [vmem:[#allocation10 + $0xf14] ss:$8 sps:$4 sm:$0xff]  }
 0x940   :  { %13116 = vmatpush1.bf16.msra.mxu1 %v17157_v12  ;;  %12685 = vmatprep.subr.bf16.mxu0 %v17162_v35  ;;  %v17255_v12 = vld [vmem:[#allocation10 + $0xf04] ss:$8 sps:$4 sm:$0xff]   ;;  %v17253_v35 = vld [vmem:[#allocation10 + $0xf00] ss:$8 sps:$4 sm:$0xff]  }
 0x941   :  { %13117 = vmatprep.subr.bf16.mxu1 %v17165_v61  ;;  %v17258_v61 = vld [vmem:[#allocation10 + $0xff4] ss:$8 sps:$4 sm:$0xff]  }
 0x943   :  { %12686 = vmatpush1.bf16.msra.mxu0 %v17160_v57  ;;  %v17256_v57 = vld [vmem:[#allocation10 + $0xff0] ss:$8 sps:$4 sm:$0xff]  }
 0x944   :  { %13118 = vmatpush1.bf16.msra.mxu1 %v17163_v15  ;;  %12687 = vmatprep.subr.bf16.mxu0 %v17168_v52  ;;  %v17261_v15 = vld [vmem:[#allocation10 + $0xfe4] ss:$8 sps:$4 sm:$0xff]   ;;  %v17259_v52 = vld [vmem:[#allocation10 + $0xfe0] ss:$8 sps:$4 sm:$0xff]  }
 0x945   :  { %13119 = vmatprep.subr.bf16.mxu1 %v17171_v36  ;;  %v17264_v36 = vld [vmem:[#allocation10 + $0xfd4] ss:$8 sps:$4 sm:$0xff]  }
 0x947   :  { %12688 = vmatpush1.bf16.msra.mxu0 %v17166_v2  ;;  %v17262_v2 = vld [vmem:[#allocation10 + $0xfd0] ss:$8 sps:$4 sm:$0xff]  }
 0x948   :  { %13120 = vmatpush1.bf16.msra.mxu1 %v17169_v10  ;;  %12689 = vmatprep.subr.bf16.mxu0 %v17174_v54  ;;  %v17267_v10 = vld [vmem:[#allocation10 + $0xfc4] ss:$8 sps:$4 sm:$0xff]   ;;  %v17265_v54 = vld [vmem:[#allocation10 + $0xfc0] ss:$8 sps:$4 sm:$0xff]  }
 0x949   :  { %13121 = vmatprep.subr.bf16.mxu1 %v17177_v40  ;;  %v17270_v40 = vld [vmem:[#allocation10 + $0xfb4] ss:$8 sps:$4 sm:$0xff]  }
 0x94b   :  { %12690 = vmatpush1.bf16.msra.mxu0 %v17172_v49  ;;  %v17268_v49 = vld [vmem:[#allocation10 + $0xfb0] ss:$8 sps:$4 sm:$0xff]  }
 0x94c   :  { %13122 = vmatpush1.bf16.msra.mxu1 %v17175_v9  ;;  %12691 = vmatprep.subr.bf16.mxu0 %v17180_v5  ;;  %v17273_v9 = vld [vmem:[#allocation10 + $0xfa4] ss:$8 sps:$4 sm:$0xff]   ;;  %v17271_v5 = vld [vmem:[#allocation10 + $0xfa0] ss:$8 sps:$4 sm:$0xff]  }
 0x94d   :  { %13123 = vmatprep.subr.bf16.mxu1 %v17183_v4  ;;  %v17276_v4 = vld [vmem:[#allocation10 + $0xf94] ss:$8 sps:$4 sm:$0xff]  }
 0x94f   :  { %12692 = vmatpush1.bf16.msra.mxu0 %v17178_v42  ;;  %v17274_v42 = vld [vmem:[#allocation10 + $0xf90] ss:$8 sps:$4 sm:$0xff]  }
 0x950   :  { %13124 = vmatpush1.bf16.msra.mxu1 %v17181_v23  ;;  %12693 = vmatprep.subr.bf16.mxu0 %v17186_v30  ;;  %v17279_v23 = vld [vmem:[#allocation10 + $0xf84] ss:$8 sps:$4 sm:$0xff]   ;;  %v17277_v30 = vld [vmem:[#allocation10 + $0xf80] ss:$8 sps:$4 sm:$0xff]  }
 0x951   :  { %13125 = vmatprep.subr.bf16.mxu1 %v17189_v55  ;;  %v17280_v55 = vld [vmem:[#allocation13 + $0x78] sm:$0xff]  }
 0x953   :  { %12694 = vmatpush2.bf16.msra.mxu0 %v17184_v27  ;;  %v17281_v27 = vld [vmem:[#allocation13 + $0x38] sm:$0xff]  }
 0x954   :  { %13126 = vmatpush2.bf16.msra.mxu1 %v17187_v58  ;;  %12695 = vmatprep.subr.bf16.mxu0 %v17192_v0  ;;  %v17282_v58 = vld [vmem:[#allocation13 + $0x70] sm:$0xff]  }
 0x955   :  { %13127 = vmatprep.subr.bf16.mxu1 %v17195_v7  ;;  %v17283_v0 = vld [vmem:[#allocation13 + $0x30] sm:$0xff]   ;;  %v17284_v7 = vld [vmem:[#allocation13 + $0x68] sm:$0xff]  }
 0x957   :  { %12696 = vmatpush2.bf16.msra.mxu0 %v17190_v11  ;;  %v17285_v11 = vld [vmem:[#allocation13 + $0x28] sm:$0xff]  }
 0x958   :  { %13128 = vmatpush2.bf16.msra.mxu1 %v17193_v43  ;;  %12697 = vmatprep.subr.bf16.mxu0 %v17198_v18  ;;  %v17286_v43 = vld [vmem:[#allocation13 + $0x60] sm:$0xff]  }
 0x959   :  { %13129 = vmatprep.subr.bf16.mxu1 %v17201_v62  ;;  %v17287_v18 = vld [vmem:[#allocation13 + $0x20] sm:$0xff]   ;;  %v17288_v62 = vld [vmem:[#allocation13 + $0x58] sm:$0xff]  }
 0x95b   :  { %12698 = vmatpush2.bf16.msra.mxu0 %v17196_v21  ;;  %v17289_v21 = vld [vmem:[#allocation13 + $0x18] sm:$0xff]  }
 0x95c   :  { %13130 = vmatpush2.bf16.msra.mxu1 %v17199_v3  ;;  %12699 = vmatprep.subr.bf16.mxu0 %v17204_v48  ;;  %v17291_v3 = vld [vmem:[#allocation13 + $0x10] sm:$0xff]   ;;  %v17292_v48 = vld [vmem:[#allocation13 + $0x48] sm:$0xff]  }
 0x95d   :  { %13131 = vmatprep.subr.bf16.mxu1 %v17207_v44  ;;  %v17293_v44 = vld [vmem:[#allocation13 + $0x8] sm:$0xff]  }
 0x95f   :  { %12700 = vmatpush2.bf16.msra.mxu0 %v17202_v6  ;;  %v17294_v6 = vld [vmem:[#allocation13 + $0x40] sm:$0xff]  }
 0x960   :  { %13132 = vmatpush2.bf16.msra.mxu1 %v17205_v45  ;;  %12701 = vmatprep.subr.bf16.mxu0 %v17210_v60  ;;  %v17295_v45 = vld [vmem:[#allocation13] sm:$0xff]   ;;  %v9891_v60 = vpop.f32.mrf.mxu1 }
 0x961   :  { %13133 = vmatprep.subr.bf16.mxu1 %v17213_v25 }
 0x962   :  { %v9893_v25 = vpop.f32.mrf.mxu1 }
 0x963   :  { %12702 = vmatpush2.bf16.msra.mxu0 %v17208_v38  ;;  %v9934_v38 = vpop.f32.mrf.mxu0 }
 0x964   :  { %13134 = vmatpush2.bf16.msra.mxu1 %v17211_v22  ;;  %12703 = vmatprep.subr.bf16.mxu0 %v17216_v37  ;;  %v9895_v22 = vpop.f32.mrf.mxu1 }
 0x965   :  { %13135 = vmatprep.subr.bf16.mxu1 %v17219_v16  ;;  %v9936_v37 = vpop.f32.mrf.mxu0 }
 0x966   :  { %v9897_v16 = vpop.f32.mrf.mxu1 }
 0x967   :  { %12704 = vmatpush2.bf16.msra.mxu0 %v17214_v34 }
 0x968   :  { %13136 = vmatpush2.bf16.msra.mxu1 %v17217_v8  ;;  %12705 = vmatprep.subr.bf16.mxu0 %v17222_v41  ;;  %v10297_v34 = vpop.f32.mrf.mxu1  ;;  %v9938_v8 = vpop.f32.mrf.mxu0 }
 0x969   :  { %13137 = vmatprep.subr.bf16.mxu1 %v17225_v26 }
 0x96a   :  { %v10299_v41 = vpop.f32.mrf.mxu1  ;;  %v9940_v26 = vpop.f32.mrf.mxu0 }
 0x96b   :  { %12706 = vmatpush2.bf16.msra.mxu0 %v17220_v13 }
 0x96c   :  { %13138 = vmatpush2.bf16.msra.mxu1 %v17223_v51  ;;  %12707 = vmatprep.subr.bf16.mxu0 %v17228_v50  ;;  %v10340_v13 = vpop.f32.mrf.mxu0  ;;  %v10301_v51 = vpop.f32.mrf.mxu1 }
 0x96d   :  { %13139 = vmatprep.subr.bf16.mxu1 %v17231_v28 }
 0x96e   :  { %v10342_v50 = vpop.f32.mrf.mxu0  ;;  %v10303_v28 = vpop.f32.mrf.mxu1 }
 0x96f   :  { %12708 = vmatpush2.bf16.msra.mxu0 %v17226_v63 }
 0x970   :  { %13140 = vmatpush2.bf16.msra.mxu1 %v17229_v29  ;;  %13152 = vmatprep.subr.bf16.mxu0 %v17234_v32  ;;  %v10768_v63 = vpop.f32.mrf.mxu1  ;;  %v10344_v29 = vpop.f32.mrf.mxu0 }
 0x971   :  { %15497 = vmatprep.subr.bf16.mxu1 %v17280_v55 }
 0x972   :  { %12710 = vmatmul.mubr.bf16.vlgmr.msra.gmra.mxu0 %v23195_v1  ;;  %v17249_v1 = vld [vmem:[#allocation10 + $0xf24] ss:$8 sps:$4 sm:$0xff]   ;;  %v10770_v32 = vpop.f32.mrf.mxu1 }
 0x973   :  { %13142 = vmatmul.mubr.bf16.vlgmr.msra.gmra.mxu1 %v23066_v59  ;;  %13153 = vmatpush1.bf16.msra.mxu0 %v17232_v19  ;;  %v17247_v59 = vld [vmem:[#allocation10 + $0xf20] ss:$8 sps:$4 sm:$0xff]   ;;  %v10346_v19 = vpop.f32.mrf.mxu0 }
 0x974   :  { %13184 = vmatprep.mubr.bf16.mxu0 %v23208_v14  ;;  %13154 = vmatprep.subr.bf16.mxu0 %v17237_v31  ;;  %v17250_v14 = vld [vmem:[#allocation10 + $0xf10] ss:$8 sps:$4 sm:$0xff]  }
 0x975   :  { %15498 = vmatpush3.bf16.msra.mxu1 %v17281_v27  ;;  %v10811_v31 = vpop.f32.mrf.mxu0 }
 0x976   :  { %15499 = vmatprep.subr.bf16.mxu1 %v17282_v58 }
 0x977   :  { %13155 = vmatpush1.bf16.msra.mxu0 %v17235_v24  ;;  %v10772_v24 = vpop.f32.mrf.mxu1 }
 0x978   :  { %13156 = vmatprep.subr.bf16.mxu0 %v17240_v46  ;;  %v10813_v46 = vpop.f32.mrf.mxu0 }
 0x979   :  { %15500 = vmatpush3.bf16.msra.mxu1 %v17283_v0  ;;  %v9937_v0 = vadd.f32 %v9936_v37, %v9893_v25 }
 0x97a   :  { %15501 = vmatprep.subr.bf16.mxu1 %v17284_v7  ;;  %v9935_v7 = vadd.f32 %v9934_v38, %v9891_v60 }
 0x97b   :  { %13157 = vmatpush1.bf16.msra.mxu0 %v17238_v53  ;;  %v10774_v53 = vpop.f32.mrf.mxu1 }
 0x97c   :  { %13158 = vmatprep.subr.bf16.mxu0 %v17243_v56 }
 0x97d   :  { %15502 = vmatpush3.bf16.msra.mxu1 %v17285_v11  ;;  %v11243_v56 = vpop.f32.mrf.mxu1 }
 0x97e   :  { %15503 = vmatprep.subr.bf16.mxu1 %v17286_v43  ;;  %v9939_v43 = vadd.f32 %v9938_v8, %v9895_v22 }
 0x97f   :  { %13159 = vmatpush1.bf16.msra.mxu0 %v17241_v17  ;;  %v10815_v17 = vpop.f32.mrf.mxu0 }
 0x980   :  { %13160 = vmatprep.subr.bf16.mxu0 %v17246_v47  ;;  %v11245_v47 = vpop.f32.mrf.mxu1  ;;  %v10816_v25 = vadd.f32 %v10815_v17, %v10772_v24 }
 0x981   :  { %15504 = vmatpush3.bf16.msra.mxu1 %v17287_v18  ;;  %v9941_v18 = vadd.f32 %v9940_v26, %v9897_v16 }
 0x982   :  { %15505 = vmatprep.subr.bf16.mxu1 %v17288_v62 }
 0x983   :  { %13161 = vmatpush1.bf16.msra.mxu0 %v17244_v20  ;;  %v10817_v20 = vpop.f32.mrf.mxu0  ;;  %v10304_v60 = vadd.f32 %v10303_v28, %v9941_v18 }
 0x984   :  { %13162 = vmatprep.subr.bf16.mxu0 %v17249_v1  ;;  %v10818_v8 = vadd.f32 %v10817_v20, %v10774_v53 }
 0x985   :  { %15506 = vmatpush3.bf16.msra.mxu1 %v17289_v21  ;;  %v11286_v1 = vpop.f32.mrf.mxu0  ;;  %v10300_v21 = vadd.f32 %v10299_v41, %v9937_v0 }
 0x986   :  { %v11287_v22 = vadd.f32 %v11286_v1, %v11243_v56 }
 0x987   :  { %13163 = vmatpush1.bf16.msra.mxu0 %v17247_v59  ;;  %v11247_v59 = vpop.f32.mrf.mxu1 }
 0x988   :  { %13164 = vmatprep.subr.bf16.mxu0 %v17252_v39  ;;  %v11288_v39 = vpop.f32.mrf.mxu0 }
 0x989   :  { %v11289_v37 = vadd.f32 %v11288_v39, %v11245_v47 }
 0x98b   :  { %13165 = vmatpush1.bf16.msra.mxu0 %v17250_v14  ;;  %v11249_v14 = vpop.f32.mrf.mxu1 }
 0x98c   :  { %13166 = vmatprep.subr.bf16.mxu0 %v17255_v12 }
 0x98d   :  { %v11718_v12 = vpop.f32.mrf.mxu1 }
 0x98f   :  { %13167 = vmatpush1.bf16.msra.mxu0 %v17253_v35  ;;  %v11290_v35 = vpop.f32.mrf.mxu0 }
 0x990   :  { %13168 = vmatprep.subr.bf16.mxu0 %v17258_v61  ;;  %v11720_v61 = vpop.f32.mrf.mxu1 }
 0x993   :  { %13169 = vmatpush2.bf16.msra.mxu0 %v17256_v57  ;;  %v11292_v57 = vpop.f32.mrf.mxu0 }
 0x994   :  { %13170 = vmatprep.subr.bf16.mxu0 %v17261_v15 }
 0x997   :  { %13171 = vmatpush2.bf16.msra.mxu0 %v17259_v52  ;;  %v11722_v52 = vpop.f32.mrf.mxu1 }
 0x998   :  { %13172 = vmatprep.subr.bf16.mxu0 %v17264_v36 }
 0x99b   :  { %13173 = vmatpush2.bf16.msra.mxu0 %v17262_v2  ;;  %v11724_v2 = vpop.f32.mrf.mxu1 }
 0x99c   :  { %13174 = vmatprep.subr.bf16.mxu0 %v17267_v10 }
 0x99f   :  { %13175 = vmatpush2.bf16.msra.mxu0 %v17265_v54 }
 0x9a0   :  { %13176 = vmatprep.subr.bf16.mxu0 %v17270_v40 }
 0x9a3   :  { %13177 = vmatpush2.bf16.msra.mxu0 %v17268_v49 }
 0x9a4   :  { %13178 = vmatprep.subr.bf16.mxu0 %v17273_v9 }
 0x9a7   :  { %13179 = vmatpush2.bf16.msra.mxu0 %v17271_v5 }
 0x9a8   :  { %13180 = vmatprep.subr.bf16.mxu0 %v17276_v4 }
 0x9ab   :  { %13181 = vmatpush2.bf16.msra.mxu0 %v17274_v42 }
 0x9ac   :  { %13182 = vmatprep.subr.bf16.mxu0 %v17279_v23 }
 0x9af   :  { %13183 = vmatpush2.bf16.msra.mxu0 %v17277_v30 }
 0x9b2   :  { %13185 = vmatmul.mubr.bf16.vlgmr.msra.gmra.mxu0 %v23206_v33  ;;  %v17290_v33 = vld [vmem:[#allocation13 + $0x50] sm:$0xff]   ;;  %v11761_v15 = vpop.f32.mrf.mxu0 }
 0x9b3   :  { %15507 = vmatprep.subr.bf16.mxu1 %v17290_v33  ;;  %v12193_v10 = vpop.f32.mrf.mxu1  ;;  %v10814_v33 = vadd.f32 %v10813_v46, %v10770_v32  ;;  %v11291_v32 = vadd.f32 %v11290_v35, %v11247_v59 }
 0x9b4   :  { %15508 = vmatpush3.bf16.msra.mxu1 %v17291_v3  ;;  %v11763_v36 = vpop.f32.mrf.mxu0  ;;  %v10298_v3 = vadd.f32 %v10297_v34, %v9935_v7  ;;  %v10347_v7 = vadd.f32 %v10346_v19, %v10304_v60 }
 0x9b5   :  { %15509 = vmatprep.subr.bf16.mxu1 %v17292_v48  ;;  %v12195_v40 = vpop.f32.mrf.mxu1  ;;  %v10812_v48 = vadd.f32 %v10811_v31, %v10768_v63  ;;  %v11764_v46 = vadd.f32 %v11763_v36, %v11720_v61  ;;  %v11293_v31 = vadd.f32 %v11292_v57, %v11249_v14  ;;  %v11762_v63 = vadd.f32 %v11761_v15, %v11718_v12 }
 0x9b6   :  { %v11765_v54 = vpop.f32.mrf.mxu0  ;;  %v10341_v38 = vadd.f32 %v10340_v13, %v10298_v3  ;;  %v10823_v24 = vadd.f32 %v10818_v8, %v10347_v7  ;;  %v15198_v7 = vld [vmem:[#allocation15] ss:$0 sm:$0xff] }
 0x9b7   :  { %v12197_v5 = vpop.f32.mrf.mxu1 }
 0x9b8   :  { %15510 = vmatpush3.bf16.msra.mxu1 %v17293_v44  ;;  %v11767_v49 = vpop.f32.mrf.mxu0  ;;  %v10820_v34 = vadd.f32 %v10812_v48, %v10341_v38  ;;  %v11298_v59 = vadd.f32 %v11293_v31, %v10823_v24 }
 0x9b9   :  { %15511 = vmatprep.subr.bf16.mxu1 %v17294_v6  ;;  %v12199_v42 = vpop.f32.mrf.mxu1  ;;  %v10343_v6 = vadd.f32 %v10342_v50, %v10300_v21  ;;  %v11768_v13 = vadd.f32 %v11767_v49, %v11724_v2 }
 0x9ba   :  { %v11295_v17 = vadd.f32 %v11287_v22, %v10820_v34 }
 0x9bb   :  { %v10821_v41 = vadd.f32 %v10814_v33, %v10343_v6  ;;  %v11773_v15 = vadd.f32 %v11768_v13, %v11298_v59 }
 0x9bc   :  { %15512 = vmatpush3.bf16.msra.mxu1 %v17295_v45  ;;  %v10302_v45 = vadd.f32 %v10301_v51, %v9939_v43  ;;  %v11766_v43 = vadd.f32 %v11765_v54, %v11722_v52  ;;  %v11770_v39 = vadd.f32 %v11762_v63, %v11295_v17 }
 0x9bd   :  { %v11296_v50 = vadd.f32 %v11289_v37, %v10821_v41 }
 0x9be   :  { %v10345_v0 = vadd.f32 %v10344_v29, %v10302_v45 }
 0x9bf   :  { %v11771_v20 = vadd.f32 %v11764_v46, %v11296_v50 }
 0x9c0   :  { %v10822_v21 = vadd.f32 %v10816_v25, %v10345_v0 }
 0x9c2   :  { %v11297_v47 = vadd.f32 %v11291_v32, %v10822_v21 }
 0x9c4   :  { %v11772_v14 = vadd.f32 %v11766_v43, %v11297_v47 }
 0x9f2   :  { %v12236_v9 = vpop.f32.mrf.mxu0 }
 0x9f3   :  { %v12668_v23 = vpop.f32.mrf.mxu1  ;;  %v12237_v28 = vadd.f32 %v12236_v9, %v12193_v10  ;;  %v13199_v9 = vld [vmem:[#allocation12] sm:$0x3] }
 0x9f4   :  { %v12238_v4 = vpop.f32.mrf.mxu0 }
 0x9f5   :  { %v12670_v55 = vpop.f32.mrf.mxu1  ;;  %v12239_v51 = vadd.f32 %v12238_v4, %v12195_v40  ;;  %v12245_v52 = vadd.f32 %v12237_v28, %v11770_v39 }
 0x9f6   :  { %v12240_v30 = vpop.f32.mrf.mxu0 }
 0x9f7   :  { %v12672_v11 = vpop.f32.mrf.mxu1  ;;  %v12241_v29 = vadd.f32 %v12240_v30, %v12197_v5  ;;  %v12246_v12 = vadd.f32 %v12239_v51, %v11771_v20  ;;  %v23995_v30 = vld [vmem:[#allocation56_spill] sm:$0xff] }
 0x9f8   :  { %v12242_v27 = vpop.f32.mrf.mxu0 }
 0x9f9   :  { %v12674_v44 = vpop.f32.mrf.mxu1  ;;  %v12243_v61 = vadd.f32 %v12242_v27, %v12199_v42  ;;  %v12247_v10 = vadd.f32 %v12241_v29, %v11772_v14 }
 0xa32   :  { %v12711_v58 = vpop.f32.mrf.mxu0 }
 0xa33   :  { %v13143_v16 = vpop.f32.mrf.mxu1  ;;  %v12712_v19 = vadd.f32 %v12711_v58, %v12668_v23  ;;  %v12248_v23 = vadd.f32 %v12243_v61, %v11773_v15 }
 0xa34   :  { %v12713_v62 = vpop.f32.mrf.mxu0 }
 0xa35   :  { %v13145_v53 = vpop.f32.mrf.mxu1  ;;  %v12714_v1 = vadd.f32 %v12713_v62, %v12670_v55  ;;  %v12720_v5 = vadd.f32 %v12712_v19, %v12245_v52  ;;  %v13208_v55 = vrot.slane %v13199_v9, %v23995_v30 }
 0xa36   :  { %v12715_v26 = vpop.f32.mrf.mxu0 }
 0xa37   :  { %v12716_v57 = vadd.f32 %v12715_v26, %v12672_v11  ;;  %v13147_v36 = vpop.f32.mrf.mxu1  ;;  %v12721_v40 = vadd.f32 %v12714_v1, %v12246_v12  ;;  %v23996_v11 = vld [vmem:[#allocation54_spill] sm:$0xff] }
 0xa38   :  { %v12717_v56 = vpop.f32.mrf.mxu0  ;;  %v13204_v3 = vrot.slane %v13199_v9, %v23996_v11 }
 0xa39   :  { %v12718_v49 = vadd.f32 %v12717_v56, %v12674_v44  ;;  %v12722_v58 = vadd.f32 %v12716_v57, %v12247_v10  ;;  %v13149_v42 = vpop.f32.mrf.mxu1 }
 0xa3b   :  { %v12723_v6 = vadd.f32 %v12718_v49, %v12248_v23 }
 0xa72   :  { %v13186_v35 = vpop.f32.mrf.mxu0 }
 0xa73   :  { %v13187_v54 = vadd.f32 %v13186_v35, %v13143_v16 }
 0xa74   :  { %v13188_v2 = vpop.f32.mrf.mxu0 }
 0xa75   :  { %v13189_v4 = vadd.f32 %v13188_v2, %v13145_v53  ;;  %v13195_v27 = vadd.f32 %v13187_v54, %v12720_v5 }
 0xa76   :  { %v13190_v18 = vpop.f32.mrf.mxu0 }
 0xa77   :  { %v13196_v62 = vadd.f32 %v13189_v4, %v12721_v40  ;;  %v13191_v33 = vadd.f32 %v13190_v18, %v13147_v36  ;;  %v13211_v60 = vadd.f32 %v13204_v3, %v13195_v27 }
 0xa78   :  { %v13192_v48 = vpop.f32.mrf.mxu0 }
 0xa79   :  { %v13197_v45 = vadd.f32 %v13191_v33, %v12722_v58  ;;  %v13193_v25 = vadd.f32 %v13192_v48, %v13149_v42  ;;  %v13212_v37 = vadd.f32 %v13208_v55, %v13196_v62  ;;  %v13215_v0 = vmax.f32 %v13211_v60, 0.0 }
 0xa7b   :  { %v13213_v44 = vadd.f32 %v13204_v3, %v13197_v45  ;;  %v13198_v38 = vadd.f32 %v13193_v25, %v12723_v6  ;;  %v13216_v16 = vmax.f32 %v13212_v37, 0.0 }
 0xa7d   :  { %v13214_v8 = vadd.f32 %v13208_v55, %v13198_v38  ;;  %v13217_v22 = vmax.f32 %v13213_v44, 0.0 }
 0xa7f   :  { %v13218_v26 = vmax.f32 %v13214_v8, 0.0  ;;  %v13219_v32 = vpack.c.bf16 %v13217_v22, %v13215_v0 }
 0xa81   :  { %v13220_v41 = vpack.c.bf16 %v13218_v26, %v13216_v16 }
 0xa83   :  { %13388 = vmatprep.mubr.bf16.mxu1 %v13220_v41 }
 0xa84   :  { %13389 = vmatmul.mubr.bf16.vlgmr.msra.gmra.mxu1 %v13219_v32 }
 0xb44   :  { %v15513_v46 = vpop.f32.mrf.mxu1 }
 0xb46   :  { %v15514_v34 = vpop.f32.mrf.mxu1 }
 0xb47   :  { %v15515_v31 = vadd.f32 %v15514_v34, %v15513_v46 }
 0xb48   :  { %v15516_v63 = vpop.f32.mrf.mxu1 }
 0xb49   :  { %v13391_v21 = vadd.f32 %v15515_v31, %v15198_v7 }
 0xb4a   :  { %v15517_v50 = vpop.f32.mrf.mxu1 }
 0xb4b   :  { %v15518_v43 = vadd.f32 %v15517_v50, %v15516_v63  ;;  %13399 = vrot.lane.b32.xlu0 %v13391_v21, %s17501_s7 }
 0xb4d   :  { %v13394_v51 = vadd.f32 %v15518_v43, %v15198_v7 }
 0xb4f   :  { %13401 = vrot.lane.b32.xlu0 %v13394_v51, %s17501_s7 }
 0xb53   :  { %13418 = vperm.xlu0 %15642, %v13391_v21  }
 0xbbd   :  { %v13400_v24 = vpop.permute.xlu0 %13399 }
 0xbbe   :  { %v13406_v17 = vsel %vm13405_vm2, %v13400_v24, 0.0 }
 0xbbf   :  { %13407 = vadd.xlane.f32.xlu1 %v13406_v17 }
 0xbc1   :  { %v13402_v13 = vpop.permute.xlu0 %13401 }
 0xbc2   :  { %v13409_v28 = vsel %vm13405_vm2, %v13402_v13, 0.0 }
 0xbc3   :  { %13410 = vadd.xlane.f32.xlu1 %v13409_v28 }
 0xbce   :  { %v13419_v20 = vpop.permute.xlu0 %13418 }
 0xbd4   :  { %13422 = vperm.xlu1 %15643, %v13394_v51  }
 0xc48   :  { %v13408_v53 = vpop.xlane.xlu1 %13407 }
 0xc49   :  { %v13413_v56 = vmul.f32 0.16666667, %v13408_v53 }
 0xc4b   :  { %v13415_v47 = vsub.f32 %v13391_v21, %v13413_v56 }
 0xc4c   :  { %v13411_v29 = vpop.xlane.xlu1 %13410 }
 0xc4d   :  { %v13425_v1 = vadd.f32 %v13419_v20, %v13415_v47  ;;  %v13414_v59 = vmul.f32 0.16666667, %v13411_v29 }
 0xc4f   :  { %13427 = vst [vmem:[%s23255_s13] sm:$0xff] %v13425_v1  ;;  %v13416_v39 = vsub.f32 %v13394_v51, %v13414_v59 }
 0xc50   :  { %v13423_v19 = vpop.permute.xlu1 %13422 }
 0xc51   :  { %v13426_v35 = vadd.f32 %v13423_v19, %v13416_v39 }
 0xc53   :  { %13428 = vst [vmem:[%s23255_s13 + $0x8] sm:$0xff] %v13426_v35 }
 0xc54   :  { %13433 = vsyncpa [#allocation3], 1 }
 0xc55   :  { %13434 = vsyncpa [#allocation5], 1 }
 0xc56   :  { %13435 = vsyncpa [#allocation8], 1 }
 0xc57   :  { %13436 = vsyncpa [#allocation11], 1 }
 0xc58   :  { %13437 = vsyncpa [#allocation14], 1 }

</bundles_post_ra>
